<compile_context>
chip_gen: v5e
topology: v5e:2x2
jax: 0.10.0
libtpu: 0.0.40
codegen_flags: <defaults>
</compile_context>

<pallas_src>
import numpy as np
import jax
import jax.numpy as jnp
from jax.experimental import pallas as pl
from jax.experimental.pallas import tpu as pltpu

PI = float(np.pi)
INV_PI = float(1.0 / np.pi)
INV_HALF_PI = float(1.0 / (0.5 * np.pi))
FLOOR_Z = -1.6
CEIL_Z = 1.6
EPS = 1e-12
CUBOID_AXES = ((-1.0, 1.0), (-1.0, -1.0), (1.0, -1.0), (1.0, 1.0))

SUBLANES_PER_TILE = 8          # batch sublanes per grid step (each quantity = 1 vreg)
LANES = 128                    # TPU lane width
TILE_B = SUBLANES_PER_TILE * LANES   # 1024 samples per grid step


# ---------- small 3x3 helpers (operate on nested lists of (8,128) arrays) ----------
def _adj3(m):
    (m00, m01, m02), (m10, m11, m12), (m20, m21, m22) = m
    c00 = m11 * m22 - m12 * m21
    c01 = -(m10 * m22 - m12 * m20)
    c02 = m10 * m21 - m11 * m20
    c10 = -(m01 * m22 - m02 * m21)
    c11 = m00 * m22 - m02 * m20
    c12 = -(m00 * m21 - m01 * m20)
    c20 = m01 * m12 - m02 * m11
    c21 = -(m00 * m12 - m02 * m10)
    c22 = m00 * m11 - m01 * m10
    # adjugate = transpose of cofactor matrix
    return [[c00, c10, c20], [c01, c11, c21], [c02, c12, c22]]


def _matmul3(a, b):
    return [[sum(a[i][k] * b[k][j] for k in range(3)) for j in range(3)] for i in range(3)]


def _basis_matrix(xs, ys):
    """Matrix (up to per-sample scale) mapping the canonical projective basis to the 4 points."""
    ones = jnp.ones_like(xs[0])
    M = [[xs[0], xs[1], xs[2]], [ys[0], ys[1], ys[2]], [ones, ones, ones]]
    adjM = _adj3(M)
    p3 = [xs[3], ys[3], ones]
    lam = [sum(adjM[i][k] * p3[k] for k in range(3)) for i in range(3)]
    return [[M[i][j] * lam[j] for j in range(3)] for i in range(3)]


def _ranks4(keys):
    """Ascending (stable) sort position of each of the 4 key arrays."""
    ranks = []
    for i in range(4):
        r = jnp.zeros_like(keys[0])
        for j in range(4):
            if j == i:
                continue
            r = r + jnp.where(keys[j] < keys[i], 1.0, 0.0)
            if j < i:
                r = r + jnp.where(keys[j] == keys[i], 1.0, 0.0)
        ranks.append(r)
    return ranks


# -------------------------------- the Pallas kernel --------------------------------
def _cuboid_kernel(corners_ref, out_ref):
    # corners_ref / out_ref blocks: (16, SUBLANES_PER_TILE, LANES).
    # Row r holds one corner component for 1024 samples, dense in sublane AND lane.
    def row(r):
        return corners_ref[r]

    def fast_inv(x):
        # approx EUP reciprocal + one Newton step (VALU) -> ~f32 accuracy, no divide.
        r = pl.reciprocal(x, approx=True)
        return r * (2.0 - x * r)

    top_u = [row(2 * i) for i in range(4)]
    top_v = [row(2 * i + 1) for i in range(4)]
    bot_u = [row(8 + 2 * i) for i in range(4)]
    bot_v = [row(8 + 2 * i + 1) for i in range(4)]

    def scale_all(xs, ys):
        def dist(i, j):
            return jnp.sqrt((xs[i] - xs[j]) ** 2 + (ys[i] - ys[j]) ** 2)
        a_x = 0.5 * (dist(0, 1) + dist(2, 3))
        a_y = 0.5 * (dist(1, 2) + dist(3, 0))
        return a_y, a_x  # matches torch.stack([a_y, a_x], dim=1)

    # ----- floor plane XY (from bottom corners); sin/cos cached once -----
    fu = [bot_u[i] * PI for i in range(4)]
    fv = [bot_v[i] * (-0.5 * PI) for i in range(4)]
    sin_fu = [jnp.sin(x) for x in fu]
    cos_fu = [jnp.cos(x) for x in fu]
    sin_fv = [jnp.sin(x) for x in fv]
    cos_fv = [jnp.cos(x) for x in fv]
    tan_fv = [sin_fv[i] / cos_fv[i] for i in range(4)]   # reused below for ceil_floor_z

    fx, fy = [], []
    for i in range(4):
        fc = FLOOR_Z / tan_fv[i]
        fx.append(fc * sin_fu[i])
        fy.append(-fc * cos_fu[i])
    f_sy, f_sx = scale_all(fx, fy)
    f_sy, f_sx = 0.5 * f_sy, 0.5 * f_sx

    # ----- ceiling plane XY (from top corners) with ceiling-height fix -----
    cu = [top_u[i] * PI for i in range(4)]
    cv = [top_v[i] * (-0.5 * PI) for i in range(4)]
    sin_cu = [jnp.sin(x) for x in cu]
    cos_cu = [jnp.cos(x) for x in cu]
    sin_cv = [jnp.sin(x) for x in cv]
    cos_cv = [jnp.cos(x) for x in cv]
    cot_cv = [cos_cv[i] / sin_cv[i] for i in range(4)]   # 1/tan(cv), shared by both passes

    cf_acc = jnp.zeros_like(top_u[0])
    for i in range(4):
        cc0 = CEIL_Z * cot_cv[i]
        cx0 = cc0 * sin_cu[i]
        cy0 = -cc0 * cos_cu[i]
        cf_c = jnp.sqrt(cx0 * cx0 + cy0 * cy0)
        cf_acc = cf_acc + cf_c * tan_fv[i]               # tan(bot_v*-pi/2) reused, not recomputed
    ceil_floor_z = 0.25 * cf_acc
    fix_ceil = -CEIL_Z / ceil_floor_z
    ceil_z_fix = CEIL_Z * fix_ceil                       # (8,128) per-sample

    cx, cy = [], []
    for i in range(4):
        cc = ceil_z_fix * cot_cv[i]
        cx.append(cc * sin_cu[i])
        cy.append(-cc * cos_cu[i])
    c_sy, c_sx = scale_all(cx, cy)
    c_sy, c_sx = 0.5 * c_sy, 0.5 * c_sx

    # ----- joint XY / scale / centering -----
    jx = [0.5 * (fx[i] + cx[i]) for i in range(4)]
    jy = [0.5 * (fy[i] + cy[i]) for i in range(4)]
    j_sy = 0.5 * (f_sy + c_sy)
    j_sx = 0.5 * (f_sx + c_sx)
    jcx = 0.25 * (jx[0] + jx[1] + jx[2] + jx[3])
    jcy = 0.25 * (jy[0] + jy[1] + jy[2] + jy[3])
    jx = [jx[i] - jcx for i in range(4)]
    jy = [jy[i] - jcy for i in range(4)]
    ox = [jx[i] + jcx for i in range(4)]                 # "original_xy"
    oy = [jy[i] + jcy for i in range(4)]

    # ----- angular sort of the centered joint points (exact path: feeds the rank tie-break) -----
    ang = [jnp.arctan2(jx[i], jy[i] + EPS) for i in range(4)]
    ranks = _ranks4(ang)

    axes_x, axes_y, ox_p, oy_p = [], [], [], []
    for k in range(4):
        ax = jnp.zeros_like(jx[0])
        ay = jnp.zeros_like(jx[0])
        px = jnp.zeros_like(jx[0])
        py = jnp.zeros_like(jx[0])
        for i in range(4):
            sel = jnp.where(ranks[i] == float(k), 1.0, 0.0)
            ax = ax + sel * CUBOID_AXES[i][0]
            ay = ay + sel * CUBOID_AXES[i][1]
            px = px + sel * ox[i]
            py = py + sel * oy[i]
        axes_x.append(ax)
        axes_y.append(ay)
        ox_p.append(px)
        oy_p.append(py)

    # ----- 4-point homography: joint_xy (src) -> permuted cuboid axes (dst) -----
    A = _basis_matrix(jx, jy)
    Bm = _basis_matrix(axes_x, axes_y)
    H = _matmul3(Bm, _adj3(A))                           # homography up to per-sample scale

    rect_x, rect_y = [], []
    for i in range(4):
        w = H[2][0] * jx[i] + H[2][1] * jy[i] + H[2][2]
        inv_w = fast_inv(w)                              # shared by X/w and Y/w
        X = H[0][0] * jx[i] + H[0][1] * jy[i] + H[0][2]
        Y = H[1][0] * jx[i] + H[1][1] * jy[i] + H[1][2]
        rect_x.append(X * inv_w * j_sy + jcx)
        rect_y.append(Y * inv_w * j_sx + jcy)

    # ----- Procrustes (closed-form 2D SVD alignment), replicating reference quirks -----
    c1x = 0.25 * (rect_x[0] + rect_x[1] + rect_x[2] + rect_x[3])
    c1y = 0.25 * (rect_y[0] + rect_y[1] + rect_y[2] + rect_y[3])
    K00 = jnp.zeros_like(c1x)
    K01 = jnp.zeros_like(c1x)
    K10 = jnp.zeros_like(c1x)
    K11 = jnp.zeros_like(c1x)
    var = jnp.zeros_like(c1x)
    for i in range(4):
        a0 = rect_x[i] - c1x
        a1 = rect_y[i] - c1y
        b0 = ox_p[i] - c1x          # reference uses centroid of points1 for both sets
        b1 = oy_p[i] - c1y
        var = var + a0 * a0 + a1 * a1
        K00 = K00 + a0 * b0
        K01 = K01 + a0 * b1
        K10 = K10 + a1 * b0
        K11 = K11 + a1 * b1
    theta = jnp.arctan2(K01 - K10, K00 + K11)
    cth = jnp.cos(theta)
    sth = jnp.sin(theta)
    s_scale = (cth * (K00 + K11) + sth * (K01 - K10)) * fast_inv(var)
    t_x = c1x - s_scale * (cth * c1x - sth * c1y)
    t_y = c1y - s_scale * (sth * c1x + cth * c1y)
    fin_x = [s_scale * (cth * rect_x[i] - sth * rect_y[i]) + t_x for i in range(4)]
    fin_y = [s_scale * (sth * rect_x[i] + cth * rect_y[i]) + t_y for i in range(4)]

    # ----- project 3D cuboid points back to panorama UV -----
    # phi and xy_dist are identical for the top and bottom rings (same x,y) -> compute once.
    floor_z_arr = jnp.full_like(ceil_z_fix, FLOOR_Z)
    us, tvs, bvs = [], [], []
    for i in range(4):
        phi = jnp.arctan2(fin_x[i], -fin_y[i] + EPS)
        xyd = jnp.sqrt(fin_x[i] * fin_x[i] + fin_y[i] * fin_y[i])
        us.append(phi * INV_PI)
        tvs.append(-jnp.arctan2(ceil_z_fix, xyd + EPS) * INV_HALF_PI)
        bvs.append(-jnp.arctan2(floor_z_arr, xyd + EPS) * INV_HALF_PI)

    # ----- sort each ring by u (ascending); u keys are identical for both rings -> one rank set -----
    rks = _ranks4(us)
    for k in range(4):
        su = jnp.zeros_like(us[0])
        tv = jnp.zeros_like(us[0])
        bv = jnp.zeros_like(us[0])
        for i in range(4):
            sel = jnp.where(rks[i] == float(k), 1.0, 0.0)
            su = su + sel * us[i]
            tv = tv + sel * tvs[i]
            bv = bv + sel * bvs[i]
        # store each sorted row directly (no concatenate; lane-dense (8,128) stores)
        out_ref[2 * k] = su
        out_ref[2 * k + 1] = tv
        out_ref[8 + 2 * k] = su
        out_ref[8 + 2 * k + 1] = bv


# -------------------------------- wrapper --------------------------------
def cuboid_fitting(corners, *, sublanes_per_tile=SUBLANES_PER_TILE):
    """corners: (B, 8, 2) float32 — first 4 rows top corners, last 4 bottom corners."""
    bsz = corners.shape[0]
    tile_b = sublanes_per_tile * LANES
    x = corners.reshape(bsz, 16).astype(jnp.float32)

    n_tiles = -(-bsz // tile_b)
    n_tiles = max(n_tiles, 1)
    bpad = n_tiles * tile_b
    if bpad != bsz:
        # edge-replicate padding: keeps padded lanes numerically benign (no div-by-zero lanes)
        x = jnp.concatenate([x, jnp.broadcast_to(x[-1:], (bpad - bsz, 16))], axis=0)

    # SoA layout: batch spread over (sublane, lane).
    # TODO(synk): if the caller can supply/consume this (16, B) SoA layout directly, the two
    # XLA transpose passes here (one extra HBM pass each way) disappear entirely.
    x_soa = jnp.transpose(x, (1, 0)).reshape(16, bpad // LANES, LANES)

    out = pl.pallas_call(
        _cuboid_kernel,
        out_shape=jax.ShapeDtypeStruct((16, bpad // LANES, LANES), jnp.float32),
        grid=(n_tiles,),
        in_specs=[pl.BlockSpec((16, sublanes_per_tile, LANES), lambda i: (0, i, 0))],
        out_specs=pl.BlockSpec((16, sublanes_per_tile, LANES), lambda i: (0, i, 0)),
        compiler_params=pltpu.CompilerParams(dimension_semantics=("parallel",)),
    )(x_soa)

    y = jnp.transpose(out.reshape(16, bpad), (1, 0))[:bsz]
    return y.reshape(bsz, 8, 2)


if __name__ == "__main__":
    key = jax.random.PRNGKey(0)
    k1, k2, k3 = jax.random.split(key, 3)
    B = 4
    base_u = jnp.array([-0.75, -0.25, 0.25, 0.75], jnp.float32)
    u = base_u[None, :] + 0.05 * jax.random.normal(k1, (B, 4), jnp.float32)
    top_v = -0.35 + 0.05 * jax.random.normal(k2, (B, 4), jnp.float32)
    bot_v = 0.40 + 0.05 * jax.random.normal(k3, (B, 4), jnp.float32)
    top = jnp.stack([u, top_v], axis=-1)       # (B, 4, 2)
    bottom = jnp.stack([u, bot_v], axis=-1)    # (B, 4, 2)
    corners = jnp.concatenate([top, bottom], axis=1).astype(jnp.float32)  # (B, 8, 2)

    result = cuboid_fitting(corners)
    jax.block_until_ready(result)
    assert result.shape == (B, 8, 2)
    assert bool(jnp.all(jnp.isfinite(result)))
    print("KERNEL_OK")
</pallas_src>

<mosaic_0001>
module attributes {stable_mosaic.version = 11 : i64} {
  func.func @_cuboid_kernel(%arg0: i32, %arg1: memref<16x8x128xf32, #tpu.memory_space<vmem>>, %arg2: memref<16x8x128xf32, #tpu.memory_space<vmem>>) attributes {dimension_semantics = [#tpu.dimension_semantics<parallel>], iteration_bounds = array<i64: 1>, scalar_prefetch = 0 : i64, scratch_operands = 0 : i64, tpu.core_type = #tpu.core_type<tc>, window_params = [{transform_indices = @transform_0, window_bounds = array<i64: 16, 8, 128>}, {transform_indices = @transform_1, window_bounds = array<i64: 16, 8, 128>}]} {
    %c0 = arith.constant 0 : index
    %c0_0 = arith.constant 0 : index
    %c0_1 = arith.constant 0 : index
    %0 = vector.load %arg1[%c0, %c0_0, %c0_1] : memref<16x8x128xf32, #tpu.memory_space<vmem>>, vector<1x8x128xf32>
    %1 = vector.shape_cast %0 : vector<1x8x128xf32> to vector<8x128xf32>
    %c2 = arith.constant 2 : index
    %c0_2 = arith.constant 0 : index
    %c0_3 = arith.constant 0 : index
    %2 = vector.load %arg1[%c2, %c0_2, %c0_3] : memref<16x8x128xf32, #tpu.memory_space<vmem>>, vector<1x8x128xf32>
    %3 = vector.shape_cast %2 : vector<1x8x128xf32> to vector<8x128xf32>
    %c4 = arith.constant 4 : index
    %c0_4 = arith.constant 0 : index
    %c0_5 = arith.constant 0 : index
    %4 = vector.load %arg1[%c4, %c0_4, %c0_5] : memref<16x8x128xf32, #tpu.memory_space<vmem>>, vector<1x8x128xf32>
    %5 = vector.shape_cast %4 : vector<1x8x128xf32> to vector<8x128xf32>
    %c6 = arith.constant 6 : index
    %c0_6 = arith.constant 0 : index
    %c0_7 = arith.constant 0 : index
    %6 = vector.load %arg1[%c6, %c0_6, %c0_7] : memref<16x8x128xf32, #tpu.memory_space<vmem>>, vector<1x8x128xf32>
    %7 = vector.shape_cast %6 : vector<1x8x128xf32> to vector<8x128xf32>
    %c1 = arith.constant 1 : index
    %c0_8 = arith.constant 0 : index
    %c0_9 = arith.constant 0 : index
    %8 = vector.load %arg1[%c1, %c0_8, %c0_9] : memref<16x8x128xf32, #tpu.memory_space<vmem>>, vector<1x8x128xf32>
    %9 = vector.shape_cast %8 : vector<1x8x128xf32> to vector<8x128xf32>
    %c3 = arith.constant 3 : index
    %c0_10 = arith.constant 0 : index
    %c0_11 = arith.constant 0 : index
    %10 = vector.load %arg1[%c3, %c0_10, %c0_11] : memref<16x8x128xf32, #tpu.memory_space<vmem>>, vector<1x8x128xf32>
    %11 = vector.shape_cast %10 : vector<1x8x128xf32> to vector<8x128xf32>
    %c5 = arith.constant 5 : index
    %c0_12 = arith.constant 0 : index
    %c0_13 = arith.constant 0 : index
    %12 = vector.load %arg1[%c5, %c0_12, %c0_13] : memref<16x8x128xf32, #tpu.memory_space<vmem>>, vector<1x8x128xf32>
    %13 = vector.shape_cast %12 : vector<1x8x128xf32> to vector<8x128xf32>
    %c7 = arith.constant 7 : index
    %c0_14 = arith.constant 0 : index
    %c0_15 = arith.constant 0 : index
    %14 = vector.load %arg1[%c7, %c0_14, %c0_15] : memref<16x8x128xf32, #tpu.memory_space<vmem>>, vector<1x8x128xf32>
    %15 = vector.shape_cast %14 : vector<1x8x128xf32> to vector<8x128xf32>
    %c8 = arith.constant 8 : index
    %c0_16 = arith.constant 0 : index
    %c0_17 = arith.constant 0 : index
    %16 = vector.load %arg1[%c8, %c0_16, %c0_17] : memref<16x8x128xf32, #tpu.memory_space<vmem>>, vector<1x8x128xf32>
    %17 = vector.shape_cast %16 : vector<1x8x128xf32> to vector<8x128xf32>
    %c10 = arith.constant 10 : index
    %c0_18 = arith.constant 0 : index
    %c0_19 = arith.constant 0 : index
    %18 = vector.load %arg1[%c10, %c0_18, %c0_19] : memref<16x8x128xf32, #tpu.memory_space<vmem>>, vector<1x8x128xf32>
    %19 = vector.shape_cast %18 : vector<1x8x128xf32> to vector<8x128xf32>
    %c12 = arith.constant 12 : index
    %c0_20 = arith.constant 0 : index
    %c0_21 = arith.constant 0 : index
    %20 = vector.load %arg1[%c12, %c0_20, %c0_21] : memref<16x8x128xf32, #tpu.memory_space<vmem>>, vector<1x8x128xf32>
    %21 = vector.shape_cast %20 : vector<1x8x128xf32> to vector<8x128xf32>
    %c14 = arith.constant 14 : index
    %c0_22 = arith.constant 0 : index
    %c0_23 = arith.constant 0 : index
    %22 = vector.load %arg1[%c14, %c0_22, %c0_23] : memref<16x8x128xf32, #tpu.memory_space<vmem>>, vector<1x8x128xf32>
    %23 = vector.shape_cast %22 : vector<1x8x128xf32> to vector<8x128xf32>
    %c9 = arith.constant 9 : index
    %c0_24 = arith.constant 0 : index
    %c0_25 = arith.constant 0 : index
    %24 = vector.load %arg1[%c9, %c0_24, %c0_25] : memref<16x8x128xf32, #tpu.memory_space<vmem>>, vector<1x8x128xf32>
    %25 = vector.shape_cast %24 : vector<1x8x128xf32> to vector<8x128xf32>
    %c11 = arith.constant 11 : index
    %c0_26 = arith.constant 0 : index
    %c0_27 = arith.constant 0 : index
    %26 = vector.load %arg1[%c11, %c0_26, %c0_27] : memref<16x8x128xf32, #tpu.memory_space<vmem>>, vector<1x8x128xf32>
    %27 = vector.shape_cast %26 : vector<1x8x128xf32> to vector<8x128xf32>
    %c13 = arith.constant 13 : index
    %c0_28 = arith.constant 0 : index
    %c0_29 = arith.constant 0 : index
    %28 = vector.load %arg1[%c13, %c0_28, %c0_29] : memref<16x8x128xf32, #tpu.memory_space<vmem>>, vector<1x8x128xf32>
    %29 = vector.shape_cast %28 : vector<1x8x128xf32> to vector<8x128xf32>
    %c15 = arith.constant 15 : index
    %c0_30 = arith.constant 0 : index
    %c0_31 = arith.constant 0 : index
    %30 = vector.load %arg1[%c15, %c0_30, %c0_31] : memref<16x8x128xf32, #tpu.memory_space<vmem>>, vector<1x8x128xf32>
    %31 = vector.shape_cast %30 : vector<1x8x128xf32> to vector<8x128xf32>
    %cst = arith.constant 3.14159274 : f32
    %32 = vector.broadcast %cst : f32 to vector<8x128xf32>
    %33 = arith.mulf %17, %32 : vector<8x128xf32>
    %cst_32 = arith.constant 3.14159274 : f32
    %34 = vector.broadcast %cst_32 : f32 to vector<8x128xf32>
    %35 = arith.mulf %19, %34 : vector<8x128xf32>
    %cst_33 = arith.constant 3.14159274 : f32
    %36 = vector.broadcast %cst_33 : f32 to vector<8x128xf32>
    %37 = arith.mulf %21, %36 : vector<8x128xf32>
    %cst_34 = arith.constant 3.14159274 : f32
    %38 = vector.broadcast %cst_34 : f32 to vector<8x128xf32>
    %39 = arith.mulf %23, %38 : vector<8x128xf32>
    %cst_35 = arith.constant -1.57079637 : f32
    %40 = vector.broadcast %cst_35 : f32 to vector<8x128xf32>
    %41 = arith.mulf %25, %40 : vector<8x128xf32>
    %cst_36 = arith.constant -1.57079637 : f32
    %42 = vector.broadcast %cst_36 : f32 to vector<8x128xf32>
    %43 = arith.mulf %27, %42 : vector<8x128xf32>
    %cst_37 = arith.constant -1.57079637 : f32
    %44 = vector.broadcast %cst_37 : f32 to vector<8x128xf32>
    %45 = arith.mulf %29, %44 : vector<8x128xf32>
    %cst_38 = arith.constant -1.57079637 : f32
    %46 = vector.broadcast %cst_38 : f32 to vector<8x128xf32>
    %47 = arith.mulf %31, %46 : vector<8x128xf32>
    %48 = math.sin %33 : vector<8x128xf32>
    %49 = math.sin %35 : vector<8x128xf32>
    %50 = math.sin %37 : vector<8x128xf32>
    %51 = math.sin %39 : vector<8x128xf32>
    %52 = math.cos %33 : vector<8x128xf32>
    %53 = math.cos %35 : vector<8x128xf32>
    %54 = math.cos %37 : vector<8x128xf32>
    %55 = math.cos %39 : vector<8x128xf32>
    %56 = math.sin %41 : vector<8x128xf32>
    %57 = math.sin %43 : vector<8x128xf32>
    %58 = math.sin %45 : vector<8x128xf32>
    %59 = math.sin %47 : vector<8x128xf32>
    %60 = math.cos %41 : vector<8x128xf32>
    %61 = math.cos %43 : vector<8x128xf32>
    %62 = math.cos %45 : vector<8x128xf32>
    %63 = math.cos %47 : vector<8x128xf32>
    %64 = arith.divf %56, %60 : vector<8x128xf32>
    %65 = arith.divf %57, %61 : vector<8x128xf32>
    %66 = arith.divf %58, %62 : vector<8x128xf32>
    %67 = arith.divf %59, %63 : vector<8x128xf32>
    %cst_39 = arith.constant -1.600000e+00 : f32
    %68 = vector.broadcast %cst_39 : f32 to vector<8x128xf32>
    %69 = arith.divf %68, %64 : vector<8x128xf32>
    %70 = arith.mulf %69, %48 : vector<8x128xf32>
    %cst_40 = arith.constant 0.000000e+00 : f32
    %71 = vector.broadcast %cst_40 : f32 to vector<8x128xf32>
    %72 = arith.subf %71, %69 : vector<8x128xf32>
    %73 = arith.mulf %72, %52 : vector<8x128xf32>
    %cst_41 = arith.constant -1.600000e+00 : f32
    %74 = vector.broadcast %cst_41 : f32 to vector<8x128xf32>
    %75 = arith.divf %74, %65 : vector<8x128xf32>
    %76 = arith.mulf %75, %49 : vector<8x128xf32>
    %cst_42 = arith.constant 0.000000e+00 : f32
    %77 = vector.broadcast %cst_42 : f32 to vector<8x128xf32>
    %78 = arith.subf %77, %75 : vector<8x128xf32>
    %79 = arith.mulf %78, %53 : vector<8x128xf32>
    %cst_43 = arith.constant -1.600000e+00 : f32
    %80 = vector.broadcast %cst_43 : f32 to vector<8x128xf32>
    %81 = arith.divf %80, %66 : vector<8x128xf32>
    %82 = arith.mulf %81, %50 : vector<8x128xf32>
    %cst_44 = arith.constant 0.000000e+00 : f32
    %83 = vector.broadcast %cst_44 : f32 to vector<8x128xf32>
    %84 = arith.subf %83, %81 : vector<8x128xf32>
    %85 = arith.mulf %84, %54 : vector<8x128xf32>
    %cst_45 = arith.constant -1.600000e+00 : f32
    %86 = vector.broadcast %cst_45 : f32 to vector<8x128xf32>
    %87 = arith.divf %86, %67 : vector<8x128xf32>
    %88 = arith.mulf %87, %51 : vector<8x128xf32>
    %cst_46 = arith.constant 0.000000e+00 : f32
    %89 = vector.broadcast %cst_46 : f32 to vector<8x128xf32>
    %90 = arith.subf %89, %87 : vector<8x128xf32>
    %91 = arith.mulf %90, %55 : vector<8x128xf32>
    %92 = arith.subf %70, %76 : vector<8x128xf32>
    %93 = arith.mulf %92, %92 : vector<8x128xf32>
    %94 = arith.subf %73, %79 : vector<8x128xf32>
    %95 = arith.mulf %94, %94 : vector<8x128xf32>
    %96 = arith.addf %93, %95 : vector<8x128xf32>
    %97 = math.sqrt %96 : vector<8x128xf32>
    %98 = arith.subf %82, %88 : vector<8x128xf32>
    %99 = arith.mulf %98, %98 : vector<8x128xf32>
    %100 = arith.subf %85, %91 : vector<8x128xf32>
    %101 = arith.mulf %100, %100 : vector<8x128xf32>
    %102 = arith.addf %99, %101 : vector<8x128xf32>
    %103 = math.sqrt %102 : vector<8x128xf32>
    %104 = arith.addf %97, %103 : vector<8x128xf32>
    %cst_47 = arith.constant 5.000000e-01 : f32
    %105 = vector.broadcast %cst_47 : f32 to vector<8x128xf32>
    %106 = arith.mulf %105, %104 : vector<8x128xf32>
    %107 = arith.subf %76, %82 : vector<8x128xf32>
    %108 = arith.mulf %107, %107 : vector<8x128xf32>
    %109 = arith.subf %79, %85 : vector<8x128xf32>
    %110 = arith.mulf %109, %109 : vector<8x128xf32>
    %111 = arith.addf %108, %110 : vector<8x128xf32>
    %112 = math.sqrt %111 : vector<8x128xf32>
    %113 = arith.subf %88, %70 : vector<8x128xf32>
    %114 = arith.mulf %113, %113 : vector<8x128xf32>
    %115 = arith.subf %91, %73 : vector<8x128xf32>
    %116 = arith.mulf %115, %115 : vector<8x128xf32>
    %117 = arith.addf %114, %116 : vector<8x128xf32>
    %118 = math.sqrt %117 : vector<8x128xf32>
    %119 = arith.addf %112, %118 : vector<8x128xf32>
    %cst_48 = arith.constant 5.000000e-01 : f32
    %120 = vector.broadcast %cst_48 : f32 to vector<8x128xf32>
    %121 = arith.mulf %120, %119 : vector<8x128xf32>
    %cst_49 = arith.constant 5.000000e-01 : f32
    %122 = vector.broadcast %cst_49 : f32 to vector<8x128xf32>
    %123 = arith.mulf %122, %121 : vector<8x128xf32>
    %cst_50 = arith.constant 5.000000e-01 : f32
    %124 = vector.broadcast %cst_50 : f32 to vector<8x128xf32>
    %125 = arith.mulf %124, %106 : vector<8x128xf32>
    %cst_51 = arith.constant 3.14159274 : f32
    %126 = vector.broadcast %cst_51 : f32 to vector<8x128xf32>
    %127 = arith.mulf %1, %126 : vector<8x128xf32>
    %cst_52 = arith.constant 3.14159274 : f32
    %128 = vector.broadcast %cst_52 : f32 to vector<8x128xf32>
    %129 = arith.mulf %3, %128 : vector<8x128xf32>
    %cst_53 = arith.constant 3.14159274 : f32
    %130 = vector.broadcast %cst_53 : f32 to vector<8x128xf32>
    %131 = arith.mulf %5, %130 : vector<8x128xf32>
    %cst_54 = arith.constant 3.14159274 : f32
    %132 = vector.broadcast %cst_54 : f32 to vector<8x128xf32>
    %133 = arith.mulf %7, %132 : vector<8x128xf32>
    %cst_55 = arith.constant -1.57079637 : f32
    %134 = vector.broadcast %cst_55 : f32 to vector<8x128xf32>
    %135 = arith.mulf %9, %134 : vector<8x128xf32>
    %cst_56 = arith.constant -1.57079637 : f32
    %136 = vector.broadcast %cst_56 : f32 to vector<8x128xf32>
    %137 = arith.mulf %11, %136 : vector<8x128xf32>
    %cst_57 = arith.constant -1.57079637 : f32
    %138 = vector.broadcast %cst_57 : f32 to vector<8x128xf32>
    %139 = arith.mulf %13, %138 : vector<8x128xf32>
    %cst_58 = arith.constant -1.57079637 : f32
    %140 = vector.broadcast %cst_58 : f32 to vector<8x128xf32>
    %141 = arith.mulf %15, %140 : vector<8x128xf32>
    %142 = math.sin %127 : vector<8x128xf32>
    %143 = math.sin %129 : vector<8x128xf32>
    %144 = math.sin %131 : vector<8x128xf32>
    %145 = math.sin %133 : vector<8x128xf32>
    %146 = math.cos %127 : vector<8x128xf32>
    %147 = math.cos %129 : vector<8x128xf32>
    %148 = math.cos %131 : vector<8x128xf32>
    %149 = math.cos %133 : vector<8x128xf32>
    %150 = math.sin %135 : vector<8x128xf32>
    %151 = math.sin %137 : vector<8x128xf32>
    %152 = math.sin %139 : vector<8x128xf32>
    %153 = math.sin %141 : vector<8x128xf32>
    %154 = math.cos %135 : vector<8x128xf32>
    %155 = math.cos %137 : vector<8x128xf32>
    %156 = math.cos %139 : vector<8x128xf32>
    %157 = math.cos %141 : vector<8x128xf32>
    %158 = arith.divf %154, %150 : vector<8x128xf32>
    %159 = arith.divf %155, %151 : vector<8x128xf32>
    %160 = arith.divf %156, %152 : vector<8x128xf32>
    %161 = arith.divf %157, %153 : vector<8x128xf32>
    %cst_59 = arith.constant 0.000000e+00 : f32
    %162 = vector.broadcast %cst_59 : f32 to vector<8x128xf32>
    %cst_60 = arith.constant 1.600000e+00 : f32
    %163 = vector.broadcast %cst_60 : f32 to vector<8x128xf32>
    %164 = arith.mulf %163, %158 : vector<8x128xf32>
    %165 = arith.mulf %164, %142 : vector<8x128xf32>
    %cst_61 = arith.constant 0.000000e+00 : f32
    %166 = vector.broadcast %cst_61 : f32 to vector<8x128xf32>
    %167 = arith.subf %166, %164 : vector<8x128xf32>
    %168 = arith.mulf %167, %146 : vector<8x128xf32>
    %169 = arith.mulf %165, %165 : vector<8x128xf32>
    %170 = arith.mulf %168, %168 : vector<8x128xf32>
    %171 = arith.addf %169, %170 : vector<8x128xf32>
    %172 = math.sqrt %171 : vector<8x128xf32>
    %173 = arith.mulf %172, %64 : vector<8x128xf32>
    %174 = arith.addf %162, %173 : vector<8x128xf32>
    %cst_62 = arith.constant 1.600000e+00 : f32
    %175 = vector.broadcast %cst_62 : f32 to vector<8x128xf32>
    %176 = arith.mulf %175, %159 : vector<8x128xf32>
    %177 = arith.mulf %176, %143 : vector<8x128xf32>
    %cst_63 = arith.constant 0.000000e+00 : f32
    %178 = vector.broadcast %cst_63 : f32 to vector<8x128xf32>
    %179 = arith.subf %178, %176 : vector<8x128xf32>
    %180 = arith.mulf %179, %147 : vector<8x128xf32>
    %181 = arith.mulf %177, %177 : vector<8x128xf32>
    %182 = arith.mulf %180, %180 : vector<8x128xf32>
    %183 = arith.addf %181, %182 : vector<8x128xf32>
    %184 = math.sqrt %183 : vector<8x128xf32>
    %185 = arith.mulf %184, %65 : vector<8x128xf32>
    %186 = arith.addf %174, %185 : vector<8x128xf32>
    %cst_64 = arith.constant 1.600000e+00 : f32
    %187 = vector.broadcast %cst_64 : f32 to vector<8x128xf32>
    %188 = arith.mulf %187, %160 : vector<8x128xf32>
    %189 = arith.mulf %188, %144 : vector<8x128xf32>
    %cst_65 = arith.constant 0.000000e+00 : f32
    %190 = vector.broadcast %cst_65 : f32 to vector<8x128xf32>
    %191 = arith.subf %190, %188 : vector<8x128xf32>
    %192 = arith.mulf %191, %148 : vector<8x128xf32>
    %193 = arith.mulf %189, %189 : vector<8x128xf32>
    %194 = arith.mulf %192, %192 : vector<8x128xf32>
    %195 = arith.addf %193, %194 : vector<8x128xf32>
    %196 = math.sqrt %195 : vector<8x128xf32>
    %197 = arith.mulf %196, %66 : vector<8x128xf32>
    %198 = arith.addf %186, %197 : vector<8x128xf32>
    %cst_66 = arith.constant 1.600000e+00 : f32
    %199 = vector.broadcast %cst_66 : f32 to vector<8x128xf32>
    %200 = arith.mulf %199, %161 : vector<8x128xf32>
    %201 = arith.mulf %200, %145 : vector<8x128xf32>
    %cst_67 = arith.constant 0.000000e+00 : f32
    %202 = vector.broadcast %cst_67 : f32 to vector<8x128xf32>
    %203 = arith.subf %202, %200 : vector<8x128xf32>
    %204 = arith.mulf %203, %149 : vector<8x128xf32>
    %205 = arith.mulf %201, %201 : vector<8x128xf32>
    %206 = arith.mulf %204, %204 : vector<8x128xf32>
    %207 = arith.addf %205, %206 : vector<8x128xf32>
    %208 = math.sqrt %207 : vector<8x128xf32>
    %209 = arith.mulf %208, %67 : vector<8x128xf32>
    %210 = arith.addf %198, %209 : vector<8x128xf32>
    %cst_68 = arith.constant 2.500000e-01 : f32
    %211 = vector.broadcast %cst_68 : f32 to vector<8x128xf32>
    %212 = arith.mulf %211, %210 : vector<8x128xf32>
    %cst_69 = arith.constant -1.600000e+00 : f32
    %213 = vector.broadcast %cst_69 : f32 to vector<8x128xf32>
    %214 = arith.divf %213, %212 : vector<8x128xf32>
    %cst_70 = arith.constant 1.600000e+00 : f32
    %215 = vector.broadcast %cst_70 : f32 to vector<8x128xf32>
    %216 = arith.mulf %215, %214 : vector<8x128xf32>
    %217 = arith.mulf %216, %158 : vector<8x128xf32>
    %218 = arith.mulf %217, %142 : vector<8x128xf32>
    %cst_71 = arith.constant 0.000000e+00 : f32
    %219 = vector.broadcast %cst_71 : f32 to vector<8x128xf32>
    %220 = arith.subf %219, %217 : vector<8x128xf32>
    %221 = arith.mulf %220, %146 : vector<8x128xf32>
    %222 = arith.mulf %216, %159 : vector<8x128xf32>
    %223 = arith.mulf %222, %143 : vector<8x128xf32>
    %cst_72 = arith.constant 0.000000e+00 : f32
    %224 = vector.broadcast %cst_72 : f32 to vector<8x128xf32>
    %225 = arith.subf %224, %222 : vector<8x128xf32>
    %226 = arith.mulf %225, %147 : vector<8x128xf32>
    %227 = arith.mulf %216, %160 : vector<8x128xf32>
    %228 = arith.mulf %227, %144 : vector<8x128xf32>
    %cst_73 = arith.constant 0.000000e+00 : f32
    %229 = vector.broadcast %cst_73 : f32 to vector<8x128xf32>
    %230 = arith.subf %229, %227 : vector<8x128xf32>
    %231 = arith.mulf %230, %148 : vector<8x128xf32>
    %232 = arith.mulf %216, %161 : vector<8x128xf32>
    %233 = arith.mulf %232, %145 : vector<8x128xf32>
    %cst_74 = arith.constant 0.000000e+00 : f32
    %234 = vector.broadcast %cst_74 : f32 to vector<8x128xf32>
    %235 = arith.subf %234, %232 : vector<8x128xf32>
    %236 = arith.mulf %235, %149 : vector<8x128xf32>
    %237 = arith.subf %218, %223 : vector<8x128xf32>
    %238 = arith.mulf %237, %237 : vector<8x128xf32>
    %239 = arith.subf %221, %226 : vector<8x128xf32>
    %240 = arith.mulf %239, %239 : vector<8x128xf32>
    %241 = arith.addf %238, %240 : vector<8x128xf32>
    %242 = math.sqrt %241 : vector<8x128xf32>
    %243 = arith.subf %228, %233 : vector<8x128xf32>
    %244 = arith.mulf %243, %243 : vector<8x128xf32>
    %245 = arith.subf %231, %236 : vector<8x128xf32>
    %246 = arith.mulf %245, %245 : vector<8x128xf32>
    %247 = arith.addf %244, %246 : vector<8x128xf32>
    %248 = math.sqrt %247 : vector<8x128xf32>
    %249 = arith.addf %242, %248 : vector<8x128xf32>
    %cst_75 = arith.constant 5.000000e-01 : f32
    %250 = vector.broadcast %cst_75 : f32 to vector<8x128xf32>
    %251 = arith.mulf %250, %249 : vector<8x128xf32>
    %252 = arith.subf %223, %228 : vector<8x128xf32>
    %253 = arith.mulf %252, %252 : vector<8x128xf32>
    %254 = arith.subf %226, %231 : vector<8x128xf32>
    %255 = arith.mulf %254, %254 : vector<8x128xf32>
    %256 = arith.addf %253, %255 : vector<8x128xf32>
    %257 = math.sqrt %256 : vector<8x128xf32>
    %258 = arith.subf %233, %218 : vector<8x128xf32>
    %259 = arith.mulf %258, %258 : vector<8x128xf32>
    %260 = arith.subf %236, %221 : vector<8x128xf32>
    %261 = arith.mulf %260, %260 : vector<8x128xf32>
    %262 = arith.addf %259, %261 : vector<8x128xf32>
    %263 = math.sqrt %262 : vector<8x128xf32>
    %264 = arith.addf %257, %263 : vector<8x128xf32>
    %cst_76 = arith.constant 5.000000e-01 : f32
    %265 = vector.broadcast %cst_76 : f32 to vector<8x128xf32>
    %266 = arith.mulf %265, %264 : vector<8x128xf32>
    %cst_77 = arith.constant 5.000000e-01 : f32
    %267 = vector.broadcast %cst_77 : f32 to vector<8x128xf32>
    %268 = arith.mulf %267, %266 : vector<8x128xf32>
    %cst_78 = arith.constant 5.000000e-01 : f32
    %269 = vector.broadcast %cst_78 : f32 to vector<8x128xf32>
    %270 = arith.mulf %269, %251 : vector<8x128xf32>
    %271 = arith.addf %70, %218 : vector<8x128xf32>
    %cst_79 = arith.constant 5.000000e-01 : f32
    %272 = vector.broadcast %cst_79 : f32 to vector<8x128xf32>
    %273 = arith.mulf %272, %271 : vector<8x128xf32>
    %274 = arith.addf %76, %223 : vector<8x128xf32>
    %cst_80 = arith.constant 5.000000e-01 : f32
    %275 = vector.broadcast %cst_80 : f32 to vector<8x128xf32>
    %276 = arith.mulf %275, %274 : vector<8x128xf32>
    %277 = arith.addf %82, %228 : vector<8x128xf32>
    %cst_81 = arith.constant 5.000000e-01 : f32
    %278 = vector.broadcast %cst_81 : f32 to vector<8x128xf32>
    %279 = arith.mulf %278, %277 : vector<8x128xf32>
    %280 = arith.addf %88, %233 : vector<8x128xf32>
    %cst_82 = arith.constant 5.000000e-01 : f32
    %281 = vector.broadcast %cst_82 : f32 to vector<8x128xf32>
    %282 = arith.mulf %281, %280 : vector<8x128xf32>
    %283 = arith.addf %73, %221 : vector<8x128xf32>
    %cst_83 = arith.constant 5.000000e-01 : f32
    %284 = vector.broadcast %cst_83 : f32 to vector<8x128xf32>
    %285 = arith.mulf %284, %283 : vector<8x128xf32>
    %286 = arith.addf %79, %226 : vector<8x128xf32>
    %cst_84 = arith.constant 5.000000e-01 : f32
    %287 = vector.broadcast %cst_84 : f32 to vector<8x128xf32>
    %288 = arith.mulf %287, %286 : vector<8x128xf32>
    %289 = arith.addf %85, %231 : vector<8x128xf32>
    %cst_85 = arith.constant 5.000000e-01 : f32
    %290 = vector.broadcast %cst_85 : f32 to vector<8x128xf32>
    %291 = arith.mulf %290, %289 : vector<8x128xf32>
    %292 = arith.addf %91, %236 : vector<8x128xf32>
    %cst_86 = arith.constant 5.000000e-01 : f32
    %293 = vector.broadcast %cst_86 : f32 to vector<8x128xf32>
    %294 = arith.mulf %293, %292 : vector<8x128xf32>
    %295 = arith.addf %123, %268 : vector<8x128xf32>
    %cst_87 = arith.constant 5.000000e-01 : f32
    %296 = vector.broadcast %cst_87 : f32 to vector<8x128xf32>
    %297 = arith.mulf %296, %295 : vector<8x128xf32>
    %298 = arith.addf %125, %270 : vector<8x128xf32>
    %cst_88 = arith.constant 5.000000e-01 : f32
    %299 = vector.broadcast %cst_88 : f32 to vector<8x128xf32>
    %300 = arith.mulf %299, %298 : vector<8x128xf32>
    %301 = arith.addf %273, %276 : vector<8x128xf32>
    %302 = arith.addf %301, %279 : vector<8x128xf32>
    %303 = arith.addf %302, %282 : vector<8x128xf32>
    %cst_89 = arith.constant 2.500000e-01 : f32
    %304 = vector.broadcast %cst_89 : f32 to vector<8x128xf32>
    %305 = arith.mulf %304, %303 : vector<8x128xf32>
    %306 = arith.addf %285, %288 : vector<8x128xf32>
    %307 = arith.addf %306, %291 : vector<8x128xf32>
    %308 = arith.addf %307, %294 : vector<8x128xf32>
    %cst_90 = arith.constant 2.500000e-01 : f32
    %309 = vector.broadcast %cst_90 : f32 to vector<8x128xf32>
    %310 = arith.mulf %309, %308 : vector<8x128xf32>
    %311 = arith.subf %273, %305 : vector<8x128xf32>
    %312 = arith.subf %276, %305 : vector<8x128xf32>
    %313 = arith.subf %279, %305 : vector<8x128xf32>
    %314 = arith.subf %282, %305 : vector<8x128xf32>
    %315 = arith.subf %285, %310 : vector<8x128xf32>
    %316 = arith.subf %288, %310 : vector<8x128xf32>
    %317 = arith.subf %291, %310 : vector<8x128xf32>
    %318 = arith.subf %294, %310 : vector<8x128xf32>
    %319 = arith.addf %311, %305 : vector<8x128xf32>
    %320 = arith.addf %312, %305 : vector<8x128xf32>
    %321 = arith.addf %313, %305 : vector<8x128xf32>
    %322 = arith.addf %314, %305 : vector<8x128xf32>
    %323 = arith.addf %315, %310 : vector<8x128xf32>
    %324 = arith.addf %316, %310 : vector<8x128xf32>
    %325 = arith.addf %317, %310 : vector<8x128xf32>
    %326 = arith.addf %318, %310 : vector<8x128xf32>
    %cst_91 = arith.constant 9.99999996E-13 : f32
    %327 = vector.broadcast %cst_91 : f32 to vector<8x128xf32>
    %328 = arith.addf %315, %327 : vector<8x128xf32>
    %329 = math.atan2 %311, %328 : vector<8x128xf32>
    %cst_92 = arith.constant 9.99999996E-13 : f32
    %330 = vector.broadcast %cst_92 : f32 to vector<8x128xf32>
    %331 = arith.addf %316, %330 : vector<8x128xf32>
    %332 = math.atan2 %312, %331 : vector<8x128xf32>
    %cst_93 = arith.constant 9.99999996E-13 : f32
    %333 = vector.broadcast %cst_93 : f32 to vector<8x128xf32>
    %334 = arith.addf %317, %333 : vector<8x128xf32>
    %335 = math.atan2 %313, %334 : vector<8x128xf32>
    %cst_94 = arith.constant 9.99999996E-13 : f32
    %336 = vector.broadcast %cst_94 : f32 to vector<8x128xf32>
    %337 = arith.addf %318, %336 : vector<8x128xf32>
    %338 = math.atan2 %314, %337 : vector<8x128xf32>
    %cst_95 = arith.constant 0.000000e+00 : f32
    %339 = vector.broadcast %cst_95 : f32 to vector<8x128xf32>
    %340 = arith.cmpf olt, %332, %329 : vector<8x128xf32>
    %cst_96 = arith.constant 1.000000e+00 : f32
    %cst_97 = arith.constant 0.000000e+00 : f32
    %341 = vector.broadcast %cst_96 : f32 to vector<8x128xf32>
    %342 = vector.broadcast %cst_97 : f32 to vector<8x128xf32>
    %343 = arith.select %340, %341, %342 : vector<8x128xi1>, vector<8x128xf32>
    %344 = arith.addf %339, %343 : vector<8x128xf32>
    %345 = arith.cmpf olt, %335, %329 : vector<8x128xf32>
    %cst_98 = arith.constant 1.000000e+00 : f32
    %cst_99 = arith.constant 0.000000e+00 : f32
    %346 = vector.broadcast %cst_98 : f32 to vector<8x128xf32>
    %347 = vector.broadcast %cst_99 : f32 to vector<8x128xf32>
    %348 = arith.select %345, %346, %347 : vector<8x128xi1>, vector<8x128xf32>
    %349 = arith.addf %344, %348 : vector<8x128xf32>
    %350 = arith.cmpf olt, %338, %329 : vector<8x128xf32>
    %cst_100 = arith.constant 1.000000e+00 : f32
    %cst_101 = arith.constant 0.000000e+00 : f32
    %351 = vector.broadcast %cst_100 : f32 to vector<8x128xf32>
    %352 = vector.broadcast %cst_101 : f32 to vector<8x128xf32>
    %353 = arith.select %350, %351, %352 : vector<8x128xi1>, vector<8x128xf32>
    %354 = arith.addf %349, %353 : vector<8x128xf32>
    %cst_102 = arith.constant 0.000000e+00 : f32
    %355 = vector.broadcast %cst_102 : f32 to vector<8x128xf32>
    %356 = arith.cmpf olt, %329, %332 : vector<8x128xf32>
    %cst_103 = arith.constant 1.000000e+00 : f32
    %cst_104 = arith.constant 0.000000e+00 : f32
    %357 = vector.broadcast %cst_103 : f32 to vector<8x128xf32>
    %358 = vector.broadcast %cst_104 : f32 to vector<8x128xf32>
    %359 = arith.select %356, %357, %358 : vector<8x128xi1>, vector<8x128xf32>
    %360 = arith.addf %355, %359 : vector<8x128xf32>
    %361 = arith.cmpf oeq, %329, %332 : vector<8x128xf32>
    %cst_105 = arith.constant 1.000000e+00 : f32
    %cst_106 = arith.constant 0.000000e+00 : f32
    %362 = vector.broadcast %cst_105 : f32 to vector<8x128xf32>
    %363 = vector.broadcast %cst_106 : f32 to vector<8x128xf32>
    %364 = arith.select %361, %362, %363 : vector<8x128xi1>, vector<8x128xf32>
    %365 = arith.addf %360, %364 : vector<8x128xf32>
    %366 = arith.cmpf olt, %335, %332 : vector<8x128xf32>
    %cst_107 = arith.constant 1.000000e+00 : f32
    %cst_108 = arith.constant 0.000000e+00 : f32
    %367 = vector.broadcast %cst_107 : f32 to vector<8x128xf32>
    %368 = vector.broadcast %cst_108 : f32 to vector<8x128xf32>
    %369 = arith.select %366, %367, %368 : vector<8x128xi1>, vector<8x128xf32>
    %370 = arith.addf %365, %369 : vector<8x128xf32>
    %371 = arith.cmpf olt, %338, %332 : vector<8x128xf32>
    %cst_109 = arith.constant 1.000000e+00 : f32
    %cst_110 = arith.constant 0.000000e+00 : f32
    %372 = vector.broadcast %cst_109 : f32 to vector<8x128xf32>
    %373 = vector.broadcast %cst_110 : f32 to vector<8x128xf32>
    %374 = arith.select %371, %372, %373 : vector<8x128xi1>, vector<8x128xf32>
    %375 = arith.addf %370, %374 : vector<8x128xf32>
    %cst_111 = arith.constant 0.000000e+00 : f32
    %376 = vector.broadcast %cst_111 : f32 to vector<8x128xf32>
    %377 = arith.cmpf olt, %329, %335 : vector<8x128xf32>
    %cst_112 = arith.constant 1.000000e+00 : f32
    %cst_113 = arith.constant 0.000000e+00 : f32
    %378 = vector.broadcast %cst_112 : f32 to vector<8x128xf32>
    %379 = vector.broadcast %cst_113 : f32 to vector<8x128xf32>
    %380 = arith.select %377, %378, %379 : vector<8x128xi1>, vector<8x128xf32>
    %381 = arith.addf %376, %380 : vector<8x128xf32>
    %382 = arith.cmpf oeq, %329, %335 : vector<8x128xf32>
    %cst_114 = arith.constant 1.000000e+00 : f32
    %cst_115 = arith.constant 0.000000e+00 : f32
    %383 = vector.broadcast %cst_114 : f32 to vector<8x128xf32>
    %384 = vector.broadcast %cst_115 : f32 to vector<8x128xf32>
    %385 = arith.select %382, %383, %384 : vector<8x128xi1>, vector<8x128xf32>
    %386 = arith.addf %381, %385 : vector<8x128xf32>
    %387 = arith.cmpf olt, %332, %335 : vector<8x128xf32>
    %cst_116 = arith.constant 1.000000e+00 : f32
    %cst_117 = arith.constant 0.000000e+00 : f32
    %388 = vector.broadcast %cst_116 : f32 to vector<8x128xf32>
    %389 = vector.broadcast %cst_117 : f32 to vector<8x128xf32>
    %390 = arith.select %387, %388, %389 : vector<8x128xi1>, vector<8x128xf32>
    %391 = arith.addf %386, %390 : vector<8x128xf32>
    %392 = arith.cmpf oeq, %332, %335 : vector<8x128xf32>
    %cst_118 = arith.constant 1.000000e+00 : f32
    %cst_119 = arith.constant 0.000000e+00 : f32
    %393 = vector.broadcast %cst_118 : f32 to vector<8x128xf32>
    %394 = vector.broadcast %cst_119 : f32 to vector<8x128xf32>
    %395 = arith.select %392, %393, %394 : vector<8x128xi1>, vector<8x128xf32>
    %396 = arith.addf %391, %395 : vector<8x128xf32>
    %397 = arith.cmpf olt, %338, %335 : vector<8x128xf32>
    %cst_120 = arith.constant 1.000000e+00 : f32
    %cst_121 = arith.constant 0.000000e+00 : f32
    %398 = vector.broadcast %cst_120 : f32 to vector<8x128xf32>
    %399 = vector.broadcast %cst_121 : f32 to vector<8x128xf32>
    %400 = arith.select %397, %398, %399 : vector<8x128xi1>, vector<8x128xf32>
    %401 = arith.addf %396, %400 : vector<8x128xf32>
    %cst_122 = arith.constant 0.000000e+00 : f32
    %402 = vector.broadcast %cst_122 : f32 to vector<8x128xf32>
    %403 = arith.cmpf olt, %329, %338 : vector<8x128xf32>
    %cst_123 = arith.constant 1.000000e+00 : f32
    %cst_124 = arith.constant 0.000000e+00 : f32
    %404 = vector.broadcast %cst_123 : f32 to vector<8x128xf32>
    %405 = vector.broadcast %cst_124 : f32 to vector<8x128xf32>
    %406 = arith.select %403, %404, %405 : vector<8x128xi1>, vector<8x128xf32>
    %407 = arith.addf %402, %406 : vector<8x128xf32>
    %408 = arith.cmpf oeq, %329, %338 : vector<8x128xf32>
    %cst_125 = arith.constant 1.000000e+00 : f32
    %cst_126 = arith.constant 0.000000e+00 : f32
    %409 = vector.broadcast %cst_125 : f32 to vector<8x128xf32>
    %410 = vector.broadcast %cst_126 : f32 to vector<8x128xf32>
    %411 = arith.select %408, %409, %410 : vector<8x128xi1>, vector<8x128xf32>
    %412 = arith.addf %407, %411 : vector<8x128xf32>
    %413 = arith.cmpf olt, %332, %338 : vector<8x128xf32>
    %cst_127 = arith.constant 1.000000e+00 : f32
    %cst_128 = arith.constant 0.000000e+00 : f32
    %414 = vector.broadcast %cst_127 : f32 to vector<8x128xf32>
    %415 = vector.broadcast %cst_128 : f32 to vector<8x128xf32>
    %416 = arith.select %413, %414, %415 : vector<8x128xi1>, vector<8x128xf32>
    %417 = arith.addf %412, %416 : vector<8x128xf32>
    %418 = arith.cmpf oeq, %332, %338 : vector<8x128xf32>
    %cst_129 = arith.constant 1.000000e+00 : f32
    %cst_130 = arith.constant 0.000000e+00 : f32
    %419 = vector.broadcast %cst_129 : f32 to vector<8x128xf32>
    %420 = vector.broadcast %cst_130 : f32 to vector<8x128xf32>
    %421 = arith.select %418, %419, %420 : vector<8x128xi1>, vector<8x128xf32>
    %422 = arith.addf %417, %421 : vector<8x128xf32>
    %423 = arith.cmpf olt, %335, %338 : vector<8x128xf32>
    %cst_131 = arith.constant 1.000000e+00 : f32
    %cst_132 = arith.constant 0.000000e+00 : f32
    %424 = vector.broadcast %cst_131 : f32 to vector<8x128xf32>
    %425 = vector.broadcast %cst_132 : f32 to vector<8x128xf32>
    %426 = arith.select %423, %424, %425 : vector<8x128xi1>, vector<8x128xf32>
    %427 = arith.addf %422, %426 : vector<8x128xf32>
    %428 = arith.cmpf oeq, %335, %338 : vector<8x128xf32>
    %cst_133 = arith.constant 1.000000e+00 : f32
    %cst_134 = arith.constant 0.000000e+00 : f32
    %429 = vector.broadcast %cst_133 : f32 to vector<8x128xf32>
    %430 = vector.broadcast %cst_134 : f32 to vector<8x128xf32>
    %431 = arith.select %428, %429, %430 : vector<8x128xi1>, vector<8x128xf32>
    %432 = arith.addf %427, %431 : vector<8x128xf32>
    %cst_135 = arith.constant 0.000000e+00 : f32
    %433 = vector.broadcast %cst_135 : f32 to vector<8x128xf32>
    %cst_136 = arith.constant 0.000000e+00 : f32
    %434 = vector.broadcast %cst_136 : f32 to vector<8x128xf32>
    %cst_137 = arith.constant 0.000000e+00 : f32
    %435 = vector.broadcast %cst_137 : f32 to vector<8x128xf32>
    %cst_138 = arith.constant 0.000000e+00 : f32
    %436 = vector.broadcast %cst_138 : f32 to vector<8x128xf32>
    %cst_139 = arith.constant 0.000000e+00 : f32
    %437 = vector.broadcast %cst_139 : f32 to vector<8x128xf32>
    %438 = arith.cmpf oeq, %354, %437 : vector<8x128xf32>
    %cst_140 = arith.constant 1.000000e+00 : f32
    %cst_141 = arith.constant 0.000000e+00 : f32
    %439 = vector.broadcast %cst_140 : f32 to vector<8x128xf32>
    %440 = vector.broadcast %cst_141 : f32 to vector<8x128xf32>
    %441 = arith.select %438, %439, %440 : vector<8x128xi1>, vector<8x128xf32>
    %cst_142 = arith.constant -1.000000e+00 : f32
    %442 = vector.broadcast %cst_142 : f32 to vector<8x128xf32>
    %443 = arith.mulf %441, %442 : vector<8x128xf32>
    %444 = arith.addf %433, %443 : vector<8x128xf32>
    %cst_143 = arith.constant 1.000000e+00 : f32
    %445 = vector.broadcast %cst_143 : f32 to vector<8x128xf32>
    %446 = arith.mulf %441, %445 : vector<8x128xf32>
    %447 = arith.addf %434, %446 : vector<8x128xf32>
    %448 = arith.mulf %441, %319 : vector<8x128xf32>
    %449 = arith.addf %435, %448 : vector<8x128xf32>
    %450 = arith.mulf %441, %323 : vector<8x128xf32>
    %451 = arith.addf %436, %450 : vector<8x128xf32>
    %cst_144 = arith.constant 0.000000e+00 : f32
    %452 = vector.broadcast %cst_144 : f32 to vector<8x128xf32>
    %453 = arith.cmpf oeq, %375, %452 : vector<8x128xf32>
    %cst_145 = arith.constant 1.000000e+00 : f32
    %cst_146 = arith.constant 0.000000e+00 : f32
    %454 = vector.broadcast %cst_145 : f32 to vector<8x128xf32>
    %455 = vector.broadcast %cst_146 : f32 to vector<8x128xf32>
    %456 = arith.select %453, %454, %455 : vector<8x128xi1>, vector<8x128xf32>
    %cst_147 = arith.constant -1.000000e+00 : f32
    %457 = vector.broadcast %cst_147 : f32 to vector<8x128xf32>
    %458 = arith.mulf %456, %457 : vector<8x128xf32>
    %459 = arith.addf %444, %458 : vector<8x128xf32>
    %cst_148 = arith.constant -1.000000e+00 : f32
    %460 = vector.broadcast %cst_148 : f32 to vector<8x128xf32>
    %461 = arith.mulf %456, %460 : vector<8x128xf32>
    %462 = arith.addf %447, %461 : vector<8x128xf32>
    %463 = arith.mulf %456, %320 : vector<8x128xf32>
    %464 = arith.addf %449, %463 : vector<8x128xf32>
    %465 = arith.mulf %456, %324 : vector<8x128xf32>
    %466 = arith.addf %451, %465 : vector<8x128xf32>
    %cst_149 = arith.constant 0.000000e+00 : f32
    %467 = vector.broadcast %cst_149 : f32 to vector<8x128xf32>
    %468 = arith.cmpf oeq, %401, %467 : vector<8x128xf32>
    %cst_150 = arith.constant 1.000000e+00 : f32
    %cst_151 = arith.constant 0.000000e+00 : f32
    %469 = vector.broadcast %cst_150 : f32 to vector<8x128xf32>
    %470 = vector.broadcast %cst_151 : f32 to vector<8x128xf32>
    %471 = arith.select %468, %469, %470 : vector<8x128xi1>, vector<8x128xf32>
    %cst_152 = arith.constant 1.000000e+00 : f32
    %472 = vector.broadcast %cst_152 : f32 to vector<8x128xf32>
    %473 = arith.mulf %471, %472 : vector<8x128xf32>
    %474 = arith.addf %459, %473 : vector<8x128xf32>
    %cst_153 = arith.constant -1.000000e+00 : f32
    %475 = vector.broadcast %cst_153 : f32 to vector<8x128xf32>
    %476 = arith.mulf %471, %475 : vector<8x128xf32>
    %477 = arith.addf %462, %476 : vector<8x128xf32>
    %478 = arith.mulf %471, %321 : vector<8x128xf32>
    %479 = arith.addf %464, %478 : vector<8x128xf32>
    %480 = arith.mulf %471, %325 : vector<8x128xf32>
    %481 = arith.addf %466, %480 : vector<8x128xf32>
    %cst_154 = arith.constant 0.000000e+00 : f32
    %482 = vector.broadcast %cst_154 : f32 to vector<8x128xf32>
    %483 = arith.cmpf oeq, %432, %482 : vector<8x128xf32>
    %cst_155 = arith.constant 1.000000e+00 : f32
    %cst_156 = arith.constant 0.000000e+00 : f32
    %484 = vector.broadcast %cst_155 : f32 to vector<8x128xf32>
    %485 = vector.broadcast %cst_156 : f32 to vector<8x128xf32>
    %486 = arith.select %483, %484, %485 : vector<8x128xi1>, vector<8x128xf32>
    %cst_157 = arith.constant 1.000000e+00 : f32
    %487 = vector.broadcast %cst_157 : f32 to vector<8x128xf32>
    %488 = arith.mulf %486, %487 : vector<8x128xf32>
    %489 = arith.addf %474, %488 : vector<8x128xf32>
    %cst_158 = arith.constant 1.000000e+00 : f32
    %490 = vector.broadcast %cst_158 : f32 to vector<8x128xf32>
    %491 = arith.mulf %486, %490 : vector<8x128xf32>
    %492 = arith.addf %477, %491 : vector<8x128xf32>
    %493 = arith.mulf %486, %322 : vector<8x128xf32>
    %494 = arith.addf %479, %493 : vector<8x128xf32>
    %495 = arith.mulf %486, %326 : vector<8x128xf32>
    %496 = arith.addf %481, %495 : vector<8x128xf32>
    %cst_159 = arith.constant 0.000000e+00 : f32
    %497 = vector.broadcast %cst_159 : f32 to vector<8x128xf32>
    %cst_160 = arith.constant 0.000000e+00 : f32
    %498 = vector.broadcast %cst_160 : f32 to vector<8x128xf32>
    %cst_161 = arith.constant 0.000000e+00 : f32
    %499 = vector.broadcast %cst_161 : f32 to vector<8x128xf32>
    %cst_162 = arith.constant 0.000000e+00 : f32
    %500 = vector.broadcast %cst_162 : f32 to vector<8x128xf32>
    %cst_163 = arith.constant 1.000000e+00 : f32
    %501 = vector.broadcast %cst_163 : f32 to vector<8x128xf32>
    %502 = arith.cmpf oeq, %354, %501 : vector<8x128xf32>
    %cst_164 = arith.constant 1.000000e+00 : f32
    %cst_165 = arith.constant 0.000000e+00 : f32
    %503 = vector.broadcast %cst_164 : f32 to vector<8x128xf32>
    %504 = vector.broadcast %cst_165 : f32 to vector<8x128xf32>
    %505 = arith.select %502, %503, %504 : vector<8x128xi1>, vector<8x128xf32>
    %cst_166 = arith.constant -1.000000e+00 : f32
    %506 = vector.broadcast %cst_166 : f32 to vector<8x128xf32>
    %507 = arith.mulf %505, %506 : vector<8x128xf32>
    %508 = arith.addf %497, %507 : vector<8x128xf32>
    %cst_167 = arith.constant 1.000000e+00 : f32
    %509 = vector.broadcast %cst_167 : f32 to vector<8x128xf32>
    %510 = arith.mulf %505, %509 : vector<8x128xf32>
    %511 = arith.addf %498, %510 : vector<8x128xf32>
    %512 = arith.mulf %505, %319 : vector<8x128xf32>
    %513 = arith.addf %499, %512 : vector<8x128xf32>
    %514 = arith.mulf %505, %323 : vector<8x128xf32>
    %515 = arith.addf %500, %514 : vector<8x128xf32>
    %cst_168 = arith.constant 1.000000e+00 : f32
    %516 = vector.broadcast %cst_168 : f32 to vector<8x128xf32>
    %517 = arith.cmpf oeq, %375, %516 : vector<8x128xf32>
    %cst_169 = arith.constant 1.000000e+00 : f32
    %cst_170 = arith.constant 0.000000e+00 : f32
    %518 = vector.broadcast %cst_169 : f32 to vector<8x128xf32>
    %519 = vector.broadcast %cst_170 : f32 to vector<8x128xf32>
    %520 = arith.select %517, %518, %519 : vector<8x128xi1>, vector<8x128xf32>
    %cst_171 = arith.constant -1.000000e+00 : f32
    %521 = vector.broadcast %cst_171 : f32 to vector<8x128xf32>
    %522 = arith.mulf %520, %521 : vector<8x128xf32>
    %523 = arith.addf %508, %522 : vector<8x128xf32>
    %cst_172 = arith.constant -1.000000e+00 : f32
    %524 = vector.broadcast %cst_172 : f32 to vector<8x128xf32>
    %525 = arith.mulf %520, %524 : vector<8x128xf32>
    %526 = arith.addf %511, %525 : vector<8x128xf32>
    %527 = arith.mulf %520, %320 : vector<8x128xf32>
    %528 = arith.addf %513, %527 : vector<8x128xf32>
    %529 = arith.mulf %520, %324 : vector<8x128xf32>
    %530 = arith.addf %515, %529 : vector<8x128xf32>
    %cst_173 = arith.constant 1.000000e+00 : f32
    %531 = vector.broadcast %cst_173 : f32 to vector<8x128xf32>
    %532 = arith.cmpf oeq, %401, %531 : vector<8x128xf32>
    %cst_174 = arith.constant 1.000000e+00 : f32
    %cst_175 = arith.constant 0.000000e+00 : f32
    %533 = vector.broadcast %cst_174 : f32 to vector<8x128xf32>
    %534 = vector.broadcast %cst_175 : f32 to vector<8x128xf32>
    %535 = arith.select %532, %533, %534 : vector<8x128xi1>, vector<8x128xf32>
    %cst_176 = arith.constant 1.000000e+00 : f32
    %536 = vector.broadcast %cst_176 : f32 to vector<8x128xf32>
    %537 = arith.mulf %535, %536 : vector<8x128xf32>
    %538 = arith.addf %523, %537 : vector<8x128xf32>
    %cst_177 = arith.constant -1.000000e+00 : f32
    %539 = vector.broadcast %cst_177 : f32 to vector<8x128xf32>
    %540 = arith.mulf %535, %539 : vector<8x128xf32>
    %541 = arith.addf %526, %540 : vector<8x128xf32>
    %542 = arith.mulf %535, %321 : vector<8x128xf32>
    %543 = arith.addf %528, %542 : vector<8x128xf32>
    %544 = arith.mulf %535, %325 : vector<8x128xf32>
    %545 = arith.addf %530, %544 : vector<8x128xf32>
    %cst_178 = arith.constant 1.000000e+00 : f32
    %546 = vector.broadcast %cst_178 : f32 to vector<8x128xf32>
    %547 = arith.cmpf oeq, %432, %546 : vector<8x128xf32>
    %cst_179 = arith.constant 1.000000e+00 : f32
    %cst_180 = arith.constant 0.000000e+00 : f32
    %548 = vector.broadcast %cst_179 : f32 to vector<8x128xf32>
    %549 = vector.broadcast %cst_180 : f32 to vector<8x128xf32>
    %550 = arith.select %547, %548, %549 : vector<8x128xi1>, vector<8x128xf32>
    %cst_181 = arith.constant 1.000000e+00 : f32
    %551 = vector.broadcast %cst_181 : f32 to vector<8x128xf32>
    %552 = arith.mulf %550, %551 : vector<8x128xf32>
    %553 = arith.addf %538, %552 : vector<8x128xf32>
    %cst_182 = arith.constant 1.000000e+00 : f32
    %554 = vector.broadcast %cst_182 : f32 to vector<8x128xf32>
    %555 = arith.mulf %550, %554 : vector<8x128xf32>
    %556 = arith.addf %541, %555 : vector<8x128xf32>
    %557 = arith.mulf %550, %322 : vector<8x128xf32>
    %558 = arith.addf %543, %557 : vector<8x128xf32>
    %559 = arith.mulf %550, %326 : vector<8x128xf32>
    %560 = arith.addf %545, %559 : vector<8x128xf32>
    %cst_183 = arith.constant 0.000000e+00 : f32
    %561 = vector.broadcast %cst_183 : f32 to vector<8x128xf32>
    %cst_184 = arith.constant 0.000000e+00 : f32
    %562 = vector.broadcast %cst_184 : f32 to vector<8x128xf32>
    %cst_185 = arith.constant 0.000000e+00 : f32
    %563 = vector.broadcast %cst_185 : f32 to vector<8x128xf32>
    %cst_186 = arith.constant 0.000000e+00 : f32
    %564 = vector.broadcast %cst_186 : f32 to vector<8x128xf32>
    %cst_187 = arith.constant 2.000000e+00 : f32
    %565 = vector.broadcast %cst_187 : f32 to vector<8x128xf32>
    %566 = arith.cmpf oeq, %354, %565 : vector<8x128xf32>
    %cst_188 = arith.constant 1.000000e+00 : f32
    %cst_189 = arith.constant 0.000000e+00 : f32
    %567 = vector.broadcast %cst_188 : f32 to vector<8x128xf32>
    %568 = vector.broadcast %cst_189 : f32 to vector<8x128xf32>
    %569 = arith.select %566, %567, %568 : vector<8x128xi1>, vector<8x128xf32>
    %cst_190 = arith.constant -1.000000e+00 : f32
    %570 = vector.broadcast %cst_190 : f32 to vector<8x128xf32>
    %571 = arith.mulf %569, %570 : vector<8x128xf32>
    %572 = arith.addf %561, %571 : vector<8x128xf32>
    %cst_191 = arith.constant 1.000000e+00 : f32
    %573 = vector.broadcast %cst_191 : f32 to vector<8x128xf32>
    %574 = arith.mulf %569, %573 : vector<8x128xf32>
    %575 = arith.addf %562, %574 : vector<8x128xf32>
    %576 = arith.mulf %569, %319 : vector<8x128xf32>
    %577 = arith.addf %563, %576 : vector<8x128xf32>
    %578 = arith.mulf %569, %323 : vector<8x128xf32>
    %579 = arith.addf %564, %578 : vector<8x128xf32>
    %cst_192 = arith.constant 2.000000e+00 : f32
    %580 = vector.broadcast %cst_192 : f32 to vector<8x128xf32>
    %581 = arith.cmpf oeq, %375, %580 : vector<8x128xf32>
    %cst_193 = arith.constant 1.000000e+00 : f32
    %cst_194 = arith.constant 0.000000e+00 : f32
    %582 = vector.broadcast %cst_193 : f32 to vector<8x128xf32>
    %583 = vector.broadcast %cst_194 : f32 to vector<8x128xf32>
    %584 = arith.select %581, %582, %583 : vector<8x128xi1>, vector<8x128xf32>
    %cst_195 = arith.constant -1.000000e+00 : f32
    %585 = vector.broadcast %cst_195 : f32 to vector<8x128xf32>
    %586 = arith.mulf %584, %585 : vector<8x128xf32>
    %587 = arith.addf %572, %586 : vector<8x128xf32>
    %cst_196 = arith.constant -1.000000e+00 : f32
    %588 = vector.broadcast %cst_196 : f32 to vector<8x128xf32>
    %589 = arith.mulf %584, %588 : vector<8x128xf32>
    %590 = arith.addf %575, %589 : vector<8x128xf32>
    %591 = arith.mulf %584, %320 : vector<8x128xf32>
    %592 = arith.addf %577, %591 : vector<8x128xf32>
    %593 = arith.mulf %584, %324 : vector<8x128xf32>
    %594 = arith.addf %579, %593 : vector<8x128xf32>
    %cst_197 = arith.constant 2.000000e+00 : f32
    %595 = vector.broadcast %cst_197 : f32 to vector<8x128xf32>
    %596 = arith.cmpf oeq, %401, %595 : vector<8x128xf32>
    %cst_198 = arith.constant 1.000000e+00 : f32
    %cst_199 = arith.constant 0.000000e+00 : f32
    %597 = vector.broadcast %cst_198 : f32 to vector<8x128xf32>
    %598 = vector.broadcast %cst_199 : f32 to vector<8x128xf32>
    %599 = arith.select %596, %597, %598 : vector<8x128xi1>, vector<8x128xf32>
    %cst_200 = arith.constant 1.000000e+00 : f32
    %600 = vector.broadcast %cst_200 : f32 to vector<8x128xf32>
    %601 = arith.mulf %599, %600 : vector<8x128xf32>
    %602 = arith.addf %587, %601 : vector<8x128xf32>
    %cst_201 = arith.constant -1.000000e+00 : f32
    %603 = vector.broadcast %cst_201 : f32 to vector<8x128xf32>
    %604 = arith.mulf %599, %603 : vector<8x128xf32>
    %605 = arith.addf %590, %604 : vector<8x128xf32>
    %606 = arith.mulf %599, %321 : vector<8x128xf32>
    %607 = arith.addf %592, %606 : vector<8x128xf32>
    %608 = arith.mulf %599, %325 : vector<8x128xf32>
    %609 = arith.addf %594, %608 : vector<8x128xf32>
    %cst_202 = arith.constant 2.000000e+00 : f32
    %610 = vector.broadcast %cst_202 : f32 to vector<8x128xf32>
    %611 = arith.cmpf oeq, %432, %610 : vector<8x128xf32>
    %cst_203 = arith.constant 1.000000e+00 : f32
    %cst_204 = arith.constant 0.000000e+00 : f32
    %612 = vector.broadcast %cst_203 : f32 to vector<8x128xf32>
    %613 = vector.broadcast %cst_204 : f32 to vector<8x128xf32>
    %614 = arith.select %611, %612, %613 : vector<8x128xi1>, vector<8x128xf32>
    %cst_205 = arith.constant 1.000000e+00 : f32
    %615 = vector.broadcast %cst_205 : f32 to vector<8x128xf32>
    %616 = arith.mulf %614, %615 : vector<8x128xf32>
    %617 = arith.addf %602, %616 : vector<8x128xf32>
    %cst_206 = arith.constant 1.000000e+00 : f32
    %618 = vector.broadcast %cst_206 : f32 to vector<8x128xf32>
    %619 = arith.mulf %614, %618 : vector<8x128xf32>
    %620 = arith.addf %605, %619 : vector<8x128xf32>
    %621 = arith.mulf %614, %322 : vector<8x128xf32>
    %622 = arith.addf %607, %621 : vector<8x128xf32>
    %623 = arith.mulf %614, %326 : vector<8x128xf32>
    %624 = arith.addf %609, %623 : vector<8x128xf32>
    %cst_207 = arith.constant 0.000000e+00 : f32
    %625 = vector.broadcast %cst_207 : f32 to vector<8x128xf32>
    %cst_208 = arith.constant 0.000000e+00 : f32
    %626 = vector.broadcast %cst_208 : f32 to vector<8x128xf32>
    %cst_209 = arith.constant 0.000000e+00 : f32
    %627 = vector.broadcast %cst_209 : f32 to vector<8x128xf32>
    %cst_210 = arith.constant 0.000000e+00 : f32
    %628 = vector.broadcast %cst_210 : f32 to vector<8x128xf32>
    %cst_211 = arith.constant 3.000000e+00 : f32
    %629 = vector.broadcast %cst_211 : f32 to vector<8x128xf32>
    %630 = arith.cmpf oeq, %354, %629 : vector<8x128xf32>
    %cst_212 = arith.constant 1.000000e+00 : f32
    %cst_213 = arith.constant 0.000000e+00 : f32
    %631 = vector.broadcast %cst_212 : f32 to vector<8x128xf32>
    %632 = vector.broadcast %cst_213 : f32 to vector<8x128xf32>
    %633 = arith.select %630, %631, %632 : vector<8x128xi1>, vector<8x128xf32>
    %cst_214 = arith.constant -1.000000e+00 : f32
    %634 = vector.broadcast %cst_214 : f32 to vector<8x128xf32>
    %635 = arith.mulf %633, %634 : vector<8x128xf32>
    %636 = arith.addf %625, %635 : vector<8x128xf32>
    %cst_215 = arith.constant 1.000000e+00 : f32
    %637 = vector.broadcast %cst_215 : f32 to vector<8x128xf32>
    %638 = arith.mulf %633, %637 : vector<8x128xf32>
    %639 = arith.addf %626, %638 : vector<8x128xf32>
    %640 = arith.mulf %633, %319 : vector<8x128xf32>
    %641 = arith.addf %627, %640 : vector<8x128xf32>
    %642 = arith.mulf %633, %323 : vector<8x128xf32>
    %643 = arith.addf %628, %642 : vector<8x128xf32>
    %cst_216 = arith.constant 3.000000e+00 : f32
    %644 = vector.broadcast %cst_216 : f32 to vector<8x128xf32>
    %645 = arith.cmpf oeq, %375, %644 : vector<8x128xf32>
    %cst_217 = arith.constant 1.000000e+00 : f32
    %cst_218 = arith.constant 0.000000e+00 : f32
    %646 = vector.broadcast %cst_217 : f32 to vector<8x128xf32>
    %647 = vector.broadcast %cst_218 : f32 to vector<8x128xf32>
    %648 = arith.select %645, %646, %647 : vector<8x128xi1>, vector<8x128xf32>
    %cst_219 = arith.constant -1.000000e+00 : f32
    %649 = vector.broadcast %cst_219 : f32 to vector<8x128xf32>
    %650 = arith.mulf %648, %649 : vector<8x128xf32>
    %651 = arith.addf %636, %650 : vector<8x128xf32>
    %cst_220 = arith.constant -1.000000e+00 : f32
    %652 = vector.broadcast %cst_220 : f32 to vector<8x128xf32>
    %653 = arith.mulf %648, %652 : vector<8x128xf32>
    %654 = arith.addf %639, %653 : vector<8x128xf32>
    %655 = arith.mulf %648, %320 : vector<8x128xf32>
    %656 = arith.addf %641, %655 : vector<8x128xf32>
    %657 = arith.mulf %648, %324 : vector<8x128xf32>
    %658 = arith.addf %643, %657 : vector<8x128xf32>
    %cst_221 = arith.constant 3.000000e+00 : f32
    %659 = vector.broadcast %cst_221 : f32 to vector<8x128xf32>
    %660 = arith.cmpf oeq, %401, %659 : vector<8x128xf32>
    %cst_222 = arith.constant 1.000000e+00 : f32
    %cst_223 = arith.constant 0.000000e+00 : f32
    %661 = vector.broadcast %cst_222 : f32 to vector<8x128xf32>
    %662 = vector.broadcast %cst_223 : f32 to vector<8x128xf32>
    %663 = arith.select %660, %661, %662 : vector<8x128xi1>, vector<8x128xf32>
    %cst_224 = arith.constant 1.000000e+00 : f32
    %664 = vector.broadcast %cst_224 : f32 to vector<8x128xf32>
    %665 = arith.mulf %663, %664 : vector<8x128xf32>
    %666 = arith.addf %651, %665 : vector<8x128xf32>
    %cst_225 = arith.constant -1.000000e+00 : f32
    %667 = vector.broadcast %cst_225 : f32 to vector<8x128xf32>
    %668 = arith.mulf %663, %667 : vector<8x128xf32>
    %669 = arith.addf %654, %668 : vector<8x128xf32>
    %670 = arith.mulf %663, %321 : vector<8x128xf32>
    %671 = arith.addf %656, %670 : vector<8x128xf32>
    %672 = arith.mulf %663, %325 : vector<8x128xf32>
    %673 = arith.addf %658, %672 : vector<8x128xf32>
    %cst_226 = arith.constant 3.000000e+00 : f32
    %674 = vector.broadcast %cst_226 : f32 to vector<8x128xf32>
    %675 = arith.cmpf oeq, %432, %674 : vector<8x128xf32>
    %cst_227 = arith.constant 1.000000e+00 : f32
    %cst_228 = arith.constant 0.000000e+00 : f32
    %676 = vector.broadcast %cst_227 : f32 to vector<8x128xf32>
    %677 = vector.broadcast %cst_228 : f32 to vector<8x128xf32>
    %678 = arith.select %675, %676, %677 : vector<8x128xi1>, vector<8x128xf32>
    %cst_229 = arith.constant 1.000000e+00 : f32
    %679 = vector.broadcast %cst_229 : f32 to vector<8x128xf32>
    %680 = arith.mulf %678, %679 : vector<8x128xf32>
    %681 = arith.addf %666, %680 : vector<8x128xf32>
    %cst_230 = arith.constant 1.000000e+00 : f32
    %682 = vector.broadcast %cst_230 : f32 to vector<8x128xf32>
    %683 = arith.mulf %678, %682 : vector<8x128xf32>
    %684 = arith.addf %669, %683 : vector<8x128xf32>
    %685 = arith.mulf %678, %322 : vector<8x128xf32>
    %686 = arith.addf %671, %685 : vector<8x128xf32>
    %687 = arith.mulf %678, %326 : vector<8x128xf32>
    %688 = arith.addf %673, %687 : vector<8x128xf32>
    %cst_231 = arith.constant 1.000000e+00 : f32
    %689 = vector.broadcast %cst_231 : f32 to vector<8x128xf32>
    %690 = arith.mulf %316, %689 : vector<8x128xf32>
    %691 = arith.mulf %317, %689 : vector<8x128xf32>
    %692 = arith.subf %690, %691 : vector<8x128xf32>
    %693 = arith.mulf %315, %689 : vector<8x128xf32>
    %694 = arith.mulf %317, %689 : vector<8x128xf32>
    %695 = arith.subf %693, %694 : vector<8x128xf32>
    %cst_232 = arith.constant 0.000000e+00 : f32
    %696 = vector.broadcast %cst_232 : f32 to vector<8x128xf32>
    %697 = arith.subf %696, %695 : vector<8x128xf32>
    %698 = arith.mulf %315, %689 : vector<8x128xf32>
    %699 = arith.mulf %316, %689 : vector<8x128xf32>
    %700 = arith.subf %698, %699 : vector<8x128xf32>
    %701 = arith.mulf %312, %689 : vector<8x128xf32>
    %702 = arith.mulf %313, %689 : vector<8x128xf32>
    %703 = arith.subf %701, %702 : vector<8x128xf32>
    %cst_233 = arith.constant 0.000000e+00 : f32
    %704 = vector.broadcast %cst_233 : f32 to vector<8x128xf32>
    %705 = arith.subf %704, %703 : vector<8x128xf32>
    %706 = arith.mulf %311, %689 : vector<8x128xf32>
    %707 = arith.mulf %313, %689 : vector<8x128xf32>
    %708 = arith.subf %706, %707 : vector<8x128xf32>
    %709 = arith.mulf %311, %689 : vector<8x128xf32>
    %710 = arith.mulf %312, %689 : vector<8x128xf32>
    %711 = arith.subf %709, %710 : vector<8x128xf32>
    %cst_234 = arith.constant 0.000000e+00 : f32
    %712 = vector.broadcast %cst_234 : f32 to vector<8x128xf32>
    %713 = arith.subf %712, %711 : vector<8x128xf32>
    %714 = arith.mulf %312, %317 : vector<8x128xf32>
    %715 = arith.mulf %313, %316 : vector<8x128xf32>
    %716 = arith.subf %714, %715 : vector<8x128xf32>
    %717 = arith.mulf %311, %317 : vector<8x128xf32>
    %718 = arith.mulf %313, %315 : vector<8x128xf32>
    %719 = arith.subf %717, %718 : vector<8x128xf32>
    %cst_235 = arith.constant 0.000000e+00 : f32
    %720 = vector.broadcast %cst_235 : f32 to vector<8x128xf32>
    %721 = arith.subf %720, %719 : vector<8x128xf32>
    %722 = arith.mulf %311, %316 : vector<8x128xf32>
    %723 = arith.mulf %312, %315 : vector<8x128xf32>
    %724 = arith.subf %722, %723 : vector<8x128xf32>
    %725 = arith.mulf %692, %314 : vector<8x128xf32>
    %cst_236 = arith.constant 0.000000e+00 : f32
    %726 = vector.broadcast %cst_236 : f32 to vector<8x128xf32>
    %727 = arith.addf %726, %725 : vector<8x128xf32>
    %728 = arith.mulf %705, %318 : vector<8x128xf32>
    %729 = arith.addf %727, %728 : vector<8x128xf32>
    %730 = arith.mulf %716, %689 : vector<8x128xf32>
    %731 = arith.addf %729, %730 : vector<8x128xf32>
    %732 = arith.mulf %697, %314 : vector<8x128xf32>
    %cst_237 = arith.constant 0.000000e+00 : f32
    %733 = vector.broadcast %cst_237 : f32 to vector<8x128xf32>
    %734 = arith.addf %733, %732 : vector<8x128xf32>
    %735 = arith.mulf %708, %318 : vector<8x128xf32>
    %736 = arith.addf %734, %735 : vector<8x128xf32>
    %737 = arith.mulf %721, %689 : vector<8x128xf32>
    %738 = arith.addf %736, %737 : vector<8x128xf32>
    %739 = arith.mulf %700, %314 : vector<8x128xf32>
    %cst_238 = arith.constant 0.000000e+00 : f32
    %740 = vector.broadcast %cst_238 : f32 to vector<8x128xf32>
    %741 = arith.addf %740, %739 : vector<8x128xf32>
    %742 = arith.mulf %713, %318 : vector<8x128xf32>
    %743 = arith.addf %741, %742 : vector<8x128xf32>
    %744 = arith.mulf %724, %689 : vector<8x128xf32>
    %745 = arith.addf %743, %744 : vector<8x128xf32>
    %746 = arith.mulf %311, %731 : vector<8x128xf32>
    %747 = arith.mulf %312, %738 : vector<8x128xf32>
    %748 = arith.mulf %313, %745 : vector<8x128xf32>
    %749 = arith.mulf %315, %731 : vector<8x128xf32>
    %750 = arith.mulf %316, %738 : vector<8x128xf32>
    %751 = arith.mulf %317, %745 : vector<8x128xf32>
    %752 = arith.mulf %689, %731 : vector<8x128xf32>
    %753 = arith.mulf %689, %738 : vector<8x128xf32>
    %754 = arith.mulf %689, %745 : vector<8x128xf32>
    %cst_239 = arith.constant 1.000000e+00 : f32
    %755 = vector.broadcast %cst_239 : f32 to vector<8x128xf32>
    %756 = arith.mulf %556, %755 : vector<8x128xf32>
    %757 = arith.mulf %620, %755 : vector<8x128xf32>
    %758 = arith.subf %756, %757 : vector<8x128xf32>
    %759 = arith.mulf %492, %755 : vector<8x128xf32>
    %760 = arith.mulf %620, %755 : vector<8x128xf32>
    %761 = arith.subf %759, %760 : vector<8x128xf32>
    %cst_240 = arith.constant 0.000000e+00 : f32
    %762 = vector.broadcast %cst_240 : f32 to vector<8x128xf32>
    %763 = arith.subf %762, %761 : vector<8x128xf32>
    %764 = arith.mulf %492, %755 : vector<8x128xf32>
    %765 = arith.mulf %556, %755 : vector<8x128xf32>
    %766 = arith.subf %764, %765 : vector<8x128xf32>
    %767 = arith.mulf %553, %755 : vector<8x128xf32>
    %768 = arith.mulf %617, %755 : vector<8x128xf32>
    %769 = arith.subf %767, %768 : vector<8x128xf32>
    %cst_241 = arith.constant 0.000000e+00 : f32
    %770 = vector.broadcast %cst_241 : f32 to vector<8x128xf32>
    %771 = arith.subf %770, %769 : vector<8x128xf32>
    %772 = arith.mulf %489, %755 : vector<8x128xf32>
    %773 = arith.mulf %617, %755 : vector<8x128xf32>
    %774 = arith.subf %772, %773 : vector<8x128xf32>
    %775 = arith.mulf %489, %755 : vector<8x128xf32>
    %776 = arith.mulf %553, %755 : vector<8x128xf32>
    %777 = arith.subf %775, %776 : vector<8x128xf32>
    %cst_242 = arith.constant 0.000000e+00 : f32
    %778 = vector.broadcast %cst_242 : f32 to vector<8x128xf32>
    %779 = arith.subf %778, %777 : vector<8x128xf32>
    %780 = arith.mulf %553, %620 : vector<8x128xf32>
    %781 = arith.mulf %617, %556 : vector<8x128xf32>
    %782 = arith.subf %780, %781 : vector<8x128xf32>
    %783 = arith.mulf %489, %620 : vector<8x128xf32>
    %784 = arith.mulf %617, %492 : vector<8x128xf32>
    %785 = arith.subf %783, %784 : vector<8x128xf32>
    %cst_243 = arith.constant 0.000000e+00 : f32
    %786 = vector.broadcast %cst_243 : f32 to vector<8x128xf32>
    %787 = arith.subf %786, %785 : vector<8x128xf32>
    %788 = arith.mulf %489, %556 : vector<8x128xf32>
    %789 = arith.mulf %553, %492 : vector<8x128xf32>
    %790 = arith.subf %788, %789 : vector<8x128xf32>
    %791 = arith.mulf %758, %681 : vector<8x128xf32>
    %cst_244 = arith.constant 0.000000e+00 : f32
    %792 = vector.broadcast %cst_244 : f32 to vector<8x128xf32>
    %793 = arith.addf %792, %791 : vector<8x128xf32>
    %794 = arith.mulf %771, %684 : vector<8x128xf32>
    %795 = arith.addf %793, %794 : vector<8x128xf32>
    %796 = arith.mulf %782, %755 : vector<8x128xf32>
    %797 = arith.addf %795, %796 : vector<8x128xf32>
    %798 = arith.mulf %763, %681 : vector<8x128xf32>
    %cst_245 = arith.constant 0.000000e+00 : f32
    %799 = vector.broadcast %cst_245 : f32 to vector<8x128xf32>
    %800 = arith.addf %799, %798 : vector<8x128xf32>
    %801 = arith.mulf %774, %684 : vector<8x128xf32>
    %802 = arith.addf %800, %801 : vector<8x128xf32>
    %803 = arith.mulf %787, %755 : vector<8x128xf32>
    %804 = arith.addf %802, %803 : vector<8x128xf32>
    %805 = arith.mulf %766, %681 : vector<8x128xf32>
    %cst_246 = arith.constant 0.000000e+00 : f32
    %806 = vector.broadcast %cst_246 : f32 to vector<8x128xf32>
    %807 = arith.addf %806, %805 : vector<8x128xf32>
    %808 = arith.mulf %779, %684 : vector<8x128xf32>
    %809 = arith.addf %807, %808 : vector<8x128xf32>
    %810 = arith.mulf %790, %755 : vector<8x128xf32>
    %811 = arith.addf %809, %810 : vector<8x128xf32>
    %812 = arith.mulf %489, %797 : vector<8x128xf32>
    %813 = arith.mulf %553, %804 : vector<8x128xf32>
    %814 = arith.mulf %617, %811 : vector<8x128xf32>
    %815 = arith.mulf %492, %797 : vector<8x128xf32>
    %816 = arith.mulf %556, %804 : vector<8x128xf32>
    %817 = arith.mulf %620, %811 : vector<8x128xf32>
    %818 = arith.mulf %755, %797 : vector<8x128xf32>
    %819 = arith.mulf %755, %804 : vector<8x128xf32>
    %820 = arith.mulf %755, %811 : vector<8x128xf32>
    %821 = arith.mulf %750, %754 : vector<8x128xf32>
    %822 = arith.mulf %751, %753 : vector<8x128xf32>
    %823 = arith.subf %821, %822 : vector<8x128xf32>
    %824 = arith.mulf %749, %754 : vector<8x128xf32>
    %825 = arith.mulf %751, %752 : vector<8x128xf32>
    %826 = arith.subf %824, %825 : vector<8x128xf32>
    %cst_247 = arith.constant 0.000000e+00 : f32
    %827 = vector.broadcast %cst_247 : f32 to vector<8x128xf32>
    %828 = arith.subf %827, %826 : vector<8x128xf32>
    %829 = arith.mulf %749, %753 : vector<8x128xf32>
    %830 = arith.mulf %750, %752 : vector<8x128xf32>
    %831 = arith.subf %829, %830 : vector<8x128xf32>
    %832 = arith.mulf %747, %754 : vector<8x128xf32>
    %833 = arith.mulf %748, %753 : vector<8x128xf32>
    %834 = arith.subf %832, %833 : vector<8x128xf32>
    %cst_248 = arith.constant 0.000000e+00 : f32
    %835 = vector.broadcast %cst_248 : f32 to vector<8x128xf32>
    %836 = arith.subf %835, %834 : vector<8x128xf32>
    %837 = arith.mulf %746, %754 : vector<8x128xf32>
    %838 = arith.mulf %748, %752 : vector<8x128xf32>
    %839 = arith.subf %837, %838 : vector<8x128xf32>
    %840 = arith.mulf %746, %753 : vector<8x128xf32>
    %841 = arith.mulf %747, %752 : vector<8x128xf32>
    %842 = arith.subf %840, %841 : vector<8x128xf32>
    %cst_249 = arith.constant 0.000000e+00 : f32
    %843 = vector.broadcast %cst_249 : f32 to vector<8x128xf32>
    %844 = arith.subf %843, %842 : vector<8x128xf32>
    %845 = arith.mulf %747, %751 : vector<8x128xf32>
    %846 = arith.mulf %748, %750 : vector<8x128xf32>
    %847 = arith.subf %845, %846 : vector<8x128xf32>
    %848 = arith.mulf %746, %751 : vector<8x128xf32>
    %849 = arith.mulf %748, %749 : vector<8x128xf32>
    %850 = arith.subf %848, %849 : vector<8x128xf32>
    %cst_250 = arith.constant 0.000000e+00 : f32
    %851 = vector.broadcast %cst_250 : f32 to vector<8x128xf32>
    %852 = arith.subf %851, %850 : vector<8x128xf32>
    %853 = arith.mulf %746, %750 : vector<8x128xf32>
    %854 = arith.mulf %747, %749 : vector<8x128xf32>
    %855 = arith.subf %853, %854 : vector<8x128xf32>
    %856 = arith.mulf %812, %823 : vector<8x128xf32>
    %cst_251 = arith.constant 0.000000e+00 : f32
    %857 = vector.broadcast %cst_251 : f32 to vector<8x128xf32>
    %858 = arith.addf %857, %856 : vector<8x128xf32>
    %859 = arith.mulf %813, %828 : vector<8x128xf32>
    %860 = arith.addf %858, %859 : vector<8x128xf32>
    %861 = arith.mulf %814, %831 : vector<8x128xf32>
    %862 = arith.addf %860, %861 : vector<8x128xf32>
    %863 = arith.mulf %812, %836 : vector<8x128xf32>
    %cst_252 = arith.constant 0.000000e+00 : f32
    %864 = vector.broadcast %cst_252 : f32 to vector<8x128xf32>
    %865 = arith.addf %864, %863 : vector<8x128xf32>
    %866 = arith.mulf %813, %839 : vector<8x128xf32>
    %867 = arith.addf %865, %866 : vector<8x128xf32>
    %868 = arith.mulf %814, %844 : vector<8x128xf32>
    %869 = arith.addf %867, %868 : vector<8x128xf32>
    %870 = arith.mulf %812, %847 : vector<8x128xf32>
    %cst_253 = arith.constant 0.000000e+00 : f32
    %871 = vector.broadcast %cst_253 : f32 to vector<8x128xf32>
    %872 = arith.addf %871, %870 : vector<8x128xf32>
    %873 = arith.mulf %813, %852 : vector<8x128xf32>
    %874 = arith.addf %872, %873 : vector<8x128xf32>
    %875 = arith.mulf %814, %855 : vector<8x128xf32>
    %876 = arith.addf %874, %875 : vector<8x128xf32>
    %877 = arith.mulf %815, %823 : vector<8x128xf32>
    %cst_254 = arith.constant 0.000000e+00 : f32
    %878 = vector.broadcast %cst_254 : f32 to vector<8x128xf32>
    %879 = arith.addf %878, %877 : vector<8x128xf32>
    %880 = arith.mulf %816, %828 : vector<8x128xf32>
    %881 = arith.addf %879, %880 : vector<8x128xf32>
    %882 = arith.mulf %817, %831 : vector<8x128xf32>
    %883 = arith.addf %881, %882 : vector<8x128xf32>
    %884 = arith.mulf %815, %836 : vector<8x128xf32>
    %cst_255 = arith.constant 0.000000e+00 : f32
    %885 = vector.broadcast %cst_255 : f32 to vector<8x128xf32>
    %886 = arith.addf %885, %884 : vector<8x128xf32>
    %887 = arith.mulf %816, %839 : vector<8x128xf32>
    %888 = arith.addf %886, %887 : vector<8x128xf32>
    %889 = arith.mulf %817, %844 : vector<8x128xf32>
    %890 = arith.addf %888, %889 : vector<8x128xf32>
    %891 = arith.mulf %815, %847 : vector<8x128xf32>
    %cst_256 = arith.constant 0.000000e+00 : f32
    %892 = vector.broadcast %cst_256 : f32 to vector<8x128xf32>
    %893 = arith.addf %892, %891 : vector<8x128xf32>
    %894 = arith.mulf %816, %852 : vector<8x128xf32>
    %895 = arith.addf %893, %894 : vector<8x128xf32>
    %896 = arith.mulf %817, %855 : vector<8x128xf32>
    %897 = arith.addf %895, %896 : vector<8x128xf32>
    %898 = arith.mulf %818, %823 : vector<8x128xf32>
    %cst_257 = arith.constant 0.000000e+00 : f32
    %899 = vector.broadcast %cst_257 : f32 to vector<8x128xf32>
    %900 = arith.addf %899, %898 : vector<8x128xf32>
    %901 = arith.mulf %819, %828 : vector<8x128xf32>
    %902 = arith.addf %900, %901 : vector<8x128xf32>
    %903 = arith.mulf %820, %831 : vector<8x128xf32>
    %904 = arith.addf %902, %903 : vector<8x128xf32>
    %905 = arith.mulf %818, %836 : vector<8x128xf32>
    %cst_258 = arith.constant 0.000000e+00 : f32
    %906 = vector.broadcast %cst_258 : f32 to vector<8x128xf32>
    %907 = arith.addf %906, %905 : vector<8x128xf32>
    %908 = arith.mulf %819, %839 : vector<8x128xf32>
    %909 = arith.addf %907, %908 : vector<8x128xf32>
    %910 = arith.mulf %820, %844 : vector<8x128xf32>
    %911 = arith.addf %909, %910 : vector<8x128xf32>
    %912 = arith.mulf %818, %847 : vector<8x128xf32>
    %cst_259 = arith.constant 0.000000e+00 : f32
    %913 = vector.broadcast %cst_259 : f32 to vector<8x128xf32>
    %914 = arith.addf %913, %912 : vector<8x128xf32>
    %915 = arith.mulf %819, %852 : vector<8x128xf32>
    %916 = arith.addf %914, %915 : vector<8x128xf32>
    %917 = arith.mulf %820, %855 : vector<8x128xf32>
    %918 = arith.addf %916, %917 : vector<8x128xf32>
    %919 = arith.mulf %904, %311 : vector<8x128xf32>
    %920 = arith.mulf %911, %315 : vector<8x128xf32>
    %921 = arith.addf %919, %920 : vector<8x128xf32>
    %922 = arith.addf %921, %918 : vector<8x128xf32>
    %923 = tpu.reciprocal %922 {approx = true} : vector<8x128xf32> -> vector<8x128xf32>
    %924 = arith.mulf %922, %923 : vector<8x128xf32>
    %cst_260 = arith.constant 2.000000e+00 : f32
    %925 = vector.broadcast %cst_260 : f32 to vector<8x128xf32>
    %926 = arith.subf %925, %924 : vector<8x128xf32>
    %927 = arith.mulf %923, %926 : vector<8x128xf32>
    %928 = arith.mulf %862, %311 : vector<8x128xf32>
    %929 = arith.mulf %869, %315 : vector<8x128xf32>
    %930 = arith.addf %928, %929 : vector<8x128xf32>
    %931 = arith.addf %930, %876 : vector<8x128xf32>
    %932 = arith.mulf %883, %311 : vector<8x128xf32>
    %933 = arith.mulf %890, %315 : vector<8x128xf32>
    %934 = arith.addf %932, %933 : vector<8x128xf32>
    %935 = arith.addf %934, %897 : vector<8x128xf32>
    %936 = arith.mulf %931, %927 : vector<8x128xf32>
    %937 = arith.mulf %936, %297 : vector<8x128xf32>
    %938 = arith.addf %937, %305 : vector<8x128xf32>
    %939 = arith.mulf %935, %927 : vector<8x128xf32>
    %940 = arith.mulf %939, %300 : vector<8x128xf32>
    %941 = arith.addf %940, %310 : vector<8x128xf32>
    %942 = arith.mulf %904, %312 : vector<8x128xf32>
    %943 = arith.mulf %911, %316 : vector<8x128xf32>
    %944 = arith.addf %942, %943 : vector<8x128xf32>
    %945 = arith.addf %944, %918 : vector<8x128xf32>
    %946 = tpu.reciprocal %945 {approx = true} : vector<8x128xf32> -> vector<8x128xf32>
    %947 = arith.mulf %945, %946 : vector<8x128xf32>
    %cst_261 = arith.constant 2.000000e+00 : f32
    %948 = vector.broadcast %cst_261 : f32 to vector<8x128xf32>
    %949 = arith.subf %948, %947 : vector<8x128xf32>
    %950 = arith.mulf %946, %949 : vector<8x128xf32>
    %951 = arith.mulf %862, %312 : vector<8x128xf32>
    %952 = arith.mulf %869, %316 : vector<8x128xf32>
    %953 = arith.addf %951, %952 : vector<8x128xf32>
    %954 = arith.addf %953, %876 : vector<8x128xf32>
    %955 = arith.mulf %883, %312 : vector<8x128xf32>
    %956 = arith.mulf %890, %316 : vector<8x128xf32>
    %957 = arith.addf %955, %956 : vector<8x128xf32>
    %958 = arith.addf %957, %897 : vector<8x128xf32>
    %959 = arith.mulf %954, %950 : vector<8x128xf32>
    %960 = arith.mulf %959, %297 : vector<8x128xf32>
    %961 = arith.addf %960, %305 : vector<8x128xf32>
    %962 = arith.mulf %958, %950 : vector<8x128xf32>
    %963 = arith.mulf %962, %300 : vector<8x128xf32>
    %964 = arith.addf %963, %310 : vector<8x128xf32>
    %965 = arith.mulf %904, %313 : vector<8x128xf32>
    %966 = arith.mulf %911, %317 : vector<8x128xf32>
    %967 = arith.addf %965, %966 : vector<8x128xf32>
    %968 = arith.addf %967, %918 : vector<8x128xf32>
    %969 = tpu.reciprocal %968 {approx = true} : vector<8x128xf32> -> vector<8x128xf32>
    %970 = arith.mulf %968, %969 : vector<8x128xf32>
    %cst_262 = arith.constant 2.000000e+00 : f32
    %971 = vector.broadcast %cst_262 : f32 to vector<8x128xf32>
    %972 = arith.subf %971, %970 : vector<8x128xf32>
    %973 = arith.mulf %969, %972 : vector<8x128xf32>
    %974 = arith.mulf %862, %313 : vector<8x128xf32>
    %975 = arith.mulf %869, %317 : vector<8x128xf32>
    %976 = arith.addf %974, %975 : vector<8x128xf32>
    %977 = arith.addf %976, %876 : vector<8x128xf32>
    %978 = arith.mulf %883, %313 : vector<8x128xf32>
    %979 = arith.mulf %890, %317 : vector<8x128xf32>
    %980 = arith.addf %978, %979 : vector<8x128xf32>
    %981 = arith.addf %980, %897 : vector<8x128xf32>
    %982 = arith.mulf %977, %973 : vector<8x128xf32>
    %983 = arith.mulf %982, %297 : vector<8x128xf32>
    %984 = arith.addf %983, %305 : vector<8x128xf32>
    %985 = arith.mulf %981, %973 : vector<8x128xf32>
    %986 = arith.mulf %985, %300 : vector<8x128xf32>
    %987 = arith.addf %986, %310 : vector<8x128xf32>
    %988 = arith.mulf %904, %314 : vector<8x128xf32>
    %989 = arith.mulf %911, %318 : vector<8x128xf32>
    %990 = arith.addf %988, %989 : vector<8x128xf32>
    %991 = arith.addf %990, %918 : vector<8x128xf32>
    %992 = tpu.reciprocal %991 {approx = true} : vector<8x128xf32> -> vector<8x128xf32>
    %993 = arith.mulf %991, %992 : vector<8x128xf32>
    %cst_263 = arith.constant 2.000000e+00 : f32
    %994 = vector.broadcast %cst_263 : f32 to vector<8x128xf32>
    %995 = arith.subf %994, %993 : vector<8x128xf32>
    %996 = arith.mulf %992, %995 : vector<8x128xf32>
    %997 = arith.mulf %862, %314 : vector<8x128xf32>
    %998 = arith.mulf %869, %318 : vector<8x128xf32>
    %999 = arith.addf %997, %998 : vector<8x128xf32>
    %1000 = arith.addf %999, %876 : vector<8x128xf32>
    %1001 = arith.mulf %883, %314 : vector<8x128xf32>
    %1002 = arith.mulf %890, %318 : vector<8x128xf32>
    %1003 = arith.addf %1001, %1002 : vector<8x128xf32>
    %1004 = arith.addf %1003, %897 : vector<8x128xf32>
    %1005 = arith.mulf %1000, %996 : vector<8x128xf32>
    %1006 = arith.mulf %1005, %297 : vector<8x128xf32>
    %1007 = arith.addf %1006, %305 : vector<8x128xf32>
    %1008 = arith.mulf %1004, %996 : vector<8x128xf32>
    %1009 = arith.mulf %1008, %300 : vector<8x128xf32>
    %1010 = arith.addf %1009, %310 : vector<8x128xf32>
    %1011 = arith.addf %938, %961 : vector<8x128xf32>
    %1012 = arith.addf %1011, %984 : vector<8x128xf32>
    %1013 = arith.addf %1012, %1007 : vector<8x128xf32>
    %cst_264 = arith.constant 2.500000e-01 : f32
    %1014 = vector.broadcast %cst_264 : f32 to vector<8x128xf32>
    %1015 = arith.mulf %1014, %1013 : vector<8x128xf32>
    %1016 = arith.addf %941, %964 : vector<8x128xf32>
    %1017 = arith.addf %1016, %987 : vector<8x128xf32>
    %1018 = arith.addf %1017, %1010 : vector<8x128xf32>
    %cst_265 = arith.constant 2.500000e-01 : f32
    %1019 = vector.broadcast %cst_265 : f32 to vector<8x128xf32>
    %1020 = arith.mulf %1019, %1018 : vector<8x128xf32>
    %cst_266 = arith.constant 0.000000e+00 : f32
    %1021 = vector.broadcast %cst_266 : f32 to vector<8x128xf32>
    %cst_267 = arith.constant 0.000000e+00 : f32
    %1022 = vector.broadcast %cst_267 : f32 to vector<8x128xf32>
    %cst_268 = arith.constant 0.000000e+00 : f32
    %1023 = vector.broadcast %cst_268 : f32 to vector<8x128xf32>
    %cst_269 = arith.constant 0.000000e+00 : f32
    %1024 = vector.broadcast %cst_269 : f32 to vector<8x128xf32>
    %cst_270 = arith.constant 0.000000e+00 : f32
    %1025 = vector.broadcast %cst_270 : f32 to vector<8x128xf32>
    %1026 = arith.subf %938, %1015 : vector<8x128xf32>
    %1027 = arith.subf %941, %1020 : vector<8x128xf32>
    %1028 = arith.subf %494, %1015 : vector<8x128xf32>
    %1029 = arith.subf %496, %1020 : vector<8x128xf32>
    %1030 = arith.mulf %1026, %1026 : vector<8x128xf32>
    %1031 = arith.addf %1025, %1030 : vector<8x128xf32>
    %1032 = arith.mulf %1027, %1027 : vector<8x128xf32>
    %1033 = arith.addf %1031, %1032 : vector<8x128xf32>
    %1034 = arith.mulf %1026, %1028 : vector<8x128xf32>
    %1035 = arith.addf %1021, %1034 : vector<8x128xf32>
    %1036 = arith.mulf %1026, %1029 : vector<8x128xf32>
    %1037 = arith.addf %1022, %1036 : vector<8x128xf32>
    %1038 = arith.mulf %1027, %1028 : vector<8x128xf32>
    %1039 = arith.addf %1023, %1038 : vector<8x128xf32>
    %1040 = arith.mulf %1027, %1029 : vector<8x128xf32>
    %1041 = arith.addf %1024, %1040 : vector<8x128xf32>
    %1042 = arith.subf %961, %1015 : vector<8x128xf32>
    %1043 = arith.subf %964, %1020 : vector<8x128xf32>
    %1044 = arith.subf %558, %1015 : vector<8x128xf32>
    %1045 = arith.subf %560, %1020 : vector<8x128xf32>
    %1046 = arith.mulf %1042, %1042 : vector<8x128xf32>
    %1047 = arith.addf %1033, %1046 : vector<8x128xf32>
    %1048 = arith.mulf %1043, %1043 : vector<8x128xf32>
    %1049 = arith.addf %1047, %1048 : vector<8x128xf32>
    %1050 = arith.mulf %1042, %1044 : vector<8x128xf32>
    %1051 = arith.addf %1035, %1050 : vector<8x128xf32>
    %1052 = arith.mulf %1042, %1045 : vector<8x128xf32>
    %1053 = arith.addf %1037, %1052 : vector<8x128xf32>
    %1054 = arith.mulf %1043, %1044 : vector<8x128xf32>
    %1055 = arith.addf %1039, %1054 : vector<8x128xf32>
    %1056 = arith.mulf %1043, %1045 : vector<8x128xf32>
    %1057 = arith.addf %1041, %1056 : vector<8x128xf32>
    %1058 = arith.subf %984, %1015 : vector<8x128xf32>
    %1059 = arith.subf %987, %1020 : vector<8x128xf32>
    %1060 = arith.subf %622, %1015 : vector<8x128xf32>
    %1061 = arith.subf %624, %1020 : vector<8x128xf32>
    %1062 = arith.mulf %1058, %1058 : vector<8x128xf32>
    %1063 = arith.addf %1049, %1062 : vector<8x128xf32>
    %1064 = arith.mulf %1059, %1059 : vector<8x128xf32>
    %1065 = arith.addf %1063, %1064 : vector<8x128xf32>
    %1066 = arith.mulf %1058, %1060 : vector<8x128xf32>
    %1067 = arith.addf %1051, %1066 : vector<8x128xf32>
    %1068 = arith.mulf %1058, %1061 : vector<8x128xf32>
    %1069 = arith.addf %1053, %1068 : vector<8x128xf32>
    %1070 = arith.mulf %1059, %1060 : vector<8x128xf32>
    %1071 = arith.addf %1055, %1070 : vector<8x128xf32>
    %1072 = arith.mulf %1059, %1061 : vector<8x128xf32>
    %1073 = arith.addf %1057, %1072 : vector<8x128xf32>
    %1074 = arith.subf %1007, %1015 : vector<8x128xf32>
    %1075 = arith.subf %1010, %1020 : vector<8x128xf32>
    %1076 = arith.subf %686, %1015 : vector<8x128xf32>
    %1077 = arith.subf %688, %1020 : vector<8x128xf32>
    %1078 = arith.mulf %1074, %1074 : vector<8x128xf32>
    %1079 = arith.addf %1065, %1078 : vector<8x128xf32>
    %1080 = arith.mulf %1075, %1075 : vector<8x128xf32>
    %1081 = arith.addf %1079, %1080 : vector<8x128xf32>
    %1082 = arith.mulf %1074, %1076 : vector<8x128xf32>
    %1083 = arith.addf %1067, %1082 : vector<8x128xf32>
    %1084 = arith.mulf %1074, %1077 : vector<8x128xf32>
    %1085 = arith.addf %1069, %1084 : vector<8x128xf32>
    %1086 = arith.mulf %1075, %1076 : vector<8x128xf32>
    %1087 = arith.addf %1071, %1086 : vector<8x128xf32>
    %1088 = arith.mulf %1075, %1077 : vector<8x128xf32>
    %1089 = arith.addf %1073, %1088 : vector<8x128xf32>
    %1090 = arith.subf %1085, %1087 : vector<8x128xf32>
    %1091 = arith.addf %1083, %1089 : vector<8x128xf32>
    %1092 = math.atan2 %1090, %1091 : vector<8x128xf32>
    %1093 = math.cos %1092 : vector<8x128xf32>
    %1094 = math.sin %1092 : vector<8x128xf32>
    %1095 = arith.addf %1083, %1089 : vector<8x128xf32>
    %1096 = arith.mulf %1093, %1095 : vector<8x128xf32>
    %1097 = arith.subf %1085, %1087 : vector<8x128xf32>
    %1098 = arith.mulf %1094, %1097 : vector<8x128xf32>
    %1099 = arith.addf %1096, %1098 : vector<8x128xf32>
    %1100 = tpu.reciprocal %1081 {approx = true} : vector<8x128xf32> -> vector<8x128xf32>
    %1101 = arith.mulf %1081, %1100 : vector<8x128xf32>
    %cst_271 = arith.constant 2.000000e+00 : f32
    %1102 = vector.broadcast %cst_271 : f32 to vector<8x128xf32>
    %1103 = arith.subf %1102, %1101 : vector<8x128xf32>
    %1104 = arith.mulf %1100, %1103 : vector<8x128xf32>
    %1105 = arith.mulf %1099, %1104 : vector<8x128xf32>
    %1106 = arith.mulf %1093, %1015 : vector<8x128xf32>
    %1107 = arith.mulf %1094, %1020 : vector<8x128xf32>
    %1108 = arith.subf %1106, %1107 : vector<8x128xf32>
    %1109 = arith.mulf %1105, %1108 : vector<8x128xf32>
    %1110 = arith.subf %1015, %1109 : vector<8x128xf32>
    %1111 = arith.mulf %1094, %1015 : vector<8x128xf32>
    %1112 = arith.mulf %1093, %1020 : vector<8x128xf32>
    %1113 = arith.addf %1111, %1112 : vector<8x128xf32>
    %1114 = arith.mulf %1105, %1113 : vector<8x128xf32>
    %1115 = arith.subf %1020, %1114 : vector<8x128xf32>
    %1116 = arith.mulf %1093, %938 : vector<8x128xf32>
    %1117 = arith.mulf %1094, %941 : vector<8x128xf32>
    %1118 = arith.subf %1116, %1117 : vector<8x128xf32>
    %1119 = arith.mulf %1105, %1118 : vector<8x128xf32>
    %1120 = arith.addf %1119, %1110 : vector<8x128xf32>
    %1121 = arith.mulf %1093, %961 : vector<8x128xf32>
    %1122 = arith.mulf %1094, %964 : vector<8x128xf32>
    %1123 = arith.subf %1121, %1122 : vector<8x128xf32>
    %1124 = arith.mulf %1105, %1123 : vector<8x128xf32>
    %1125 = arith.addf %1124, %1110 : vector<8x128xf32>
    %1126 = arith.mulf %1093, %984 : vector<8x128xf32>
    %1127 = arith.mulf %1094, %987 : vector<8x128xf32>
    %1128 = arith.subf %1126, %1127 : vector<8x128xf32>
    %1129 = arith.mulf %1105, %1128 : vector<8x128xf32>
    %1130 = arith.addf %1129, %1110 : vector<8x128xf32>
    %1131 = arith.mulf %1093, %1007 : vector<8x128xf32>
    %1132 = arith.mulf %1094, %1010 : vector<8x128xf32>
    %1133 = arith.subf %1131, %1132 : vector<8x128xf32>
    %1134 = arith.mulf %1105, %1133 : vector<8x128xf32>
    %1135 = arith.addf %1134, %1110 : vector<8x128xf32>
    %1136 = arith.mulf %1094, %938 : vector<8x128xf32>
    %1137 = arith.mulf %1093, %941 : vector<8x128xf32>
    %1138 = arith.addf %1136, %1137 : vector<8x128xf32>
    %1139 = arith.mulf %1105, %1138 : vector<8x128xf32>
    %1140 = arith.addf %1139, %1115 : vector<8x128xf32>
    %1141 = arith.mulf %1094, %961 : vector<8x128xf32>
    %1142 = arith.mulf %1093, %964 : vector<8x128xf32>
    %1143 = arith.addf %1141, %1142 : vector<8x128xf32>
    %1144 = arith.mulf %1105, %1143 : vector<8x128xf32>
    %1145 = arith.addf %1144, %1115 : vector<8x128xf32>
    %1146 = arith.mulf %1094, %984 : vector<8x128xf32>
    %1147 = arith.mulf %1093, %987 : vector<8x128xf32>
    %1148 = arith.addf %1146, %1147 : vector<8x128xf32>
    %1149 = arith.mulf %1105, %1148 : vector<8x128xf32>
    %1150 = arith.addf %1149, %1115 : vector<8x128xf32>
    %1151 = arith.mulf %1094, %1007 : vector<8x128xf32>
    %1152 = arith.mulf %1093, %1010 : vector<8x128xf32>
    %1153 = arith.addf %1151, %1152 : vector<8x128xf32>
    %1154 = arith.mulf %1105, %1153 : vector<8x128xf32>
    %1155 = arith.addf %1154, %1115 : vector<8x128xf32>
    %cst_272 = arith.constant -1.600000e+00 : f32
    %1156 = vector.broadcast %cst_272 : f32 to vector<8x128xf32>
    %cst_273 = arith.constant 0.000000e+00 : f32
    %1157 = vector.broadcast %cst_273 : f32 to vector<8x128xf32>
    %1158 = arith.subf %1157, %1140 : vector<8x128xf32>
    %cst_274 = arith.constant 9.99999996E-13 : f32
    %1159 = vector.broadcast %cst_274 : f32 to vector<8x128xf32>
    %1160 = arith.addf %1158, %1159 : vector<8x128xf32>
    %1161 = math.atan2 %1120, %1160 : vector<8x128xf32>
    %1162 = arith.mulf %1120, %1120 : vector<8x128xf32>
    %1163 = arith.mulf %1140, %1140 : vector<8x128xf32>
    %1164 = arith.addf %1162, %1163 : vector<8x128xf32>
    %1165 = math.sqrt %1164 : vector<8x128xf32>
    %cst_275 = arith.constant 0.318309873 : f32
    %1166 = vector.broadcast %cst_275 : f32 to vector<8x128xf32>
    %1167 = arith.mulf %1161, %1166 : vector<8x128xf32>
    %cst_276 = arith.constant 9.99999996E-13 : f32
    %1168 = vector.broadcast %cst_276 : f32 to vector<8x128xf32>
    %1169 = arith.addf %1165, %1168 : vector<8x128xf32>
    %1170 = math.atan2 %216, %1169 : vector<8x128xf32>
    %cst_277 = arith.constant 0.000000e+00 : f32
    %1171 = vector.broadcast %cst_277 : f32 to vector<8x128xf32>
    %1172 = arith.subf %1171, %1170 : vector<8x128xf32>
    %cst_278 = arith.constant 0.636619746 : f32
    %1173 = vector.broadcast %cst_278 : f32 to vector<8x128xf32>
    %1174 = arith.mulf %1172, %1173 : vector<8x128xf32>
    %cst_279 = arith.constant 9.99999996E-13 : f32
    %1175 = vector.broadcast %cst_279 : f32 to vector<8x128xf32>
    %1176 = arith.addf %1165, %1175 : vector<8x128xf32>
    %1177 = math.atan2 %1156, %1176 : vector<8x128xf32>
    %cst_280 = arith.constant 0.000000e+00 : f32
    %1178 = vector.broadcast %cst_280 : f32 to vector<8x128xf32>
    %1179 = arith.subf %1178, %1177 : vector<8x128xf32>
    %cst_281 = arith.constant 0.636619746 : f32
    %1180 = vector.broadcast %cst_281 : f32 to vector<8x128xf32>
    %1181 = arith.mulf %1179, %1180 : vector<8x128xf32>
    %cst_282 = arith.constant 0.000000e+00 : f32
    %1182 = vector.broadcast %cst_282 : f32 to vector<8x128xf32>
    %1183 = arith.subf %1182, %1145 : vector<8x128xf32>
    %cst_283 = arith.constant 9.99999996E-13 : f32
    %1184 = vector.broadcast %cst_283 : f32 to vector<8x128xf32>
    %1185 = arith.addf %1183, %1184 : vector<8x128xf32>
    %1186 = math.atan2 %1125, %1185 : vector<8x128xf32>
    %1187 = arith.mulf %1125, %1125 : vector<8x128xf32>
    %1188 = arith.mulf %1145, %1145 : vector<8x128xf32>
    %1189 = arith.addf %1187, %1188 : vector<8x128xf32>
    %1190 = math.sqrt %1189 : vector<8x128xf32>
    %cst_284 = arith.constant 0.318309873 : f32
    %1191 = vector.broadcast %cst_284 : f32 to vector<8x128xf32>
    %1192 = arith.mulf %1186, %1191 : vector<8x128xf32>
    %cst_285 = arith.constant 9.99999996E-13 : f32
    %1193 = vector.broadcast %cst_285 : f32 to vector<8x128xf32>
    %1194 = arith.addf %1190, %1193 : vector<8x128xf32>
    %1195 = math.atan2 %216, %1194 : vector<8x128xf32>
    %cst_286 = arith.constant 0.000000e+00 : f32
    %1196 = vector.broadcast %cst_286 : f32 to vector<8x128xf32>
    %1197 = arith.subf %1196, %1195 : vector<8x128xf32>
    %cst_287 = arith.constant 0.636619746 : f32
    %1198 = vector.broadcast %cst_287 : f32 to vector<8x128xf32>
    %1199 = arith.mulf %1197, %1198 : vector<8x128xf32>
    %cst_288 = arith.constant 9.99999996E-13 : f32
    %1200 = vector.broadcast %cst_288 : f32 to vector<8x128xf32>
    %1201 = arith.addf %1190, %1200 : vector<8x128xf32>
    %1202 = math.atan2 %1156, %1201 : vector<8x128xf32>
    %cst_289 = arith.constant 0.000000e+00 : f32
    %1203 = vector.broadcast %cst_289 : f32 to vector<8x128xf32>
    %1204 = arith.subf %1203, %1202 : vector<8x128xf32>
    %cst_290 = arith.constant 0.636619746 : f32
    %1205 = vector.broadcast %cst_290 : f32 to vector<8x128xf32>
    %1206 = arith.mulf %1204, %1205 : vector<8x128xf32>
    %cst_291 = arith.constant 0.000000e+00 : f32
    %1207 = vector.broadcast %cst_291 : f32 to vector<8x128xf32>
    %1208 = arith.subf %1207, %1150 : vector<8x128xf32>
    %cst_292 = arith.constant 9.99999996E-13 : f32
    %1209 = vector.broadcast %cst_292 : f32 to vector<8x128xf32>
    %1210 = arith.addf %1208, %1209 : vector<8x128xf32>
    %1211 = math.atan2 %1130, %1210 : vector<8x128xf32>
    %1212 = arith.mulf %1130, %1130 : vector<8x128xf32>
    %1213 = arith.mulf %1150, %1150 : vector<8x128xf32>
    %1214 = arith.addf %1212, %1213 : vector<8x128xf32>
    %1215 = math.sqrt %1214 : vector<8x128xf32>
    %cst_293 = arith.constant 0.318309873 : f32
    %1216 = vector.broadcast %cst_293 : f32 to vector<8x128xf32>
    %1217 = arith.mulf %1211, %1216 : vector<8x128xf32>
    %cst_294 = arith.constant 9.99999996E-13 : f32
    %1218 = vector.broadcast %cst_294 : f32 to vector<8x128xf32>
    %1219 = arith.addf %1215, %1218 : vector<8x128xf32>
    %1220 = math.atan2 %216, %1219 : vector<8x128xf32>
    %cst_295 = arith.constant 0.000000e+00 : f32
    %1221 = vector.broadcast %cst_295 : f32 to vector<8x128xf32>
    %1222 = arith.subf %1221, %1220 : vector<8x128xf32>
    %cst_296 = arith.constant 0.636619746 : f32
    %1223 = vector.broadcast %cst_296 : f32 to vector<8x128xf32>
    %1224 = arith.mulf %1222, %1223 : vector<8x128xf32>
    %cst_297 = arith.constant 9.99999996E-13 : f32
    %1225 = vector.broadcast %cst_297 : f32 to vector<8x128xf32>
    %1226 = arith.addf %1215, %1225 : vector<8x128xf32>
    %1227 = math.atan2 %1156, %1226 : vector<8x128xf32>
    %cst_298 = arith.constant 0.000000e+00 : f32
    %1228 = vector.broadcast %cst_298 : f32 to vector<8x128xf32>
    %1229 = arith.subf %1228, %1227 : vector<8x128xf32>
    %cst_299 = arith.constant 0.636619746 : f32
    %1230 = vector.broadcast %cst_299 : f32 to vector<8x128xf32>
    %1231 = arith.mulf %1229, %1230 : vector<8x128xf32>
    %cst_300 = arith.constant 0.000000e+00 : f32
    %1232 = vector.broadcast %cst_300 : f32 to vector<8x128xf32>
    %1233 = arith.subf %1232, %1155 : vector<8x128xf32>
    %cst_301 = arith.constant 9.99999996E-13 : f32
    %1234 = vector.broadcast %cst_301 : f32 to vector<8x128xf32>
    %1235 = arith.addf %1233, %1234 : vector<8x128xf32>
    %1236 = math.atan2 %1135, %1235 : vector<8x128xf32>
    %1237 = arith.mulf %1135, %1135 : vector<8x128xf32>
    %1238 = arith.mulf %1155, %1155 : vector<8x128xf32>
    %1239 = arith.addf %1237, %1238 : vector<8x128xf32>
    %1240 = math.sqrt %1239 : vector<8x128xf32>
    %cst_302 = arith.constant 0.318309873 : f32
    %1241 = vector.broadcast %cst_302 : f32 to vector<8x128xf32>
    %1242 = arith.mulf %1236, %1241 : vector<8x128xf32>
    %cst_303 = arith.constant 9.99999996E-13 : f32
    %1243 = vector.broadcast %cst_303 : f32 to vector<8x128xf32>
    %1244 = arith.addf %1240, %1243 : vector<8x128xf32>
    %1245 = math.atan2 %216, %1244 : vector<8x128xf32>
    %cst_304 = arith.constant 0.000000e+00 : f32
    %1246 = vector.broadcast %cst_304 : f32 to vector<8x128xf32>
    %1247 = arith.subf %1246, %1245 : vector<8x128xf32>
    %cst_305 = arith.constant 0.636619746 : f32
    %1248 = vector.broadcast %cst_305 : f32 to vector<8x128xf32>
    %1249 = arith.mulf %1247, %1248 : vector<8x128xf32>
    %cst_306 = arith.constant 9.99999996E-13 : f32
    %1250 = vector.broadcast %cst_306 : f32 to vector<8x128xf32>
    %1251 = arith.addf %1240, %1250 : vector<8x128xf32>
    %1252 = math.atan2 %1156, %1251 : vector<8x128xf32>
    %cst_307 = arith.constant 0.000000e+00 : f32
    %1253 = vector.broadcast %cst_307 : f32 to vector<8x128xf32>
    %1254 = arith.subf %1253, %1252 : vector<8x128xf32>
    %cst_308 = arith.constant 0.636619746 : f32
    %1255 = vector.broadcast %cst_308 : f32 to vector<8x128xf32>
    %1256 = arith.mulf %1254, %1255 : vector<8x128xf32>
    %cst_309 = arith.constant 0.000000e+00 : f32
    %1257 = vector.broadcast %cst_309 : f32 to vector<8x128xf32>
    %1258 = arith.cmpf olt, %1192, %1167 : vector<8x128xf32>
    %cst_310 = arith.constant 1.000000e+00 : f32
    %cst_311 = arith.constant 0.000000e+00 : f32
    %1259 = vector.broadcast %cst_310 : f32 to vector<8x128xf32>
    %1260 = vector.broadcast %cst_311 : f32 to vector<8x128xf32>
    %1261 = arith.select %1258, %1259, %1260 : vector<8x128xi1>, vector<8x128xf32>
    %1262 = arith.addf %1257, %1261 : vector<8x128xf32>
    %1263 = arith.cmpf olt, %1217, %1167 : vector<8x128xf32>
    %cst_312 = arith.constant 1.000000e+00 : f32
    %cst_313 = arith.constant 0.000000e+00 : f32
    %1264 = vector.broadcast %cst_312 : f32 to vector<8x128xf32>
    %1265 = vector.broadcast %cst_313 : f32 to vector<8x128xf32>
    %1266 = arith.select %1263, %1264, %1265 : vector<8x128xi1>, vector<8x128xf32>
    %1267 = arith.addf %1262, %1266 : vector<8x128xf32>
    %1268 = arith.cmpf olt, %1242, %1167 : vector<8x128xf32>
    %cst_314 = arith.constant 1.000000e+00 : f32
    %cst_315 = arith.constant 0.000000e+00 : f32
    %1269 = vector.broadcast %cst_314 : f32 to vector<8x128xf32>
    %1270 = vector.broadcast %cst_315 : f32 to vector<8x128xf32>
    %1271 = arith.select %1268, %1269, %1270 : vector<8x128xi1>, vector<8x128xf32>
    %1272 = arith.addf %1267, %1271 : vector<8x128xf32>
    %cst_316 = arith.constant 0.000000e+00 : f32
    %1273 = vector.broadcast %cst_316 : f32 to vector<8x128xf32>
    %1274 = arith.cmpf olt, %1167, %1192 : vector<8x128xf32>
    %cst_317 = arith.constant 1.000000e+00 : f32
    %cst_318 = arith.constant 0.000000e+00 : f32
    %1275 = vector.broadcast %cst_317 : f32 to vector<8x128xf32>
    %1276 = vector.broadcast %cst_318 : f32 to vector<8x128xf32>
    %1277 = arith.select %1274, %1275, %1276 : vector<8x128xi1>, vector<8x128xf32>
    %1278 = arith.addf %1273, %1277 : vector<8x128xf32>
    %1279 = arith.cmpf oeq, %1167, %1192 : vector<8x128xf32>
    %cst_319 = arith.constant 1.000000e+00 : f32
    %cst_320 = arith.constant 0.000000e+00 : f32
    %1280 = vector.broadcast %cst_319 : f32 to vector<8x128xf32>
    %1281 = vector.broadcast %cst_320 : f32 to vector<8x128xf32>
    %1282 = arith.select %1279, %1280, %1281 : vector<8x128xi1>, vector<8x128xf32>
    %1283 = arith.addf %1278, %1282 : vector<8x128xf32>
    %1284 = arith.cmpf olt, %1217, %1192 : vector<8x128xf32>
    %cst_321 = arith.constant 1.000000e+00 : f32
    %cst_322 = arith.constant 0.000000e+00 : f32
    %1285 = vector.broadcast %cst_321 : f32 to vector<8x128xf32>
    %1286 = vector.broadcast %cst_322 : f32 to vector<8x128xf32>
    %1287 = arith.select %1284, %1285, %1286 : vector<8x128xi1>, vector<8x128xf32>
    %1288 = arith.addf %1283, %1287 : vector<8x128xf32>
    %1289 = arith.cmpf olt, %1242, %1192 : vector<8x128xf32>
    %cst_323 = arith.constant 1.000000e+00 : f32
    %cst_324 = arith.constant 0.000000e+00 : f32
    %1290 = vector.broadcast %cst_323 : f32 to vector<8x128xf32>
    %1291 = vector.broadcast %cst_324 : f32 to vector<8x128xf32>
    %1292 = arith.select %1289, %1290, %1291 : vector<8x128xi1>, vector<8x128xf32>
    %1293 = arith.addf %1288, %1292 : vector<8x128xf32>
    %cst_325 = arith.constant 0.000000e+00 : f32
    %1294 = vector.broadcast %cst_325 : f32 to vector<8x128xf32>
    %1295 = arith.cmpf olt, %1167, %1217 : vector<8x128xf32>
    %cst_326 = arith.constant 1.000000e+00 : f32
    %cst_327 = arith.constant 0.000000e+00 : f32
    %1296 = vector.broadcast %cst_326 : f32 to vector<8x128xf32>
    %1297 = vector.broadcast %cst_327 : f32 to vector<8x128xf32>
    %1298 = arith.select %1295, %1296, %1297 : vector<8x128xi1>, vector<8x128xf32>
    %1299 = arith.addf %1294, %1298 : vector<8x128xf32>
    %1300 = arith.cmpf oeq, %1167, %1217 : vector<8x128xf32>
    %cst_328 = arith.constant 1.000000e+00 : f32
    %cst_329 = arith.constant 0.000000e+00 : f32
    %1301 = vector.broadcast %cst_328 : f32 to vector<8x128xf32>
    %1302 = vector.broadcast %cst_329 : f32 to vector<8x128xf32>
    %1303 = arith.select %1300, %1301, %1302 : vector<8x128xi1>, vector<8x128xf32>
    %1304 = arith.addf %1299, %1303 : vector<8x128xf32>
    %1305 = arith.cmpf olt, %1192, %1217 : vector<8x128xf32>
    %cst_330 = arith.constant 1.000000e+00 : f32
    %cst_331 = arith.constant 0.000000e+00 : f32
    %1306 = vector.broadcast %cst_330 : f32 to vector<8x128xf32>
    %1307 = vector.broadcast %cst_331 : f32 to vector<8x128xf32>
    %1308 = arith.select %1305, %1306, %1307 : vector<8x128xi1>, vector<8x128xf32>
    %1309 = arith.addf %1304, %1308 : vector<8x128xf32>
    %1310 = arith.cmpf oeq, %1192, %1217 : vector<8x128xf32>
    %cst_332 = arith.constant 1.000000e+00 : f32
    %cst_333 = arith.constant 0.000000e+00 : f32
    %1311 = vector.broadcast %cst_332 : f32 to vector<8x128xf32>
    %1312 = vector.broadcast %cst_333 : f32 to vector<8x128xf32>
    %1313 = arith.select %1310, %1311, %1312 : vector<8x128xi1>, vector<8x128xf32>
    %1314 = arith.addf %1309, %1313 : vector<8x128xf32>
    %1315 = arith.cmpf olt, %1242, %1217 : vector<8x128xf32>
    %cst_334 = arith.constant 1.000000e+00 : f32
    %cst_335 = arith.constant 0.000000e+00 : f32
    %1316 = vector.broadcast %cst_334 : f32 to vector<8x128xf32>
    %1317 = vector.broadcast %cst_335 : f32 to vector<8x128xf32>
    %1318 = arith.select %1315, %1316, %1317 : vector<8x128xi1>, vector<8x128xf32>
    %1319 = arith.addf %1314, %1318 : vector<8x128xf32>
    %cst_336 = arith.constant 0.000000e+00 : f32
    %1320 = vector.broadcast %cst_336 : f32 to vector<8x128xf32>
    %1321 = arith.cmpf olt, %1167, %1242 : vector<8x128xf32>
    %cst_337 = arith.constant 1.000000e+00 : f32
    %cst_338 = arith.constant 0.000000e+00 : f32
    %1322 = vector.broadcast %cst_337 : f32 to vector<8x128xf32>
    %1323 = vector.broadcast %cst_338 : f32 to vector<8x128xf32>
    %1324 = arith.select %1321, %1322, %1323 : vector<8x128xi1>, vector<8x128xf32>
    %1325 = arith.addf %1320, %1324 : vector<8x128xf32>
    %1326 = arith.cmpf oeq, %1167, %1242 : vector<8x128xf32>
    %cst_339 = arith.constant 1.000000e+00 : f32
    %cst_340 = arith.constant 0.000000e+00 : f32
    %1327 = vector.broadcast %cst_339 : f32 to vector<8x128xf32>
    %1328 = vector.broadcast %cst_340 : f32 to vector<8x128xf32>
    %1329 = arith.select %1326, %1327, %1328 : vector<8x128xi1>, vector<8x128xf32>
    %1330 = arith.addf %1325, %1329 : vector<8x128xf32>
    %1331 = arith.cmpf olt, %1192, %1242 : vector<8x128xf32>
    %cst_341 = arith.constant 1.000000e+00 : f32
    %cst_342 = arith.constant 0.000000e+00 : f32
    %1332 = vector.broadcast %cst_341 : f32 to vector<8x128xf32>
    %1333 = vector.broadcast %cst_342 : f32 to vector<8x128xf32>
    %1334 = arith.select %1331, %1332, %1333 : vector<8x128xi1>, vector<8x128xf32>
    %1335 = arith.addf %1330, %1334 : vector<8x128xf32>
    %1336 = arith.cmpf oeq, %1192, %1242 : vector<8x128xf32>
    %cst_343 = arith.constant 1.000000e+00 : f32
    %cst_344 = arith.constant 0.000000e+00 : f32
    %1337 = vector.broadcast %cst_343 : f32 to vector<8x128xf32>
    %1338 = vector.broadcast %cst_344 : f32 to vector<8x128xf32>
    %1339 = arith.select %1336, %1337, %1338 : vector<8x128xi1>, vector<8x128xf32>
    %1340 = arith.addf %1335, %1339 : vector<8x128xf32>
    %1341 = arith.cmpf olt, %1217, %1242 : vector<8x128xf32>
    %cst_345 = arith.constant 1.000000e+00 : f32
    %cst_346 = arith.constant 0.000000e+00 : f32
    %1342 = vector.broadcast %cst_345 : f32 to vector<8x128xf32>
    %1343 = vector.broadcast %cst_346 : f32 to vector<8x128xf32>
    %1344 = arith.select %1341, %1342, %1343 : vector<8x128xi1>, vector<8x128xf32>
    %1345 = arith.addf %1340, %1344 : vector<8x128xf32>
    %1346 = arith.cmpf oeq, %1217, %1242 : vector<8x128xf32>
    %cst_347 = arith.constant 1.000000e+00 : f32
    %cst_348 = arith.constant 0.000000e+00 : f32
    %1347 = vector.broadcast %cst_347 : f32 to vector<8x128xf32>
    %1348 = vector.broadcast %cst_348 : f32 to vector<8x128xf32>
    %1349 = arith.select %1346, %1347, %1348 : vector<8x128xi1>, vector<8x128xf32>
    %1350 = arith.addf %1345, %1349 : vector<8x128xf32>
    %cst_349 = arith.constant 0.000000e+00 : f32
    %1351 = vector.broadcast %cst_349 : f32 to vector<8x128xf32>
    %cst_350 = arith.constant 0.000000e+00 : f32
    %1352 = vector.broadcast %cst_350 : f32 to vector<8x128xf32>
    %cst_351 = arith.constant 0.000000e+00 : f32
    %1353 = vector.broadcast %cst_351 : f32 to vector<8x128xf32>
    %cst_352 = arith.constant 0.000000e+00 : f32
    %1354 = vector.broadcast %cst_352 : f32 to vector<8x128xf32>
    %1355 = arith.cmpf oeq, %1272, %1354 : vector<8x128xf32>
    %cst_353 = arith.constant 1.000000e+00 : f32
    %cst_354 = arith.constant 0.000000e+00 : f32
    %1356 = vector.broadcast %cst_353 : f32 to vector<8x128xf32>
    %1357 = vector.broadcast %cst_354 : f32 to vector<8x128xf32>
    %1358 = arith.select %1355, %1356, %1357 : vector<8x128xi1>, vector<8x128xf32>
    %1359 = arith.mulf %1358, %1167 : vector<8x128xf32>
    %1360 = arith.addf %1351, %1359 : vector<8x128xf32>
    %1361 = arith.mulf %1358, %1174 : vector<8x128xf32>
    %1362 = arith.addf %1352, %1361 : vector<8x128xf32>
    %1363 = arith.mulf %1358, %1181 : vector<8x128xf32>
    %1364 = arith.addf %1353, %1363 : vector<8x128xf32>
    %cst_355 = arith.constant 0.000000e+00 : f32
    %1365 = vector.broadcast %cst_355 : f32 to vector<8x128xf32>
    %1366 = arith.cmpf oeq, %1293, %1365 : vector<8x128xf32>
    %cst_356 = arith.constant 1.000000e+00 : f32
    %cst_357 = arith.constant 0.000000e+00 : f32
    %1367 = vector.broadcast %cst_356 : f32 to vector<8x128xf32>
    %1368 = vector.broadcast %cst_357 : f32 to vector<8x128xf32>
    %1369 = arith.select %1366, %1367, %1368 : vector<8x128xi1>, vector<8x128xf32>
    %1370 = arith.mulf %1369, %1192 : vector<8x128xf32>
    %1371 = arith.addf %1360, %1370 : vector<8x128xf32>
    %1372 = arith.mulf %1369, %1199 : vector<8x128xf32>
    %1373 = arith.addf %1362, %1372 : vector<8x128xf32>
    %1374 = arith.mulf %1369, %1206 : vector<8x128xf32>
    %1375 = arith.addf %1364, %1374 : vector<8x128xf32>
    %cst_358 = arith.constant 0.000000e+00 : f32
    %1376 = vector.broadcast %cst_358 : f32 to vector<8x128xf32>
    %1377 = arith.cmpf oeq, %1319, %1376 : vector<8x128xf32>
    %cst_359 = arith.constant 1.000000e+00 : f32
    %cst_360 = arith.constant 0.000000e+00 : f32
    %1378 = vector.broadcast %cst_359 : f32 to vector<8x128xf32>
    %1379 = vector.broadcast %cst_360 : f32 to vector<8x128xf32>
    %1380 = arith.select %1377, %1378, %1379 : vector<8x128xi1>, vector<8x128xf32>
    %1381 = arith.mulf %1380, %1217 : vector<8x128xf32>
    %1382 = arith.addf %1371, %1381 : vector<8x128xf32>
    %1383 = arith.mulf %1380, %1224 : vector<8x128xf32>
    %1384 = arith.addf %1373, %1383 : vector<8x128xf32>
    %1385 = arith.mulf %1380, %1231 : vector<8x128xf32>
    %1386 = arith.addf %1375, %1385 : vector<8x128xf32>
    %cst_361 = arith.constant 0.000000e+00 : f32
    %1387 = vector.broadcast %cst_361 : f32 to vector<8x128xf32>
    %1388 = arith.cmpf oeq, %1350, %1387 : vector<8x128xf32>
    %cst_362 = arith.constant 1.000000e+00 : f32
    %cst_363 = arith.constant 0.000000e+00 : f32
    %1389 = vector.broadcast %cst_362 : f32 to vector<8x128xf32>
    %1390 = vector.broadcast %cst_363 : f32 to vector<8x128xf32>
    %1391 = arith.select %1388, %1389, %1390 : vector<8x128xi1>, vector<8x128xf32>
    %1392 = arith.mulf %1391, %1242 : vector<8x128xf32>
    %1393 = arith.addf %1382, %1392 : vector<8x128xf32>
    %1394 = arith.mulf %1391, %1249 : vector<8x128xf32>
    %1395 = arith.addf %1384, %1394 : vector<8x128xf32>
    %1396 = arith.mulf %1391, %1256 : vector<8x128xf32>
    %1397 = arith.addf %1386, %1396 : vector<8x128xf32>
    %c0_364 = arith.constant 0 : index
    %c0_365 = arith.constant 0 : index
    %c0_366 = arith.constant 0 : index
    %1398 = vector.load %arg2[%c0_364, %c0_365, %c0_366] : memref<16x8x128xf32, #tpu.memory_space<vmem>>, vector<1x8x128xf32>
    %1399 = vector.shape_cast %1398 : vector<1x8x128xf32> to vector<8x128xf32>
    %1400 = vector.shape_cast %1393 : vector<8x128xf32> to vector<1x8x128xf32>
    tpu.vector_store %arg2[%c0_364, %c0_365, %c0_366], %1400 {strides = array<i32>} : memref<16x8x128xf32, #tpu.memory_space<vmem>>, vector<1x8x128xf32>,
    %c1_367 = arith.constant 1 : index
    %c0_368 = arith.constant 0 : index
    %c0_369 = arith.constant 0 : index
    %1401 = vector.load %arg2[%c1_367, %c0_368, %c0_369] : memref<16x8x128xf32, #tpu.memory_space<vmem>>, vector<1x8x128xf32>
    %1402 = vector.shape_cast %1401 : vector<1x8x128xf32> to vector<8x128xf32>
    %1403 = vector.shape_cast %1395 : vector<8x128xf32> to vector<1x8x128xf32>
    tpu.vector_store %arg2[%c1_367, %c0_368, %c0_369], %1403 {strides = array<i32>} : memref<16x8x128xf32, #tpu.memory_space<vmem>>, vector<1x8x128xf32>,
    %c8_370 = arith.constant 8 : index
    %c0_371 = arith.constant 0 : index
    %c0_372 = arith.constant 0 : index
    %1404 = vector.load %arg2[%c8_370, %c0_371, %c0_372] : memref<16x8x128xf32, #tpu.memory_space<vmem>>, vector<1x8x128xf32>
    %1405 = vector.shape_cast %1404 : vector<1x8x128xf32> to vector<8x128xf32>
    %1406 = vector.shape_cast %1393 : vector<8x128xf32> to vector<1x8x128xf32>
    tpu.vector_store %arg2[%c8_370, %c0_371, %c0_372], %1406 {strides = array<i32>} : memref<16x8x128xf32, #tpu.memory_space<vmem>>, vector<1x8x128xf32>,
    %c9_373 = arith.constant 9 : index
    %c0_374 = arith.constant 0 : index
    %c0_375 = arith.constant 0 : index
    %1407 = vector.load %arg2[%c9_373, %c0_374, %c0_375] : memref<16x8x128xf32, #tpu.memory_space<vmem>>, vector<1x8x128xf32>
    %1408 = vector.shape_cast %1407 : vector<1x8x128xf32> to vector<8x128xf32>
    %1409 = vector.shape_cast %1397 : vector<8x128xf32> to vector<1x8x128xf32>
    tpu.vector_store %arg2[%c9_373, %c0_374, %c0_375], %1409 {strides = array<i32>} : memref<16x8x128xf32, #tpu.memory_space<vmem>>, vector<1x8x128xf32>,
    %cst_376 = arith.constant 0.000000e+00 : f32
    %1410 = vector.broadcast %cst_376 : f32 to vector<8x128xf32>
    %cst_377 = arith.constant 0.000000e+00 : f32
    %1411 = vector.broadcast %cst_377 : f32 to vector<8x128xf32>
    %cst_378 = arith.constant 0.000000e+00 : f32
    %1412 = vector.broadcast %cst_378 : f32 to vector<8x128xf32>
    %cst_379 = arith.constant 1.000000e+00 : f32
    %1413 = vector.broadcast %cst_379 : f32 to vector<8x128xf32>
    %1414 = arith.cmpf oeq, %1272, %1413 : vector<8x128xf32>
    %cst_380 = arith.constant 1.000000e+00 : f32
    %cst_381 = arith.constant 0.000000e+00 : f32
    %1415 = vector.broadcast %cst_380 : f32 to vector<8x128xf32>
    %1416 = vector.broadcast %cst_381 : f32 to vector<8x128xf32>
    %1417 = arith.select %1414, %1415, %1416 : vector<8x128xi1>, vector<8x128xf32>
    %1418 = arith.mulf %1417, %1167 : vector<8x128xf32>
    %1419 = arith.addf %1410, %1418 : vector<8x128xf32>
    %1420 = arith.mulf %1417, %1174 : vector<8x128xf32>
    %1421 = arith.addf %1411, %1420 : vector<8x128xf32>
    %1422 = arith.mulf %1417, %1181 : vector<8x128xf32>
    %1423 = arith.addf %1412, %1422 : vector<8x128xf32>
    %cst_382 = arith.constant 1.000000e+00 : f32
    %1424 = vector.broadcast %cst_382 : f32 to vector<8x128xf32>
    %1425 = arith.cmpf oeq, %1293, %1424 : vector<8x128xf32>
    %cst_383 = arith.constant 1.000000e+00 : f32
    %cst_384 = arith.constant 0.000000e+00 : f32
    %1426 = vector.broadcast %cst_383 : f32 to vector<8x128xf32>
    %1427 = vector.broadcast %cst_384 : f32 to vector<8x128xf32>
    %1428 = arith.select %1425, %1426, %1427 : vector<8x128xi1>, vector<8x128xf32>
    %1429 = arith.mulf %1428, %1192 : vector<8x128xf32>
    %1430 = arith.addf %1419, %1429 : vector<8x128xf32>
    %1431 = arith.mulf %1428, %1199 : vector<8x128xf32>
    %1432 = arith.addf %1421, %1431 : vector<8x128xf32>
    %1433 = arith.mulf %1428, %1206 : vector<8x128xf32>
    %1434 = arith.addf %1423, %1433 : vector<8x128xf32>
    %cst_385 = arith.constant 1.000000e+00 : f32
    %1435 = vector.broadcast %cst_385 : f32 to vector<8x128xf32>
    %1436 = arith.cmpf oeq, %1319, %1435 : vector<8x128xf32>
    %cst_386 = arith.constant 1.000000e+00 : f32
    %cst_387 = arith.constant 0.000000e+00 : f32
    %1437 = vector.broadcast %cst_386 : f32 to vector<8x128xf32>
    %1438 = vector.broadcast %cst_387 : f32 to vector<8x128xf32>
    %1439 = arith.select %1436, %1437, %1438 : vector<8x128xi1>, vector<8x128xf32>
    %1440 = arith.mulf %1439, %1217 : vector<8x128xf32>
    %1441 = arith.addf %1430, %1440 : vector<8x128xf32>
    %1442 = arith.mulf %1439, %1224 : vector<8x128xf32>
    %1443 = arith.addf %1432, %1442 : vector<8x128xf32>
    %1444 = arith.mulf %1439, %1231 : vector<8x128xf32>
    %1445 = arith.addf %1434, %1444 : vector<8x128xf32>
    %cst_388 = arith.constant 1.000000e+00 : f32
    %1446 = vector.broadcast %cst_388 : f32 to vector<8x128xf32>
    %1447 = arith.cmpf oeq, %1350, %1446 : vector<8x128xf32>
    %cst_389 = arith.constant 1.000000e+00 : f32
    %cst_390 = arith.constant 0.000000e+00 : f32
    %1448 = vector.broadcast %cst_389 : f32 to vector<8x128xf32>
    %1449 = vector.broadcast %cst_390 : f32 to vector<8x128xf32>
    %1450 = arith.select %1447, %1448, %1449 : vector<8x128xi1>, vector<8x128xf32>
    %1451 = arith.mulf %1450, %1242 : vector<8x128xf32>
    %1452 = arith.addf %1441, %1451 : vector<8x128xf32>
    %1453 = arith.mulf %1450, %1249 : vector<8x128xf32>
    %1454 = arith.addf %1443, %1453 : vector<8x128xf32>
    %1455 = arith.mulf %1450, %1256 : vector<8x128xf32>
    %1456 = arith.addf %1445, %1455 : vector<8x128xf32>
    %c2_391 = arith.constant 2 : index
    %c0_392 = arith.constant 0 : index
    %c0_393 = arith.constant 0 : index
    %1457 = vector.load %arg2[%c2_391, %c0_392, %c0_393] : memref<16x8x128xf32, #tpu.memory_space<vmem>>, vector<1x8x128xf32>
    %1458 = vector.shape_cast %1457 : vector<1x8x128xf32> to vector<8x128xf32>
    %1459 = vector.shape_cast %1452 : vector<8x128xf32> to vector<1x8x128xf32>
    tpu.vector_store %arg2[%c2_391, %c0_392, %c0_393], %1459 {strides = array<i32>} : memref<16x8x128xf32, #tpu.memory_space<vmem>>, vector<1x8x128xf32>,
    %c3_394 = arith.constant 3 : index
    %c0_395 = arith.constant 0 : index
    %c0_396 = arith.constant 0 : index
    %1460 = vector.load %arg2[%c3_394, %c0_395, %c0_396] : memref<16x8x128xf32, #tpu.memory_space<vmem>>, vector<1x8x128xf32>
    %1461 = vector.shape_cast %1460 : vector<1x8x128xf32> to vector<8x128xf32>
    %1462 = vector.shape_cast %1454 : vector<8x128xf32> to vector<1x8x128xf32>
    tpu.vector_store %arg2[%c3_394, %c0_395, %c0_396], %1462 {strides = array<i32>} : memref<16x8x128xf32, #tpu.memory_space<vmem>>, vector<1x8x128xf32>,
    %c10_397 = arith.constant 10 : index
    %c0_398 = arith.constant 0 : index
    %c0_399 = arith.constant 0 : index
    %1463 = vector.load %arg2[%c10_397, %c0_398, %c0_399] : memref<16x8x128xf32, #tpu.memory_space<vmem>>, vector<1x8x128xf32>
    %1464 = vector.shape_cast %1463 : vector<1x8x128xf32> to vector<8x128xf32>
    %1465 = vector.shape_cast %1452 : vector<8x128xf32> to vector<1x8x128xf32>
    tpu.vector_store %arg2[%c10_397, %c0_398, %c0_399], %1465 {strides = array<i32>} : memref<16x8x128xf32, #tpu.memory_space<vmem>>, vector<1x8x128xf32>,
    %c11_400 = arith.constant 11 : index
    %c0_401 = arith.constant 0 : index
    %c0_402 = arith.constant 0 : index
    %1466 = vector.load %arg2[%c11_400, %c0_401, %c0_402] : memref<16x8x128xf32, #tpu.memory_space<vmem>>, vector<1x8x128xf32>
    %1467 = vector.shape_cast %1466 : vector<1x8x128xf32> to vector<8x128xf32>
    %1468 = vector.shape_cast %1456 : vector<8x128xf32> to vector<1x8x128xf32>
    tpu.vector_store %arg2[%c11_400, %c0_401, %c0_402], %1468 {strides = array<i32>} : memref<16x8x128xf32, #tpu.memory_space<vmem>>, vector<1x8x128xf32>,
    %cst_403 = arith.constant 0.000000e+00 : f32
    %1469 = vector.broadcast %cst_403 : f32 to vector<8x128xf32>
    %cst_404 = arith.constant 0.000000e+00 : f32
    %1470 = vector.broadcast %cst_404 : f32 to vector<8x128xf32>
    %cst_405 = arith.constant 0.000000e+00 : f32
    %1471 = vector.broadcast %cst_405 : f32 to vector<8x128xf32>
    %cst_406 = arith.constant 2.000000e+00 : f32
    %1472 = vector.broadcast %cst_406 : f32 to vector<8x128xf32>
    %1473 = arith.cmpf oeq, %1272, %1472 : vector<8x128xf32>
    %cst_407 = arith.constant 1.000000e+00 : f32
    %cst_408 = arith.constant 0.000000e+00 : f32
    %1474 = vector.broadcast %cst_407 : f32 to vector<8x128xf32>
    %1475 = vector.broadcast %cst_408 : f32 to vector<8x128xf32>
    %1476 = arith.select %1473, %1474, %1475 : vector<8x128xi1>, vector<8x128xf32>
    %1477 = arith.mulf %1476, %1167 : vector<8x128xf32>
    %1478 = arith.addf %1469, %1477 : vector<8x128xf32>
    %1479 = arith.mulf %1476, %1174 : vector<8x128xf32>
    %1480 = arith.addf %1470, %1479 : vector<8x128xf32>
    %1481 = arith.mulf %1476, %1181 : vector<8x128xf32>
    %1482 = arith.addf %1471, %1481 : vector<8x128xf32>
    %cst_409 = arith.constant 2.000000e+00 : f32
    %1483 = vector.broadcast %cst_409 : f32 to vector<8x128xf32>
    %1484 = arith.cmpf oeq, %1293, %1483 : vector<8x128xf32>
    %cst_410 = arith.constant 1.000000e+00 : f32
    %cst_411 = arith.constant 0.000000e+00 : f32
    %1485 = vector.broadcast %cst_410 : f32 to vector<8x128xf32>
    %1486 = vector.broadcast %cst_411 : f32 to vector<8x128xf32>
    %1487 = arith.select %1484, %1485, %1486 : vector<8x128xi1>, vector<8x128xf32>
    %1488 = arith.mulf %1487, %1192 : vector<8x128xf32>
    %1489 = arith.addf %1478, %1488 : vector<8x128xf32>
    %1490 = arith.mulf %1487, %1199 : vector<8x128xf32>
    %1491 = arith.addf %1480, %1490 : vector<8x128xf32>
    %1492 = arith.mulf %1487, %1206 : vector<8x128xf32>
    %1493 = arith.addf %1482, %1492 : vector<8x128xf32>
    %cst_412 = arith.constant 2.000000e+00 : f32
    %1494 = vector.broadcast %cst_412 : f32 to vector<8x128xf32>
    %1495 = arith.cmpf oeq, %1319, %1494 : vector<8x128xf32>
    %cst_413 = arith.constant 1.000000e+00 : f32
    %cst_414 = arith.constant 0.000000e+00 : f32
    %1496 = vector.broadcast %cst_413 : f32 to vector<8x128xf32>
    %1497 = vector.broadcast %cst_414 : f32 to vector<8x128xf32>
    %1498 = arith.select %1495, %1496, %1497 : vector<8x128xi1>, vector<8x128xf32>
    %1499 = arith.mulf %1498, %1217 : vector<8x128xf32>
    %1500 = arith.addf %1489, %1499 : vector<8x128xf32>
    %1501 = arith.mulf %1498, %1224 : vector<8x128xf32>
    %1502 = arith.addf %1491, %1501 : vector<8x128xf32>
    %1503 = arith.mulf %1498, %1231 : vector<8x128xf32>
    %1504 = arith.addf %1493, %1503 : vector<8x128xf32>
    %cst_415 = arith.constant 2.000000e+00 : f32
    %1505 = vector.broadcast %cst_415 : f32 to vector<8x128xf32>
    %1506 = arith.cmpf oeq, %1350, %1505 : vector<8x128xf32>
    %cst_416 = arith.constant 1.000000e+00 : f32
    %cst_417 = arith.constant 0.000000e+00 : f32
    %1507 = vector.broadcast %cst_416 : f32 to vector<8x128xf32>
    %1508 = vector.broadcast %cst_417 : f32 to vector<8x128xf32>
    %1509 = arith.select %1506, %1507, %1508 : vector<8x128xi1>, vector<8x128xf32>
    %1510 = arith.mulf %1509, %1242 : vector<8x128xf32>
    %1511 = arith.addf %1500, %1510 : vector<8x128xf32>
    %1512 = arith.mulf %1509, %1249 : vector<8x128xf32>
    %1513 = arith.addf %1502, %1512 : vector<8x128xf32>
    %1514 = arith.mulf %1509, %1256 : vector<8x128xf32>
    %1515 = arith.addf %1504, %1514 : vector<8x128xf32>
    %c4_418 = arith.constant 4 : index
    %c0_419 = arith.constant 0 : index
    %c0_420 = arith.constant 0 : index
    %1516 = vector.load %arg2[%c4_418, %c0_419, %c0_420] : memref<16x8x128xf32, #tpu.memory_space<vmem>>, vector<1x8x128xf32>
    %1517 = vector.shape_cast %1516 : vector<1x8x128xf32> to vector<8x128xf32>
    %1518 = vector.shape_cast %1511 : vector<8x128xf32> to vector<1x8x128xf32>
    tpu.vector_store %arg2[%c4_418, %c0_419, %c0_420], %1518 {strides = array<i32>} : memref<16x8x128xf32, #tpu.memory_space<vmem>>, vector<1x8x128xf32>,
    %c5_421 = arith.constant 5 : index
    %c0_422 = arith.constant 0 : index
    %c0_423 = arith.constant 0 : index
    %1519 = vector.load %arg2[%c5_421, %c0_422, %c0_423] : memref<16x8x128xf32, #tpu.memory_space<vmem>>, vector<1x8x128xf32>
    %1520 = vector.shape_cast %1519 : vector<1x8x128xf32> to vector<8x128xf32>
    %1521 = vector.shape_cast %1513 : vector<8x128xf32> to vector<1x8x128xf32>
    tpu.vector_store %arg2[%c5_421, %c0_422, %c0_423], %1521 {strides = array<i32>} : memref<16x8x128xf32, #tpu.memory_space<vmem>>, vector<1x8x128xf32>,
    %c12_424 = arith.constant 12 : index
    %c0_425 = arith.constant 0 : index
    %c0_426 = arith.constant 0 : index
    %1522 = vector.load %arg2[%c12_424, %c0_425, %c0_426] : memref<16x8x128xf32, #tpu.memory_space<vmem>>, vector<1x8x128xf32>
    %1523 = vector.shape_cast %1522 : vector<1x8x128xf32> to vector<8x128xf32>
    %1524 = vector.shape_cast %1511 : vector<8x128xf32> to vector<1x8x128xf32>
    tpu.vector_store %arg2[%c12_424, %c0_425, %c0_426], %1524 {strides = array<i32>} : memref<16x8x128xf32, #tpu.memory_space<vmem>>, vector<1x8x128xf32>,
    %c13_427 = arith.constant 13 : index
    %c0_428 = arith.constant 0 : index
    %c0_429 = arith.constant 0 : index
    %1525 = vector.load %arg2[%c13_427, %c0_428, %c0_429] : memref<16x8x128xf32, #tpu.memory_space<vmem>>, vector<1x8x128xf32>
    %1526 = vector.shape_cast %1525 : vector<1x8x128xf32> to vector<8x128xf32>
    %1527 = vector.shape_cast %1515 : vector<8x128xf32> to vector<1x8x128xf32>
    tpu.vector_store %arg2[%c13_427, %c0_428, %c0_429], %1527 {strides = array<i32>} : memref<16x8x128xf32, #tpu.memory_space<vmem>>, vector<1x8x128xf32>,
    %cst_430 = arith.constant 0.000000e+00 : f32
    %1528 = vector.broadcast %cst_430 : f32 to vector<8x128xf32>
    %cst_431 = arith.constant 0.000000e+00 : f32
    %1529 = vector.broadcast %cst_431 : f32 to vector<8x128xf32>
    %cst_432 = arith.constant 0.000000e+00 : f32
    %1530 = vector.broadcast %cst_432 : f32 to vector<8x128xf32>
    %cst_433 = arith.constant 3.000000e+00 : f32
    %1531 = vector.broadcast %cst_433 : f32 to vector<8x128xf32>
    %1532 = arith.cmpf oeq, %1272, %1531 : vector<8x128xf32>
    %cst_434 = arith.constant 1.000000e+00 : f32
    %cst_435 = arith.constant 0.000000e+00 : f32
    %1533 = vector.broadcast %cst_434 : f32 to vector<8x128xf32>
    %1534 = vector.broadcast %cst_435 : f32 to vector<8x128xf32>
    %1535 = arith.select %1532, %1533, %1534 : vector<8x128xi1>, vector<8x128xf32>
    %1536 = arith.mulf %1535, %1167 : vector<8x128xf32>
    %1537 = arith.addf %1528, %1536 : vector<8x128xf32>
    %1538 = arith.mulf %1535, %1174 : vector<8x128xf32>
    %1539 = arith.addf %1529, %1538 : vector<8x128xf32>
    %1540 = arith.mulf %1535, %1181 : vector<8x128xf32>
    %1541 = arith.addf %1530, %1540 : vector<8x128xf32>
    %cst_436 = arith.constant 3.000000e+00 : f32
    %1542 = vector.broadcast %cst_436 : f32 to vector<8x128xf32>
    %1543 = arith.cmpf oeq, %1293, %1542 : vector<8x128xf32>
    %cst_437 = arith.constant 1.000000e+00 : f32
    %cst_438 = arith.constant 0.000000e+00 : f32
    %1544 = vector.broadcast %cst_437 : f32 to vector<8x128xf32>
    %1545 = vector.broadcast %cst_438 : f32 to vector<8x128xf32>
    %1546 = arith.select %1543, %1544, %1545 : vector<8x128xi1>, vector<8x128xf32>
    %1547 = arith.mulf %1546, %1192 : vector<8x128xf32>
    %1548 = arith.addf %1537, %1547 : vector<8x128xf32>
    %1549 = arith.mulf %1546, %1199 : vector<8x128xf32>
    %1550 = arith.addf %1539, %1549 : vector<8x128xf32>
    %1551 = arith.mulf %1546, %1206 : vector<8x128xf32>
    %1552 = arith.addf %1541, %1551 : vector<8x128xf32>
    %cst_439 = arith.constant 3.000000e+00 : f32
    %1553 = vector.broadcast %cst_439 : f32 to vector<8x128xf32>
    %1554 = arith.cmpf oeq, %1319, %1553 : vector<8x128xf32>
    %cst_440 = arith.constant 1.000000e+00 : f32
    %cst_441 = arith.constant 0.000000e+00 : f32
    %1555 = vector.broadcast %cst_440 : f32 to vector<8x128xf32>
    %1556 = vector.broadcast %cst_441 : f32 to vector<8x128xf32>
    %1557 = arith.select %1554, %1555, %1556 : vector<8x128xi1>, vector<8x128xf32>
    %1558 = arith.mulf %1557, %1217 : vector<8x128xf32>
    %1559 = arith.addf %1548, %1558 : vector<8x128xf32>
    %1560 = arith.mulf %1557, %1224 : vector<8x128xf32>
    %1561 = arith.addf %1550, %1560 : vector<8x128xf32>
    %1562 = arith.mulf %1557, %1231 : vector<8x128xf32>
    %1563 = arith.addf %1552, %1562 : vector<8x128xf32>
    %cst_442 = arith.constant 3.000000e+00 : f32
    %1564 = vector.broadcast %cst_442 : f32 to vector<8x128xf32>
    %1565 = arith.cmpf oeq, %1350, %1564 : vector<8x128xf32>
    %cst_443 = arith.constant 1.000000e+00 : f32
    %cst_444 = arith.constant 0.000000e+00 : f32
    %1566 = vector.broadcast %cst_443 : f32 to vector<8x128xf32>
    %1567 = vector.broadcast %cst_444 : f32 to vector<8x128xf32>
    %1568 = arith.select %1565, %1566, %1567 : vector<8x128xi1>, vector<8x128xf32>
    %1569 = arith.mulf %1568, %1242 : vector<8x128xf32>
    %1570 = arith.addf %1559, %1569 : vector<8x128xf32>
    %1571 = arith.mulf %1568, %1249 : vector<8x128xf32>
    %1572 = arith.addf %1561, %1571 : vector<8x128xf32>
    %1573 = arith.mulf %1568, %1256 : vector<8x128xf32>
    %1574 = arith.addf %1563, %1573 : vector<8x128xf32>
    %c6_445 = arith.constant 6 : index
    %c0_446 = arith.constant 0 : index
    %c0_447 = arith.constant 0 : index
    %1575 = vector.load %arg2[%c6_445, %c0_446, %c0_447] : memref<16x8x128xf32, #tpu.memory_space<vmem>>, vector<1x8x128xf32>
    %1576 = vector.shape_cast %1575 : vector<1x8x128xf32> to vector<8x128xf32>
    %1577 = vector.shape_cast %1570 : vector<8x128xf32> to vector<1x8x128xf32>
    tpu.vector_store %arg2[%c6_445, %c0_446, %c0_447], %1577 {strides = array<i32>} : memref<16x8x128xf32, #tpu.memory_space<vmem>>, vector<1x8x128xf32>,
    %c7_448 = arith.constant 7 : index
    %c0_449 = arith.constant 0 : index
    %c0_450 = arith.constant 0 : index
    %1578 = vector.load %arg2[%c7_448, %c0_449, %c0_450] : memref<16x8x128xf32, #tpu.memory_space<vmem>>, vector<1x8x128xf32>
    %1579 = vector.shape_cast %1578 : vector<1x8x128xf32> to vector<8x128xf32>
    %1580 = vector.shape_cast %1572 : vector<8x128xf32> to vector<1x8x128xf32>
    tpu.vector_store %arg2[%c7_448, %c0_449, %c0_450], %1580 {strides = array<i32>} : memref<16x8x128xf32, #tpu.memory_space<vmem>>, vector<1x8x128xf32>,
    %c14_451 = arith.constant 14 : index
    %c0_452 = arith.constant 0 : index
    %c0_453 = arith.constant 0 : index
    %1581 = vector.load %arg2[%c14_451, %c0_452, %c0_453] : memref<16x8x128xf32, #tpu.memory_space<vmem>>, vector<1x8x128xf32>
    %1582 = vector.shape_cast %1581 : vector<1x8x128xf32> to vector<8x128xf32>
    %1583 = vector.shape_cast %1570 : vector<8x128xf32> to vector<1x8x128xf32>
    tpu.vector_store %arg2[%c14_451, %c0_452, %c0_453], %1583 {strides = array<i32>} : memref<16x8x128xf32, #tpu.memory_space<vmem>>, vector<1x8x128xf32>,
    %c15_454 = arith.constant 15 : index
    %c0_455 = arith.constant 0 : index
    %c0_456 = arith.constant 0 : index
    %1584 = vector.load %arg2[%c15_454, %c0_455, %c0_456] : memref<16x8x128xf32, #tpu.memory_space<vmem>>, vector<1x8x128xf32>
    %1585 = vector.shape_cast %1584 : vector<1x8x128xf32> to vector<8x128xf32>
    %1586 = vector.shape_cast %1574 : vector<8x128xf32> to vector<1x8x128xf32>
    tpu.vector_store %arg2[%c15_454, %c0_455, %c0_456], %1586 {strides = array<i32>} : memref<16x8x128xf32, #tpu.memory_space<vmem>>, vector<1x8x128xf32>,
    return
  }
  func.func @transform_0(%arg0: i32) -> (i32, i32, i32) {
    %c0_i32 = arith.constant 0 : i32
    %c0_i32_0 = arith.constant 0 : i32
    %c0_i32_1 = arith.constant 0 : i32
    return %c0_i32, %arg0, %c0_i32_0 : i32, i32, i32
  }
  func.func @transform_1(%arg0: i32) -> (i32, i32, i32) {
    %c0_i32 = arith.constant 0 : i32
    %c0_i32_0 = arith.constant 0 : i32
    %c0_i32_1 = arith.constant 0 : i32
    return %c0_i32, %arg0, %c0_i32_0 : i32, i32, i32
  }
}

</mosaic_0001>

<bundles_post_ra>
// kernel: tpu_custom_call.1
= control target key start
LH: loop header
LB: loop body
LE: loop exit
PB: predicated region body
PF: predicated region fallthrough
CT: control target
= control target key end

     0   :  { %6 = vsyncpa [#allocation3], 0  ;;  %s13930_s0 = inlined_call_operand.hbm [shape: f32[16,8,128], index: 0, kind: input, shape index: {}]   ;;  %s13931_s1 = inlined_call_operand.hbm [shape: f32[16,8,128], index: 1, kind: output, shape index: {}]  }
   0x1   :  { %7 = vsyncpa [#allocation4], 0  ;;  %s12_s8 = sshll.u32 %s13930_s0, 4  ;;  %s7998_s9 = smov [#allocation2]   ;;  %s13_s8 = int_to_ptr.hbm [resolvable:$true] %s12_s8 }
   0x2   :  { %s14_s10 = sshll.u32 %s7998_s9, 4  ;;  %s7999_s11 = smov 128   ;;  %s15_s10 = int_to_ptr.vmem [resolvable:$true] %s14_s10 }
   0x3   :  { %s8000_s12 = smov 8  }
   0x4   :  { %20 = dma.hbm_to_vmem [thread:$0]  %s13_s8, 2048, %s15_s10, [#allocation3], %s7999_s11, %s7999_s11, %s8000_s12  }
   0x5   :  { %7994 = dma.done.wait [#allocation3], 2048  }
   0x6   :  { %7995 = vsyncadd [#allocation3], 4294965248  ;;  %v41_v0 = vld [vmem:[#allocation2 + $0x40] sm:$0xff]  ;;  %v13943_v9 = vmov 2102212464   ;;  %v43_v16 = vld [vmem:[#allocation2 + $0x50] sm:$0xff] }
   0x7   :  { %v8027_v1 = vmul.f32 3.1415927, %v41_v0  ;;  %v13941_v11 = vmov 920167782   ;;  %v13939_v14 = vmov 1326507024  }
   0x8   :  { %v13955_v19 = vmov 683565275   ;;  %v13937_v21 = vmov 2475754826   ;;  %v13935_v24 = vmov 2131351028  }
   0x9   :  { %14118 = vst [vmem:[#allocation8_spill] sm:$0xff] %v8027_v1  ;;  %v67_v2 = vand.u32 2139095040, %v8027_v1  ;;  %v64_v17 = vand.u32 2147483647, %v8027_v1  ;;  %v8050_v28 = vmul.f32 3.1415927, %v43_v16 }
   0xa   :  { %s8010_s0 = smov [#allocation5]   ;;  %s7712_s16 = sshll.u32 %s13931_s1, 4  ;;  %s7713_s16 = int_to_ptr.hbm [resolvable:$true] %s7712_s16 }
   0xb   :  { %v68_v3 = vshrl.u32 %v67_v2, 23  ;;  %14119 = vst [vmem:[#allocation9_spill] sm:$0xff] %v8050_v28  ;;  %v71_v31 = vand.u32 8388607, %v64_v17  ;;  %v222_v37 = vand.u32 2139095040, %v8050_v28  ;;  %s7710_s13 = sshll.u32 %s8010_s0, 4  ;;  %s7711_s13 = int_to_ptr.vmem [resolvable:$true] %s7710_s13 }
   0xd   :  { %v7725_v4 = vadd.s32 4294967169, %v68_v3  ;;  %v72_v38 = vor.u32 8388608, %v71_v31  ;;  %v223_v43 = vshrl.u32 %v222_v37, 23 }
   0xf   :  { %v74_v5 = vadd.s32 1, %v7725_v4  ;;  %v8082_v44 = vshll.u32 %v72_v38, 8  ;;  %v7728_v47 = vadd.s32 4294967169, %v223_v43 }
  0x11   :  { %vm75_vm0 = vcmp.gt.s32.totalorder %v74_v5, 0  ;;  %v113_v48 = vand.u32 65535, %v8082_v44  ;;  %v114_v51 = vshrl.u32 %v8082_v44, 16  ;;  %v229_v54 = vadd.s32 1, %v7728_v47 }
  0x12   :  { %v76_v6 = vsel %vm75_vm0, %v74_v5, 0 }
  0x13   :  { %v78_v7 = vand.u32 31, %v76_v6  ;;  %v8039_v18 = vshrl.u32 %v76_v6, 5  ;;  %vm230_vm5 = vcmp.gt.s32.totalorder %v229_v54, 0 }
  0x14   :  { %v231_v63 = vsel %vm230_vm5, %v229_v54, 0 }
  0x15   :  { %v8030_v8 = vsub.s32 32, %v78_v7  ;;  %v90_v10 = vshll.u32 %v13943_v9, %v78_v7  ;;  %v93_v13 = vshll.u32 %v13941_v11, %v78_v7  ;;  %v81_v20 = vshll.u32 %v13955_v19, %v78_v7 }
  0x16   :  { %v84_v22 = vshll.u32 %v13937_v21, %v78_v7  ;;  %v87_v26 = vshll.u32 %v13935_v24, %v78_v7  ;;  %vm99_vm1 = vcmp.lt.s32.totalorder %v8039_v18, 4  ;;  %vm96_vm2 = vcmp.lt.s32.totalorder %v8039_v18, 1 }
  0x17   :  { %v91_v12 = vshrl.u32 %v13941_v11, %v8030_v8  ;;  %v94_v15 = vshrl.u32 %v13939_v14, %v8030_v8  ;;  %v82_v23 = vshrl.u32 %v13937_v21, %v8030_v8  ;;  %v85_v25 = vshrl.u32 %v13935_v24, %v8030_v8 }
  0x18   :  { %v88_v27 = vshrl.u32 %v13943_v9, %v8030_v8  ;;  %vm98_vm3 = vcmp.lt.s32.totalorder %v8039_v18, 3  ;;  %vm97_vm4 = vcmp.lt.s32.totalorder %v8039_v18, 2  ;;  %v233_v5 = vand.u32 31, %v231_v63 }
  0x19   :  { %v92_v29 = vor.u32 %v91_v12, %v90_v10  ;;  %v95_v30 = vor.u32 %v94_v15, %v93_v13  ;;  %v8055_v32 = vor.u32 %v82_v23, %v81_v20  ;;  %v8057_v33 = vor.u32 %v85_v25, %v84_v22 }
  0x1a   :  { %v8059_v34 = vor.u32 %v88_v27, %v87_v26  ;;  %v13946_v10 = vmov 0   ;;  %v8098_v15 = vsub.s32 32, %v233_v5  ;;  %v245_v27 = vshll.u32 %v13943_v9, %v233_v5 }
  0x1b   :  { %v105_v35 = vsel %vm99_vm1, %v92_v29, 920167782  ;;  %v109_v36 = vsel %vm99_vm1, %v95_v30, 1326507024  ;;  %v104_v39 = vsel %vm96_vm2, %v8055_v32, %v8057_v33  ;;  %v236_v37 = vshll.u32 %v13955_v19, %v233_v5 }
  0x1c   :  { %v106_v40 = vsel %vm98_vm3, %v8059_v34, %v105_v35  ;;  %v108_v41 = vsel %vm96_vm2, %v8057_v33, %v8059_v34  ;;  %v110_v42 = vsel %vm98_vm3, %v92_v29, %v109_v36  ;;  %v246_v29 = vshrl.u32 %v13941_v11, %v8098_v15 }
  0x1d   :  { %v107_v45 = vsel %vm97_vm4, %v104_v39, %v106_v40  ;;  %v111_v46 = vsel %vm97_vm4, %v108_v41, %v110_v42  ;;  %v219_v35 = vand.u32 2147483647, %v8050_v28  ;;  %v8106_v36 = vshrl.u32 %v231_v63, 5 }
  0x1e   :  { %v116_v49 = vshrl.u32 %v111_v46, 16  ;;  %v138_v50 = vshrl.u32 %v107_v45, 16  ;;  %v115_v52 = vand.u32 65535, %v111_v46  ;;  %v137_v53 = vand.u32 65535, %v107_v45  ;;  %v45_v46 = vld [vmem:[#allocation2 + $0x60] sm:$0xff] }
  0x1f   :  { %v237_v38 = vshrl.u32 %v13937_v21, %v8098_v15  ;;  %v248_v39 = vshll.u32 %v13941_v11, %v233_v5  ;;  %v249_v40 = vshrl.u32 %v13939_v14, %v8098_v15  ;;  %v239_v41 = vshll.u32 %v13937_v21, %v233_v5 }
  0x20   :  { %v118_v55 = vmul.u32 %v116_v49, %v113_v48  ;;  %v140_v56 = vmul.u32 %v138_v50, %v113_v48  ;;  %v8090_v57 = vmul.u32 %v115_v52, %v114_v51  ;;  %v8092_v58 = vmul.u32 %v137_v53, %v114_v51 }
  0x21   :  { %v117_v59 = vmul.u32 %v115_v52, %v113_v48  ;;  %v139_v61 = vmul.u32 %v137_v53, %v113_v48  ;;  %v120_v6 = vmul.u32 %v116_v49, %v114_v51  ;;  %v142_v7 = vmul.u32 %v138_v50, %v114_v51 }
  0x22   :  { %v121_v60 = vshll.u32 %v118_v55, 16  ;;  %v143_v62 = vshll.u32 %v140_v56, 16  ;;  %v123_v0 = vshll.u32 %v8090_v57, 16  ;;  %v145_v2 = vshll.u32 %v8092_v58, 16 }
  0x23   :  { %v122_v25 = vshrl.u32 %v118_v55, 16  ;;  %v144_v26 = vshrl.u32 %v140_v56, 16  ;;  %v240_v42 = vshrl.u32 %v13935_v24, %v8098_v15  ;;  %v242_v43 = vshll.u32 %v13935_v24, %v233_v5 }
  0x24   :  { %vm125_vm6 = vc.u32 %v117_v59, %v121_v60  ;;  %v127_v3 = vadd.s32 %v121_v60, %v117_v59  ;;  %vm147_vm7 = vc.u32 %v139_v61, %v143_v62  ;;  %v149_v4 = vadd.s32 %v143_v62, %v139_v61 }
  0x25   :  { %v126_v12 = vsel %vm125_vm6, 1, %v13946_v10  ;;  %v148_v13 = vsel %vm147_vm7, 1, %v13946_v10  ;;  %v243_v45 = vshrl.u32 %v13943_v9, %v8098_v15  ;;  %v80_v47 = vshrl.u32 %v13955_v19, %v8030_v8 }
  0x26   :  { %vm129_vm8 = vc.u32 %v127_v3, %v123_v0  ;;  %vm151_vm9 = vc.u32 %v149_v4, %v145_v2  ;;  %v128_v16 = vadd.s32 %v126_v12, %v120_v6  ;;  %v150_v20 = vadd.s32 %v148_v13, %v142_v7 }
  0x27   :  { %v130_v22 = vsel %vm129_vm8, 1, %v13946_v10  ;;  %v152_v23 = vsel %vm151_vm9, 1, %v13946_v10  ;;  %v247_v48 = vor.u32 %v246_v29, %v245_v27  ;;  %v146_v49 = vshrl.u32 %v8092_v58, 16 }
  0x28   :  { %v132_v30 = vadd.s32 %v130_v22, %v128_v16  ;;  %v154_v31 = vadd.s32 %v152_v23, %v150_v20  ;;  %v226_v51 = vand.u32 8388607, %v219_v35  ;;  %vm254_vm10 = vcmp.lt.s32.totalorder %v8106_v36, 4 }
  0x29   :  { %v101_v52 = vsel %vm99_vm1, %v8059_v34, 2102212464  ;;  %v124_v53 = vshrl.u32 %v8090_v57, 16  ;;  %v250_v55 = vor.u32 %v249_v40, %v248_v39  ;;  %v8130_v56 = vmul.f32 3.1415927, %v45_v46 }
  0x2a   :  { %v155_v50 = vadd.s32 %v154_v31, %v144_v26  ;;  %v133_v54 = vadd.s32 %v132_v30, %v122_v25  ;;  %v8132_v8 = vor.u32 %v237_v38, %v236_v37  ;;  %v8134_v59 = vor.u32 %v240_v42, %v239_v41 }
  0x2b   :  { %14120 = vst [vmem:[#allocation10_spill] sm:$0xff] %v8130_v56  ;;  %v8136_v58 = vor.u32 %v243_v45, %v242_v43  ;;  %vm251_vm11 = vcmp.lt.s32.totalorder %v8106_v36, 1  ;;  %vm253_vm12 = vcmp.lt.s32.totalorder %v8106_v36, 3  ;;  %v260_v60 = vsel %vm254_vm10, %v247_v48, 920167782 }
  0x2c   :  { %v100_v34 = vsel %vm96_vm2, %v80_v47, %v8055_v32  ;;  %v102_v57 = vsel %vm98_vm3, %v8057_v33, %v101_v52  ;;  %v156_v61 = vadd.s32 %v155_v50, %v146_v49  ;;  %v227_v62 = vor.u32 8388608, %v226_v51 }
  0x2d   :  { %v8148_v63 = vadd.s32 %v133_v54, %v124_v53  ;;  %v8150_v0 = vadd.s32 %v149_v4, %v145_v2  ;;  %v264_v3 = vsel %vm254_vm10, %v250_v55, 1326507024  ;;  %vm252_vm13 = vcmp.lt.s32.totalorder %v8106_v36, 2 }
  0x2e   :  { %v259_v32 = vsel %vm251_vm11, %v8132_v8, %v8134_v59  ;;  %v261_v33 = vsel %vm253_vm12, %v8136_v58, %v260_v60  ;;  %v377_v5 = vand.u32 2139095040, %v8130_v56  ;;  %v103_v2 = vsel %vm97_vm4, %v100_v34, %v102_v57 }
  0x2f   :  { %v160_v4 = vadd.s32 1, %v156_v61  ;;  %v263_v6 = vsel %vm251_vm11, %v8134_v59, %v8136_v58  ;;  %v265_v7 = vsel %vm253_vm12, %v247_v48, %v264_v3  ;;  %v8171_v12 = vshll.u32 %v227_v62, 8 }
  0x30   :  { %vm159_vm14 = vc.u32 %v8148_v63, %v8150_v0  ;;  %v262_v13 = vsel %vm252_vm13, %v259_v32, %v261_v33  ;;  %v378_v16 = vshrl.u32 %v377_v5, 23  ;;  %v157_v18 = vmul.u32 %v8082_v44, %v103_v2 }
  0x31   :  { %v266_v20 = vsel %vm252_vm13, %v263_v6, %v265_v7  ;;  %v161_v22 = vsel %vm159_vm14, %v160_v4, %v156_v61  ;;  %v268_v23 = vand.u32 65535, %v8171_v12  ;;  %v293_v25 = vshrl.u32 %v262_v13, 16 }
  0x32   :  { %v271_v26 = vshrl.u32 %v266_v20, 16  ;;  %v7731_v27 = vadd.s32 4294967169, %v378_v16  ;;  %v162_v29 = vadd.s32 %v161_v22, %v157_v18  ;;  %v269_v30 = vshrl.u32 %v8171_v12, 16 }
  0x33   :  { %v292_v31 = vand.u32 65535, %v262_v13  ;;  %v295_v37 = vmul.u32 %v293_v25, %v268_v23  ;;  %v270_v38 = vand.u32 65535, %v266_v20  ;;  %v235_v13 = vshrl.u32 %v13955_v19, %v8098_v15 }
  0x34   :  { %v273_v39 = vmul.u32 %v271_v26, %v268_v23  ;;  %v384_v40 = vadd.s32 1, %v7731_v27  ;;  %v163_v41 = vadd.s32 536870912, %v162_v29  ;;  %v297_v54 = vmul.u32 %v293_v25, %v269_v30 }
  0x35   :  { %v294_v42 = vmul.u32 %v292_v31, %v268_v23  ;;  %v296_v44 = vmul.u32 %v292_v31, %v269_v30  ;;  %v298_v43 = vshll.u32 %v295_v37, 16  ;;  %v272_v45 = vmul.u32 %v270_v38, %v268_v23 }
  0x36   :  { %v274_v46 = vmul.u32 %v270_v38, %v269_v30  ;;  %v276_v47 = vshll.u32 %v273_v39, 16  ;;  %vm385_vm15 = vcmp.gt.s32.totalorder %v384_v40, 0  ;;  %v8182_v48 = vshrl.u32 %v163_v41, 30 }
  0x37   :  { %v300_v49 = vshll.u32 %v296_v44, 16  ;;  %vm302_vm0 = vc.u32 %v294_v42, %v298_v43  ;;  %v304_v50 = vadd.s32 %v298_v43, %v294_v42  ;;  %v386_v51 = vsel %vm385_vm15, %v384_v40, 0 }
  0x38   :  { %v278_v52 = vshll.u32 %v274_v46, 16  ;;  %vm280_vm1 = vc.u32 %v272_v45, %v276_v47  ;;  %v282_v53 = vadd.s32 %v276_v47, %v272_v45  ;;  %v165_v55 = vshll.u32 %v8182_v48, 30 }
  0x39   :  { %v303_v60 = vsel %vm302_vm0, 1, %v13946_v10  ;;  %v275_v34 = vmul.u32 %v271_v26, %v269_v30  ;;  %vm306_vm2 = vc.u32 %v304_v50, %v300_v49  ;;  %v388_v57 = vand.u32 31, %v386_v51 }
  0x3a   :  { %v281_v61 = vsel %vm280_vm1, 1, %v13946_v10  ;;  %vm284_vm3 = vc.u32 %v282_v53, %v278_v52  ;;  %v305_v62 = vadd.s32 %v303_v60, %v297_v54  ;;  %v8187_v3 = vsub.s32 %v162_v29, %v165_v55 }
  0x3b   :  { %v307_v32 = vsel %vm306_vm2, 1, %v13946_v10  ;;  %v283_v33 = vadd.s32 %v281_v61, %v275_v34  ;;  %v8190_v5 = vsub.s32 32, %v388_v57  ;;  %v285_v2 = vsel %vm284_vm3, 1, %v13946_v10 }
  0x3c   :  { %v299_v4 = vshrl.u32 %v295_v37, 16  ;;  %v309_v6 = vadd.s32 %v307_v32, %v305_v62  ;;  %vm167_vm4 = vcmp.lt.s32.totalorder %v8187_v3, 0  ;;  %v168_v7 = vsub.s32 0, %v8187_v3 }
  0x3d   :  { %v256_v16 = vsel %vm254_vm10, %v8136_v58, 2102212464  ;;  %v277_v18 = vshrl.u32 %v273_v39, 16  ;;  %v287_v20 = vadd.s32 %v285_v2, %v283_v33  ;;  %v400_v22 = vshll.u32 %v13943_v9, %v388_v57 }
  0x3e   :  { %v401_v23 = vshrl.u32 %v13941_v11, %v8190_v5  ;;  %v13934_v25 = vand.u32 2147483647, %v8130_v56  ;;  %v8204_v26 = vshrl.u32 %v386_v51, 5  ;;  %v403_v27 = vshll.u32 %v13941_v11, %v388_v57 }
  0x3f   :  { %v404_v15 = vshrl.u32 %v13939_v14, %v8190_v5  ;;  %v301_v29 = vshrl.u32 %v296_v44, 16  ;;  %v310_v30 = vadd.s32 %v309_v6, %v299_v4  ;;  %v391_v58 = vshll.u32 %v13955_v19, %v388_v57 }
  0x40   :  { %v394_v31 = vshll.u32 %v13937_v21, %v388_v57  ;;  %v392_v37 = vshrl.u32 %v13937_v21, %v8190_v5  ;;  %v395_v38 = vshrl.u32 %v13935_v24, %v8190_v5  ;;  %v397_v39 = vshll.u32 %v13935_v24, %v388_v57 }
  0x41   :  { %v398_v40 = vshrl.u32 %v13943_v9, %v8190_v5  ;;  %v279_v41 = vshrl.u32 %v274_v46, 16  ;;  %v288_v42 = vadd.s32 %v287_v20, %v277_v18  ;;  %v402_v43 = vor.u32 %v401_v23, %v400_v22 }
  0x42   :  { %v381_v44 = vand.u32 8388607, %v13934_v25  ;;  %v405_v45 = vor.u32 %v404_v15, %v403_v27  ;;  %vm409_vm5 = vcmp.lt.s32.totalorder %v8204_v26, 4  ;;  %v169_v47 = vsel %vm167_vm4, %v168_v7, %v8187_v3 }
  0x43   :  { %v255_v51 = vsel %vm251_vm11, %v235_v13, %v8132_v8  ;;  %v257_v46 = vsel %vm253_vm12, %v8134_v59, %v256_v16  ;;  %v8230_v52 = vadd.s32 %v304_v50, %v300_v49  ;;  %v311_v53 = vadd.s32 %v310_v30, %v301_v29 }
  0x44   :  { %v8232_v54 = vor.u32 %v392_v37, %v391_v58  ;;  %v8234_v55 = vor.u32 %v395_v38, %v394_v31  ;;  %v8236_v60 = vor.u32 %v398_v40, %v397_v39  ;;  %v8238_v34 = vadd.s32 %v288_v42, %v279_v41  ;;  %v47_v37 = vld [vmem:[#allocation2 + $0x70] sm:$0xff]  ;;  %v49_v38 = vld [vmem:[#allocation2 + $0x48] sm:$0xff] }
  0x45   :  { %vm406_vm6 = vcmp.lt.s32.totalorder %v8204_v26, 1  ;;  %vm408_vm7 = vcmp.lt.s32.totalorder %v8204_v26, 3  ;;  %v415_v8 = vsel %vm409_vm5, %v402_v43, 920167782  ;;  %v382_v57 = vor.u32 8388608, %v381_v44 }
  0x46   :  { %v419_v59 = vsel %vm409_vm5, %v405_v45, 1326507024  ;;  %v170_v49 = vclz %v169_v47  ;;  %v258_v50 = vsel %vm252_vm13, %v255_v51, %v257_v46  ;;  %v315_v61 = vadd.s32 1, %v311_v53 }
  0x47   :  { %vm407_vm8 = vcmp.lt.s32.totalorder %v8204_v26, 2  ;;  %v414_v62 = vsel %vm406_vm6, %v8232_v54, %v8234_v55  ;;  %v416_v32 = vsel %vm408_vm7, %v8236_v60, %v415_v8  ;;  %vm314_vm9 = vc.u32 %v8238_v34, %v8230_v52 }
  0x48   :  { %v418_v36 = vsel %vm406_vm6, %v8234_v55, %v8236_v60  ;;  %v420_v33 = vsel %vm408_vm7, %v402_v43, %v419_v59  ;;  %v8264_v2 = vshll.u32 %v382_v57, 8  ;;  %v312_v4 = vmul.u32 %v8171_v12, %v258_v50 }
  0x49   :  { %v417_v6 = vsel %vm407_vm8, %v414_v62, %v416_v32  ;;  %v7726_v7 = vadd.s32 4294967294, %v170_v49  ;;  %v316_v13 = vsel %vm314_vm9, %v315_v61, %v311_v53  ;;  %v421_v16 = vsel %vm407_vm8, %v418_v36, %v420_v33 }
  0x4a   :  { %v423_v18 = vand.u32 65535, %v8264_v2  ;;  %v448_v20 = vshrl.u32 %v417_v6, 16  ;;  %v317_v22 = vadd.s32 %v316_v13, %v312_v4  ;;  %v426_v23 = vshrl.u32 %v421_v16, 16 }
  0x4b   :  { %vm7727_vm10 = vcmp.lt.s32.totalorder %v7726_v7, 0  ;;  %v424_v27 = vshrl.u32 %v8264_v2, 16  ;;  %v447_v15 = vand.u32 65535, %v417_v6  ;;  %v425_v58 = vand.u32 65535, %v421_v16 }
  0x4c   :  { %v450_v29 = vmul.u32 %v448_v20, %v423_v18  ;;  %v173_v30 = vsel %vm7727_vm10, 0, %v7726_v7  ;;  %v318_v12 = vadd.s32 536870912, %v317_v22  ;;  %v428_v31 = vmul.u32 %v426_v23, %v423_v18 }
  0x4d   :  { %v178_v39 = vsub.s32 4294967266, %v173_v30  ;;  %v449_v40 = vmul.u32 %v447_v15, %v423_v18  ;;  %v8273_v41 = vmul.u32 %v447_v15, %v424_v27  ;;  %v427_v44 = vmul.u32 %v425_v58, %v423_v18 }
  0x4e   :  { %v453_v42 = vshll.u32 %v450_v29, 16  ;;  %v8275_v43 = vshrl.u32 %v318_v12, 30  ;;  %v429_v45 = vmul.u32 %v425_v58, %v424_v27  ;;  %v431_v47 = vshll.u32 %v428_v31, 16 }
  0x4f   :  { %v8277_v51 = vmul.f32 3.1415927, %v47_v37  ;;  %v8279_v46 = vmul.f32 -1.5707964, %v49_v38  ;;  %v158_v53 = vadd.s32 %v8150_v0, %v8148_v63  ;;  %v174_v8 = vsub.s32 32, %v173_v30 }
  0x50   :  { %v179_v57 = vadd.s32 127, %v178_v39  ;;  %v455_v59 = vshll.u32 %v8273_v41, 16  ;;  %vm457_vm11 = vc.u32 %v449_v40, %v453_v42  ;;  %v459_v49 = vadd.s32 %v453_v42, %v449_v40 }
  0x51   :  { %14121 = vst [vmem:[#allocation11_spill] sm:$0xff] %v8277_v51  ;;  %v320_v50 = vshll.u32 %v8275_v43, 30  ;;  %v433_v61 = vshll.u32 %v429_v45, 16  ;;  %vm435_vm12 = vc.u32 %v427_v44, %v431_v47  ;;  %v437_v62 = vadd.s32 %v431_v47, %v427_v44 }
  0x52   :  { %14122 = vst [vmem:[#allocation12_spill] sm:$0xff] %v8279_v46  ;;  %v452_v32 = vmul.u32 %v448_v20, %v424_v27  ;;  %v175_v36 = vshll.u32 %v8187_v3, %v173_v30  ;;  %v430_v33 = vmul.u32 %v426_v23, %v424_v27  ;;  %v458_v4 = vsel %vm457_vm11, 1, %v13946_v10 }
  0x53   :  { %v532_v6 = vand.u32 2139095040, %v8277_v51  ;;  %v176_v63 = vshrl.u32 %v158_v53, %v174_v8  ;;  %v180_v0 = vshll.u32 %v179_v57, 23  ;;  %v436_v7 = vsel %vm435_vm12, 1, %v13946_v10 }
  0x54   :  { %vm461_vm13 = vc.u32 %v459_v49, %v455_v59  ;;  %v8289_v13 = vsub.s32 %v317_v22, %v320_v50  ;;  %vm439_vm14 = vc.u32 %v437_v62, %v433_v61  ;;  %v1303_v16 = vand.u32 2139095040, %v8279_v46 }
  0x55   :  { %v460_v18 = vadd.s32 %v458_v4, %v452_v32  ;;  %v438_v15 = vadd.s32 %v436_v7, %v430_v33  ;;  %v462_v20 = vsel %vm461_vm13, 1, %v13946_v10  ;;  %v533_v3 = vshrl.u32 %v532_v6, 23 }
  0x56   :  { %v177_v23 = vor.u32 %v176_v63, %v175_v36  ;;  %v181_v27 = vor.u32 4788187, %v180_v0  ;;  %v440_v30 = vsel %vm439_vm14, 1, %v13946_v10  ;;  %v323_v12 = vsub.s32 0, %v8289_v13 }
  0x57   :  { %v1304_v58 = vshrl.u32 %v1303_v16, 23  ;;  %vm322_vm15 = vcmp.lt.s32.totalorder %v8289_v13, 0  ;;  %v454_v37 = vshrl.u32 %v450_v29, 16  ;;  %v464_v22 = vadd.s32 %v462_v20, %v460_v18 }
  0x58   :  { %v432_v38 = vshrl.u32 %v428_v31, 16  ;;  %v442_v39 = vadd.s32 %v440_v30, %v438_v15  ;;  %v7734_v40 = vadd.s32 4294967169, %v533_v3  ;;  %v182_v42 = vand.u32 2147483647, %v181_v27  ;;  %v51_v30 = vld [vmem:[#allocation2 + $0x58] sm:$0xff] }
  0x59   :  { %v184_v44 = vcvt.s32.f32 %v177_v23  ;;  %v324_v47 = vsel %vm322_vm15, %v323_v12, %v8289_v13  ;;  %v7749_v53 = vadd.s32 4294967169, %v1304_v58  ;;  %v390_v8 = vshrl.u32 %v13955_v19, %v8190_v5 }
  0x5a   :  { %v456_v57 = vshrl.u32 %v8273_v41, 16  ;;  %v465_v50 = vadd.s32 %v464_v22, %v454_v37  ;;  %v434_v61 = vshrl.u32 %v429_v45, 16  ;;  %v443_v62 = vadd.s32 %v442_v39, %v432_v38 }
  0x5b   :  { %v539_v32 = vadd.s32 1, %v7734_v40  ;;  %v185_v36 = vmul.f32 %v184_v44, %v182_v42  ;;  %v325_v29 = vclz %v324_v47  ;;  %v411_v31 = vsel %vm409_vm5, %v8236_v60, 2102212464 }
  0x5c   :  { %v1310_v33 = vadd.s32 1, %v7749_v53  ;;  %v410_v4 = vsel %vm406_vm6, %v390_v8, %v8232_v54  ;;  %v466_v6 = vadd.s32 %v465_v50, %v456_v57  ;;  %v412_v5 = vsel %vm408_vm7, %v8234_v55, %v411_v31 }
  0x5d   :  { %v8309_v41 = vadd.s32 %v443_v62, %v434_v61  ;;  %v8311_v45 = vadd.s32 %v459_v49, %v455_v59  ;;  %vm540_vm0 = vcmp.gt.s32.totalorder %v539_v32, 0  ;;  %v186_v63 = vxor.u32 2147483648, %v185_v36 }
  0x5e   :  { %v7729_v0 = vadd.s32 4294967294, %v325_v29  ;;  %vm66_vm1 = vcmp.lt.s32.totalorder %v8027_v1, 0  ;;  %vm1311_vm2 = vcmp.gt.s32.totalorder %v1310_v33, 0  ;;  %v413_v60 = vsel %vm407_vm8, %v410_v4, %v412_v5 }
  0x5f   :  { %v470_v7 = vadd.s32 1, %v466_v6  ;;  %v541_v54 = vsel %vm540_vm0, %v539_v32, 0  ;;  %vm8318_vm3 = vcmp.le.f32.partialorder %v64_v17, 0.7853982  ;;  %vm469_vm4 = vc.u32 %v8309_v41, %v8311_v45 }
  0x60   :  { %v187_v55 = vsel %vm66_vm1, %v186_v63, %v185_v36  ;;  %vm7730_vm5 = vcmp.lt.s32.totalorder %v7729_v0, 0  ;;  %v13933_v59 = vand.u32 2147483647, %v8279_v46  ;;  %v1312_v49 = vsel %vm1311_vm2, %v1310_v33, 0 }
  0x61   :  { %v467_v26 = vmul.u32 %v8264_v2, %v413_v60  ;;  %v13932_v18 = vand.u32 2147483647, %v8277_v51  ;;  %v543_v15 = vand.u32 31, %v541_v54  ;;  %v471_v20 = vsel %vm469_vm4, %v470_v7, %v466_v6 }
  0x62   :  { %v188_v17 = vsub.s32 4, %v8182_v48  ;;  %v8333_v3 = vsel %vm8318_vm3, %v8027_v1, %v187_v55  ;;  %v8335_v23 = vsel %vm7730_vm5, 0, %v7729_v0  ;;  %v1314_v27 = vand.u32 31, %v1312_v49 }
  0x63   :  { %14125 = vst [vmem:[#allocation13_spill] sm:$0xff] %v8333_v3  ;;  %v8339_v12 = vand.u32 8388607, %v13933_v59  ;;  %v8341_v2 = vadd.s32 %v471_v20, %v467_v26  ;;  %v8345_v58 = vand.u32 8388607, %v13932_v18  ;;  %v8347_v37 = vsub.s32 32, %v543_v15 }
  0x64   :  { %v8351_v22 = vmul.f32 %v8333_v3, %v8333_v3  ;;  %v333_v38 = vsub.s32 4294967266, %v8335_v23  ;;  %v8354_v39 = vmul.f32 -1.5707964, %v51_v30  ;;  %v8359_v40 = vsel %vm66_vm1, %v188_v17, %v8182_v48 }
  0x65   :  { %v8361_v42 = vsub.s32 32, %v1314_v27  ;;  %v313_v47 = vadd.s32 %v8230_v52, %v8238_v34  ;;  %v1308_v53 = vor.u32 8388608, %v8339_v12  ;;  %v8369_v8 = vshrl.u32 %v1312_v49, 5 }
  0x66   :  { %14126 = vst [vmem:[#allocation14_spill] sm:$0xff] %v8354_v39  ;;  %v8364_v44 = vmul.f32 -0.001358992, %v8351_v22  ;;  %v473_v57 = vadd.s32 536870912, %v8341_v2  ;;  %v537_v50 = vor.u32 8388608, %v8345_v58  ;;  %v558_v61 = vshll.u32 %v13941_v11, %v543_v15 }
  0x67   :  { %v559_v48 = vshrl.u32 %v13939_v14, %v8347_v37  ;;  %v329_v62 = vsub.s32 32, %v8335_v23  ;;  %v8377_v32 = vadd.s32 127, %v333_v38  ;;  %v8379_v36 = vshrl.u32 %v541_v54, 5 }
  0x68   :  { %v546_v52 = vshll.u32 %v13955_v19, %v543_v15  ;;  %v549_v34 = vshll.u32 %v13937_v21, %v543_v15  ;;  %v552_v29 = vshll.u32 %v13935_v24, %v543_v15  ;;  %v1329_v31 = vshll.u32 %v13941_v11, %v1314_v27 }
  0x69   :  { %v1330_v33 = vshrl.u32 %v13939_v14, %v8361_v42  ;;  %v550_v4 = vshrl.u32 %v13935_v24, %v8347_v37  ;;  %v555_v6 = vshll.u32 %v13943_v9, %v543_v15  ;;  %v1326_v5 = vshll.u32 %v13943_v9, %v1314_v27 }
  0x6a   :  { %v1327_v63 = vshrl.u32 %v13941_v11, %v8361_v42  ;;  %v8393_v0 = vshrl.u32 %v473_v57, 30  ;;  %v553_v60 = vshrl.u32 %v13943_v9, %v8347_v37  ;;  %v556_v7 = vshrl.u32 %v13941_v11, %v8347_v37 }
  0x6b   :  { %v560_v54 = vor.u32 %v559_v48, %v558_v61  ;;  %v1320_v55 = vshll.u32 %v13937_v21, %v1314_v27  ;;  %v1321_v49 = vshrl.u32 %v13935_v24, %v8361_v42  ;;  %v1323_v26 = vshll.u32 %v13935_v24, %v1314_v27 }
  0x6c   :  { %14127 = vst [vmem:[#allocation15_spill] sm:$0xff] %v8393_v0  ;;  %v1324_v15 = vshrl.u32 %v13943_v9, %v8361_v42  ;;  %vm564_vm6 = vcmp.lt.s32.totalorder %v8379_v36, 4  ;;  %v1317_v20 = vshll.u32 %v13955_v19, %v1314_v27  ;;  %v1318_v17 = vshrl.u32 %v13937_v21, %v8361_v42 }
  0x6d   :  { %v1331_v30 = vor.u32 %v1330_v33, %v1329_v31  ;;  %v547_v58 = vshrl.u32 %v13937_v21, %v8347_v37  ;;  %v8411_v38 = vor.u32 %v550_v4, %v549_v34  ;;  %v1328_v57 = vor.u32 %v1327_v63, %v1326_v5 }
  0x6e   :  { %vm1335_vm7 = vcmp.lt.s32.totalorder %v8369_v8, 4  ;;  %v8414_v61 = vor.u32 %v553_v60, %v552_v29  ;;  %v557_v48 = vor.u32 %v556_v7, %v555_v6  ;;  %vm561_vm8 = vcmp.lt.s32.totalorder %v8379_v36, 1 }
  0x6f   :  { %vm563_vm9 = vcmp.lt.s32.totalorder %v8379_v36, 3  ;;  %v475_v27 = vshll.u32 %v8393_v0, 30  ;;  %v574_v31 = vsel %vm564_vm6, %v560_v54, 1326507024  ;;  %v8421_v33 = vor.u32 %v1321_v49, %v1320_v55 }
  0x70   :  { %v8423_v18 = vor.u32 %v1324_v15, %v1323_v26  ;;  %v8425_v34 = vor.u32 %v1318_v17, %v1317_v20  ;;  %vm1332_vm10 = vcmp.lt.s32.totalorder %v8369_v8, 1  ;;  %vm13964_vm11 = vcmp.lt.s32.totalorder %v8369_v8, 3 }
  0x71   :  { %v1345_v29 = vsel %vm1335_vm7, %v1331_v30, 1326507024  ;;  %v330_v4 = vshll.u32 %v8289_v13, %v8335_v23  ;;  %v331_v6 = vshrl.u32 %v313_v47, %v329_v62  ;;  %v8433_v5 = vor.u32 %v547_v58, %v546_v52  ;;  %v53_v30 = vld [vmem:[#allocation2 + $0x68] sm:$0xff] }
  0x72   :  { %v1341_v63 = vsel %vm1335_vm7, %v1328_v57, 920167782  ;;  %v335_v60 = vshll.u32 %v8377_v32, 23  ;;  %vm562_vm12 = vcmp.lt.s32.totalorder %v8379_v36, 2  ;;  %v570_v7 = vsel %vm564_vm6, %v557_v48, 920167782 }
  0x73   :  { %v573_v54 = vsel %vm561_vm8, %v8411_v38, %v8414_v61  ;;  %v575_v13 = vsel %vm563_vm9, %v557_v48, %v574_v31  ;;  %vm13962_vm13 = vcmp.lt.s32.totalorder %v8369_v8, 2  ;;  %v1344_v23 = vsel %vm1332_vm10, %v8421_v33, %v8423_v18 }
  0x74   :  { %v1346_v47 = vsel %vm13964_vm11, %v1328_v57, %v1345_v29  ;;  %v8455_v62 = vsub.s32 %v8341_v2, %v475_v27  ;;  %v8457_v32 = vshll.u32 %v537_v50, 8  ;;  %v1340_v52 = vsel %vm1332_vm10, %v8425_v34, %v8421_v33 }
  0x75   :  { %v1342_v55 = vsel %vm13964_vm11, %v8423_v18, %v1341_v63  ;;  %v569_v49 = vsel %vm561_vm8, %v8433_v5, %v8411_v38  ;;  %v571_v2 = vsel %vm563_vm9, %v8414_v61, %v570_v7  ;;  %v8475_v50 = vshll.u32 %v1308_v53, 8 }
  0x76   :  { %v8480_v26 = vsel %vm8318_vm3, 0, %v8359_v40  ;;  %v200_v15 = vmul.f32 -0.00019511016, %v8351_v22  ;;  %v8485_v20 = vsel %vm562_vm12, %v573_v54, %v575_v13  ;;  %v8489_v17 = vsel %vm13962_vm13, %v1344_v23, %v1346_v47 }
  0x77   :  { %14128 = vst [vmem:[#allocation16_spill] sm:$0xff] %v8480_v26  ;;  %v194_v12 = vadd.f32 0.041655596, %v8364_v44  ;;  %v332_v53 = vor.u32 %v331_v6, %v330_v4  ;;  %v336_v58 = vor.u32 4788187, %v335_v60  ;;  %v8494_v16 = vsel %vm13962_vm13, %v1340_v52, %v1342_v55 }
  0x78   :  { %v478_v40 = vsub.s32 0, %v8455_v62  ;;  %v8499_v57 = vsel %vm562_vm12, %v569_v49, %v571_v2  ;;  %v578_v48 = vand.u32 65535, %v8457_v32  ;;  %v1458_v27 = vand.u32 2139095040, %v8354_v39 }
  0x79   :  { %vm477_vm14 = vcmp.lt.s32.totalorder %v8455_v62, 0  ;;  %v13945_v44 = vshrl.u32 %v8485_v20, 16  ;;  %v1349_v31 = vand.u32 65535, %v8475_v50  ;;  %v1352_v29 = vshrl.u32 %v8489_v17, 16 }
  0x7a   :  { %v8507_v4 = vmul.f32 -1.5707964, %v53_v30  ;;  %v201_v6 = vadd.f32 0.008332121, %v200_v15  ;;  %v8510_v63 = vadd.s32 3, %v8480_v26  ;;  %v1374_v60 = vshrl.u32 %v8494_v16, 16 }
  0x7b   :  { %v195_v7 = vmul.f32 %v194_v12, %v8351_v22  ;;  %v337_v54 = vand.u32 2147483647, %v336_v58  ;;  %v339_v13 = vcvt.s32.f32 %v332_v53  ;;  %v603_v23 = vshrl.u32 %v8499_v57, 16 }
  0x7c   :  { %14129 = vst [vmem:[#allocation17_spill] sm:$0xff] %v8507_v4  ;;  %v479_v47 = vsel %vm477_vm14, %v478_v40, %v8455_v62  ;;  %v579_v52 = vshrl.u32 %v8457_v32, 16  ;;  %v580_v55 = vand.u32 65535, %v8485_v20  ;;  %v1459_v49 = vshrl.u32 %v1458_v27, 23 }
  0x7d   :  { %v8520_v2 = vmul.u32 %v13945_v44, %v578_v48  ;;  %v1350_v15 = vshrl.u32 %v8475_v50, 16  ;;  %v1351_v30 = vand.u32 65535, %v8489_v17  ;;  %v8524_v12 = vmul.u32 %v1352_v29, %v1349_v31 }
  0x7e   :  { %v202_v53 = vmul.f32 %v201_v6, %v8351_v22  ;;  %vm13963_vm15 = vcmp.lt.s32.totalorder %v8050_v28, 0  ;;  %v1373_v58 = vand.u32 65535, %v8494_v16  ;;  %v8529_v40 = vmul.u32 %v1374_v60, %v1349_v31 }
  0x7f   :  { %v8531_v59 = vadd.f32 -0.4999988, %v195_v7  ;;  %v340_v27 = vmul.f32 %v339_v13, %v337_v54  ;;  %v602_v25 = vand.u32 65535, %v8499_v57  ;;  %v8534_v24 = vmul.u32 %v603_v23, %v578_v48 }
  0x80   :  { %v480_v21 = vclz %v479_v47  ;;  %v582_v14 = vmul.u32 %v580_v55, %v578_v48  ;;  %v8536_v17 = vmul.u32 %v580_v55, %v579_v52  ;;  %v7752_v11 = vadd.s32 4294967169, %v1459_v49 }
  0x81   :  { %v586_v6 = vshll.u32 %v8520_v2, 16  ;;  %v1353_v9 = vmul.u32 %v1351_v30, %v1349_v31  ;;  %v8539_v44 = vmul.u32 %v1351_v30, %v1350_v15  ;;  %v1357_v16 = vshll.u32 %v8524_v12, 16 }
  0x82   :  { %v8542_v10 = vadd.f32 -0.16666654, %v202_v53  ;;  %v1375_v7 = vmul.u32 %v1373_v58, %v1349_v31  ;;  %v8544_v54 = vmul.u32 %v1373_v58, %v1350_v15  ;;  %v1379_v57 = vshll.u32 %v8529_v40, 16 }
  0x83   :  { %vm8549_vm0 = vcmp.le.f32.partialorder %v219_v35, 0.7853982  ;;  %v545_v47 = vshrl.u32 %v13955_v19, %v8347_v37  ;;  %v604_v55 = vmul.u32 %v602_v25, %v578_v48  ;;  %v8555_v49 = vmul.u32 %v602_v25, %v579_v52 }
  0x84   :  { %v608_v30 = vshll.u32 %v8534_v24, 16  ;;  %v341_v53 = vxor.u32 2147483648, %v340_v27  ;;  %v7732_v31 = vadd.s32 4294967294, %v480_v21  ;;  %v588_v58 = vshll.u32 %v8536_v17, 16 }
  0x85   :  { %v1465_v26 = vadd.s32 1, %v7752_v11  ;;  %vm8559_vm1 = vc.u32 %v582_v14, %v586_v6  ;;  %v1359_v35 = vshll.u32 %v8539_v44, 16  ;;  %vm1361_vm2 = vc.u32 %v1353_v9, %v1357_v16 }
  0x86   :  { %v1363_v46 = vadd.s32 %v1357_v16, %v1353_v9  ;;  %v592_v1 = vadd.s32 %v586_v6, %v582_v14  ;;  %v1381_v37 = vshll.u32 %v8544_v54, 16  ;;  %vm1383_vm3 = vc.u32 %v1375_v7, %v1379_v57 }
  0x87   :  { %v8565_v25 = vadd.s32 %v1379_v57, %v1375_v7  ;;  %v610_v48 = vshll.u32 %v8555_v49, 16  ;;  %vm612_vm4 = vc.u32 %v604_v55, %v608_v30  ;;  %v8568_v21 = vadd.s32 %v608_v30, %v604_v55 }
  0x88   :  { %v1356_v11 = vmul.u32 %v1352_v29, %v1350_v15  ;;  %v342_v19 = vsel %vm13963_vm15, %v341_v53, %v340_v27  ;;  %v14134_v0 = vmov 0   ;;  %v1378_v3 = vmul.u32 %v1374_v60, %v1350_v15 }
  0x89   :  { %v1362_v56 = vsel %vm1361_vm2, 1, %v14134_v0  ;;  %vm1466_vm5 = vcmp.gt.s32.totalorder %v1465_v26, 0  ;;  %v14135_v9 = vshrl.u32 %v8485_v20, 16  ;;  %v607_v6 = vmul.u32 %v603_v23, %v579_v52 }
  0x8a   :  { %vm1365_vm14 = vc.u32 %v1363_v46, %v1359_v35  ;;  %v1384_v16 = vsel %vm1383_vm3, 1, %v14134_v0  ;;  %vm7733_vm13 = vcmp.lt.s32.totalorder %v7732_v31, 0  ;;  %v591_v7 = vsel %vm8559_vm1, 1, %v14134_v0 }
  0x8b   :  { %v585_v14 = vmul.u32 %v14135_v9, %v579_v52  ;;  %v613_v29 = vsel %vm612_vm4, 1, %v14134_v0  ;;  %vm1387_vm2 = vc.u32 %v8565_v25, %v1381_v37  ;;  %vm594_vm15 = vc.u32 %v592_v1, %v588_v58 }
  0x8c   :  { %vm616_vm11 = vc.u32 %v8568_v21, %v610_v48  ;;  %v1364_v20 = vadd.s32 %v1362_v56, %v1356_v11  ;;  %v1467_v46 = vsel %vm1466_vm5, %v1465_v26, 0  ;;  %v468_v60 = vadd.s32 %v8311_v45, %v8309_v41 }
  0x8d   :  { %v566_v51 = vsel %vm564_vm6, %v8414_v61, 2102212464  ;;  %v1366_v23 = vsel %vm1365_vm14, 1, %v14134_v0  ;;  %v1386_v52 = vadd.s32 %v1384_v16, %v1378_v3  ;;  %v8592_v15 = vsel %vm7733_vm13, 0, %v7732_v31 }
  0x8e   :  { %v593_v27 = vadd.s32 %v591_v7, %v585_v14  ;;  %v615_v1 = vadd.s32 %v613_v29, %v607_v6  ;;  %v1388_v57 = vsel %vm1387_vm2, 1, %v14134_v0  ;;  %v8598_v56 = vsel %vm8549_vm0, %v8050_v28, %v342_v19 }
  0x8f   :  { %v595_v41 = vsel %vm594_vm15, 1, %v14134_v0  ;;  %v617_v45 = vsel %vm616_vm11, 1, %v14134_v0  ;;  %v1469_v26 = vand.u32 31, %v1467_v46  ;;  %v565_v3 = vsel %vm561_vm8, %v545_v47, %v8433_v5 }
  0x90   :  { %v567_v61 = vsel %vm563_vm9, %v8411_v38, %v566_v51  ;;  %v1358_v55 = vshrl.u32 %v8524_v12, 16  ;;  %v1368_v30 = vadd.s32 %v1366_v23, %v1364_v20  ;;  %v488_v53 = vsub.s32 4294967266, %v8592_v15 }
  0x91   :  { %v14136_v19 = vmov 683565275   ;;  %v1380_v58 = vshrl.u32 %v8529_v40, 16  ;;  %v1390_v35 = vadd.s32 %v1388_v57, %v1386_v52  ;;  %v587_v11 = vshrl.u32 %v8520_v2, 16 }
  0x92   :  { %v1316_v31 = vshrl.u32 %v14136_v19, %v8361_v42  ;;  %v597_v9 = vadd.s32 %v595_v41, %v593_v27  ;;  %v609_v5 = vshrl.u32 %v8534_v24, 16  ;;  %v619_v47 = vadd.s32 %v617_v45, %v615_v1 }
  0x93   :  { %v8617_v38 = vmul.f32 %v8598_v56, %v8598_v56  ;;  %v484_v12 = vsub.s32 32, %v8592_v15  ;;  %v8622_v14 = vsel %vm562_vm12, %v565_v3, %v567_v61  ;;  %v8624_v42 = vsub.s32 32, %v1469_v26 }
  0x94   :  { %v485_v40 = vshll.u32 %v8455_v62, %v8592_v15  ;;  %v1337_v24 = vsel %vm1335_vm7, %v8423_v18, 2102212464  ;;  %v1360_v2 = vshrl.u32 %v8539_v44, 16  ;;  %v1369_v6 = vadd.s32 %v1368_v30, %v1358_v55 }
  0x95   :  { %v489_v16 = vadd.s32 127, %v488_v53  ;;  %v589_v7 = vshrl.u32 %v8536_v17, 16  ;;  %v1382_v29 = vshrl.u32 %v8544_v54, 16  ;;  %v1391_v36 = vadd.s32 %v1390_v35, %v1380_v58 }
  0x96   :  { %v598_v20 = vadd.s32 %v597_v9, %v587_v11  ;;  %v611_v51 = vshrl.u32 %v8555_v49, 16  ;;  %v620_v23 = vadd.s32 %v619_v47, %v609_v5  ;;  %v1336_v62 = vsel %vm1332_vm10, %v1316_v31, %v8425_v34 }
  0x97   :  { %vm14137_vm6 = vcmp.lt.s32.totalorder %v8369_v8, 3  ;;  %v13967_v44 = vand.u32 2147483647, %v8354_v39  ;;  %v14138_v52 = vmov 2102212464   ;;  %v8645_v1 = vadd.s32 %v1369_v6, %v1360_v2 }
  0x98   :  { %v1338_v18 = vsel %vm14137_vm6, %v8421_v33, %v1337_v24  ;;  %v1481_v15 = vshll.u32 %v14138_v52, %v1469_v26  ;;  %v14139_v17 = vmov 920167782   ;;  %v8647_v57 = vshrl.u32 %v1467_v46, 5 }
  0x99   :  { %v1482_v27 = vshrl.u32 %v14139_v17, %v8624_v42  ;;  %v1484_v41 = vshll.u32 %v14139_v17, %v1469_v26  ;;  %v14140_v45 = vmov 1326507024   ;;  %v8655_v33 = vadd.s32 %v8565_v25, %v1381_v37 }
  0x9a   :  { %v1485_v34 = vshrl.u32 %v14140_v45, %v8624_v42  ;;  %v1392_v3 = vadd.s32 %v1391_v36, %v1382_v29  ;;  %v1472_v61 = vshll.u32 %v14136_v19, %v1469_v26  ;;  %v14141_v55 = vmov 2475754826  }
  0x9b   :  { %v1475_v30 = vshll.u32 %v14141_v55, %v1469_v26  ;;  %v1473_v53 = vshrl.u32 %v14141_v55, %v8624_v42  ;;  %v14142_v46 = vmov 2131351028   ;;  %v1479_v35 = vshrl.u32 %v14138_v52, %v8624_v42 }
  0x9c   :  { %v1476_v31 = vshrl.u32 %v14142_v46, %v8624_v42  ;;  %v1478_v58 = vshll.u32 %v14142_v46, %v1469_v26  ;;  %v486_v54 = vshrl.u32 %v468_v60, %v484_v12  ;;  %v490_v11 = vshll.u32 %v489_v16, 23 }
  0x9d   :  { %v621_v37 = vadd.s32 %v620_v23, %v611_v51  ;;  %v1483_v25 = vor.u32 %v1482_v27, %v1481_v15  ;;  %v1462_v9 = vand.u32 8388607, %v13967_v44  ;;  %v1486_v5 = vor.u32 %v1485_v34, %v1484_v41 }
  0x9e   :  { %vm1490_vm7 = vcmp.lt.s32.totalorder %v8647_v57, 4  ;;  %v1613_v47 = vand.u32 2139095040, %v8507_v4  ;;  %v8670_v24 = vadd.s32 %v598_v20, %v589_v7  ;;  %v8675_v26 = vadd.s32 %v8568_v21, %v610_v48 }
  0x9f   :  { %vm14143_vm8 = vcmp.lt.s32.totalorder %v8369_v8, 2  ;;  %v1396_v12 = vadd.s32 1, %v1392_v3  ;;  %vm1395_vm9 = vc.u32 %v8645_v1, %v8655_v33  ;;  %v8681_v2 = vor.u32 %v1473_v53, %v1472_v61 }
  0xa0   :  { %v1339_v60 = vsel %vm14143_vm8, %v1336_v62, %v1338_v18  ;;  %v8683_v6 = vor.u32 %v1476_v31, %v1475_v30  ;;  %v8685_v16 = vor.u32 %v1479_v35, %v1478_v58  ;;  %v625_v7 = vadd.s32 1, %v621_v37  ;;  %v55_v30 = vld [vmem:[#allocation2 + $0x78] sm:$0xff] }
  0xa1   :  { %vm1487_vm10 = vcmp.lt.s32.totalorder %v8647_v57, 1  ;;  %vm1489_vm11 = vcmp.lt.s32.totalorder %v8647_v57, 3  ;;  %v1496_v49 = vsel %vm1490_vm7, %v1483_v25, 920167782  ;;  %v1393_v8 = vmul.u32 %v8475_v50, %v1339_v60 }
  0xa2   :  { %v1463_v48 = vor.u32 8388608, %v1462_v9  ;;  %v1500_v21 = vsel %vm1490_vm7, %v1486_v5, 1326507024  ;;  %v1614_v29 = vshrl.u32 %v1613_v47, 23  ;;  %v204_v36 = vmul.f32 %v8542_v10, %v8351_v22 }
  0xa3   :  { %v348_v20 = vmul.f32 -0.001358992, %v8617_v38  ;;  %vm624_vm12 = vc.u32 %v8670_v24, %v8675_v26  ;;  %v1397_v51 = vsel %vm1395_vm9, %v1396_v12, %v1392_v3  ;;  %v622_v23 = vmul.u32 %v8457_v32, %v8622_v14  ;;  %v14146_v12 = vld [vmem:[#allocation13_spill] sm:$0xff] }
  0xa4   :  { %vm1488_vm13 = vcmp.lt.s32.totalorder %v8647_v57, 2  ;;  %v1495_v50 = vsel %vm1487_vm10, %v8681_v2, %v8683_v6  ;;  %v1497_v10 = vsel %vm1489_vm11, %v8685_v16, %v1496_v49  ;;  %v487_v62 = vor.u32 %v486_v54, %v485_v40 }
  0xa5   :  { %v491_v18 = vor.u32 4788187, %v490_v11  ;;  %v1499_v15 = vsel %vm1487_vm10, %v8683_v6, %v8685_v16  ;;  %v1501_v32 = vsel %vm1489_vm11, %v1483_v25, %v1500_v21  ;;  %v626_v14 = vsel %vm624_vm12, %v625_v7, %v621_v37 }
  0xa6   :  { %v8715_v27 = vadd.s32 %v1397_v51, %v1393_v8  ;;  %v8717_v41 = vshll.u32 %v1463_v48, 8  ;;  %v7755_v34 = vadd.s32 4294967169, %v1614_v29  ;;  %v197_v3 = vmul.f32 %v8531_v59, %v8351_v22 }
  0xa7   :  { %v8722_v40 = vand.u32 3, %v8510_v63  ;;  %v8726_v61 = vsel %vm1488_vm13, %v1495_v50, %v1497_v10  ;;  %v205_v53 = vadd.f32 1.0, %v204_v36  ;;  %v343_v31 = vsub.s32 4, %v8275_v43 }
  0xa8   :  { %v355_v58 = vmul.f32 -0.00019511016, %v8617_v38  ;;  %v8732_v35 = vsel %vm1488_vm13, %v1499_v15, %v1501_v32  ;;  %v349_v54 = vadd.f32 0.041655596, %v348_v20  ;;  %v492_v11 = vand.u32 2147483647, %v491_v18 }
  0xa9   :  { %v494_v59 = vcvt.s32.f32 %v487_v62  ;;  %v8734_v22 = vadd.s32 %v626_v14, %v622_v23  ;;  %v1399_v63 = vadd.s32 536870912, %v8715_v27  ;;  %v1504_v37 = vand.u32 65535, %v8717_v41  ;;  %v14151_v32 = vld [vmem:[#allocation10_spill] sm:$0xff] }
  0xaa   :  { %v1529_v25 = vshrl.u32 %v8726_v61, 16  ;;  %v1620_v9 = vadd.s32 1, %v7755_v34  ;;  %v8739_v5 = vmul.f32 -1.5707964, %v55_v30  ;;  %v8741_v47 = vadd.f32 1.0, %v197_v3 }
  0xab   :  { %v1507_v60 = vshrl.u32 %v8732_v35, 16  ;;  %v8745_v7 = vmul.f32 %v205_v53, %v14146_v12  ;;  %vm211_vm15 = vcmp.eq.s32.totalorder %v8722_v40, 0  ;;  %vm14148_vm1 = vcmp.lt.s32.totalorder %v8050_v28, 0 }
  0xac   :  { %14144 = vst [vmem:[#allocation18_spill] sm:$0xff] %v8739_v5  ;;  %v344_v49 = vsel %vm14148_vm1, %v343_v31, %v8275_v43  ;;  %v356_v8 = vadd.f32 0.008332121, %v355_v58  ;;  %v350_v48 = vmul.f32 %v349_v54, %v8617_v38  ;;  %v495_v21 = vmul.f32 %v494_v59, %v492_v11 }
  0xad   :  { %14145 = vst [vmem:[#allocation19_spill] sm:$0xff] %v8741_v47  ;;  %v628_v29 = vadd.s32 536870912, %v8734_v22  ;;  %v1505_v36 = vshrl.u32 %v8717_v41, 16  ;;  %v8754_v20 = vshrl.u32 %v1399_v63, 30  ;;  %v1528_v51 = vand.u32 65535, %v8726_v61 }
  0xae   :  { %14147 = vst [vmem:[#allocation13_spill] sm:$0xff] %v8745_v7  ;;  %v8757_v23 = vmul.u32 %v1529_v25, %v1504_v37  ;;  %vm1621_vm3 = vcmp.gt.s32.totalorder %v1620_v9, 0  ;;  %vm214_vm4 = vcmp.eq.s32.totalorder %v8722_v40, 2  ;;  %v13965_v50 = vxor.u32 2147483648, %v8741_v47 }
  0xaf   :  { %14149 = vst [vmem:[#allocation20_spill] sm:$0xff] %v8754_v20  ;;  %v1506_v43 = vand.u32 65535, %v8732_v35  ;;  %v8762_v10 = vmul.u32 %v1507_v60, %v1504_v37  ;;  %v13966_v62 = vxor.u32 2147483648, %v8745_v7  ;;  %v8767_v18 = vsel %vm8549_vm0, 0, %v344_v49 }
  0xb0   :  { %14150 = vst [vmem:[#allocation21_spill] sm:$0xff] %v8767_v18  ;;  %v357_v15 = vmul.f32 %v356_v8, %v8617_v38  ;;  %vm376_vm5 = vcmp.lt.s32.totalorder %v14151_v32, 0  ;;  %v351_v14 = vadd.f32 -0.4999988, %v350_v48  ;;  %v496_v34 = vxor.u32 2147483648, %v495_v21 }
  0xb1   :  { %v8771_v3 = vshrl.u32 %v628_v29, 30  ;;  %v1622_v61 = vsel %vm1621_vm3, %v1620_v9, 0  ;;  %v1401_v30 = vshll.u32 %v8754_v20, 30  ;;  %v1530_v53 = vmul.u32 %v1528_v51, %v1504_v37  ;;  %v14153_v9 = vld [vmem:[#allocation15_spill] sm:$0xff] }
  0xb2   :  { %v8774_v31 = vmul.u32 %v1528_v51, %v1505_v36  ;;  %v1534_v58 = vshll.u32 %v8757_v23, 16  ;;  %v8782_v13 = vsel %vm214_vm4, %v13965_v50, %v8745_v7  ;;  %v1508_v35 = vmul.u32 %v1506_v43, %v1504_v37 }
  0xb3   :  { %14152 = vst [vmem:[#allocation22_spill] sm:$0xff] %v8771_v3  ;;  %v8784_v54 = vmul.u32 %v1506_v43, %v1505_v36  ;;  %v1512_v11 = vshll.u32 %v8762_v10, 16  ;;  %v358_v59 = vadd.f32 -0.16666654, %v357_v15  ;;  %v363_v63 = vadd.s32 3, %v8767_v18 }
  0xb4   :  { %v498_v12 = vsub.s32 4, %v14153_v9  ;;  %v1624_v49 = vand.u32 31, %v1622_v61  ;;  %v8794_v8 = vsel %vm211_vm15, %v8741_v47, %v13966_v62  ;;  %v352_v48 = vmul.f32 %v351_v14, %v8617_v38 }
  0xb5   :  { %v14154_v37 = vand.u32 2147483647, %v14151_v32  ;;  %v497_v51 = vsel %vm376_vm5, %v496_v34, %v495_v21  ;;  %v630_v43 = vshll.u32 %v8771_v3, 30  ;;  %v8807_v15 = vsub.s32 %v8715_v27, %v1401_v30 }
  0xb6   :  { %v13970_v50 = vshll.u32 %v8774_v31, 16  ;;  %v8810_v62 = vadd.s32 %v1534_v58, %v1530_v53  ;;  %v1514_v14 = vshll.u32 %v8784_v54, 16  ;;  %vm1516_vm14 = vc.u32 %v1508_v35, %v1512_v11 }
  0xb7   :  { %vm8799_vm0 = vcmp.le.f32.partialorder %v14154_v37, 0.7853982  ;;  %v1518_v44 = vadd.s32 %v1512_v11, %v1508_v35  ;;  %vm1538_vm2 = vc.u32 %v1530_v53, %v1534_v58  ;;  %v8814_v37 = vmul.f32 %v358_v59, %v8617_v38 }
  0xb8   :  { %v8816_v47 = vand.u32 3, %v363_v63  ;;  %v8821_v21 = vsel %vm376_vm5, %v498_v12, %v14153_v9  ;;  %v8823_v27 = vsub.s32 32, %v1624_v49  ;;  %v8825_v34 = vadd.f32 1.0, %v352_v48 }
  0xb9   :  { %v8830_v30 = vsel %vm8799_vm0, %v14151_v32, %v497_v51  ;;  %v1511_v53 = vmul.u32 %v1507_v60, %v1505_v36  ;;  %v1533_v58 = vmul.u32 %v1529_v25, %v1505_v36  ;;  %v8833_v38 = vsub.s32 %v8734_v22, %v630_v43 }
  0xba   :  { %14157 = vst [vmem:[#allocation15_spill] sm:$0xff] %v8825_v34  ;;  %v1517_v35 = vsel %vm1516_vm14, 1, %v14134_v0  ;;  %v1539_v11 = vsel %vm1538_vm2, 1, %v14134_v0  ;;  %vm1542_vm6 = vc.u32 %v8810_v62, %v13970_v50  ;;  %vm1403_vm8 = vcmp.lt.s32.totalorder %v8807_v15, 0 }
  0xbb   :  { %14158 = vst [vmem:[#allocation23_spill] sm:$0xff] %v8830_v30  ;;  %v1404_v59 = vsub.s32 0, %v8807_v15  ;;  %vm1520_vm9 = vc.u32 %v1518_v44, %v1514_v14  ;;  %v1636_v25 = vshll.u32 %v14138_v52, %v1624_v49  ;;  %v1637_v22 = vshrl.u32 %v14139_v17, %v8823_v27 }
  0xbc   :  { %v1639_v60 = vshll.u32 %v14139_v17, %v1624_v49  ;;  %v1640_v36 = vshrl.u32 %v14140_v45, %v8823_v27  ;;  %v1519_v9 = vadd.s32 %v1517_v35, %v1511_v53  ;;  %v1541_v12 = vadd.s32 %v1539_v11, %v1533_v58 }
  0xbd   :  { %v1543_v48 = vsel %vm1542_vm6, 1, %v14134_v0  ;;  %v8850_v51 = vshrl.u32 %v1622_v61, 5  ;;  %v1627_v44 = vshll.u32 %v14136_v19, %v1624_v49  ;;  %v1628_v43 = vshrl.u32 %v14141_v55, %v8823_v27 }
  0xbe   :  { %v1630_v14 = vshll.u32 %v14141_v55, %v1624_v49  ;;  %v1631_v50 = vshrl.u32 %v14142_v46, %v8823_v27  ;;  %v1521_v63 = vsel %vm1520_vm9, 1, %v14134_v0  ;;  %v14159_v32 = vand.u32 2147483647, %v8507_v4 }
  0xbf   :  { %v1633_v58 = vshll.u32 %v14142_v46, %v1624_v49  ;;  %v1634_v61 = vshrl.u32 %v14138_v52, %v8823_v27  ;;  %vm210_vm12 = vcmp.lt.s32.totalorder %v8722_v40, 2  ;;  %v8867_v35 = vmul.f32 %v8830_v30, %v8830_v30 }
  0xc0   :  { %v1617_v53 = vand.u32 8388607, %v14159_v32  ;;  %vm632_vm15 = vcmp.lt.s32.totalorder %v8833_v38, 0  ;;  %v1638_v11 = vor.u32 %v1637_v22, %v1636_v25  ;;  %v1641_v7 = vor.u32 %v1640_v36, %v1639_v60 }
  0xc1   :  { %v1405_v28 = vsel %vm1403_vm8, %v1404_v59, %v8807_v15  ;;  %v1535_v32 = vshrl.u32 %v8757_v23, 16  ;;  %v1545_v49 = vadd.s32 %v1543_v48, %v1541_v12  ;;  %vm1645_vm1 = vcmp.lt.s32.totalorder %v8850_v51, 4 }
  0xc2   :  { %v1513_v4 = vshrl.u32 %v8762_v10, 16  ;;  %v1523_v18 = vadd.s32 %v1521_v63, %v1519_v9  ;;  %v8876_v39 = vor.u32 %v1628_v43, %v1627_v44  ;;  %v8878_v20 = vor.u32 %v1631_v50, %v1630_v14 }
  0xc3   :  { %v633_v30 = vsub.s32 0, %v8833_v38  ;;  %v1618_v25 = vor.u32 8388608, %v1617_v53  ;;  %v8881_v22 = vor.u32 %v1634_v61, %v1633_v58  ;;  %vm1642_vm3 = vcmp.lt.s32.totalorder %v8850_v51, 1 }
  0xc4   :  { %v1471_v23 = vshrl.u32 %v14136_v19, %v8624_v42  ;;  %vm1644_vm4 = vcmp.lt.s32.totalorder %v8850_v51, 3  ;;  %v1651_v10 = vsel %vm1645_vm1, %v1638_v11, 920167782  ;;  %v1655_v59 = vsel %vm1645_vm1, %v1641_v7, 1326507024 }
  0xc5   :  { %v1406_v50 = vclz %v1405_v28  ;;  %v1492_v63 = vsel %vm1490_vm7, %v8685_v16, 2102212464  ;;  %v1537_v60 = vshrl.u32 %v8774_v31, 16  ;;  %v1546_v36 = vadd.s32 %v1545_v49, %v1535_v32 }
  0xc6   :  { %v1515_v9 = vshrl.u32 %v8784_v54, 16  ;;  %v1524_v12 = vadd.s32 %v1523_v18, %v1513_v4  ;;  %vm1643_vm5 = vcmp.lt.s32.totalorder %v8850_v51, 2  ;;  %v1650_v42 = vsel %vm1642_vm3, %v8876_v39, %v8878_v20 }
  0xc7   :  { %v1652_v28 = vsel %vm1644_vm4, %v8881_v22, %v1651_v10  ;;  %v1654_v16 = vsel %vm1642_vm3, %v8878_v20, %v8881_v22  ;;  %v1656_v7 = vsel %vm1644_vm4, %v1638_v11, %v1655_v59  ;;  %v1768_v4 = vand.u32 2139095040, %v8739_v5  ;;  %v25_v10 = vld [vmem:[#allocation2] sm:$0xff] }
  0xc8   :  { %v360_v18 = vadd.f32 1.0, %v8814_v37  ;;  %v503_v54 = vmul.f32 -0.001358992, %v8867_v35  ;;  %v510_v48 = vmul.f32 -0.00019511016, %v8867_v35  ;;  %v634_v44 = vsel %vm632_vm15, %v633_v30, %v8833_v38 }
  0xc9   :  { %v1491_v43 = vsel %vm1487_vm10, %v1471_v23, %v8681_v2  ;;  %v1493_v14 = vsel %vm1489_vm11, %v8683_v6, %v1492_v63  ;;  %v1547_v53 = vadd.s32 %v1546_v36, %v1537_v60  ;;  %v8923_v58 = vshll.u32 %v1618_v25, 8 }
  0xca   :  { %v8925_v37 = vadd.s32 %v1524_v12, %v1515_v9  ;;  %v14160_v61 = vshll.u32 %v8774_v31, 16  ;;  %v8934_v30 = vsel %vm1643_vm5, %v1650_v42, %v1652_v28  ;;  %v8938_v2 = vsel %vm1643_vm5, %v1654_v16, %v1656_v7 }
  0xcb   :  { %v8944_v6 = vsel %vm210_vm12, %v8794_v8, %v8782_v13  ;;  %v635_v32 = vclz %v634_v44  ;;  %v7750_v49 = vadd.s32 4294967294, %v1406_v50  ;;  %v1769_v31 = vshrl.u32 %v1768_v4, 23 }
  0xcc   :  { %v8930_v11 = vadd.s32 %v8810_v62, %v14160_v61  ;;  %v8947_v62 = vmul.f32 %v360_v18, %v8598_v56  ;;  %vm369_vm7 = vcmp.eq.s32.totalorder %v8816_v47, 2  ;;  %v8953_v25 = vsel %vm8799_vm0, 0, %v8821_v21 }
  0xcd   :  { %14162 = vst [vmem:[#allocation25_spill] sm:$0xff] %v8953_v25  ;;  %v1494_v23 = vsel %vm1488_vm13, %v1491_v43, %v1493_v14  ;;  %v1551_v40 = vadd.s32 1, %v1547_v53  ;;  %v1659_v13 = vand.u32 65535, %v8923_v58  ;;  %v1662_v8 = vshrl.u32 %v8938_v2, 16 }
  0xce   :  { %14161 = vst [vmem:[#allocation24_spill] sm:$0xff] %v8947_v62  ;;  %v1684_v59 = vshrl.u32 %v8934_v30, 16  ;;  %v13984_v56 = vxor.u32 2147483648, %v8825_v34  ;;  %v504_v50 = vadd.f32 0.041655596, %v503_v54  ;;  %vm1550_vm10 = vc.u32 %v8925_v37, %v8930_v11 }
  0xcf   :  { %v511_v63 = vadd.f32 0.008332121, %v510_v48  ;;  %v7735_v29 = vadd.s32 4294967294, %v635_v32  ;;  %vm7751_vm11 = vcmp.lt.s32.totalorder %v7750_v49, 0  ;;  %v1548_v57 = vmul.u32 %v8717_v41, %v1494_v23  ;;  %v14164_v23 = vld [vmem:[#allocation8_spill] sm:$0xff] }
  0xd0   :  { %v7758_v21 = vadd.s32 4294967169, %v1769_v31  ;;  %v1660_v60 = vshrl.u32 %v8923_v58, 16  ;;  %v1661_v36 = vand.u32 65535, %v8938_v2  ;;  %v1683_v9 = vand.u32 65535, %v8934_v30 }
  0xd1   :  { %v8967_v12 = vmul.f32 3.1415927, %v25_v10  ;;  %vm366_vm13 = vcmp.eq.s32.totalorder %v8816_v47, 0  ;;  %v1552_v42 = vsel %vm1550_vm10, %v1551_v40, %v1547_v53  ;;  %v8970_v28 = vmul.u32 %v1662_v8, %v1659_v13 }
  0xd2   :  { %v8972_v16 = vmul.u32 %v1684_v59, %v1659_v13  ;;  %v13985_v7 = vxor.u32 2147483648, %v8947_v62  ;;  %v371_v41 = vsel %vm369_vm7, %v13984_v56, %v8947_v62  ;;  %v505_v4 = vmul.f32 %v504_v50, %v8867_v35 }
  0xd3   :  { %14163 = vst [vmem:[#allocation26_spill] sm:$0xff] %v8967_v12  ;;  %v518_v18 = vadd.s32 3, %v8953_v25  ;;  %v512_v54 = vmul.f32 %v511_v63, %v8867_v35  ;;  %vm7736_vm0 = vcmp.lt.s32.totalorder %v7735_v29, 0  ;;  %v8984_v48 = vsel %vm7751_vm11, 0, %v7750_v49 }
  0xd4   :  { %v1775_v44 = vadd.s32 1, %v7758_v21  ;;  %v8986_v43 = vadd.s32 %v1552_v42, %v1548_v57  ;;  %v8988_v14 = vmul.u32 %v1661_v36, %v1660_v60  ;;  %v8990_v53 = vmul.u32 %v1683_v9, %v1660_v60 }
  0xd5   :  { %v2753_v61 = vand.u32 2139095040, %v8967_v12  ;;  %v1663_v30 = vmul.u32 %v1661_v36, %v1659_v13  ;;  %v1667_v2 = vshll.u32 %v8970_v28, 16  ;;  %v1685_v32 = vmul.u32 %v1683_v9, %v1659_v13 }
  0xd6   :  { %v1689_v31 = vshll.u32 %v8972_v16, 16  ;;  %vm14043_vm14 = vweird.f32 %v14164_v23  ;;  %vm365_vm2 = vcmp.lt.s32.totalorder %v8816_v47, 2  ;;  %v368_v49 = vsel %vm366_vm13, %v8825_v34, %v13985_v7 }
  0xd7   :  { %v506_v10 = vadd.f32 -0.4999988, %v505_v4  ;;  %v623_v40 = vadd.s32 %v8675_v26, %v8670_v24  ;;  %v638_v50 = vsel %vm7736_vm0, 0, %v7735_v29  ;;  %v513_v63 = vadd.f32 -0.16666654, %v512_v54 }
  0xd8   :  { %v639_v13 = vsub.s32 32, %v638_v50  ;;  %v1414_v57 = vsub.s32 4294967266, %v8984_v48  ;;  %vm1776_vm6 = vcmp.gt.s32.totalorder %v1775_v44, 0  ;;  %v1554_v21 = vadd.s32 536870912, %v8986_v43 }
  0xd9   :  { %v1669_v36 = vshll.u32 %v8988_v14, 16  ;;  %v2754_v42 = vshrl.u32 %v2753_v61, 23  ;;  %vm1671_vm8 = vc.u32 %v1663_v30, %v1667_v2  ;;  %v1673_v56 = vadd.s32 %v1667_v2, %v1663_v30 }
  0xda   :  { %vm1693_vm9 = vc.u32 %v1685_v32, %v1689_v31  ;;  %v9009_v4 = vadd.s32 %v1689_v31, %v1685_v32  ;;  %v643_v24 = vsub.s32 4294967266, %v638_v50  ;;  %v1394_v26 = vadd.s32 %v8655_v33, %v8645_v1 }
  0xdb   :  { %v1410_v29 = vsub.s32 32, %v8984_v48  ;;  %v1777_v54 = vsel %vm1776_vm6, %v1775_v44, 0  ;;  %v514_v7 = vmul.f32 %v513_v63, %v8867_v35  ;;  %v640_v34 = vshll.u32 %v8833_v38, %v638_v50 }
  0xdc   :  { %v1666_v62 = vmul.u32 %v1662_v8, %v1660_v60  ;;  %v1688_v25 = vmul.u32 %v1684_v59, %v1660_v60  ;;  %v1415_v9 = vadd.s32 127, %v1414_v57  ;;  %v1672_v61 = vsel %vm1671_vm8, 1, %v14134_v0 }
  0xdd   :  { %v1694_v30 = vsel %vm1693_vm9, 1, %v14134_v0  ;;  %v7773_v2 = vadd.s32 4294967169, %v2754_v42  ;;  %v9018_v32 = vshrl.u32 %v1554_v21, 30  ;;  %vm1675_vm12 = vc.u32 %v1673_v56, %v1669_v36 }
  0xde   :  { %v14166_v1 = vshll.u32 %v8990_v53, 16  ;;  %v1779_v33 = vand.u32 31, %v1777_v54  ;;  %v641_v44 = vshrl.u32 %v623_v40, %v639_v13  ;;  %v9023_v31 = vadd.s32 127, %v643_v24 }
  0xdf   :  { %14165 = vst [vmem:[#allocation27_spill] sm:$0xff] %v9018_v32  ;;  %v1411_v38 = vshll.u32 %v8807_v15, %v8984_v48  ;;  %v1412_v8 = vshrl.u32 %v1394_v26, %v1410_v29  ;;  %v9030_v59 = vsel %vm14043_vm14, nan, %v8944_v6  ;;  %v9032_v60 = vand.u32 3, %v518_v18 }
  0xe0   :  { %vm1697_vm15 = vc.u32 %v9009_v4, %v14166_v1  ;;  %14167 = vst [vmem:[#allocation28_spill] sm:$0xff] %v9030_v59  ;;  %v1674_v56 = vadd.s32 %v1672_v61, %v1666_v62  ;;  %v1696_v50 = vadd.s32 %v1694_v30, %v1688_v25  ;;  %v1416_v63 = vshll.u32 %v1415_v9, 23 }
  0xe1   :  { %14168 = vst [vmem:[#allocation29_spill] sm:$0xff] %v9032_v60  ;;  %v1676_v57 = vsel %vm1675_vm12, 1, %v14134_v0  ;;  %v1698_v40 = vsel %vm1697_vm15, 1, %v14134_v0  ;;  %v2760_v13 = vadd.s32 1, %v7773_v2  ;;  %v9038_v21 = vsel %vm365_vm2, %v368_v49, %v371_v41 }
  0xe2   :  { %14169 = vst [vmem:[#allocation30_spill] sm:$0xff] %v9038_v21  ;;  %v9041_v15 = vmul.f32 %v506_v10, %v8867_v35  ;;  %v1556_v6 = vshll.u32 %v9018_v32, 30  ;;  %v9044_v48 = vsub.s32 32, %v1779_v33  ;;  %v9046_v18 = vadd.f32 1.0, %v514_v7 }
  0xe3   :  { %v9048_v62 = vor.u32 %v641_v44, %v640_v34  ;;  %v645_v25 = vshll.u32 %v9023_v31, 23  ;;  %v9051_v36 = vor.u32 %v1412_v8, %v1411_v38  ;;  %v1668_v9 = vshrl.u32 %v8970_v28, 16 }
  0xe4   :  { %v1678_v47 = vadd.s32 %v1676_v57, %v1674_v56  ;;  %v1690_v41 = vshrl.u32 %v8972_v16, 16  ;;  %v1700_v49 = vadd.s32 %v1698_v40, %v1696_v50  ;;  %v9055_v35 = vor.u32 4788187, %v1416_v63 }
  0xe5   :  { %v1626_v10 = vshrl.u32 %v14136_v19, %v8823_v27  ;;  %v1647_v34 = vsel %vm1645_vm1, %v8881_v22, 2102212464  ;;  %vm2761_vm7 = vcmp.gt.s32.totalorder %v2760_v13, 0  ;;  %v9063_v7 = vsub.s32 %v8986_v43, %v1556_v6 }
  0xe6   :  { %v1670_v42 = vshrl.u32 %v8988_v14, 16  ;;  %v1794_v28 = vshll.u32 %v14139_v17, %v1779_v33  ;;  %v1795_v16 = vshrl.u32 %v14140_v45, %v9044_v48  ;;  %v13992_v24 = vand.u32 2147483647, %v8739_v5 }
  0xe7   :  { %v9070_v26 = vshrl.u32 %v1777_v54, 5  ;;  %v1791_v27 = vshll.u32 %v14138_v52, %v1779_v33  ;;  %v1792_v22 = vshrl.u32 %v14139_v17, %v9044_v48  ;;  %v1679_v29 = vadd.s32 %v1678_v47, %v1668_v9 }
  0xe8   :  { %v1692_v43 = vshrl.u32 %v8990_v53, 16  ;;  %v1701_v61 = vadd.s32 %v1700_v49, %v1690_v41  ;;  %v2762_v30 = vsel %vm2761_vm7, %v2760_v13, 0  ;;  %v1785_v14 = vshll.u32 %v14141_v55, %v1779_v33 }
  0xe9   :  { %v1786_v2 = vshrl.u32 %v14142_v46, %v9044_v48  ;;  %v1788_v1 = vshll.u32 %v14142_v46, %v1779_v33  ;;  %v1789_v54 = vshrl.u32 %v14138_v52, %v9044_v48  ;;  %v1646_v44 = vsel %vm1642_vm3, %v1626_v10, %v8876_v39 }
  0xea   :  { %v1782_v31 = vshll.u32 %v14136_v19, %v1779_v33  ;;  %v1783_v38 = vshrl.u32 %v14141_v55, %v9044_v48  ;;  %v1796_v8 = vor.u32 %v1795_v16, %v1794_v28  ;;  %v1772_v56 = vand.u32 8388607, %v13992_v24 }
  0xeb   :  { %v1793_v50 = vor.u32 %v1792_v22, %v1791_v27  ;;  %vm1800_vm1 = vcmp.lt.s32.totalorder %v9070_v26, 4  ;;  %v2764_v63 = vand.u32 31, %v2762_v30  ;;  %vm1558_vm10 = vcmp.lt.s32.totalorder %v9063_v7, 0 }
  0xec   :  { %v1559_v57 = vsub.s32 0, %v9063_v7  ;;  %v1648_v39 = vsel %vm1644_vm4, %v8878_v20, %v1647_v34  ;;  %v14170_v33 = vshll.u32 %v8990_v53, 16  ;;  %v9101_v13 = vadd.s32 %v1679_v29, %v1670_v42 }
  0xed   :  { %v1702_v6 = vadd.s32 %v1701_v61, %v1692_v43  ;;  %v9103_v9 = vor.u32 %v1786_v2, %v1785_v14  ;;  %v9105_v47 = vor.u32 %v1789_v54, %v1788_v1  ;;  %v9107_v41 = vor.u32 %v1783_v38, %v1782_v31 }
  0xee   :  { %v9099_v40 = vadd.s32 %v9009_v4, %v14170_v33  ;;  %14172 = vst [vmem:[#allocation32_spill] sm:$0xff] %v9101_v13  ;;  %vm1797_vm3 = vcmp.lt.s32.totalorder %v9070_v26, 1  ;;  %vm1799_vm11 = vcmp.lt.s32.totalorder %v9070_v26, 3  ;;  %v1810_v20 = vsel %vm1800_vm1, %v1796_v8, 1326507024 }
  0xef   :  { %v1649_v53 = vsel %vm1643_vm5, %v1646_v44, %v1648_v39  ;;  %v1773_v4 = vor.u32 8388608, %v1772_v56  ;;  %v1806_v49 = vsel %vm1800_vm1, %v1793_v50, 920167782  ;;  %v9117_v10 = vsub.s32 32, %v2764_v63  ;;  %v14173_v44 = vld [vmem:[#allocation12_spill] sm:$0xff] }
  0xf0   :  { %14171 = vst [vmem:[#allocation31_spill] sm:$0xff] %v9099_v40  ;;  %v9119_v34 = vor.u32 4788187, %v645_v25  ;;  %v1418_v42 = vand.u32 2147483647, %v9055_v35  ;;  %v1420_v28 = vcvt.s32.f32 %v9051_v36  ;;  %v1560_v16 = vsel %vm1558_vm10, %v1559_v57, %v9063_v7 }
  0xf1   :  { %v1706_v27 = vadd.s32 1, %v1702_v6  ;;  %vm1798_vm4 = vcmp.lt.s32.totalorder %v9070_v26, 2  ;;  %v1809_v51 = vsel %vm1797_vm3, %v9103_v9, %v9105_v47  ;;  %v1811_v25 = vsel %vm1799_vm11, %v1793_v50, %v1810_v20 }
  0xf2   :  { %v1703_v22 = vmul.u32 %v8923_v58, %v1649_v53  ;;  %vm1705_vm5 = vc.u32 %v9101_v13, %v9099_v40  ;;  %v1805_v36 = vsel %vm1797_vm3, %v9107_v41, %v9103_v9  ;;  %v1807_v35 = vsel %vm1799_vm11, %v9105_v47, %v1806_v49 }
  0xf3   :  { %v9143_v29 = vshll.u32 %v1773_v4, 8  ;;  %v13991_v43 = vand.u32 2147483647, %v8967_v12  ;;  %v2776_v61 = vshll.u32 %v14138_v52, %v2764_v63  ;;  %v2777_v58 = vshrl.u32 %v14139_v17, %v9117_v10 }
  0xf4   :  { %v9151_v14 = vsel %vm1798_vm4, %v1809_v51, %v1811_v25  ;;  %v9153_v2 = vshrl.u32 %v2762_v30, 5  ;;  %v2779_v1 = vshll.u32 %v14139_v17, %v2764_v63  ;;  %v2780_v54 = vshrl.u32 %v14140_v45, %v9117_v10 }
  0xf5   :  { %vm1302_vm13 = vcmp.lt.s32.totalorder %v14173_v44, 0  ;;  %v1707_v31 = vsel %vm1705_vm5, %v1706_v27, %v1702_v6  ;;  %v9161_v38 = vsel %vm1798_vm4, %v1805_v36, %v1807_v35  ;;  %v2767_v8 = vshll.u32 %v14136_v19, %v2764_v63 }
  0xf6   :  { %v2770_v56 = vshll.u32 %v14141_v55, %v2764_v63  ;;  %v2768_v30 = vshrl.u32 %v14141_v55, %v9117_v10  ;;  %v2771_v50 = vshrl.u32 %v14142_v46, %v9117_v10  ;;  %v2773_v57 = vshll.u32 %v14142_v46, %v2764_v63 }
  0xf7   :  { %v2774_v39 = vshrl.u32 %v14138_v52, %v9117_v10  ;;  %v1421_v33 = vmul.f32 %v1420_v28, %v1418_v42  ;;  %v1814_v6 = vand.u32 65535, %v9143_v29  ;;  %v13993_v20 = vshrl.u32 %v9151_v14, 16 }
  0xf8   :  { %v2778_v53 = vor.u32 %v2777_v58, %v2776_v61  ;;  %v14174_v4 = vand.u32 2147483647, %v14173_v44  ;;  %v14175_v49 = vmov 0  ;;  %v1839_v27 = vshrl.u32 %v9161_v38, 16 }
  0xf9   :  { %v2757_v63 = vand.u32 8388607, %v13991_v43  ;;  %v2781_v51 = vor.u32 %v2780_v54, %v2779_v1  ;;  %vm2785_vm2 = vcmp.lt.s32.totalorder %v9153_v2, 4  ;;  %v1561_v42 = vclz %v1560_v16 }
  0xfa   :  { %vm9176_vm0 = vcmp.le.f32.partialorder %v14174_v4, 0.7853982  ;;  %v9184_v28 = vadd.s32 %v1707_v31, %v1703_v22  ;;  %v1815_v25 = vshrl.u32 %v9143_v29, 16  ;;  %v1816_v36 = vand.u32 65535, %v9151_v14 }
  0xfb   :  { %v14176_v49 = vsel %vm9176_vm0, 4294967295, %v14175_v49  ;;  %v1838_v35 = vand.u32 65535, %v9161_v38  ;;  %v9189_v61 = vor.u32 %v2768_v30, %v2767_v8  ;;  %v9191_v58 = vor.u32 %v2771_v50, %v2770_v56 }
  0xfc   :  { %14177 = vst [vmem:[#allocation12_spill] sm:$0xff] %v14176_v49  ;;  %v9193_v4 = vor.u32 %v2774_v39, %v2773_v57  ;;  %v9197_v1 = vmul.u32 %v13993_v20, %v1814_v6  ;;  %vm2782_vm6 = vcmp.lt.s32.totalorder %v9153_v2, 1  ;;  %vm2784_vm8 = vcmp.lt.s32.totalorder %v9153_v2, 3 }
  0xfd   :  { %v2791_v16 = vsel %vm2785_vm2, %v2778_v53, 920167782  ;;  %v1422_v22 = vxor.u32 2147483648, %v1421_v33  ;;  %v9203_v54 = vmul.u32 %v1839_v27, %v1814_v6  ;;  %v2758_v31 = vor.u32 8388608, %v2757_v63 }
  0xfe   :  { %v2795_v38 = vsel %vm2785_vm2, %v2781_v51, 1326507024  ;;  %v647_v8 = vand.u32 2147483647, %v9119_v34  ;;  %v649_v56 = vcvt.s32.f32 %v9048_v62  ;;  %v7753_v30 = vadd.s32 4294967294, %v1561_v42 }
  0xff   :  { %v1709_v50 = vadd.s32 536870912, %v9184_v28  ;;  %v1818_v57 = vmul.u32 %v1816_v36, %v1814_v6  ;;  %vm2783_vm9 = vcmp.lt.s32.totalorder %v9153_v2, 2  ;;  %v2790_v39 = vsel %vm2782_vm6, %v9189_v61, %v9191_v58 }
 0x100   :  { %v2792_v63 = vsel %vm2784_vm8, %v9193_v4, %v2791_v16  ;;  %v1822_v51 = vshll.u32 %v9197_v1, 16  ;;  %v9219_v34 = vmul.u32 %v1838_v35, %v1815_v25  ;;  %v2794_v62 = vsel %vm2782_vm6, %v9191_v58, %v9193_v4 }
 0x101   :  { %v2796_v42 = vsel %vm2784_vm8, %v2778_v53, %v2795_v38  ;;  %v1423_v43 = vsel %vm1302_vm13, %v1422_v22, %v1421_v33  ;;  %v1840_v24 = vmul.u32 %v1838_v35, %v1814_v6  ;;  %v1844_v20 = vshll.u32 %v9203_v54, 16  ;;  %v27_v53 = vld [vmem:[#allocation2 + $0x10] sm:$0xff]  ;;  %v14179_v38 = vld [vmem:[#allocation23_spill] sm:$0xff] }
 0x102   :  { %v9230_v59 = vshll.u32 %v2758_v31, 8  ;;  %v9233_v16 = vadd.f32 1.0, %v9041_v15  ;;  %v9236_v21 = vmul.u32 %v1816_v36, %v1815_v25  ;;  %v9240_v60 = vsel %vm2783_vm9, %v2790_v39, %v2792_v63 }
 0x103   :  { %v9244_v33 = vmul.f32 %v9046_v18, %v14179_v38  ;;  %v9246_v6 = vmul.f32 %v649_v56, %v647_v8  ;;  %v9248_v35 = vshrl.u32 %v1709_v50, 30  ;;  %v9252_v15 = vsel %vm2783_vm9, %v2794_v62, %v2796_v42  ;;  %v14186_v62 = vld [vmem:[#allocation20_spill] sm:$0xff] }
 0x104   :  { %14178 = vst [vmem:[#allocation33_spill] sm:$0xff] %v9233_v16  ;;  %v9257_v36 = vsel %vm9176_vm0, %v14173_v44, %v1423_v43  ;;  %vm7754_vm12 = vcmp.lt.s32.totalorder %v7753_v30, 0  ;;  %vm9259_vm15 = vc.u32 %v1818_v57, %v1822_v51  ;;  %vm1848_vm7 = vc.u32 %v1840_v24, %v1844_v20 }
 0x105   :  { %14180 = vst [vmem:[#allocation23_spill] sm:$0xff] %v9244_v33  ;;  %v9264_v31 = vadd.s32 %v1844_v20, %v1840_v24  ;;  %v2799_v8 = vand.u32 65535, %v9230_v59  ;;  %v2824_v56 = vshrl.u32 %v9240_v60, 16  ;;  %v1824_v50 = vshll.u32 %v9236_v21, 16 }
 0x106   :  { %14181 = vst [vmem:[#allocation34_spill] sm:$0xff] %v9248_v35  ;;  %v1828_v39 = vadd.s32 %v1822_v51, %v1818_v57  ;;  %v9269_v63 = vmul.f32 3.1415927, %v27_v53  ;;  %v2802_v43 = vshrl.u32 %v9252_v15, 16  ;;  %v9275_v38 = vmul.f32 %v9257_v36, %v9257_v36 }
 0x107   :  { %14182 = vst [vmem:[#allocation35_spill] sm:$0xff] %v9257_v36  ;;  %v1711_v24 = vshll.u32 %v9248_v35, 30  ;;  %v1843_v20 = vmul.u32 %v1839_v27, %v1815_v25  ;;  %v9278_v23 = vsel %vm7754_vm12, 0, %v7753_v30  ;;  %v14187_v18 = vshrl.u32 %v9151_v14, 16 }
 0x108   :  { %14185 = vst [vmem:[#allocation36_spill] sm:$0xff] %v9269_v63  ;;  %v1827_v57 = vsel %vm9259_vm15, 1, %v14134_v0  ;;  %v1849_v51 = vsel %vm1848_vm7, 1, %v14134_v0  ;;  %v14188_v53 = vshll.u32 %v9219_v34, 16  ;;  %v2800_v42 = vshrl.u32 %v9230_v59, 16 }
 0x109   :  { %v1821_v33 = vmul.u32 %v14187_v18, %v1815_v25  ;;  %v2823_v12 = vand.u32 65535, %v9240_v60  ;;  %v9291_v27 = vmul.u32 %v2824_v56, %v2799_v8  ;;  %vm1830_vm5 = vc.u32 %v1828_v39, %v1824_v50 }
 0x10a   :  { %vm1852_vm10 = vc.u32 %v9264_v31, %v14188_v53  ;;  %v2801_v14 = vand.u32 65535, %v9252_v15  ;;  %v9294_v25 = vmul.u32 %v2802_v43, %v2799_v8  ;;  %v2908_v30 = vand.u32 2139095040, %v9269_v63 }
 0x10b   :  { %v9298_v22 = vmul.f32 -0.00019511016, %v9275_v38  ;;  %v1549_v18 = vadd.s32 %v8930_v11, %v8925_v37  ;;  %v9303_v53 = vsub.s32 %v9184_v28, %v1711_v24  ;;  %v1851_v5 = vadd.s32 %v1849_v51, %v1843_v20 }
 0x10c   :  { %v1565_v60 = vsub.s32 32, %v9278_v23  ;;  %v1569_v50 = vsub.s32 4294967266, %v9278_v23  ;;  %v1829_v39 = vadd.s32 %v1827_v57, %v1821_v33  ;;  %v1853_v15 = vsel %vm1852_vm10, 1, %v14134_v0 }
 0x10d   :  { %v1831_v35 = vsel %vm1830_vm5, 1, %v14134_v0  ;;  %v2825_v36 = vmul.u32 %v2823_v12, %v2799_v8  ;;  %v9309_v3 = vmul.u32 %v2823_v12, %v2800_v42  ;;  %v2829_v32 = vshll.u32 %v9291_v27, 16 }
 0x10e   :  { %v2803_v40 = vmul.u32 %v2801_v14, %v2799_v8  ;;  %v9312_v37 = vmul.u32 %v2801_v14, %v2800_v42  ;;  %v2807_v11 = vshll.u32 %v9294_v25, 16  ;;  %v2909_v28 = vshrl.u32 %v2908_v30, 23 }
 0x10f   :  { %vm1713_vm12 = vcmp.lt.s32.totalorder %v9303_v53, 0  ;;  %v1781_v33 = vshrl.u32 %v14136_v19, %v9044_v48  ;;  %v1845_v24 = vshrl.u32 %v9203_v54, 16  ;;  %v1855_v20 = vadd.s32 %v1853_v15, %v1851_v5 }
 0x110   :  { %v1714_v57 = vsub.s32 0, %v9303_v53  ;;  %v1823_v12 = vshrl.u32 %v9197_v1, 16  ;;  %v1833_v51 = vadd.s32 %v1831_v35, %v1829_v39  ;;  %v7776_v13 = vadd.s32 4294967169, %v2909_v28 }
 0x111   :  { %v1802_v8 = vsel %vm1800_vm1, %v9105_v47, 2102212464  ;;  %vm2833_vm15 = vc.u32 %v2825_v36, %v2829_v32  ;;  %v9325_v30 = vadd.s32 %v2829_v32, %v2825_v36  ;;  %v2809_v48 = vshll.u32 %v9312_v37, 16 }
 0x112   :  { %vm2811_vm7 = vc.u32 %v2803_v40, %v2807_v11  ;;  %v2813_v54 = vadd.s32 %v2807_v11, %v2803_v40  ;;  %v2915_v5 = vadd.s32 1, %v7776_v13  ;;  %v1825_v15 = vshrl.u32 %v9236_v21, 16 }
 0x113   :  { %v1847_v1 = vshrl.u32 %v9219_v34, 16  ;;  %v1856_v35 = vadd.s32 %v1855_v20, %v1845_v24  ;;  %v2828_v39 = vmul.u32 %v2824_v56, %v2800_v42  ;;  %v1834_v28 = vadd.s32 %v1833_v51, %v1823_v12 }
 0x114   :  { %v2806_v49 = vmul.u32 %v2802_v43, %v2800_v42  ;;  %v2834_v47 = vsel %vm2833_vm15, 1, %v14134_v0  ;;  %vm2916_vm1 = vcmp.gt.s32.totalorder %v2915_v5, 0  ;;  %v1570_v14 = vadd.s32 127, %v1569_v50 }
 0x115   :  { %v2812_v32 = vsel %vm2811_vm7, 1, %v14134_v0  ;;  %v14189_v36 = vshll.u32 %v9309_v3, 16  ;;  %v2917_v40 = vsel %vm2916_vm1, %v2915_v5, 0  ;;  %v1566_v21 = vshll.u32 %v9063_v7, %v9278_v23 }
 0x116   :  { %v1715_v13 = vsel %vm1713_vm12, %v1714_v57, %v9303_v53  ;;  %v1801_v56 = vsel %vm1797_vm3, %v1781_v33, %v9107_v41  ;;  %vm2815_vm5 = vc.u32 %v2813_v54, %v2809_v48  ;;  %v1803_v43 = vsel %vm1799_vm11, %v9103_v9, %v1802_v8 }
 0x117   :  { %vm2837_vm10 = vc.u32 %v9325_v30, %v14189_v36  ;;  %v1857_v42 = vadd.s32 %v1856_v35, %v1847_v1  ;;  %v2836_v50 = vadd.s32 %v2834_v47, %v2828_v39  ;;  %v9346_v11 = vand.u32 31, %v2917_v40 }
 0x118   :  { %v9348_v24 = vadd.s32 %v1834_v28, %v1825_v15  ;;  %v14190_v23 = vshll.u32 %v9219_v34, 16  ;;  %v2814_v20 = vadd.s32 %v2812_v32, %v2806_v49  ;;  %v2838_v57 = vsel %vm2837_vm10, 1, %v14134_v0  ;;  %v14192_v32 = vld [vmem:[#allocation11_spill] sm:$0xff] }
 0x119   :  { %v1567_v41 = vshrl.u32 %v1549_v18, %v1565_v60  ;;  %v1571_v33 = vshll.u32 %v1570_v14, 23  ;;  %v1716_v12 = vclz %v1715_v13  ;;  %v2816_v51 = vsel %vm2815_vm5, 1, %v14134_v0 }
 0x11a   :  { %v9353_v7 = vadd.s32 %v9264_v31, %v14190_v23  ;;  %v651_v8 = vxor.u32 2147483648, %v9246_v6  ;;  %v14191_v48 = vsub.s32 4, %v14186_v62  ;;  %v9367_v49 = vsub.s32 32, %v9346_v11 }
 0x11b   :  { %v1804_v31 = vsel %vm1798_vm4, %v1801_v56, %v1803_v43  ;;  %v1861_v18 = vadd.s32 1, %v1857_v42  ;;  %v2830_v60 = vshrl.u32 %v9291_v27, 16  ;;  %v2840_v14 = vadd.s32 %v2838_v57, %v2836_v50 }
 0x11c   :  { %v9364_v34 = vsel %vm1302_vm13, %v14191_v48, %v14186_v62  ;;  %v1429_v54 = vmul.f32 -0.001358992, %v9275_v38  ;;  %vm1860_vm3 = vc.u32 %v9348_v24, %v9353_v7  ;;  %v2808_v5 = vshrl.u32 %v9294_v25, 16 }
 0x11d   :  { %v2818_v15 = vadd.s32 %v2816_v51, %v2814_v20  ;;  %v1437_v62 = vadd.f32 0.008332121, %v9298_v22  ;;  %v1568_v1 = vor.u32 %v1567_v41, %v1566_v21  ;;  %v1572_v35 = vor.u32 4788187, %v1571_v33 }
 0x11e   :  { %v7756_v39 = vadd.s32 4294967294, %v1716_v12  ;;  %v1858_v26 = vmul.u32 %v9143_v29, %v1804_v31  ;;  %v14011_v28 = vand.u32 2147483647, %v9269_v63  ;;  %v2934_v27 = vshll.u32 %v14139_v17, %v9346_v11 }
 0x11f   :  { %v2935_v47 = vshrl.u32 %v14140_v45, %v9367_v49  ;;  %vm531_vm11 = vcmp.lt.s32.totalorder %v14192_v32, 0  ;;  %v1862_v36 = vsel %vm1860_vm3, %v1861_v18, %v1857_v42  ;;  %v2832_v25 = vshrl.u32 %v9309_v3, 16 }
 0x120   :  { %v2841_v13 = vadd.s32 %v2840_v14, %v2830_v60  ;;  %v9385_v22 = vshrl.u32 %v2917_v40, 5  ;;  %v2766_v21 = vshrl.u32 %v14136_v19, %v9117_v10  ;;  %v2787_v29 = vsel %vm2785_vm2, %v9193_v4, 2102212464 }
 0x121   :  { %v2810_v56 = vshrl.u32 %v9312_v37, 16  ;;  %v2819_v43 = vadd.s32 %v2818_v15, %v2808_v5  ;;  %v2925_v50 = vshll.u32 %v14141_v55, %v9346_v11  ;;  %v2926_v42 = vshrl.u32 %v14142_v46, %v9367_v49 }
 0x122   :  { %v2928_v40 = vshll.u32 %v14142_v46, %v9346_v11  ;;  %v2929_v23 = vshrl.u32 %v14138_v52, %v9367_v49  ;;  %v14193_v10 = vand.u32 2147483647, %v14192_v32  ;;  %v14194_v20 = vmov 0 }
 0x123   :  { %v1575_v4 = vcvt.s32.f32 %v1568_v1  ;;  %v9407_v37 = vadd.s32 %v1862_v36, %v1858_v26  ;;  %v2912_v57 = vand.u32 8388607, %v14011_v28  ;;  %v2936_v41 = vor.u32 %v2935_v47, %v2934_v27 }
 0x124   :  { %vm9403_vm4 = vcmp.le.f32.partialorder %v14193_v10, 0.7853982  ;;  %v2842_v33 = vadd.s32 %v2841_v13, %v2832_v25  ;;  %v2931_v12 = vshll.u32 %v14138_v52, %v9346_v11  ;;  %v2932_v51 = vshrl.u32 %v14139_v17, %v9367_v49 }
 0x125   :  { %v14195_v20 = vsel %vm9403_vm4, 4294967295, %v14194_v20  ;;  %vm2940_vm13 = vcmp.lt.s32.totalorder %v9385_v22, 4  ;;  %v2786_v48 = vsel %vm2782_vm6, %v2766_v21, %v9189_v61  ;;  %v2788_v31 = vsel %vm2784_vm8, %v9191_v58, %v2787_v29 }
 0x126   :  { %14196 = vst [vmem:[#allocation20_spill] sm:$0xff] %v14195_v20  ;;  %v9422_v18 = vadd.s32 %v2819_v43, %v2810_v56  ;;  %v14197_v60 = vshll.u32 %v9309_v3, 16  ;;  %v1573_v5 = vand.u32 2147483647, %v1572_v35  ;;  %vm7757_vm2 = vcmp.lt.s32.totalorder %v7756_v39, 0 }
 0x127   :  { %v9429_v15 = vor.u32 %v2926_v42, %v2925_v50  ;;  %v9431_v1 = vor.u32 %v2929_v23, %v2928_v40  ;;  %v1430_v26 = vadd.f32 0.041655596, %v1429_v54  ;;  %vm2937_vm6 = vcmp.lt.s32.totalorder %v9385_v22, 1  ;;  %v14200_v23 = vld [vmem:[#allocation14_spill] sm:$0xff] }
 0x128   :  { %v9427_v14 = vadd.s32 %v9325_v30, %v14197_v60  ;;  %vm2939_vm12 = vcmp.lt.s32.totalorder %v9385_v22, 3  ;;  %v2950_v61 = vsel %vm2940_vm13, %v2936_v41, 1326507024  ;;  %v2789_v3 = vsel %vm2783_vm9, %v2786_v48, %v2788_v31 }
 0x129   :  { %v2846_v58 = vadd.s32 1, %v2842_v33  ;;  %v2913_v30 = vor.u32 8388608, %v2912_v57  ;;  %v2933_v27 = vor.u32 %v2932_v51, %v2931_v12  ;;  %v1438_v35 = vmul.f32 %v1437_v62, %v9275_v38  ;;  %v14202_v57 = vld [vmem:[#allocation31_spill] sm:$0xff] }
 0x12a   :  { %v1719_v47 = vsel %vm7757_vm2, 0, %v7756_v39  ;;  %v1864_v36 = vadd.s32 536870912, %v9407_v37  ;;  %vm2845_vm8 = vc.u32 %v9422_v18, %v9427_v14  ;;  %v1576_v54 = vmul.f32 %v1575_v4, %v1573_v5  ;;  %v14201_v4 = vld [vmem:[#allocation32_spill] sm:$0xff] }
 0x12b   :  { %vm2938_vm15 = vcmp.lt.s32.totalorder %v9385_v22, 2  ;;  %v2949_v2 = vsel %vm2937_vm6, %v9429_v15, %v9431_v1  ;;  %v2951_v25 = vsel %vm2939_vm12, %v2933_v27, %v2950_v61  ;;  %v652_v62 = vsel %vm531_vm11, %v651_v8, %v9246_v6 }
 0x12c   :  { %v2843_v39 = vmul.u32 %v9230_v59, %v2789_v3  ;;  %v2922_v13 = vshll.u32 %v14136_v19, %v9346_v11  ;;  %v2923_v21 = vshrl.u32 %v14141_v55, %v9367_v49  ;;  %v9463_v56 = vsel %vm9176_vm0, 0, %v9364_v34 }
 0x12d   :  { %v1724_v43 = vsub.s32 4294967266, %v1719_v47  ;;  %v2847_v50 = vsel %vm2845_vm8, %v2846_v58, %v2842_v33  ;;  %v9465_v42 = vshll.u32 %v2913_v30, 8  ;;  %v1431_v40 = vmul.f32 %v1430_v26, %v9275_v38 }
 0x12e   :  { %v1444_v6 = vadd.s32 3, %v9463_v56  ;;  %v9469_v59 = vshrl.u32 %v1864_v36, 30  ;;  %v9473_v11 = vsel %vm2938_vm15, %v2949_v2, %v2951_v25  ;;  %v9478_v8 = vsel %vm9403_vm4, %v14192_v32, %v652_v62  ;;  %v14206_v36 = vld [vmem:[#allocation27_spill] sm:$0xff] }
 0x12f   :  { %14199 = vst [vmem:[#allocation12_spill] sm:$0xff] %v9478_v8  ;;  %v1439_v34 = vadd.f32 -0.16666654, %v1438_v35  ;;  %vm1457_vm0 = vcmp.lt.s32.totalorder %v14200_v23, 0  ;;  %v1577_v10 = vxor.u32 2147483648, %v1576_v54  ;;  %v1704_v41 = vadd.s32 %v14202_v57, %v14201_v4 }
 0x130   :  { %v1720_v33 = vsub.s32 32, %v1719_v47  ;;  %v9483_v12 = vadd.s32 %v2847_v50, %v2843_v39  ;;  %v9485_v51 = vor.u32 %v2923_v21, %v2922_v13  ;;  %v1725_v48 = vadd.s32 127, %v1724_v43 }
 0x131   :  { %v2946_v31 = vsel %vm2940_vm13, %v2933_v27, 920167782  ;;  %v2954_v60 = vand.u32 65535, %v9465_v42  ;;  %v2957_v5 = vshrl.u32 %v9473_v11, 16  ;;  %v1432_v26 = vadd.f32 -0.4999988, %v1431_v40 }
 0x132   :  { %v9491_v61 = vand.u32 3, %v1444_v6  ;;  %v14203_v3 = vand.u32 2147483647, %v14200_v23  ;;  %v1866_v30 = vshll.u32 %v9469_v59, 30  ;;  %v1440_v35 = vmul.f32 %v1439_v34, %v9275_v38  ;;  %v14210_v6 = vld [vmem:[#allocation16_spill] sm:$0xff] }
 0x133   :  { %v1578_v27 = vsel %vm1457_vm0, %v1577_v10, %v1576_v54  ;;  %v1579_v2 = vsub.s32 4, %v14206_v36  ;;  %v1721_v25 = vshll.u32 %v9303_v53, %v1719_v47  ;;  %v1722_v62 = vshrl.u32 %v1704_v41, %v1720_v33  ;;  %v14207_v53 = vld [vmem:[#allocation22_spill] sm:$0xff]  ;;  %v14212_v10 = vld [vmem:[#allocation21_spill] sm:$0xff] }
 0x134   :  { %vm9495_vm9 = vcmp.le.f32.partialorder %v14203_v3, 0.7853982  ;;  %v2849_v39 = vadd.s32 536870912, %v9483_v12  ;;  %v2945_v13 = vsel %vm2937_vm6, %v9485_v51, %v9429_v15  ;;  %v2947_v21 = vsel %vm2939_vm12, %v9431_v1, %v2946_v31  ;;  %v29_v31 = vld [vmem:[#allocation2 + $0x20] sm:$0xff] }
 0x135   :  { %v1726_v29 = vshll.u32 %v1725_v48, 23  ;;  %v2955_v43 = vshrl.u32 %v9465_v42, 16  ;;  %v2956_v54 = vand.u32 65535, %v9473_v11  ;;  %v9515_v50 = vmul.u32 %v2957_v5, %v2954_v60 }
 0x136   :  { %v14208_v47 = vsub.s32 4, %v14207_v53  ;;  %v9525_v34 = vand.u32 3, %v14210_v6  ;;  %v9528_v4 = vand.u32 3, %v14212_v10  ;;  %v9531_v57 = vsub.s32 %v9407_v37, %v1866_v30 }
 0x137   :  { %v9535_v11 = vmul.f32 %v9478_v8, %v9478_v8  ;;  %v1433_v41 = vmul.f32 %v1432_v26, %v9275_v38  ;;  %v1441_v33 = vadd.f32 1.0, %v1440_v35  ;;  %v2948_v48 = vsel %vm2938_vm15, %v2945_v13, %v2947_v21 }
 0x138   :  { %v9522_v40 = vsel %vm531_vm11, %v14208_v47, %v14207_v53  ;;  %14211 = vst [vmem:[#allocation31_spill] sm:$0xff] %v9525_v34  ;;  %vm1447_vm7 = vcmp.eq.s32.totalorder %v9491_v61, 0  ;;  %v1580_v3 = vsel %vm1457_vm0, %v1579_v2, %v14206_v36  ;;  %v9547_v37 = vsel %vm9495_vm9, %v14200_v23, %v1578_v27 }
 0x139   :  { %14209 = vst [vmem:[#allocation32_spill] sm:$0xff] %v9522_v40  ;;  %v1723_v30 = vor.u32 %v1722_v62, %v1721_v25  ;;  %v9549_v53 = vshrl.u32 %v2849_v39, 30  ;;  %v1727_v38 = vor.u32 4788187, %v1726_v29  ;;  %v2958_v26 = vmul.u32 %v2956_v54, %v2954_v60  ;;  %v14216_v62 = vld [vmem:[#allocation35_spill] sm:$0xff] }
 0x13a   :  { %14213 = vst [vmem:[#allocation27_spill] sm:$0xff] %v9528_v4  ;;  %v9551_v35 = vmul.u32 %v2956_v54, %v2955_v43  ;;  %v2962_v13 = vshll.u32 %v9515_v50, 16  ;;  %vm1450_vm1 = vcmp.eq.s32.totalorder %v9491_v61, 2  ;;  %v1869_v21 = vsub.s32 0, %v9531_v57 }
 0x13b   :  { %14214 = vst [vmem:[#allocation22_spill] sm:$0xff] %v9535_v11  ;;  %v2978_v47 = vand.u32 65535, %v2948_v48  ;;  %v2979_v36 = vshrl.u32 %v2948_v48, 16  ;;  %v9556_v2 = vadd.f32 1.0, %v1433_v41  ;;  %vm1446_vm10 = vcmp.lt.s32.totalorder %v9491_v61, 2  ;;  %v14217_v48 = vld [vmem:[#allocation17_spill] sm:$0xff] }
 0x13c   :  { %v9561_v27 = vsel %vm9495_vm9, 0, %v1580_v3  ;;  %vm1868_vm5 = vcmp.lt.s32.totalorder %v9531_v57, 0  ;;  %v9564_v25 = vmul.f32 3.1415927, %v29_v31  ;;  %v9567_v39 = vmul.f32 %v1441_v33, %v14216_v62 }
 0x13d   :  { %v9571_v29 = vmul.f32 %v9547_v37, %v9547_v37  ;;  %v1730_v54 = vcvt.s32.f32 %v1723_v30  ;;  %v2851_v6 = vshll.u32 %v9549_v53, 30  ;;  %v1728_v10 = vand.u32 2147483647, %v1727_v38 }
 0x13e   :  { %14215 = vst [vmem:[#allocation16_spill] sm:$0xff] %v9564_v25  ;;  %v2964_v41 = vshll.u32 %v9551_v35, 16  ;;  %vm2966_vm3 = vc.u32 %v2958_v26, %v2962_v13  ;;  %v2968_v58 = vadd.s32 %v2962_v13, %v2958_v26  ;;  %vm1612_vm11 = vcmp.lt.s32.totalorder %v14217_v48, 0 }
 0x13f   :  { %v1870_v31 = vsel %vm1868_vm5, %v1869_v21, %v9531_v57  ;;  %v2980_v3 = vmul.u32 %v2978_v47, %v2954_v60  ;;  %v2981_v9 = vmul.u32 %v2979_v36, %v2954_v60  ;;  %v9577_v33 = vmul.u32 %v2978_v47, %v2955_v43 }
 0x140   :  { %v14015_v62 = vxor.u32 2147483648, %v9556_v2  ;;  %v1584_v28 = vmul.f32 -0.001358992, %v9571_v29  ;;  %v2961_v30 = vmul.u32 %v2957_v5, %v2955_v43  ;;  %v3063_v32 = vand.u32 2139095040, %v9564_v25 }
 0x141   :  { %vm1443_vm2 = vweird.f32 %v14173_v44  ;;  %v9585_v26 = vsub.s32 %v9483_v12, %v2851_v6  ;;  %v2967_v13 = vsel %vm2966_vm3, 1, %v14134_v0  ;;  %v2984_v21 = vshll.u32 %v2981_v9, 16 }
 0x142   :  { %v1591_v60 = vmul.f32 -0.00019511016, %v9571_v29  ;;  %v1731_v47 = vmul.f32 %v1730_v54, %v1728_v10  ;;  %v1871_v8 = vclz %v1870_v31  ;;  %vm2970_vm8 = vc.u32 %v2968_v58, %v2964_v41 }
 0x143   :  { %v1452_v5 = vsel %vm1450_vm1, %v14015_v62, %v9567_v39  ;;  %v14218_v4 = vand.u32 2147483647, %v14217_v48  ;;  %v2983_v12 = vmul.u32 %v2979_v36, %v2955_v43  ;;  %v2986_v6 = vshll.u32 %v9577_v33, 16 }
 0x144   :  { %vm2988_vm9 = vc.u32 %v2980_v3, %v2984_v21  ;;  %v14221_v54 = vxor.u32 2147483648, %v9567_v39  ;;  %v1585_v41 = vadd.f32 0.041655596, %v1584_v28  ;;  %v2969_v58 = vadd.s32 %v2967_v13, %v2961_v30 }
 0x145   :  { %vm9596_vm0 = vcmp.le.f32.partialorder %v14218_v4, 0.7853982  ;;  %v3064_v31 = vshrl.u32 %v3063_v32, 23  ;;  %v2854_v62 = vsub.s32 0, %v9585_v26  ;;  %v2971_v4 = vsel %vm2970_vm8, 1, %v14134_v0 }
 0x146   :  { %v1449_v10 = vsel %vm1447_vm7, %v9556_v2, %v14221_v54  ;;  %v2989_v34 = vsel %vm2988_vm9, 1, %v14134_v0  ;;  %v2990_v20 = vadd.s32 %v2984_v21, %v2980_v3  ;;  %v1592_v43 = vadd.f32 0.008332121, %v1591_v60  ;;  %v31_v60 = vld [vmem:[#allocation2 + $0x30] sm:$0xff] }
 0x147   :  { %v1732_v36 = vxor.u32 2147483648, %v1731_v47  ;;  %v7759_v40 = vadd.s32 4294967294, %v1871_v8  ;;  %vm2853_vm1 = vcmp.lt.s32.totalorder %v9585_v26, 0  ;;  %v1453_v16 = vsel %vm1446_vm10, %v1449_v10, %v1452_v5 }
 0x148   :  { %v2985_v11 = vshrl.u32 %v2981_v9, 16  ;;  %v2991_v54 = vadd.s32 %v2989_v34, %v2983_v12  ;;  %vm2992_vm7 = vc.u32 %v2990_v20, %v2986_v6  ;;  %v2963_v28 = vshrl.u32 %v9515_v50, 16 }
 0x149   :  { %v2973_v32 = vadd.s32 %v2971_v4, %v2969_v58  ;;  %v2993_v30 = vsel %vm2992_vm7, 1, %v14134_v0  ;;  %v7779_v13 = vadd.s32 4294967169, %v3064_v31  ;;  %v1586_v63 = vmul.f32 %v1585_v41, %v9571_v29 }
 0x14a   :  { %v1599_v3 = vadd.s32 3, %v9561_v27  ;;  %v2855_v8 = vsel %vm2853_vm1, %v2854_v62, %v9585_v26  ;;  %v2995_v21 = vadd.s32 %v2993_v30, %v2991_v54  ;;  %v9619_v61 = vsel %vm1443_vm2, nan, %v1453_v16 }
 0x14b   :  { %14222 = vst [vmem:[#allocation21_spill] sm:$0xff] %v9619_v61  ;;  %v1593_v9 = vmul.f32 %v1592_v43, %v9571_v29  ;;  %v1733_v50 = vsel %vm1612_vm11, %v1732_v36, %v1731_v47  ;;  %vm7760_vm10 = vcmp.lt.s32.totalorder %v7759_v40, 0  ;;  %v2921_v34 = vshrl.u32 %v14136_v19, %v9367_v49  ;;  %v33_v36 = vld [vmem:[#allocation2 + $0x8] sm:$0xff] }
 0x14c   :  { %v2942_v5 = vsel %vm2940_vm13, %v9431_v1, 2102212464  ;;  %v2987_v62 = vshrl.u32 %v9577_v33, 16  ;;  %v2996_v12 = vadd.s32 %v2995_v21, %v2985_v11  ;;  %v2856_v10 = vclz %v2855_v8 }
 0x14d   :  { %v2965_v16 = vshrl.u32 %v9551_v35, 16  ;;  %v2974_v41 = vadd.s32 %v2973_v32, %v2963_v28  ;;  %v3070_v58 = vadd.s32 1, %v7779_v13  ;;  %v1587_v31 = vadd.f32 -0.4999988, %v1586_v63 }
 0x14e   :  { %v9631_v4 = vand.u32 3, %v1599_v3  ;;  %v1874_v47 = vsel %vm7760_vm10, 0, %v7759_v40  ;;  %v9633_v43 = vmul.f32 3.1415927, %v31_v60  ;;  %v1594_v49 = vadd.f32 -0.16666654, %v1593_v9 }
 0x14f   :  { %v9638_v1 = vsel %vm9596_vm0, %v14217_v48, %v1733_v50  ;;  %v14023_v11 = vand.u32 2147483647, %v9564_v25  ;;  %vm3071_vm13 = vcmp.gt.s32.totalorder %v3070_v58, 0  ;;  %v2941_v35 = vsel %vm2937_vm6, %v2921_v34, %v9485_v51  ;;  %v14224_v3 = vld [vmem:[#allocation34_spill] sm:$0xff] }
 0x150   :  { %14223 = vst [vmem:[#allocation35_spill] sm:$0xff] %v9633_v43  ;;  %v2943_v63 = vsel %vm2939_vm12, %v9429_v15, %v2942_v5  ;;  %v2997_v40 = vadd.s32 %v2996_v12, %v2987_v62  ;;  %v3072_v33 = vsel %vm3071_vm13, %v3070_v58, 0  ;;  %v1879_v54 = vsub.s32 4294967266, %v1874_v47 }
 0x151   :  { %v7774_v28 = vadd.s32 4294967294, %v2856_v10  ;;  %v9647_v32 = vadd.s32 %v2974_v41, %v2965_v16  ;;  %v9649_v30 = vadd.s32 %v2990_v20, %v2986_v6  ;;  %v1588_v13 = vmul.f32 %v1587_v31, %v9571_v29 }
 0x152   :  { %v1734_v8 = vsub.s32 4, %v14224_v3  ;;  %v9653_v21 = vmul.f32 -1.5707964, %v33_v36  ;;  %v3074_v60 = vand.u32 31, %v3072_v33  ;;  %v1595_v51 = vmul.f32 %v1594_v49, %v9571_v29 }
 0x153   :  { %v9658_v15 = vmul.f32 %v9638_v1, %v9638_v1  ;;  %v1859_v9 = vadd.s32 %v9353_v7, %v9348_v24  ;;  %v2944_v20 = vsel %vm2938_vm15, %v2941_v35, %v2943_v63  ;;  %v1875_v6 = vsub.s32 32, %v1874_v47 }
 0x154   :  { %14225 = vst [vmem:[#allocation34_spill] sm:$0xff] %v9653_v21  ;;  %v3001_v50 = vadd.s32 1, %v2997_v40  ;;  %v3067_v34 = vand.u32 8388607, %v14023_v11  ;;  %v9666_v5 = vsub.s32 32, %v3074_v60  ;;  %v1880_v62 = vadd.s32 127, %v1879_v54 }
 0x155   :  { %vm7775_vm6 = vcmp.lt.s32.totalorder %v7774_v28, 0  ;;  %vm3000_vm12 = vc.u32 %v9647_v32, %v9649_v30  ;;  %v3080_v29 = vshll.u32 %v14141_v55, %v3074_v60  ;;  %v2998_v12 = vmul.u32 %v9465_v42, %v2944_v20 }
 0x156   :  { %v9672_v24 = vshrl.u32 %v3072_v33, 5  ;;  %v3081_v7 = vshrl.u32 %v14142_v46, %v9666_v5  ;;  %v3083_v22 = vshll.u32 %v14142_v46, %v3074_v60  ;;  %v3077_v10 = vshll.u32 %v14136_v19, %v3074_v60  ;;  %v35_v46 = vld [vmem:[#allocation2 + $0x18] sm:$0xff] }
 0x157   :  { %v3078_v16 = vshrl.u32 %v14141_v55, %v9666_v5  ;;  %v3084_v41 = vshrl.u32 %v14138_v52, %v9666_v5  ;;  %v3086_v58 = vshll.u32 %v14138_v52, %v3074_v60  ;;  %v1876_v31 = vshll.u32 %v9531_v57, %v1874_v47  ;;  %v37_v55 = vld [vmem:[#allocation2 + $0x28] sm:$0xff] }
 0x158   :  { %v3002_v42 = vsel %vm3000_vm12, %v3001_v50, %v2997_v40  ;;  %v3068_v36 = vor.u32 8388608, %v3067_v34  ;;  %v3087_v49 = vshrl.u32 %v14139_v17, %v9666_v5  ;;  %v1877_v35 = vshrl.u32 %v1859_v9, %v1875_v6 }
 0x159   :  { %v1881_v63 = vshll.u32 %v1880_v62, 23  ;;  %v2859_v33 = vsel %vm7775_vm6, 0, %v7774_v28  ;;  %v9687_v54 = vor.u32 %v3081_v7, %v3080_v29  ;;  %v9689_v20 = vor.u32 %v3084_v41, %v3083_v22 }
 0x15a   :  { %v3088_v11 = vor.u32 %v3087_v49, %v3086_v58  ;;  %v3089_v61 = vshll.u32 %v14139_v17, %v3074_v60  ;;  %v3090_v25 = vshrl.u32 %v14140_v45, %v9666_v5  ;;  %v1596_v57 = vadd.f32 1.0, %v1595_v51 }
 0x15b   :  { %v9694_v47 = vadd.s32 %v3002_v42, %v2998_v12  ;;  %v9696_v40 = vor.u32 %v3078_v16, %v3077_v10  ;;  %vm3092_vm15 = vcmp.lt.s32.totalorder %v9672_v24, 1  ;;  %vm3094_vm5 = vcmp.lt.s32.totalorder %v9672_v24, 3 }
 0x15c   :  { %v3091_v9 = vor.u32 %v3090_v25, %v3089_v61  ;;  %vm3095_vm3 = vcmp.lt.s32.totalorder %v9672_v24, 4  ;;  %v9701_v28 = vshll.u32 %v3068_v36, 8  ;;  %v1746_v6 = vmul.f32 -0.00019511016, %v9658_v15 }
 0x15d   :  { %v1878_v60 = vor.u32 %v1877_v35, %v1876_v31  ;;  %v2864_v50 = vsub.s32 4294967266, %v2859_v33  ;;  %vm3093_vm8 = vcmp.lt.s32.totalorder %v9672_v24, 2  ;;  %v1882_v51 = vor.u32 4788187, %v1881_v63 }
 0x15e   :  { %v3101_v34 = vsel %vm3095_vm3, %v3088_v11, 920167782  ;;  %v3104_v25 = vsel %vm3092_vm15, %v9687_v54, %v9689_v20  ;;  %v3105_v61 = vsel %vm3095_vm3, %v3091_v9, 1326507024  ;;  %vm1605_vm9 = vcmp.eq.s32.totalorder %v9631_v4, 2 }
 0x15f   :  { %v3004_v62 = vadd.s32 536870912, %v9694_v47  ;;  %v3100_v29 = vsel %vm3092_vm15, %v9696_v40, %v9687_v54  ;;  %v3102_v12 = vsel %vm3094_vm5, %v9689_v20, %v3101_v34  ;;  %v3106_v7 = vsel %vm3094_vm5, %v3088_v11, %v3105_v61 }
 0x160   :  { %v2844_v22 = vadd.s32 %v9427_v14, %v9422_v18  ;;  %v2860_v10 = vsub.s32 32, %v2859_v33  ;;  %v3107_v16 = vsel %vm3093_vm8, %v3104_v25, %v3106_v7  ;;  %v3109_v41 = vand.u32 65535, %v9701_v28 }
 0x161   :  { %v9729_v58 = vadd.f32 1.0, %v1588_v13  ;;  %v1735_v31 = vsel %vm1612_vm11, %v1734_v8, %v14224_v3  ;;  %v2865_v42 = vadd.s32 127, %v2864_v50  ;;  %v3112_v36 = vshrl.u32 %v3107_v16, 16 }
 0x162   :  { %v1739_v49 = vmul.f32 -0.001358992, %v9658_v15  ;;  %v1883_v11 = vand.u32 2147483647, %v1882_v51  ;;  %v1885_v35 = vcvt.s32.f32 %v1878_v60  ;;  %v3103_v18 = vsel %vm3093_vm8, %v3100_v29, %v3102_v12  ;;  %v14227_v29 = vld [vmem:[#allocation18_spill] sm:$0xff] }
 0x163   :  { %v9738_v14 = vmul.f32 %v1596_v57, %v9547_v37  ;;  %vm1602_vm1 = vcmp.eq.s32.totalorder %v9631_v4, 0  ;;  %v1747_v13 = vadd.f32 0.008332121, %v1746_v6  ;;  %v2861_v63 = vshll.u32 %v9585_v26, %v2859_v33 }
 0x164   :  { %v9742_v9 = vshrl.u32 %v3004_v62, 30  ;;  %v2862_v3 = vshrl.u32 %v2844_v22, %v2860_v10  ;;  %v3110_v8 = vshrl.u32 %v9701_v28, 16  ;;  %v3111_v50 = vand.u32 65535, %v3107_v16 }
 0x165   :  { %v9745_v34 = vmul.u32 %v3112_v36, %v3109_v41  ;;  %v9749_v60 = vsel %vm9596_vm0, 0, %v1735_v31  ;;  %v2866_v51 = vshll.u32 %v2865_v42, 23  ;;  %v3133_v37 = vand.u32 65535, %v3103_v18 }
 0x166   :  { %14226 = vst [vmem:[#allocation37_spill] sm:$0xff] %v9742_v9  ;;  %v3134_v57 = vshrl.u32 %v3103_v18, 16  ;;  %v14026_v25 = vxor.u32 2147483648, %v9729_v58  ;;  %v1740_v6 = vadd.f32 0.041655596, %v1739_v49  ;;  %v1754_v26 = vadd.s32 3, %v9749_v60 }
 0x167   :  { %v1886_v33 = vmul.f32 %v1885_v35, %v1883_v11  ;;  %v1748_v62 = vmul.f32 %v1747_v13, %v9658_v15  ;;  %vm1767_vm11 = vcmp.lt.s32.totalorder %v14227_v29, 0  ;;  %v3006_v12 = vshll.u32 %v9742_v9, 30 }
 0x168   :  { %vm1601_vm0 = vcmp.lt.s32.totalorder %v9631_v4, 2  ;;  %v2863_v38 = vor.u32 %v2862_v3, %v2861_v63  ;;  %v3113_v7 = vmul.u32 %v3111_v50, %v3109_v41  ;;  %v9758_v22 = vmul.u32 %v3111_v50, %v3110_v8 }
 0x169   :  { %v3117_v10 = vshll.u32 %v9745_v34, 16  ;;  %v2867_v16 = vor.u32 4788187, %v2866_v51  ;;  %v3135_v31 = vmul.u32 %v3133_v37, %v3109_v41  ;;  %v9761_v42 = vmul.u32 %v3134_v57, %v3109_v41 }
 0x16a   :  { %v9763_v49 = vmul.u32 %v3133_v37, %v3110_v8  ;;  %v1607_v11 = vsel %vm1605_vm9, %v14026_v25, %v9738_v14  ;;  %v1741_v35 = vmul.f32 %v1740_v6, %v9658_v15  ;;  %v14228_v18 = vand.u32 2147483647, %v14227_v29 }
 0x16b   :  { %v1887_v63 = vxor.u32 2147483648, %v1886_v33  ;;  %v1749_v3 = vadd.f32 -0.16666654, %v1748_v62  ;;  %v9778_v41 = vsub.s32 %v9694_v47, %v3006_v12  ;;  %v3139_v50 = vshll.u32 %v9761_v42, 16 }
 0x16c   :  { %vm9773_vm7 = vcmp.le.f32.partialorder %v14228_v18, 0.7853982  ;;  %v2870_v37 = vcvt.s32.f32 %v2863_v38  ;;  %v3119_v25 = vshll.u32 %v9758_v22, 16  ;;  %vm3121_vm10 = vc.u32 %v3113_v7, %v3117_v10 }
 0x16d   :  { %v3123_v6 = vadd.s32 %v3117_v10, %v3113_v7  ;;  %v2868_v61 = vand.u32 2147483647, %v2867_v16  ;;  %v3138_v9 = vmul.u32 %v3134_v57, %v3110_v8  ;;  %vm3143_vm13 = vc.u32 %v3135_v31, %v3139_v50  ;;  %v39_v7 = vld [vmem:[#allocation2 + $0x38] sm:$0xff] }
 0x16e   :  { %v9783_v18 = vadd.s32 %v3139_v50, %v3135_v31  ;;  %v14231_v62 = vxor.u32 2147483648, %v9738_v14  ;;  %v1888_v12 = vsel %vm1767_vm11, %v1887_v63, %v1886_v33  ;;  %v3116_v38 = vmul.u32 %v3112_v36, %v3110_v8 }
 0x16f   :  { %v3144_v51 = vsel %vm3143_vm13, 1, %v14134_v0  ;;  %v1742_v10 = vadd.f32 -0.4999988, %v1741_v35  ;;  %v3009_v57 = vsub.s32 0, %v9778_v41  ;;  %v3122_v16 = vsel %vm3121_vm10, 1, %v14134_v0 }
 0x170   :  { %v1604_v47 = vsel %vm1602_vm1, %v9729_v58, %v14231_v62  ;;  %v14232_v31 = vshll.u32 %v9763_v49, 16  ;;  %v1750_v50 = vmul.f32 %v1749_v3, %v9658_v15  ;;  %v2064_v62 = vand.u32 3, %v9463_v56 }
 0x171   :  { %vm3008_vm12 = vcmp.lt.s32.totalorder %v9778_v41, 0  ;;  %vm3125_vm9 = vc.u32 %v3123_v6, %v3119_v25  ;;  %v9804_v36 = vsel %vm9773_vm7, %v14227_v29, %v1888_v12  ;;  %v9806_v8 = vmul.f32 -1.5707964, %v35_v46 }
 0x172   :  { %vm3147_vm6 = vc.u32 %v9783_v18, %v14232_v31  ;;  %v2871_v33 = vmul.f32 %v2870_v37, %v2868_v61  ;;  %v3146_v35 = vadd.s32 %v3144_v51, %v3138_v9  ;;  %v9808_v63 = vmul.f32 -1.5707964, %v37_v55  ;;  %v14237_v37 = vld [vmem:[#allocation26_spill] sm:$0xff] }
 0x173   :  { %v9810_v45 = vmul.f32 -1.5707964, %v39_v7  ;;  %v3124_v31 = vadd.s32 %v3122_v16, %v3116_v38  ;;  %v3148_v3 = vsel %vm3147_vm6, 1, %v14134_v0  ;;  %v9815_v56 = vsel %vm1601_vm0, %v1604_v47, %v1607_v11 }
 0x174   :  { %14233 = vst [vmem:[#allocation38_spill] sm:$0xff] %v9808_v63  ;;  %v9817_v25 = vand.u32 3, %v1754_v26  ;;  %v3010_v6 = vsel %vm3008_vm12, %v3009_v57, %v9778_v41  ;;  %v3126_v46 = vsel %vm3125_vm9, 1, %v14134_v0  ;;  %v1743_v61 = vmul.f32 %v1742_v10, %v9658_v15 }
 0x175   :  { %14234 = vst [vmem:[#allocation39_spill] sm:$0xff] %v9810_v45  ;;  %v1751_v9 = vadd.f32 1.0, %v1750_v50  ;;  %v9824_v55 = vmul.f32 %v9804_v36, %v9804_v36  ;;  %vm2066_vm1 = vcmp.eq.s32.totalorder %v2064_v62, 0  ;;  %vm2069_vm10 = vcmp.eq.s32.totalorder %v2064_v62, 2 }
 0x176   :  { %14235 = vst [vmem:[#allocation40_spill] sm:$0xff] %v9815_v56  ;;  %v2872_v51 = vxor.u32 2147483648, %v2871_v33  ;;  %v3140_v4 = vshrl.u32 %v9761_v42, 16  ;;  %v3150_v11 = vadd.s32 %v3148_v3, %v3146_v35  ;;  %vm2752_vm0 = vcmp.lt.s32.totalorder %v14237_v37, 0 }
 0x177   :  { %14236 = vst [vmem:[#allocation41_spill] sm:$0xff] %v9817_v25  ;;  %v3011_v26 = vclz %v3010_v6  ;;  %v3118_v47 = vshrl.u32 %v9745_v34, 16  ;;  %v3128_v12 = vadd.s32 %v3126_v46, %v3124_v31  ;;  %vm2065_vm13 = vcmp.lt.s32.totalorder %v2064_v62, 2 }
 0x178   :  { %v14238_v15 = vxor.u32 2147483648, %v9567_v39  ;;  %v2218_v7 = vand.u32 3, %v9561_v27  ;;  %v14239_v10 = vand.u32 2147483647, %v14237_v37  ;;  %v1894_v42 = vmul.f32 -0.001358992, %v9824_v55 }
 0x179   :  { %v1901_v16 = vmul.f32 -0.00019511016, %v9824_v55  ;;  %v14242_v34 = vxor.u32 2147483648, %v9556_v2  ;;  %v3218_v35 = vand.u32 2139095040, %v9633_v43  ;;  %v2873_v31 = vsel %vm2752_vm0, %v2872_v51, %v2871_v33 }
 0x17a   :  { %v2068_v38 = vsel %vm2066_vm1, %v9556_v2, %v14238_v15  ;;  %vm9835_vm6 = vcmp.le.f32.partialorder %v14239_v10, 0.7853982  ;;  %v3076_v27 = vshrl.u32 %v14136_v19, %v9666_v5  ;;  %v3142_v3 = vshrl.u32 %v9763_v49, 16 }
 0x17b   :  { %v2071_v50 = vsel %vm2069_vm10, %v14242_v34, %v9567_v39  ;;  %v3151_v6 = vadd.s32 %v3150_v11, %v3140_v4  ;;  %v9850_v46 = vadd.f32 1.0, %v1743_v61  ;;  %v7777_v15 = vadd.s32 4294967294, %v3011_v26 }
 0x17c   :  { %v3120_v10 = vshrl.u32 %v9758_v22, 16  ;;  %v3129_v56 = vadd.s32 %v3128_v12, %v3118_v47  ;;  %v9854_v2 = vmul.f32 %v1751_v9, %v9638_v1  ;;  %vm2220_vm12 = vcmp.eq.s32.totalorder %v2218_v7, 0 }
 0x17d   :  { %vm2223_vm9 = vcmp.eq.s32.totalorder %v2218_v7, 2  ;;  %v3097_v39 = vsel %vm3095_vm3, %v9689_v20, 2102212464  ;;  %v2072_v5 = vsel %vm2065_vm13, %v2068_v38, %v2071_v50  ;;  %v2372_v33 = vand.u32 3, %v9749_v60 }
 0x17e   :  { %v9864_v61 = vsel %vm9835_vm6, %v14237_v37, %v2873_v31  ;;  %v3219_v22 = vshrl.u32 %v3218_v35, 23  ;;  %v1895_v51 = vadd.f32 0.041655596, %v1894_v42  ;;  %v1902_v4 = vadd.f32 0.008332121, %v1901_v16 }
 0x17f   :  { %v3096_v1 = vsel %vm3092_vm15, %v3076_v27, %v9696_v40  ;;  %v3152_v9 = vadd.s32 %v3151_v6, %v3142_v3  ;;  %vm14086_vm1 = vweird.f32 %v14200_v23  ;;  %vm7778_vm3 = vcmp.lt.s32.totalorder %v7777_v15, 0 }
 0x180   :  { %v3098_v20 = vsel %vm3094_vm5, %v9687_v54, %v3097_v39  ;;  %v9873_v60 = vadd.s32 %v3129_v56, %v3120_v10  ;;  %v14243_v62 = vshll.u32 %v9763_v49, 16  ;;  %v1758_v26 = vxor.u32 2147483648, %v9854_v2 }
 0x181   :  { %v1761_v47 = vxor.u32 2147483648, %v9850_v46  ;;  %vm2219_vm15 = vcmp.lt.s32.totalorder %v2218_v7, 2  ;;  %v9884_v40 = vmul.f32 %v9864_v61, %v9864_v61  ;;  %v9888_v12 = vsel %vm1443_vm2, nan, %v2072_v5 }
 0x182   :  { %v9878_v11 = vadd.s32 %v9783_v18, %v14243_v62  ;;  %14244 = vst [vmem:[#allocation42_spill] sm:$0xff] %v9888_v12  ;;  %v14245_v54 = vxor.u32 2147483648, %v9738_v14  ;;  %v14246_v18 = vxor.u32 2147483648, %v9729_v58  ;;  %v7782_v38 = vadd.s32 4294967169, %v3219_v22 }
 0x183   :  { %vm2374_vm5 = vcmp.eq.s32.totalorder %v2372_v33, 0  ;;  %v9898_v42 = vsel %vm7778_vm3, 0, %v7777_v15  ;;  %v3099_v16 = vsel %vm3093_vm8, %v3096_v1, %v3098_v20  ;;  %v3156_v44 = vadd.s32 1, %v3152_v9 }
 0x184   :  { %v2222_v49 = vsel %vm2220_vm12, %v9729_v58, %v14245_v54  ;;  %v2225_v56 = vsel %vm2223_vm9, %v14246_v18, %v9738_v14  ;;  %vm14078_vm2 = vweird.f32 %v14217_v48  ;;  %v1896_v34 = vmul.f32 %v1895_v51, %v9824_v55 }
 0x185   :  { %v1903_v50 = vmul.f32 %v1902_v4, %v9824_v55  ;;  %vm3155_vm10 = vc.u32 %v9873_v60, %v9878_v11  ;;  %v3989_v58 = vand.u32 2139095040, %v9653_v21  ;;  %v1889_v14 = vsub.s32 4, %v9469_v59 }
 0x186   :  { %vm2377_vm13 = vcmp.eq.s32.totalorder %v2372_v33, 2  ;;  %v2874_v35 = vsub.s32 4, %v9549_v53  ;;  %v2886_v24 = vmul.f32 -0.00019511016, %v9884_v40  ;;  %v2226_v31 = vsel %vm2219_vm15, %v2222_v49, %v2225_v56 }
 0x187   :  { %v3019_v27 = vsub.s32 4294967266, %v9898_v42  ;;  %v3153_v3 = vmul.u32 %v9701_v28, %v3099_v16  ;;  %v3225_v6 = vadd.s32 1, %v7782_v38  ;;  %vm2373_vm8 = vcmp.lt.s32.totalorder %v2372_v33, 2 }
 0x188   :  { %v2376_v15 = vsel %vm2374_vm5, %v9850_v46, %v1758_v26  ;;  %7844 = vrcp.f32 %v9888_v12  ;;  %v3157_v10 = vsel %vm3155_vm10, %v3156_v44, %v3152_v9  ;;  %vm1757_vm12 = vcmp.eq.s32.totalorder %v9817_v25, 0 }
 0x189   :  { %v1897_v39 = vadd.f32 -0.4999988, %v1896_v34  ;;  %v1904_v5 = vadd.f32 -0.16666654, %v1903_v50  ;;  %v2379_v7 = vsel %vm2377_vm13, %v1761_v47, %v9854_v2  ;;  %v3990_v22 = vshrl.u32 %v3989_v58, 23 }
 0x18a   :  { %v2875_v28 = vsel %vm2752_vm0, %v2874_v35, %v9549_v53  ;;  %v2879_v51 = vmul.f32 -0.001358992, %v9884_v40  ;;  %v2887_v4 = vadd.f32 0.008332121, %v2886_v24  ;;  %v2999_v1 = vadd.s32 %v9649_v30, %v9647_v32 }
 0x18b   :  { %v3015_v20 = vsub.s32 32, %v9898_v42  ;;  %v3020_v9 = vadd.s32 127, %v3019_v27  ;;  %v9928_v62 = vadd.s32 %v3157_v10, %v3153_v3  ;;  %vm3226_vm9 = vcmp.gt.s32.totalorder %v3225_v6, 0 }
 0x18c   :  { %vm1760_vm3 = vcmp.eq.s32.totalorder %v9817_v25, 2  ;;  %v1890_v54 = vsel %vm1767_vm11, %v1889_v14, %v9469_v59  ;;  %v9936_v53 = vsel %vm14086_vm1, nan, %v2226_v31  ;;  %v2380_v49 = vsel %vm2373_vm8, %v2376_v15, %v2379_v7 }
 0x18d   :  { %14247 = vst [vmem:[#allocation43_spill] sm:$0xff] %v9936_v53  ;;  %v1898_v32 = vmul.f32 %v1897_v39, %v9824_v55  ;;  %v1905_v30 = vmul.f32 %v1904_v5, %v9824_v55  ;;  %v9943_v18 = vsel %vm9835_vm6, 0, %v2875_v28  ;;  %v7797_v56 = vadd.s32 4294967169, %v3990_v22 }
 0x18e   :  { %14248 = vst [vmem:[#allocation44_spill] sm:$0xff] %v9943_v18  ;;  %v9945_v38 = vpop.eup %7844  ;;  %v2880_v16 = vadd.f32 0.041655596, %v2879_v51  ;;  %v2888_v59 = vmul.f32 %v2887_v4, %v9884_v40  ;;  %v14033_v44 = vand.u32 2147483647, %v9633_v43  ;;  %v3227_v34 = vsel %vm3226_vm9, %v3225_v6, 0 }
 0x18f   :  { %14249 = vst [vmem:[#allocation45_spill] sm:$0xff] %v9945_v38  ;;  %v3016_v33 = vshll.u32 %v9778_v41, %v9898_v42  ;;  %v3017_v50 = vshrl.u32 %v2999_v1, %v3015_v20  ;;  %v3021_v58 = vshll.u32 %v3020_v9, 23  ;;  %v3159_v55 = vadd.s32 536870912, %v9928_v62 }
 0x190   :  { %v9955_v57 = vsel %vm1760_vm3, %v1761_v47, %v9854_v2  ;;  %v9959_v14 = vsel %vm9773_vm7, 0, %v1890_v54  ;;  %v9963_v35 = vsel %vm14078_vm2, nan, %v2380_v49  ;;  %7846 = vrcp.f32 %v9936_v53 }
 0x191   :  { %14250 = vst [vmem:[#allocation46_spill] sm:$0xff] %v9955_v57  ;;  %v1906_v41 = vadd.f32 1.0, %v1905_v30  ;;  %v9968_v42 = vmul.f32 %v9945_v38, %v9888_v12  ;;  %v3229_v24 = vand.u32 31, %v3227_v34  ;;  %v3996_v31 = vadd.s32 1, %v7797_v56 }
 0x192   :  { %14251 = vst [vmem:[#allocation47_spill] sm:$0xff] %v9959_v14  ;;  %v9970_v27 = vadd.f32 1.0, %v1898_v32  ;;  %v2881_v47 = vmul.f32 %v2880_v16, %v9884_v40  ;;  %v2889_v13 = vadd.f32 -0.16666654, %v2888_v59  ;;  %v2894_v3 = vadd.s32 3, %v9943_v18 }
 0x193   :  { %14252 = vst [vmem:[#allocation48_spill] sm:$0xff] %v9963_v35  ;;  %v3018_v6 = vor.u32 %v3017_v50, %v3016_v33  ;;  %v3022_v15 = vor.u32 4788187, %v3021_v58  ;;  %v9974_v10 = vshrl.u32 %v3159_v55, 30  ;;  %v3222_v39 = vand.u32 8388607, %v14033_v44 }
 0x194   :  { %14253 = vst [vmem:[#allocation49_spill] sm:$0xff] %v9968_v42  ;;  %v9983_v5 = vsel %vm1757_vm12, %v9850_v46, %v1758_v26  ;;  %v9986_v7 = vand.u32 3, %v9959_v14  ;;  %7848 = vrcp.f32 %v9963_v35  ;;  %v14032_v22 = vand.u32 2147483647, %v9653_v21  ;;  %v14263_v44 = vld [vmem:[#allocation36_spill] sm:$0xff] }
 0x195   :  { %14254 = vst [vmem:[#allocation50_spill] sm:$0xff] %v9970_v27  ;;  %v9991_v28 = vmul.f32 %v1906_v41, %v9804_v36  ;;  %v9994_v4 = vsub.s32 32, %v3229_v24  ;;  %vm3997_vm11 = vcmp.gt.s32.totalorder %v3996_v31, 0  ;;  %v2882_v26 = vadd.f32 -0.4999988, %v2881_v47 }
 0x196   :  { %14255 = vst [vmem:[#allocation51_spill] sm:$0xff] %v9983_v5  ;;  %v9996_v2 = vpop.eup %7846  ;;  %v2890_v1 = vmul.f32 %v2889_v13, %v9884_v40  ;;  %v10000_v20 = vand.u32 3, %v2894_v3  ;;  %v3023_v9 = vand.u32 2147483647, %v3022_v15  ;;  %v3025_v54 = vcvt.s32.f32 %v3018_v6 }
 0x197   :  { %14256 = vst [vmem:[#allocation52_spill] sm:$0xff] %v9986_v7  ;;  %v3161_v49 = vshll.u32 %v9974_v10, 30  ;;  %v3223_v36 = vor.u32 8388608, %v3222_v39  ;;  %v10003_v32 = vshrl.u32 %v3227_v34, 5  ;;  %v3241_v30 = vshll.u32 %v14138_v52, %v3229_v24 }
 0x198   :  { %14257 = vst [vmem:[#allocation53_spill] sm:$0xff] %v9991_v28  ;;  %v3993_v56 = vand.u32 8388607, %v14032_v22  ;;  %v3998_v16 = vsel %vm3997_vm11, %v3996_v31, 0  ;;  %v3242_v59 = vshrl.u32 %v14139_v17, %v9994_v4  ;;  %v3244_v33 = vshll.u32 %v14139_v17, %v3229_v24 }
 0x199   :  { %14258 = vst [vmem:[#allocation54_spill] sm:$0xff] %v9996_v2  ;;  %v14259_v50 = vmov 1326507024   ;;  %v10013_v55 = vand.u32 31, %v3998_v16  ;;  %v2883_v34 = vmul.f32 %v2882_v26, %v9884_v40  ;;  %v2891_v47 = vadd.f32 1.0, %v2890_v1 }
 0x19a   :  { %v3245_v58 = vshrl.u32 %v14259_v50, %v9994_v4  ;;  %v10015_v41 = vpop.eup %7848  ;;  %v3232_v13 = vshll.u32 %v14136_v19, %v3229_v24  ;;  %v14261_v3 = vmov 2475754826   ;;  %v10021_v31 = vsub.s32 %v9928_v62, %v3161_v49 }
 0x19b   :  { %14260 = vst [vmem:[#allocation55_spill] sm:$0xff] %v10015_v41  ;;  %v3235_v6 = vshll.u32 %v14261_v3, %v3229_v24  ;;  %v3233_v15 = vshrl.u32 %v14261_v3, %v9994_v4  ;;  %v14262_v39 = vmov 2131351028   ;;  %v10028_v51 = vsub.s32 32, %v10013_v55 }
 0x19c   :  { %v3236_v46 = vshrl.u32 %v14262_v39, %v9994_v4  ;;  %v3026_v22 = vmul.f32 %v3025_v54, %v3023_v9  ;;  %v3238_v40 = vshll.u32 %v14262_v39, %v3229_v24  ;;  %v3239_v26 = vshrl.u32 %v14138_v52, %v9994_v4 }
 0x19d   :  { %v10033_v1 = vshll.u32 %v3223_v36, 8  ;;  %vm2907_vm7 = vcmp.lt.s32.totalorder %v14263_v44, 0  ;;  %v3243_v62 = vor.u32 %v3242_v59, %v3241_v30  ;;  %v3246_v49 = vor.u32 %v3245_v58, %v3244_v33 }
 0x19e   :  { %vm3250_vm0 = vcmp.lt.s32.totalorder %v10003_v32, 4  ;;  %v3994_v48 = vor.u32 8388608, %v3993_v56  ;;  %v4006_v5 = vshll.u32 %v14261_v3, %v10013_v55  ;;  %v4007_v9 = vshrl.u32 %v14262_v39, %v10028_v51 }
 0x19f   :  { %v4009_v24 = vshll.u32 %v14262_v39, %v10013_v55  ;;  %v4010_v54 = vshrl.u32 %v14138_v52, %v10028_v51  ;;  %v3164_v36 = vsub.s32 0, %v10021_v31  ;;  %v10046_v57 = vor.u32 %v3233_v15, %v3232_v13 }
 0x1a0   :  { %v10048_v30 = vor.u32 %v3236_v46, %v3235_v6  ;;  %v10050_v59 = vshrl.u32 %v3998_v16, 5  ;;  %v14264_v56 = vand.u32 2147483647, %v14263_v44  ;;  %vm3163_vm15 = vcmp.lt.s32.totalorder %v10021_v31, 0 }
 0x1a1   :  { %v10059_v58 = vor.u32 %v3239_v26, %v3238_v40  ;;  %vm3247_vm5 = vcmp.lt.s32.totalorder %v10003_v32, 1  ;;  %v4015_v13 = vshll.u32 %v14139_v17, %v10013_v55  ;;  %vm3249_vm10 = vcmp.lt.s32.totalorder %v10003_v32, 3 }
 0x1a2   :  { %vm10054_vm6 = vcmp.le.f32.partialorder %v14264_v56, 0.7853982  ;;  %v3256_v46 = vsel %vm3250_vm0, %v3243_v62, 920167782  ;;  %v3260_v16 = vsel %vm3250_vm0, %v3246_v49, 1326507024  ;;  %v4016_v6 = vshrl.u32 %v14259_v50, %v10028_v51 }
 0x1a3   :  { %v10071_v15 = vor.u32 %v4007_v9, %v4006_v5  ;;  %v10073_v40 = vor.u32 %v4010_v54, %v4009_v24  ;;  %v4012_v26 = vshll.u32 %v14138_v52, %v10013_v55  ;;  %v4013_v56 = vshrl.u32 %v14139_v17, %v10028_v51 }
 0x1a4   :  { %v3027_v23 = vxor.u32 2147483648, %v3026_v22  ;;  %v3165_v25 = vsel %vm3163_vm15, %v3164_v36, %v10021_v31  ;;  %v4017_v12 = vor.u32 %v4016_v6, %v4015_v13  ;;  %vm4018_vm13 = vcmp.lt.s32.totalorder %v10050_v59, 1 }
 0x1a5   :  { %vm3248_vm8 = vcmp.lt.s32.totalorder %v10003_v32, 2  ;;  %v3259_v5 = vsel %vm3247_vm5, %v10048_v30, %v10059_v58  ;;  %v3261_v49 = vsel %vm3249_vm10, %v3243_v62, %v3260_v16  ;;  %vm4021_vm12 = vcmp.lt.s32.totalorder %v10050_v59, 4 }
 0x1a6   :  { %v3255_v9 = vsel %vm3247_vm5, %v10046_v57, %v10048_v30  ;;  %v3257_v24 = vsel %vm3249_vm10, %v10059_v58, %v3256_v46  ;;  %vm4020_vm9 = vcmp.lt.s32.totalorder %v10050_v59, 3  ;;  %v10097_v54 = vshll.u32 %v3994_v48, 8 }
 0x1a7   :  { %v3166_v36 = vclz %v3165_v25  ;;  %v4014_v13 = vor.u32 %v4013_v56, %v4012_v26  ;;  %vm4019_vm3 = vcmp.lt.s32.totalorder %v10050_v59, 2  ;;  %v4030_v62 = vsel %vm4018_vm13, %v10071_v15, %v10073_v40  ;;  %v14269_v26 = vld [vmem:[#allocation37_spill] sm:$0xff] }
 0x1a8   :  { %v10104_v16 = vadd.f32 1.0, %v2883_v34  ;;  %v10107_v6 = vmul.f32 %v2891_v47, %v9864_v61  ;;  %v10111_v46 = vsel %vm3248_vm8, %v3259_v5, %v3261_v49  ;;  %v4031_v48 = vsel %vm4021_vm12, %v4017_v12, 1326507024 }
 0x1a9   :  { %v3028_v25 = vsel %vm2907_vm7, %v3027_v23, %v3026_v22  ;;  %v3029_v56 = vsub.s32 4, %v14269_v26  ;;  %v10120_v14 = vsel %vm3248_vm8, %v3255_v9, %v3257_v24  ;;  %v4032_v61 = vsel %vm4020_vm9, %v4014_v13, %v4031_v48 }
 0x1aa   :  { %14267 = vst [vmem:[#allocation56_spill] sm:$0xff] %v10104_v16  ;;  %vm2897_vm11 = vcmp.eq.s32.totalorder %v10000_v20, 0  ;;  %v3264_v34 = vand.u32 65535, %v10033_v1  ;;  %v4033_v47 = vsel %vm4019_vm3, %v4030_v62, %v4032_v61  ;;  %v10129_v12 = vand.u32 65535, %v10097_v54 }
 0x1ab   :  { %14268 = vst [vmem:[#allocation57_spill] sm:$0xff] %v10107_v6  ;;  %v7780_v23 = vadd.s32 4294967294, %v3166_v36  ;;  %v4003_v5 = vshll.u32 %v14136_v19, %v10013_v55  ;;  %v4004_v49 = vshrl.u32 %v14261_v3, %v10028_v51  ;;  %v10140_v24 = vsel %vm10054_vm6, %v14263_v44, %v3028_v25 }
 0x1ac   :  { %14270 = vst [vmem:[#allocation37_spill] sm:$0xff] %v10140_v24  ;;  %v3289_v62 = vshrl.u32 %v10120_v14, 16  ;;  %v4038_v48 = vshrl.u32 %v4033_v47, 16  ;;  %vm2900_vm15 = vcmp.eq.s32.totalorder %v10000_v20, 2  ;;  %v3030_v55 = vsel %vm2907_vm7, %v3029_v56, %v14269_v26 }
 0x1ad   :  { %v3266_v61 = vand.u32 65535, %v10111_v46  ;;  %v3265_v9 = vshrl.u32 %v10033_v1, 16  ;;  %v10151_v22 = vshrl.u32 %v10097_v54, 16  ;;  %v4037_v25 = vand.u32 65535, %v4033_v47 }
 0x1ae   :  { %v10154_v27 = vmul.u32 %v4038_v48, %v10129_v12  ;;  %v10158_v36 = vmul.f32 %v10140_v24, %v10140_v24  ;;  %vm7781_vm14 = vcmp.lt.s32.totalorder %v7780_v23, 0  ;;  %v14271_v41 = vshrl.u32 %v10111_v46, 16 }
 0x1af   :  { %v10164_v26 = vor.u32 %v4004_v49, %v4003_v5  ;;  %v14272_v56 = vxor.u32 2147483648, %v10104_v16  ;;  %v3288_v47 = vand.u32 65535, %v10120_v14  ;;  %v10172_v53 = vmul.u32 %v3289_v62, %v3264_v34 }
 0x1b0   :  { %v10162_v35 = vmul.u32 %v14271_v41, %v3264_v34  ;;  %v4027_v38 = vsel %vm4021_vm12, %v4014_v13, 920167782  ;;  %v14273_v42 = vxor.u32 2147483648, %v10107_v6  ;;  %v10185_v5 = vsel %vm10054_vm6, 0, %v3030_v55 }
 0x1b1   :  { %v10169_v2 = vsel %vm2900_vm15, %v14272_v56, %v10107_v6  ;;  %14274 = vst [vmem:[#allocation58_spill] sm:$0xff] %v10185_v5  ;;  %v3034_v49 = vmul.f32 -0.001358992, %v10158_v36  ;;  %v3268_v56 = vmul.u32 %v3266_v61, %v3264_v34  ;;  %v3169_v14 = vsel %vm7781_vm14, 0, %v7780_v23 }
 0x1b2   :  { %v10181_v41 = vsel %vm2897_vm11, %v10104_v16, %v14273_v42  ;;  %v4039_v28 = vmul.u32 %v4037_v25, %v10129_v12  ;;  %v10190_v29 = vmul.u32 %v4037_v25, %v10151_v22  ;;  %v4043_v13 = vshll.u32 %v10154_v27, 16 }
 0x1b3   :  { %v10193_v7 = vmul.u32 %v3266_v61, %v3265_v9  ;;  %v3272_v42 = vshll.u32 %v10162_v35, 16  ;;  %v4026_v33 = vsel %vm4018_vm13, %v10164_v26, %v10071_v15  ;;  %v4028_v23 = vsel %vm4020_vm9, %v10073_v40, %v4027_v38 }
 0x1b4   :  { %v10204_v55 = vadd.s32 3, %v10185_v5  ;;  %v3290_v25 = vmul.u32 %v3288_v47, %v3264_v34  ;;  %v10206_v16 = vmul.u32 %v3288_v47, %v3265_v9  ;;  %v3294_v61 = vshll.u32 %v10172_v53, 16 }
 0x1b5   :  { %v3035_v6 = vadd.f32 0.041655596, %v3034_v49  ;;  %v3041_v18 = vmul.f32 -0.00019511016, %v10158_v36  ;;  %v3154_v45 = vadd.s32 %v9878_v11, %v9873_v60  ;;  %v3174_v21 = vsub.s32 4294967266, %v3169_v14 }
 0x1b6   :  { %v4029_v43 = vsel %vm4019_vm3, %v4026_v33, %v4028_v23  ;;  %v4045_v38 = vshll.u32 %v10190_v29, 16  ;;  %vm4047_vm14 = vc.u32 %v4039_v28, %v4043_v13  ;;  %v4049_v5 = vadd.s32 %v4043_v13, %v4039_v28 }
 0x1b7   :  { %v3170_v44 = vsub.s32 32, %v3169_v14  ;;  %v10217_v34 = vshrl.u32 %v14136_v19, %v9994_v4  ;;  %v3274_v47 = vshll.u32 %v10193_v7, 16  ;;  %vm10220_vm7 = vc.u32 %v3268_v56, %v3272_v42 }
 0x1b8   :  { %v3278_v60 = vadd.s32 %v3272_v42, %v3268_v56  ;;  %vm10225_vm6 = vc.u32 %v3290_v25, %v3294_v61  ;;  %v4042_v28 = vmul.u32 %v4038_v48, %v10151_v22  ;;  %v10230_v13 = vadd.s32 %v3294_v61, %v3290_v25 }
 0x1b9   :  { %v4048_v4 = vsel %vm4047_vm14, 1, %v14134_v0  ;;  %v4059_v23 = vand.u32 65535, %v4029_v43  ;;  %v4060_v24 = vshrl.u32 %v4029_v43, 16  ;;  %v10234_v63 = vmul.f32 %v3035_v6, %v10158_v36 }
 0x1ba   :  { %v3042_v37 = vadd.f32 0.008332121, %v3041_v18  ;;  %v3175_v50 = vadd.s32 127, %v3174_v21  ;;  %vm4051_vm11 = vc.u32 %v4049_v5, %v4045_v38  ;;  %v3171_v56 = vshll.u32 %v10021_v31, %v3169_v14 }
 0x1bb   :  { %v3172_v42 = vshrl.u32 %v3154_v45, %v3170_v44  ;;  %v14279_v11 = vshrl.u32 %v10111_v46, 16  ;;  %v3293_v39 = vmul.u32 %v3289_v62, %v3265_v9  ;;  %v3277_v48 = vsel %vm10220_vm7, 1, %v14134_v0 }
 0x1bc   :  { %vm3280_vm15 = vc.u32 %v3278_v60, %v3274_v47  ;;  %v3299_v43 = vsel %vm10225_vm6, 1, %v14134_v0  ;;  %v4050_v6 = vadd.s32 %v4048_v4, %v4042_v28  ;;  %v14280_v21 = vshll.u32 %v10206_v16, 16 }
 0x1bd   :  { %v3271_v17 = vmul.u32 %v14279_v11, %v3265_v9  ;;  %v4052_v45 = vsel %vm4051_vm11, 1, %v14134_v0  ;;  %v4062_v18 = vmul.u32 %v4060_v24, %v10129_v12  ;;  %v4063_v44 = vmul.u32 %v4059_v23, %v10151_v22 }
 0x1be   :  { %vm3302_vm14 = vc.u32 %v10230_v13, %v14280_v21  ;;  %v3043_v31 = vmul.f32 %v3042_v37, %v10158_v36  ;;  %v3176_v46 = vshll.u32 %v3175_v50, 23  ;;  %v3252_v9 = vsel %vm3250_vm0, %v10059_v58, 2102212464 }
 0x1bf   :  { %v3273_v62 = vshrl.u32 %v10162_v35, 16  ;;  %v3173_v5 = vor.u32 %v3172_v42, %v3171_v56  ;;  %v3279_v14 = vadd.s32 %v3277_v48, %v3271_v17  ;;  %v3301_v25 = vadd.s32 %v3299_v43, %v3293_v39 }
 0x1c0   :  { %v4061_v61 = vmul.u32 %v4059_v23, %v10129_v12  ;;  %v3281_v38 = vsel %vm3280_vm15, 1, %v14134_v0  ;;  %v3303_v47 = vsel %vm3302_vm14, 1, %v14134_v0  ;;  %v4044_v49 = vshrl.u32 %v10154_v27, 16 }
 0x1c1   :  { %v4054_v60 = vadd.s32 %v4052_v45, %v4050_v6  ;;  %v3295_v37 = vshrl.u32 %v10172_v53, 16  ;;  %v4064_v50 = vmul.u32 %v4060_v24, %v10151_v22  ;;  %v4065_v11 = vshll.u32 %v4062_v18, 16 }
 0x1c2   :  { %v4067_v58 = vshll.u32 %v4063_v44, 16  ;;  %v3177_v33 = vor.u32 4788187, %v3176_v46  ;;  %v3297_v35 = vshrl.u32 %v10206_v16, 16  ;;  %v4002_v17 = vshrl.u32 %v14136_v19, %v10028_v51 }
 0x1c3   :  { %v4144_v39 = vand.u32 2139095040, %v9806_v8  ;;  %vm2896_vm0 = vcmp.lt.s32.totalorder %v10000_v20, 2  ;;  %v3305_v12 = vadd.s32 %v3303_v47, %v3301_v25  ;;  %v4023_v27 = vsel %vm4021_vm12, %v10073_v40, 2102212464 }
 0x1c4   :  { %vm4069_vm7 = vc.u32 %v4061_v61, %v4065_v11  ;;  %v4071_v53 = vadd.s32 %v4065_v11, %v4061_v61  ;;  %v4046_v22 = vshrl.u32 %v10190_v29, 16  ;;  %v4055_v24 = vadd.s32 %v4054_v60, %v4044_v49 }
 0x1c5   :  { %v4070_v28 = vsel %vm4069_vm7, 1, %v14134_v0  ;;  %v4145_v4 = vshrl.u32 %v4144_v39, 23  ;;  %v3283_v23 = vadd.s32 %v3281_v38, %v3279_v14  ;;  %v4066_v56 = vshrl.u32 %v4062_v18, 16 }
 0x1c6   :  { %v4072_v51 = vadd.s32 %v4070_v28, %v4064_v50  ;;  %vm4073_vm6 = vc.u32 %v4071_v53, %v4067_v58  ;;  %v4022_v42 = vsel %vm4018_vm13, %v4002_v17, %v10164_v26  ;;  %v4024_v40 = vsel %vm4020_vm9, %v10071_v15, %v4023_v27 }
 0x1c7   :  { %v4074_v48 = vsel %vm4073_vm6, 1, %v14134_v0  ;;  %v7800_v43 = vadd.s32 4294967169, %v4145_v4  ;;  %v3178_v29 = vand.u32 2147483647, %v3177_v33  ;;  %v3180_v6 = vcvt.s32.f32 %v3173_v5 }
 0x1c8   :  { %v4068_v21 = vshrl.u32 %v4063_v44, 16  ;;  %v4076_v45 = vadd.s32 %v4074_v48, %v4072_v51  ;;  %v3306_v46 = vadd.s32 %v3305_v12, %v3295_v37  ;;  %v10279_v14 = vadd.s32 %v4055_v24, %v4046_v22 }
 0x1c9   :  { %v10281_v18 = vadd.s32 %v4071_v53, %v4067_v58  ;;  %v4151_v25 = vadd.s32 1, %v7800_v43  ;;  %v3275_v61 = vshrl.u32 %v10193_v7, 16  ;;  %v3284_v26 = vadd.s32 %v3283_v23, %v3273_v62 }
 0x1ca   :  { %v4025_v38 = vsel %vm4019_vm3, %v4022_v42, %v4024_v40  ;;  %v4077_v15 = vadd.s32 %v4076_v45, %v4066_v56  ;;  %v3037_v47 = vadd.f32 -0.4999988, %v10234_v63  ;;  %v3044_v49 = vadd.f32 -0.16666654, %v3043_v31 }
 0x1cb   :  { %v3251_v44 = vsel %vm3247_vm5, %v10217_v34, %v10046_v57  ;;  %vm4152_vm13 = vcmp.gt.s32.totalorder %v4151_v25, 0  ;;  %v3181_v5 = vmul.f32 %v3180_v6, %v3178_v29  ;;  %v3253_v60 = vsel %vm3249_vm10, %v10048_v30, %v3252_v9 }
 0x1cc   :  { %v4078_v7 = vadd.s32 %v4077_v15, %v4068_v21  ;;  %v4153_v62 = vsel %vm4152_vm13, %v4151_v25, 0  ;;  %v3307_v37 = vadd.s32 %v3306_v46, %v3297_v35  ;;  %v4079_v59 = vmul.u32 %v10097_v54, %v4025_v38  ;;  %v14282_v54 = vld [vmem:[#allocation16_spill] sm:$0xff]  ;;  %v14289_v46 = vld [vmem:[#allocation26_spill] sm:$0xff] }
 0x1cd   :  { %vm4081_vm12 = vc.u32 %v10279_v14, %v10281_v18  ;;  %v4155_v63 = vand.u32 31, %v4153_v62  ;;  %v10297_v31 = vadd.s32 %v3284_v26, %v3275_v61  ;;  %v14281_v50 = vshll.u32 %v10206_v16, 16  ;;  %v14290_v38 = vld [vmem:[#allocation38_spill] sm:$0xff] }
 0x1ce   :  { %v4082_v34 = vadd.s32 1, %v4078_v7  ;;  %v14077_v11 = vand.u32 2147483647, %v9806_v8  ;;  %v10309_v30 = vsel %vm2896_vm0, %v10181_v41, %v10169_v2  ;;  %v14283_v9 = vand.u32 2147483647, %v14282_v54 }
 0x1cf   :  { %v10302_v57 = vadd.s32 %v10230_v13, %v14281_v50  ;;  %vm3062_vm10 = vcmp.lt.s32.totalorder %v14282_v54, 0  ;;  %v3254_v16 = vsel %vm3248_vm8, %v3251_v44, %v3253_v60  ;;  %v3038_v13 = vmul.f32 %v3037_v47, %v10158_v36 }
 0x1d0   :  { %vm10313_vm5 = vcmp.le.f32.partialorder %v14283_v9, 0.7853982  ;;  %v10322_v33 = vand.u32 3, %v10204_v55  ;;  %v4083_v35 = vsel %vm4081_vm12, %v4082_v34, %v4078_v7  ;;  %v10324_v20 = vsub.s32 32, %v4155_v63 }
 0x1d1   :  { %v3045_v2 = vmul.f32 %v3044_v49, %v10158_v36  ;;  %v3182_v41 = vxor.u32 2147483648, %v3181_v5  ;;  %v3311_v17 = vadd.s32 1, %v3307_v37  ;;  %v4084_v39 = vadd.s32 %v4083_v35, %v4079_v59 }
 0x1d2   :  { %v3184_v12 = vsub.s32 4, %v9974_v10  ;;  %v3308_v27 = vmul.u32 %v10033_v1, %v3254_v16  ;;  %vm3310_vm8 = vc.u32 %v10297_v31, %v10302_v57  ;;  %v4148_v32 = vand.u32 8388607, %v14077_v11 }
 0x1d3   :  { %v4085_v55 = vadd.s32 536870912, %v4084_v39  ;;  %v10333_v53 = vshrl.u32 %v4153_v62, 5  ;;  %v4158_v22 = vshll.u32 %v14136_v19, %v4155_v63  ;;  %v4167_v36 = vshll.u32 %v14138_v52, %v4155_v63 }
 0x1d4   :  { %v4159_v24 = vshrl.u32 %v14261_v3, %v10324_v20  ;;  %v4161_v28 = vshll.u32 %v14261_v3, %v4155_v63  ;;  %v14286_v1 = vmov 2131351028   ;;  %v14287_v23 = vmov 920167782  }
 0x1d5   :  { %v4162_v4 = vshrl.u32 %v14286_v1, %v10324_v20  ;;  %v4168_v56 = vshrl.u32 %v14287_v23, %v10324_v20  ;;  %v3046_v51 = vadd.f32 1.0, %v3045_v2  ;;  %v3183_v42 = vsel %vm3062_vm10, %v3182_v41, %v3181_v5  ;;  %v14291_v5 = vld [vmem:[#allocation37_spill] sm:$0xff] }
 0x1d6   :  { %v3312_v40 = vsel %vm3310_vm8, %v3311_v17, %v3307_v37  ;;  %v10346_v48 = vshrl.u32 %v4085_v55, 30  ;;  %v4164_v43 = vshll.u32 %v14286_v1, %v4155_v63  ;;  %v4165_v29 = vshrl.u32 %v14138_v52, %v10324_v20 }
 0x1d7   :  { %v4170_v6 = vshll.u32 %v14287_v23, %v4155_v63  ;;  %v14288_v21 = vmov 1326507024   ;;  %vm2893_vm9 = vweird.f32 %v14289_v46  ;;  %v10355_v25 = vadd.f32 1.0, %v3038_v13 }
 0x1d8   :  { %v4171_v45 = vshrl.u32 %v14288_v21, %v10324_v20  ;;  %v4149_v61 = vor.u32 8388608, %v4148_v32  ;;  %v4169_v26 = vor.u32 %v4168_v56, %v4167_v36  ;;  %v4299_v15 = vand.u32 2139095040, %v14290_v38 }
 0x1d9   :  { %v10358_v47 = vadd.s32 %v3312_v40, %v3308_v27  ;;  %v4160_v49 = vor.u32 %v4159_v24, %v4158_v22  ;;  %v10360_v44 = vor.u32 %v4162_v4, %v4161_v28  ;;  %vm4176_vm3 = vcmp.lt.s32.totalorder %v10333_v53, 4 }
 0x1da   :  { %v10364_v60 = vmul.f32 %v3046_v51, %v14291_v5  ;;  %v10369_v7 = vsel %vm10313_vm5, %v14282_v54, %v3183_v42  ;;  %v4087_v62 = vshll.u32 %v10346_v48, 30  ;;  %vm4173_vm11 = vcmp.lt.s32.totalorder %v10333_v53, 1 }
 0x1db   :  { %vm3052_vm15 = vcmp.eq.s32.totalorder %v10322_v33, 0  ;;  %vm3055_vm14 = vcmp.eq.s32.totalorder %v10322_v33, 2  ;;  %v4166_v37 = vor.u32 %v4165_v29, %v4164_v43  ;;  %v4172_v59 = vor.u32 %v4171_v45, %v4170_v6 }
 0x1dc   :  { %vm4175_vm0 = vcmp.lt.s32.totalorder %v10333_v53, 3  ;;  %v4182_v63 = vsel %vm4176_vm3, %v4169_v26, 920167782  ;;  %v10378_v50 = vshll.u32 %v4149_v61, 8  ;;  %v4300_v34 = vshrl.u32 %v4299_v15, 23 }
 0x1dd   :  { %v10382_v9 = vmul.f32 %v10369_v7, %v10369_v7  ;;  %v3314_v16 = vadd.s32 536870912, %v10358_v47  ;;  %vm4174_vm7 = vcmp.lt.s32.totalorder %v10333_v53, 2  ;;  %v4181_v13 = vsel %vm4173_vm11, %v4160_v49, %v10360_v44 }
 0x1de   :  { %v14075_v35 = vxor.u32 2147483648, %v10364_v60  ;;  %v14074_v2 = vxor.u32 2147483648, %v10355_v25  ;;  %v3185_v41 = vsel %vm3062_vm10, %v3184_v12, %v9974_v10  ;;  %v10394_v17 = vsub.s32 %v4084_v39, %v4087_v62 }
 0x1df   :  { %v3189_v27 = vmul.f32 -0.001358992, %v10382_v9  ;;  %v4183_v32 = vsel %vm4175_vm0, %v4166_v37, %v4182_v63  ;;  %v4185_v55 = vsel %vm4173_vm11, %v10360_v44, %v4166_v37  ;;  %v4186_v22 = vsel %vm4176_vm3, %v4172_v59, 1326507024 }
 0x1e0   :  { %v4184_v36 = vsel %vm4174_vm7, %v4181_v13, %v4183_v32  ;;  %v4187_v10 = vsel %vm4175_vm0, %v4169_v26, %v4186_v22  ;;  %v4190_v39 = vand.u32 65535, %v10378_v50  ;;  %v7803_v12 = vadd.s32 4294967169, %v4300_v34 }
 0x1e1   :  { %v3196_v24 = vmul.f32 -0.00019511016, %v10382_v9  ;;  %v10410_v28 = vshrl.u32 %v3314_v16, 30  ;;  %v4188_v4 = vsel %vm4174_vm7, %v4185_v55, %v4187_v10  ;;  %v4191_v56 = vshrl.u32 %v10378_v50, 16 }
 0x1e2   :  { %v4090_v51 = vsub.s32 0, %v10394_v17  ;;  %v4192_v42 = vand.u32 65535, %v4188_v4  ;;  %v4193_v40 = vshrl.u32 %v4188_v4, 16  ;;  %v4215_v43 = vshrl.u32 %v4184_v36, 16 }
 0x1e3   :  { %v10419_v29 = vsel %vm2893_vm9, nan, %v10309_v30  ;;  %v10423_v6 = vsel %vm10313_vm5, 0, %v3185_v41  ;;  %vm4089_vm6 = vcmp.lt.s32.totalorder %v10394_v17, 0  ;;  %v4157_v45 = vshrl.u32 %v14136_v19, %v10324_v20 }
 0x1e4   :  { %14292 = vst [vmem:[#allocation38_spill] sm:$0xff] %v10419_v29  ;;  %v10433_v61 = vsel %vm3055_vm14, %v14074_v2, %v10364_v60  ;;  %v4195_v26 = vmul.u32 %v4193_v40, %v4190_v39  ;;  %v4214_v15 = vand.u32 65535, %v4184_v36  ;;  %v4306_v30 = vadd.s32 1, %v7803_v12 }
 0x1e5   :  { %v10440_v58 = vsel %vm3052_vm15, %v10355_v25, %v14075_v35  ;;  %v3190_v5 = vadd.f32 0.041655596, %v3189_v27  ;;  %v4194_v62 = vmul.u32 %v4192_v42, %v4190_v39  ;;  %v4196_v20 = vmul.u32 %v4192_v42, %v4191_v56 }
 0x1e6   :  { %v3197_v59 = vadd.f32 0.008332121, %v3196_v24  ;;  %v3316_v63 = vshll.u32 %v10410_v28, 30  ;;  %v4091_v34 = vsel %vm4089_vm6, %v4090_v51, %v10394_v17  ;;  %v4217_v16 = vmul.u32 %v4215_v43, %v4190_v39 }
 0x1e7   :  { %v4177_v13 = vsel %vm4173_vm11, %v4157_v45, %v4160_v49  ;;  %v4197_v41 = vmul.u32 %v4193_v40, %v4191_v56  ;;  %v4198_v32 = vshll.u32 %v4195_v26, 16  ;;  %v14076_v55 = vand.u32 2147483647, %v14290_v38 }
 0x1e8   :  { %v4200_v22 = vshll.u32 %v4196_v20, 16  ;;  %v4216_v36 = vmul.u32 %v4214_v15, %v4190_v39  ;;  %v4218_v10 = vmul.u32 %v4214_v15, %v4191_v56  ;;  %vm4307_vm13 = vcmp.gt.s32.totalorder %v4306_v30, 0 }
 0x1e9   :  { %v4092_v27 = vclz %v4091_v34  ;;  %v4178_v12 = vsel %vm4176_vm3, %v4166_v37, 2102212464  ;;  %vm4202_vm12 = vc.u32 %v4194_v62, %v4198_v32  ;;  %v4204_v24 = vadd.s32 %v4198_v32, %v4194_v62 }
 0x1ea   :  { %v4203_v4 = vsel %vm4202_vm12, 1, %v14134_v0  ;;  %v4219_v51 = vmul.u32 %v4215_v43, %v4191_v56  ;;  %v4220_v42 = vshll.u32 %v4217_v16, 16  ;;  %v4222_v2 = vshll.u32 %v4218_v10, 16 }
 0x1eb   :  { %v4199_v49 = vshrl.u32 %v4195_v26, 16  ;;  %v4205_v40 = vadd.s32 %v4203_v4, %v4197_v41  ;;  %vm4206_vm5 = vc.u32 %v4204_v24, %v4200_v22  ;;  %v4308_v45 = vsel %vm4307_vm13, %v4306_v30, 0 }
 0x1ec   :  { %v4179_v39 = vsel %vm4175_vm0, %v10360_v44, %v4178_v12  ;;  %v4207_v15 = vsel %vm4206_vm5, 1, %v14134_v0  ;;  %vm4224_vm10 = vc.u32 %v4216_v36, %v4220_v42  ;;  %v4226_v34 = vadd.s32 %v4220_v42, %v4216_v36 }
 0x1ed   :  { %v7798_v37 = vadd.s32 4294967294, %v4092_v27  ;;  %v4201_v35 = vshrl.u32 %v4196_v20, 16  ;;  %v4209_v62 = vadd.s32 %v4207_v15, %v4205_v40  ;;  %v4225_v32 = vsel %vm4224_vm10, 1, %v14134_v0 }
 0x1ee   :  { %v4221_v56 = vshrl.u32 %v4217_v16, 16  ;;  %v4227_v43 = vadd.s32 %v4225_v32, %v4219_v51  ;;  %vm4228_vm8 = vc.u32 %v4226_v34, %v4222_v2  ;;  %v4310_v26 = vand.u32 31, %v4308_v45 }
 0x1ef   :  { %vm3051_vm3 = vcmp.lt.s32.totalorder %v10322_v33, 2  ;;  %v3191_v30 = vmul.f32 %v3190_v5, %v10382_v9  ;;  %v3198_v41 = vmul.f32 %v3197_v59, %v10382_v9  ;;  %v4210_v44 = vadd.s32 %v4209_v62, %v4199_v49 }
 0x1f0   :  { %v4229_v22 = vsel %vm4228_vm8, 1, %v14134_v0  ;;  %v10460_v36 = vsub.s32 %v10358_v47, %v3316_v63  ;;  %v4223_v20 = vshrl.u32 %v4218_v10, 16  ;;  %v10462_v12 = vsub.s32 32, %v4310_v26  ;;  %v14293_v63 = vld [vmem:[#allocation36_spill] sm:$0xff] }
 0x1f1   :  { %v4231_v27 = vadd.s32 %v4229_v22, %v4227_v43  ;;  %v4180_v16 = vsel %vm4174_vm7, %v4177_v13, %v4179_v39  ;;  %v10466_v24 = vadd.s32 %v4210_v44, %v4201_v35  ;;  %v10468_v4 = vadd.s32 %v4226_v34, %v4222_v2 }
 0x1f2   :  { %v4303_v5 = vand.u32 8388607, %v14076_v55  ;;  %vm7799_vm11 = vcmp.lt.s32.totalorder %v7798_v37, 0  ;;  %v10472_v51 = vshrl.u32 %v4308_v45, 5  ;;  %v4313_v47 = vshll.u32 %v14136_v19, %v4310_v26 }
 0x1f3   :  { %v4232_v59 = vadd.s32 %v4231_v27, %v4221_v56  ;;  %vm14101_vm15 = vweird.f32 %v14293_v63  ;;  %v4314_v10 = vshrl.u32 %v14261_v3, %v10462_v12  ;;  %v4316_v53 = vshll.u32 %v14261_v3, %v4310_v26 }
 0x1f4   :  { %v4317_v35 = vshrl.u32 %v14286_v1, %v10462_v12  ;;  %v4322_v2 = vshll.u32 %v14138_v52, %v4310_v26  ;;  %v3319_v13 = vsub.s32 0, %v10460_v36  ;;  %v4319_v49 = vshll.u32 %v14286_v1, %v4310_v26 }
 0x1f5   :  { %v4233_v42 = vadd.s32 %v4232_v59, %v4223_v20  ;;  %v4320_v40 = vshrl.u32 %v14138_v52, %v10462_v12  ;;  %v4234_v45 = vmul.u32 %v10378_v50, %v4180_v16  ;;  %vm4236_vm14 = vc.u32 %v10466_v24, %v10468_v4 }
 0x1f6   :  { %v4323_v39 = vshrl.u32 %v14287_v23, %v10462_v12  ;;  %v4325_v15 = vshll.u32 %v14287_v23, %v4310_v26  ;;  %v4095_v34 = vsel %vm7799_vm11, 0, %v7798_v37  ;;  %v4304_v32 = vor.u32 8388608, %v4303_v5 }
 0x1f7   :  { %v4237_v62 = vadd.s32 1, %v4233_v42  ;;  %v4326_v56 = vshrl.u32 %v14288_v21, %v10462_v12  ;;  %v10495_v43 = vor.u32 %v4314_v10, %v4313_v47  ;;  %v10497_v44 = vor.u32 %v4317_v35, %v4316_v53 }
 0x1f8   :  { %v4324_v50 = vor.u32 %v4323_v39, %v4322_v2  ;;  %vm4331_vm0 = vcmp.lt.s32.totalorder %v10472_v51, 4  ;;  %v10500_v20 = vor.u32 %v4320_v40, %v4319_v49  ;;  %vm4328_vm7 = vcmp.lt.s32.totalorder %v10472_v51, 1 }
 0x1f9   :  { %v4238_v22 = vsel %vm4236_vm14, %v4237_v62, %v4233_v42  ;;  %v4327_v27 = vor.u32 %v4326_v56, %v4325_v15  ;;  %v3204_v37 = vadd.s32 3, %v10423_v6  ;;  %vm3318_vm6 = vcmp.lt.s32.totalorder %v10460_v36, 0 }
 0x1fa   :  { %v4239_v26 = vadd.s32 %v4238_v22, %v4234_v45  ;;  %vm4330_vm13 = vcmp.lt.s32.totalorder %v10472_v51, 3  ;;  %v3058_v16 = vsel %vm3051_vm3, %v10440_v58, %v10433_v61  ;;  %v3192_v5 = vadd.f32 -0.4999988, %v3191_v30 }
 0x1fb   :  { %v3199_v59 = vadd.f32 -0.16666654, %v3198_v41  ;;  %v4337_v47 = vsel %vm4331_vm0, %v4324_v50, 920167782  ;;  %v4100_v10 = vsub.s32 4294967266, %v4095_v34  ;;  %vm4329_vm12 = vcmp.lt.s32.totalorder %v10472_v51, 2 }
 0x1fc   :  { %v4240_v53 = vadd.s32 536870912, %v4239_v26  ;;  %v4336_v35 = vsel %vm4328_vm7, %v10495_v43, %v10497_v44  ;;  %v3320_v2 = vsel %vm3318_vm6, %v3319_v13, %v10460_v36  ;;  %v4338_v33 = vsel %vm4330_vm13, %v10500_v20, %v4337_v47 }
 0x1fd   :  { %v4341_v61 = vsel %vm4331_vm0, %v4327_v27, 1326507024  ;;  %v10523_v58 = vshll.u32 %v4304_v32, 8  ;;  %v4080_v30 = vadd.s32 %v10281_v18, %v10279_v14  ;;  %v4096_v41 = vsub.s32 32, %v4095_v34 }
 0x1fe   :  { %v10527_v42 = vshrl.u32 %v4240_v53, 30  ;;  %v4340_v13 = vsel %vm4328_vm7, %v10497_v44, %v10500_v20  ;;  %v10535_v49 = vsel %vm14101_vm15, nan, %v3058_v16  ;;  %v3193_v40 = vmul.f32 %v3192_v5, %v10382_v9 }
 0x1ff   :  { %14294 = vst [vmem:[#allocation37_spill] sm:$0xff] %v10535_v49  ;;  %v4339_v45 = vsel %vm4329_vm12, %v4336_v35, %v4338_v33  ;;  %v4342_v14 = vsel %vm4330_vm13, %v4324_v50, %v4341_v61  ;;  %v3200_v18 = vmul.f32 %v3199_v59, %v10382_v9  ;;  %v10543_v39 = vand.u32 3, %v3204_v37 }
 0x200   :  { %v4101_v15 = vadd.s32 127, %v4100_v10  ;;  %v4242_v62 = vshll.u32 %v10527_v42, 30  ;;  %v3321_v32 = vclz %v3320_v2  ;;  %v4343_v56 = vsel %vm4329_vm12, %v4340_v13, %v4342_v14 }
 0x201   :  { %v4345_v22 = vand.u32 65535, %v10523_v58  ;;  %v4346_v27 = vshrl.u32 %v10523_v58, 16  ;;  %v4097_v16 = vshll.u32 %v10394_v17, %v4095_v34  ;;  %v4098_v5 = vshrl.u32 %v4080_v30, %v4096_v41 }
 0x202   :  { %v10551_v47 = vsub.s32 %v4239_v26, %v4242_v62  ;;  %v4370_v50 = vshrl.u32 %v4339_v45, 16  ;;  %v10553_v9 = vadd.f32 1.0, %v3193_v40  ;;  %v10557_v37 = vadd.s32 %v10302_v57, %v10297_v31 }
 0x203   :  { %v4347_v59 = vand.u32 65535, %v4343_v56  ;;  %v4348_v10 = vshrl.u32 %v4343_v56, 16  ;;  %v3201_v53 = vadd.f32 1.0, %v3200_v18  ;;  %v4102_v35 = vshll.u32 %v4101_v15, 23 }
 0x204   :  { %14295 = vst [vmem:[#allocation59_spill] sm:$0xff] %v10553_v9  ;;  %vm4244_vm5 = vcmp.lt.s32.totalorder %v10551_v47, 0  ;;  %v4245_v2 = vsub.s32 0, %v10551_v47  ;;  %v7783_v33 = vadd.s32 4294967294, %v3321_v32  ;;  %v4099_v61 = vor.u32 %v4098_v5, %v4097_v16 }
 0x205   :  { %v4349_v17 = vmul.u32 %v4347_v59, %v4345_v22  ;;  %v4350_v34 = vmul.u32 %v4348_v10, %v4345_v22  ;;  %v10561_v26 = vmul.u32 %v4347_v59, %v4346_v27  ;;  %v4369_v41 = vand.u32 65535, %v4339_v45 }
 0x206   :  { %v4246_v30 = vsel %vm4244_vm5, %v4245_v2, %v10551_v47  ;;  %v10564_v13 = vmul.u32 %v4370_v50, %v4345_v22  ;;  %v4352_v57 = vmul.u32 %v4348_v10, %v4346_v27  ;;  %v10568_v18 = vmul.f32 %v3201_v53, %v10369_v7 }
 0x207   :  { %v4247_v31 = vclz %v4246_v30  ;;  %v4353_v40 = vshll.u32 %v4350_v34, 16  ;;  %v4355_v14 = vshll.u32 %v10561_v26, 16  ;;  %v14079_v15 = vxor.u32 2147483648, %v10553_v9 }
 0x208   :  { %14296 = vst [vmem:[#allocation60_spill] sm:$0xff] %v10568_v18  ;;  %v4103_v32 = vor.u32 4788187, %v4102_v35  ;;  %vm3210_vm10 = vcmp.eq.s32.totalorder %v10543_v39, 2  ;;  %vm7784_vm8 = vcmp.lt.s32.totalorder %v7783_v33, 0  ;;  %vm3207_vm11 = vcmp.eq.s32.totalorder %v10543_v39, 0 }
 0x209   :  { %v7801_v56 = vadd.s32 4294967294, %v4247_v31  ;;  %vm4357_vm3 = vc.u32 %v4349_v17, %v4353_v40  ;;  %v4359_v45 = vadd.s32 %v4353_v40, %v4349_v17  ;;  %v4371_v5 = vmul.u32 %v4369_v41, %v4345_v22 }
 0x20a   :  { %v4358_v16 = vsel %vm4357_vm3, 1, %v14134_v0  ;;  %v10575_v59 = vmul.u32 %v4369_v41, %v4346_v27  ;;  %v4375_v7 = vshll.u32 %v10564_v13, 16  ;;  %v4106_v10 = vcvt.s32.f32 %v4099_v61  ;;  %v14297_v41 = vld [vmem:[#allocation35_spill] sm:$0xff] }
 0x20b   :  { %vm7802_vm14 = vcmp.lt.s32.totalorder %v7801_v56, 0  ;;  %v4360_v53 = vadd.s32 %v4358_v16, %v4352_v57  ;;  %vm4361_vm6 = vc.u32 %v4359_v45, %v4355_v14  ;;  %v4104_v35 = vand.u32 2147483647, %v4103_v32 }
 0x20c   :  { %v4250_v2 = vsel %vm7802_vm14, 0, %v7801_v56  ;;  %v4362_v30 = vsel %vm4361_vm6, 1, %v14134_v0  ;;  %v4374_v31 = vmul.u32 %v4370_v50, %v4346_v27  ;;  %vm3206_vm5 = vcmp.lt.s32.totalorder %v10543_v39, 2 }
 0x20d   :  { %v14080_v17 = vxor.u32 2147483648, %v10568_v18  ;;  %v4255_v40 = vsub.s32 4294967266, %v4250_v2  ;;  %v4354_v55 = vshrl.u32 %v4350_v34, 16  ;;  %v4364_v22 = vadd.s32 %v4362_v30, %v4360_v53  ;;  %v14298_v34 = vld [vmem:[#allocation34_spill] sm:$0xff]  ;;  %v14299_v30 = vld [vmem:[#allocation39_spill] sm:$0xff] }
 0x20e   :  { %vm3217_vm3 = vcmp.lt.s32.totalorder %v14297_v41, 0  ;;  %v4235_v61 = vadd.s32 %v10468_v4, %v10466_v24  ;;  %v4251_v11 = vsub.s32 32, %v4250_v2  ;;  %v4377_v57 = vshll.u32 %v10575_v59, 16 }
 0x20f   :  { %vm4379_vm2 = vc.u32 %v4371_v5, %v4375_v7  ;;  %v10586_v14 = vsel %vm7784_vm8, 0, %v7783_v33  ;;  %v4256_v27 = vadd.s32 127, %v4255_v40  ;;  %v4312_v50 = vshrl.u32 %v14136_v19, %v10462_v12 }
 0x210   :  { %v4380_v32 = vsel %vm4379_vm2, 1, %v14134_v0  ;;  %vm3988_vm14 = vcmp.lt.s32.totalorder %v14298_v34, 0  ;;  %v4107_v56 = vmul.f32 %v4106_v10, %v4104_v35  ;;  %v4333_v24 = vsel %vm4331_vm0, %v10500_v20, 2102212464 }
 0x211   :  { %v4381_v4 = vadd.s32 %v4375_v7, %v4371_v5  ;;  %v4382_v45 = vadd.s32 %v4380_v32, %v4374_v31  ;;  %vm14087_vm6 = vweird.f32 %v14282_v54  ;;  %v4356_v33 = vshrl.u32 %v10561_v26, 16 }
 0x212   :  { %v4365_v16 = vadd.s32 %v4364_v22, %v4354_v55  ;;  %v4376_v53 = vshrl.u32 %v10564_v13, 16  ;;  %v4454_v12 = vand.u32 2139095040, %v14299_v30  ;;  %v14300_v40 = vand.u32 2147483647, %v14297_v41 }
 0x213   :  { %v4252_v10 = vshll.u32 %v10551_v47, %v4250_v2  ;;  %v4253_v20 = vshrl.u32 %v4235_v61, %v4251_v11  ;;  %v4257_v5 = vshll.u32 %v4256_v27, 23  ;;  %vm4383_vm0 = vc.u32 %v4381_v4, %v4377_v57 }
 0x214   :  { %vm10601_vm2 = vcmp.le.f32.partialorder %v14300_v40, 0.7853982  ;;  %v4332_v26 = vsel %vm4328_vm7, %v4312_v50, %v10495_v43  ;;  %v4334_v55 = vsel %vm4330_vm13, %v10497_v44, %v4333_v24  ;;  %v4384_v13 = vsel %vm4383_vm0, 1, %v14134_v0 }
 0x215   :  { %v4455_v7 = vshrl.u32 %v4454_v12, 23  ;;  %v3212_v47 = vsel %vm3210_vm10, %v14079_v15, %v10568_v18  ;;  %v3329_v11 = vsub.s32 4294967266, %v10586_v14  ;;  %v4378_v35 = vshrl.u32 %v10575_v59, 16 }
 0x216   :  { %v4386_v2 = vadd.s32 %v4384_v13, %v4382_v45  ;;  %v3209_v43 = vsel %vm3207_vm11, %v10553_v9, %v14080_v17  ;;  %v10625_v44 = vadd.s32 %v4365_v16, %v4356_v33  ;;  %v10627_v31 = vadd.s32 %v4381_v4, %v4377_v57  ;;  %v14304_v45 = vld [vmem:[#allocation44_spill] sm:$0xff] }
 0x217   :  { %v7806_v22 = vadd.s32 4294967169, %v4455_v7  ;;  %v4254_v61 = vor.u32 %v4253_v20, %v4252_v10  ;;  %v4258_v27 = vor.u32 4788187, %v4257_v5  ;;  %v4335_v50 = vsel %vm4329_vm12, %v4332_v26, %v4334_v55 }
 0x218   :  { %v4387_v32 = vadd.s32 %v4386_v2, %v4376_v53  ;;  %v14303_v59 = vsub.s32 4, %v10410_v28  ;;  %v10637_v12 = vand.u32 3, %v14304_v45  ;;  %v4108_v33 = vxor.u32 2147483648, %v4107_v56 }
 0x219   :  { %v4461_v16 = vadd.s32 1, %v7806_v22  ;;  %v3213_v57 = vsel %vm3206_vm5, %v3209_v43, %v3212_v47  ;;  %v3325_v4 = vsub.s32 32, %v10586_v14  ;;  %v3330_v40 = vadd.s32 127, %v3329_v11  ;;  %v14310_v11 = vld [vmem:[#allocation58_spill] sm:$0xff] }
 0x21a   :  { %v3340_v24 = vsel %vm3217_vm3, %v14303_v59, %v10410_v28  ;;  %v4388_v51 = vadd.s32 %v4387_v32, %v4378_v35  ;;  %v4389_v53 = vmul.u32 %v10523_v58, %v4335_v50  ;;  %vm4391_vm7 = vc.u32 %v10625_v44, %v10627_v31 }
 0x21b   :  { %v14081_v10 = vand.u32 2147483647, %v14299_v30  ;;  %vm4462_vm13 = vcmp.gt.s32.totalorder %v4461_v16, 0  ;;  %v4259_v28 = vand.u32 2147483647, %v4258_v27  ;;  %v4261_v20 = vcvt.s32.f32 %v4254_v61 }
 0x21c   :  { %v4392_v5 = vadd.s32 1, %v4388_v51  ;;  %v4463_v26 = vsel %vm4462_vm13, %v4461_v16, 0  ;;  %v10648_v39 = vsel %vm10601_vm2, 0, %v3340_v24  ;;  %v14306_v55 = vand.u32 2147483647, %v14298_v34 }
 0x21d   :  { %14305 = vst [vmem:[#allocation35_spill] sm:$0xff] %v10648_v39  ;;  %v4109_v58 = vsel %vm3988_vm14, %v4108_v33, %v4107_v56  ;;  %v4465_v7 = vand.u32 31, %v4463_v26  ;;  %v10660_v47 = vsel %vm14087_vm6, nan, %v3213_v57  ;;  %vm3516_vm10 = vcmp.eq.s32.totalorder %v10637_v12, 0 }
 0x21e   :  { %vm10652_vm12 = vcmp.le.f32.partialorder %v14306_v55, 0.7853982  ;;  %14309 = vst [vmem:[#allocation34_spill] sm:$0xff] %v10660_v47  ;;  %v10664_v35 = vand.u32 3, %v14310_v11  ;;  %v4393_v2 = vsel %vm4391_vm7, %v4392_v5, %v4388_v51  ;;  %v3326_v43 = vshll.u32 %v10460_v36, %v10586_v14  ;;  %v14313_v55 = vld [vmem:[#allocation56_spill] sm:$0xff] }
 0x21f   :  { %v3327_v22 = vshrl.u32 %v10557_v37, %v3325_v4  ;;  %vm3519_vm8 = vcmp.eq.s32.totalorder %v10637_v12, 2  ;;  %v4394_v61 = vadd.s32 %v4393_v2, %v4389_v53  ;;  %v10670_v56 = vsub.s32 32, %v4465_v7 }
 0x220   :  { %v3331_v27 = vshll.u32 %v3330_v40, 23  ;;  %v10675_v50 = vsel %vm10652_vm12, %v14298_v34, %v4109_v58  ;;  %v4262_v32 = vmul.f32 %v4261_v20, %v4259_v28  ;;  %v4458_v59 = vand.u32 8388607, %v14081_v10  ;;  %v14311_v20 = vld [vmem:[#allocation57_spill] sm:$0xff] }
 0x221   :  { %v4395_v24 = vadd.s32 536870912, %v4394_v61  ;;  %v4468_v36 = vshll.u32 %v14136_v19, %v4465_v7  ;;  %v4471_v37 = vshll.u32 %v14261_v3, %v4465_v7  ;;  %v4474_v14 = vshll.u32 %v14286_v1, %v4465_v7 }
 0x222   :  { %vm3515_vm11 = vcmp.lt.s32.totalorder %v10637_v12, 2  ;;  %v4469_v45 = vshrl.u32 %v14261_v3, %v10670_v56  ;;  %v4477_v33 = vshll.u32 %v14138_v52, %v4465_v7  ;;  %v4478_v16 = vshrl.u32 %v14287_v23, %v10670_v56 }
 0x223   :  { %v4480_v57 = vshll.u32 %v14287_v23, %v4465_v7  ;;  %v10689_v4 = vshrl.u32 %v4395_v24, 30  ;;  %v4472_v40 = vshrl.u32 %v14286_v1, %v10670_v56  ;;  %v4475_v51 = vshrl.u32 %v14138_v52, %v10670_v56 }
 0x224   :  { %v4481_v53 = vshrl.u32 %v14288_v21, %v10670_v56  ;;  %v10697_v28 = vor.u32 %v3327_v22, %v3326_v43  ;;  %v14312_v5 = vxor.u32 2147483648, %v14311_v20  ;;  %v10706_v7 = vmul.f32 %v10675_v50, %v10675_v50 }
 0x225   :  { %v10708_v11 = vshrl.u32 %v4463_v26, 5  ;;  %v10710_v2 = vor.u32 4788187, %v3331_v27  ;;  %vm4143_vm5 = vcmp.lt.s32.totalorder %v9806_v8, 0  ;;  %v4263_v24 = vxor.u32 2147483648, %v4262_v32 }
 0x226   :  { %v3518_v58 = vsel %vm3516_vm10, %v14313_v55, %v14312_v5  ;;  %v4397_v43 = vshll.u32 %v10689_v4, 30  ;;  %v14314_v22 = vand.u32 2147483647, %v9806_v8  ;;  %v4459_v5 = vor.u32 8388608, %v4458_v59 }
 0x227   :  { %v4479_v17 = vor.u32 %v4478_v16, %v4477_v33  ;;  %v4482_v10 = vor.u32 %v4481_v53, %v4480_v57  ;;  %v10722_v26 = vor.u32 %v4469_v45, %v4468_v36  ;;  %v10724_v27 = vor.u32 %v4472_v40, %v4471_v37 }
 0x228   :  { %vm10716_vm0 = vcmp.le.f32.partialorder %v14314_v22, 0.7853982  ;;  %v10720_v21 = vsub.s32 %v4394_v61, %v4397_v43  ;;  %v10726_v23 = vor.u32 %v4475_v51, %v4474_v14  ;;  %v4115_v52 = vmul.f32 -0.001358992, %v10706_v7 }
 0x229   :  { %v4122_v1 = vmul.f32 -0.00019511016, %v10706_v7  ;;  %vm4483_vm7 = vcmp.lt.s32.totalorder %v10708_v11, 1  ;;  %vm4486_vm13 = vcmp.lt.s32.totalorder %v10708_v11, 4  ;;  %v4264_v59 = vsel %vm4143_vm5, %v4263_v24, %v4262_v32 }
 0x22a   :  { %vm4399_vm10 = vcmp.lt.s32.totalorder %v10720_v21, 0  ;;  %v4400_v61 = vsub.s32 0, %v10720_v21  ;;  %vm4485_vm1 = vcmp.lt.s32.totalorder %v10708_v11, 3  ;;  %v14317_v36 = vxor.u32 2147483648, %v14313_v55 }
 0x22b   :  { %v4492_v14 = vsel %vm4486_vm13, %v4479_v17, 920167782  ;;  %v4496_v45 = vsel %vm4486_vm13, %v4482_v10, 1326507024  ;;  %v10746_v33 = vshll.u32 %v4459_v5, 8  ;;  %vm4484_vm6 = vcmp.lt.s32.totalorder %v10708_v11, 2 }
 0x22c   :  { %v3521_v37 = vsel %vm3519_vm8, %v14317_v36, %v14311_v20  ;;  %v4401_v32 = vsel %vm4399_vm10, %v4400_v61, %v10720_v21  ;;  %v4491_v16 = vsel %vm4483_vm7, %v10722_v26, %v10724_v27  ;;  %v4495_v57 = vsel %vm4483_vm7, %v10724_v27, %v10726_v23 }
 0x22d   :  { %v10761_v10 = vsel %vm10716_vm0, %v9806_v8, %v4264_v59  ;;  %v4402_v40 = vclz %v4401_v32  ;;  %v4493_v51 = vsel %vm4485_vm1, %v10726_v23, %v4492_v14  ;;  %v4497_v53 = vsel %vm4485_vm1, %v4479_v17, %v4496_v45 }
 0x22e   :  { %v10772_v24 = vsel %vm3515_vm11, %v3518_v58, %v3521_v37  ;;  %v4110_v43 = vsub.s32 4, %v10346_v48  ;;  %v4116_v22 = vadd.f32 0.041655596, %v4115_v52  ;;  %v4494_v59 = vsel %vm4484_vm6, %v4491_v16, %v4493_v51 }
 0x22f   :  { %v7804_v5 = vadd.s32 4294967294, %v4402_v40  ;;  %v4498_v61 = vsel %vm4484_vm6, %v4495_v57, %v4497_v53  ;;  %v4123_v36 = vadd.f32 0.008332121, %v4122_v1  ;;  %v10781_v17 = vmul.f32 %v10761_v10, %v10761_v10 }
 0x230   :  { %v4390_v12 = vadd.s32 %v10627_v31, %v10625_v44  ;;  %v4502_v58 = vand.u32 65535, %v4498_v61  ;;  %v4500_v37 = vand.u32 65535, %v10746_v33  ;;  %v4501_v52 = vshrl.u32 %v10746_v33, 16 }
 0x231   :  { %vm7805_vm8 = vcmp.lt.s32.totalorder %v7804_v5, 0  ;;  %v4503_v14 = vshrl.u32 %v4498_v61, 16  ;;  %v10790_v45 = vsel %vm3988_vm14, %v4110_v43, %v10346_v48  ;;  %v4524_v32 = vand.u32 65535, %v4494_v59 }
 0x232   :  { %v4405_v1 = vsel %vm7805_vm8, 0, %v7804_v5  ;;  %v4525_v16 = vshrl.u32 %v4494_v59, 16  ;;  %v10793_v57 = vmul.f32 %v4116_v22, %v10706_v7  ;;  %v4124_v51 = vmul.f32 %v4123_v36, %v10706_v7 }
 0x233   :  { %v4406_v40 = vsub.s32 32, %v4405_v1  ;;  %v4407_v44 = vshll.u32 %v10720_v21, %v4405_v1  ;;  %v4410_v31 = vsub.s32 4294967266, %v4405_v1  ;;  %v4270_v53 = vmul.f32 -0.001358992, %v10781_v17 }
 0x234   :  { %v4277_v61 = vmul.f32 -0.00019511016, %v10781_v17  ;;  %v4504_v55 = vmul.u32 %v4502_v58, %v4500_v37  ;;  %v4505_v43 = vmul.u32 %v4503_v14, %v4500_v37  ;;  %v4506_v5 = vmul.u32 %v4502_v58, %v4501_v52 }
 0x235   :  { %v4408_v20 = vshrl.u32 %v4390_v12, %v4406_v40  ;;  %v4411_v48 = vadd.s32 127, %v4410_v31  ;;  %vm4298_vm14 = vcmp.lt.s32.totalorder %v14290_v38, 0  ;;  %v4467_v22 = vshrl.u32 %v14136_v19, %v10670_v56 }
 0x236   :  { %v4507_v59 = vmul.u32 %v4503_v14, %v4501_v52  ;;  %v4527_v3 = vmul.u32 %v4525_v16, %v4500_v37  ;;  %v4528_v21 = vmul.u32 %v4524_v32, %v4501_v52  ;;  %v14318_v1 = vand.u32 2147483647, %v14290_v38 }
 0x237   :  { %v4409_v39 = vor.u32 %v4408_v20, %v4407_v44  ;;  %v4412_v47 = vshll.u32 %v4411_v48, 23  ;;  %v4508_v12 = vshll.u32 %v4505_v43, 16  ;;  %v4526_v40 = vmul.u32 %v4524_v32, %v4500_v37 }
 0x238   :  { %vm10804_vm11 = vcmp.le.f32.partialorder %v14318_v1, 0.7853982  ;;  %v4271_v31 = vadd.f32 0.041655596, %v4270_v53  ;;  %v4510_v58 = vshll.u32 %v4506_v5, 16  ;;  %v4529_v49 = vmul.u32 %v4525_v16, %v4501_v52 }
 0x239   :  { %v4530_v54 = vshll.u32 %v4527_v3, 16  ;;  %v4413_v29 = vor.u32 4788187, %v4412_v47  ;;  %v4416_v63 = vcvt.s32.f32 %v4409_v39  ;;  %vm4512_vm10 = vc.u32 %v4504_v55, %v4508_v12 }
 0x23a   :  { %v4514_v56 = vadd.s32 %v4508_v12, %v4504_v55  ;;  %v4278_v14 = vadd.f32 0.008332121, %v4277_v61  ;;  %v4509_v19 = vshrl.u32 %v4505_v43, 16  ;;  %v4513_v9 = vsel %vm4512_vm10, 1, %v14134_v0 }
 0x23b   :  { %v4532_v1 = vshll.u32 %v4528_v21, 16  ;;  %v4414_v18 = vand.u32 2147483647, %v4413_v29  ;;  %v4515_v46 = vadd.s32 %v4513_v9, %v4507_v59  ;;  %vm4534_vm15 = vc.u32 %v4526_v40, %v4530_v54 }
 0x23c   :  { %vm4516_vm8 = vc.u32 %v4514_v56, %v4510_v58  ;;  %v4488_v20 = vsel %vm4486_vm13, %v10726_v23, 2102212464  ;;  %v4535_v47 = vsel %vm4534_vm15, 1, %v14134_v0  ;;  %v4536_v39 = vadd.s32 %v4530_v54, %v4526_v40 }
 0x23d   :  { %v4517_v37 = vsel %vm4516_vm8, 1, %v14134_v0  ;;  %v4417_v52 = vmul.f32 %v4416_v63, %v4414_v18  ;;  %v4511_v55 = vshrl.u32 %v4506_v5, 16  ;;  %v4537_v16 = vadd.s32 %v4535_v47, %v4529_v49 }
 0x23e   :  { %v4519_v32 = vadd.s32 %v4517_v37, %v4515_v46  ;;  %v4279_v44 = vmul.f32 %v4278_v14, %v10781_v17  ;;  %v4487_v29 = vsel %vm4483_vm7, %v4467_v22, %v10722_v26  ;;  %v4531_v9 = vshrl.u32 %v4527_v3, 16 }
 0x23f   :  { %vm4538_vm10 = vc.u32 %v4536_v39, %v4532_v1  ;;  %v4418_v53 = vxor.u32 2147483648, %v4417_v52  ;;  %v4489_v23 = vsel %vm4485_vm1, %v10724_v27, %v4488_v20  ;;  %v4125_v63 = vadd.f32 -0.16666654, %v4124_v51 }
 0x240   :  { %v4520_v61 = vadd.s32 %v4519_v32, %v4509_v19  ;;  %v4539_v54 = vsel %vm4538_vm10, 1, %v14134_v0  ;;  %v4265_v46 = vsub.s32 4, %v10527_v42  ;;  %v4533_v49 = vshrl.u32 %v4528_v21, 16 }
 0x241   :  { %v4541_v18 = vadd.s32 %v4539_v54, %v4537_v16  ;;  %v4272_v48 = vmul.f32 %v4271_v31, %v10781_v17  ;;  %v4419_v26 = vsel %vm4298_vm14, %v4418_v53, %v4417_v52  ;;  %v10828_v43 = vadd.s32 %v4536_v39, %v4532_v1 }
 0x242   :  { %v10826_v3 = vadd.s32 %v4520_v61, %v4511_v55  ;;  %v4280_v5 = vadd.f32 -0.16666654, %v4279_v44  ;;  %v4422_v19 = vsel %vm10804_vm11, %v14290_v38, %v4419_v26  ;;  %v4490_v27 = vsel %vm4484_vm6, %v4487_v29, %v4489_v23 }
 0x243   :  { %v4542_v51 = vadd.s32 %v4541_v18, %v4531_v9  ;;  %vm3670_vm1 = vcmp.eq.s32.totalorder %v10664_v35, 0  ;;  %v10839_v22 = vsel %vm10652_vm12, 0, %v10790_v45  ;;  %v4420_v59 = vsub.s32 4, %v10689_v4 }
 0x244   :  { %v4424_v21 = vmul.f32 %v4422_v19, %v4422_v19  ;;  %v4118_v12 = vadd.f32 -0.4999988, %v10793_v57  ;;  %v4126_v40 = vmul.f32 %v4125_v63, %v10706_v7  ;;  %v4266_v11 = vsel %vm4143_vm5, %v4265_v46, %v10527_v42 }
 0x245   :  { %v4543_v31 = vadd.s32 %v4542_v51, %v4533_v49  ;;  %v4544_v14 = vmul.u32 %v10746_v33, %v4490_v27  ;;  %vm4546_vm15 = vc.u32 %v10826_v3, %v10828_v43  ;;  %v14321_v13 = vand.u32 2147483647, %v10710_v2 }
 0x246   :  { %v4425_v58 = vmul.f32 -0.001358992, %v4424_v21  ;;  %v4432_v56 = vmul.f32 -0.00019511016, %v4424_v21  ;;  %v14322_v45 = vcvt.s32.f32 %v10697_v28  ;;  %v4273_v57 = vadd.f32 -0.4999988, %v4272_v48 }
 0x247   :  { %v4281_v20 = vmul.f32 %v4280_v5, %v10781_v17  ;;  %v4547_v37 = vadd.s32 1, %v4543_v31  ;;  %v4130_v47 = vadd.s32 3, %v10839_v22  ;;  %v4421_v42 = vsel %vm4298_vm14, %v4420_v59, %v10689_v4 }
 0x248   :  { %v3336_v1 = vmul.f32 %v14322_v45, %v14321_v13  ;;  %v4426_v39 = vadd.f32 0.041655596, %v4425_v58  ;;  %v4433_v33 = vadd.f32 0.008332121, %v4432_v56  ;;  %v4119_v52 = vmul.f32 %v4118_v12, %v10706_v7 }
 0x249   :  { %v4127_v55 = vadd.f32 1.0, %v4126_v40  ;;  %v10862_v2 = vsel %vm10716_vm0, 0, %v4266_v11  ;;  %v4548_v28 = vsel %vm4546_vm15, %v4547_v37, %v4543_v31  ;;  %vm3673_vm6 = vcmp.eq.s32.totalorder %v10664_v35, 2 }
 0x24a   :  { %v4427_v32 = vmul.f32 %v4426_v39, %v4424_v21  ;;  %v4434_v16 = vmul.f32 %v4433_v33, %v4424_v21  ;;  %v4549_v44 = vadd.s32 %v4548_v28, %v4544_v14  ;;  %v3337_v29 = vxor.u32 2147483648, %v3336_v1 }
 0x24b   :  { %v4274_v9 = vmul.f32 %v4273_v57, %v10781_v17  ;;  %v4282_v53 = vadd.f32 1.0, %v4281_v20  ;;  %v10868_v4 = vsel %vm10804_vm11, 0, %v4421_v42  ;;  %v4285_v7 = vadd.s32 3, %v10862_v2 }
 0x24c   :  { %v4428_v23 = vadd.f32 -0.4999988, %v4427_v32  ;;  %v4435_v15 = vadd.f32 -0.16666654, %v4434_v16  ;;  %v4550_v61 = vadd.s32 536870912, %v4549_v44  ;;  %v14323_v54 = vxor.u32 2147483648, %v10364_v60 }
 0x24d   :  { %v10878_v46 = vadd.f32 1.0, %v4119_v52  ;;  %v10881_v17 = vmul.f32 %v4127_v55, %v10675_v50  ;;  %v4131_v36 = vand.u32 3, %v4130_v47  ;;  %v4440_v48 = vadd.s32 3, %v10868_v4 }
 0x24e   :  { %v10876_v63 = vsel %vm3670_vm1, %v10355_v25, %v14323_v54  ;;  %v4429_v49 = vmul.f32 %v4428_v23, %v4424_v21  ;;  %v4436_v18 = vmul.f32 %v4435_v15, %v4424_v21  ;;  %v4551_v26 = vshrl.u32 %v4550_v61, 30 }
 0x24f   :  { %v14324_v5 = vxor.u32 2147483648, %v10355_v25  ;;  %v10892_v51 = vand.u32 3, %v10423_v6  ;;  %v10894_v59 = vadd.f32 1.0, %v4274_v9  ;;  %v10897_v50 = vmul.f32 %v4282_v53, %v10761_v10 }
 0x250   :  { %v3338_v21 = vsel %vm3217_vm3, %v3337_v29, %v3336_v1  ;;  %v4286_v12 = vand.u32 3, %v4285_v7  ;;  %v4437_v40 = vadd.f32 1.0, %v4436_v18  ;;  %v4552_v11 = vshll.u32 %v4551_v26, 30 }
 0x251   :  { %v10889_v27 = vsel %vm3673_vm6, %v14324_v5, %v10364_v60  ;;  %vm4133_vm12 = vcmp.eq.s32.totalorder %v4131_v36, 0  ;;  %v4134_v25 = vxor.u32 2147483648, %v10881_v17  ;;  %v4137_v60 = vxor.u32 2147483648, %v10878_v46 }
 0x252   :  { %v10903_v31 = vadd.f32 1.0, %v4429_v49  ;;  %vm4136_vm5 = vcmp.eq.s32.totalorder %v4131_v36, 2  ;;  %v10905_v6 = vmul.f32 %v4437_v40, %v4422_v19  ;;  %v4441_v58 = vand.u32 3, %v4440_v48 }
 0x253   :  { %v4553_v56 = vsub.s32 %v4549_v44, %v4552_v11  ;;  %v10910_v10 = vsel %vm10601_vm2, %v14297_v41, %v3338_v21  ;;  %vm3669_vm3 = vcmp.lt.s32.totalorder %v10664_v35, 2  ;;  %vm4132_vm0 = vcmp.lt.s32.totalorder %v4131_v36, 2  ;;  %v14329_v11 = vld [vmem:[#allocation60_spill] sm:$0xff] }
 0x254   :  { %v4289_v14 = vxor.u32 2147483648, %v10897_v50  ;;  %v4292_v13 = vxor.u32 2147483648, %v10894_v59  ;;  %vm4288_vm7 = vcmp.eq.s32.totalorder %v4286_v12, 0  ;;  %vm4291_vm13 = vcmp.eq.s32.totalorder %v4286_v12, 2 }
 0x255   :  { %vm4554_vm14 = vcmp.lt.s32.totalorder %v4553_v56, 0  ;;  %v4555_v45 = vsub.s32 0, %v4553_v56  ;;  %vm3824_vm11 = vcmp.eq.s32.totalorder %v10892_v51, 0  ;;  %v4135_v62 = vsel %vm4133_vm12, %v10878_v46, %v4134_v25 }
 0x256   :  { %v4138_v19 = vsel %vm4136_vm5, %v4137_v60, %v10881_v17  ;;  %v4444_v1 = vxor.u32 2147483648, %v10905_v6  ;;  %v4447_v57 = vxor.u32 2147483648, %v10903_v31  ;;  %vm4287_vm2 = vcmp.lt.s32.totalorder %v4286_v12, 2 }
 0x257   :  { %vm4443_vm8 = vcmp.eq.s32.totalorder %v4441_v58, 0  ;;  %vm4446_vm10 = vcmp.eq.s32.totalorder %v4441_v58, 2  ;;  %v4556_v20 = vsel %vm4554_vm14, %v4555_v45, %v4553_v56  ;;  %v4290_v37 = vsel %vm4288_vm7, %v10894_v59, %v4289_v14 }
 0x258   :  { %v4293_v47 = vsel %vm4291_vm13, %v4292_v13, %v10897_v50  ;;  %v4557_v42 = vclz %v4556_v20  ;;  %v4575_v39 = vsub.s32 4, %v4551_v26  ;;  %v10933_v33 = vmul.f32 %v10910_v10, %v10910_v10 }
 0x259   :  { %vm3827_vm1 = vcmp.eq.s32.totalorder %v10892_v51, 2  ;;  %vm4129_vm15 = vweird.f32 %v14298_v34  ;;  %v4139_v52 = vsel %vm4132_vm0, %v4135_v62, %v4138_v19  ;;  %vm4442_vm6 = vcmp.lt.s32.totalorder %v4441_v58, 2 }
 0x25a   :  { %v4445_v55 = vsel %vm4443_vm8, %v10903_v31, %v4444_v1  ;;  %v4448_v28 = vsel %vm4446_vm10, %v4447_v57, %v10905_v6  ;;  %v7807_v32 = vadd.s32 4294967294, %v4557_v42  ;;  %v3344_v16 = vmul.f32 -0.001358992, %v10933_v33 }
 0x25b   :  { %vm4284_vm12 = vweird.f32 %v9806_v8  ;;  %v4294_v44 = vsel %vm4287_vm2, %v4290_v37, %v4293_v47  ;;  %vm4453_vm5 = vcmp.lt.s32.totalorder %v14299_v30, 0  ;;  %v10950_v29 = vsel %vm4129_vm15, nan, %v4139_v52 }
 0x25c   :  { %v4545_v9 = vadd.s32 %v10828_v43, %v10826_v3  ;;  %vm7808_vm0 = vcmp.lt.s32.totalorder %v7807_v32, 0  ;;  %v4576_v53 = vsel %vm4453_vm5, %v4575_v39, %v4551_v26  ;;  %vm4439_vm7 = vweird.f32 %v14290_v38  ;;  %v14356_v38 = vld [vmem:[#allocation43_spill] sm:$0xff] }
 0x25d   :  { %v4449_v7 = vsel %vm4442_vm6, %v4445_v55, %v4448_v28  ;;  %v14325_v23 = vand.u32 2147483647, %v14299_v30  ;;  %v4560_v61 = vsel %vm7808_vm0, 0, %v7807_v32  ;;  %v10965_v54 = vsel %vm4284_vm12, nan, %v4294_v44 }
 0x25e   :  { %v4561_v36 = vsub.s32 32, %v4560_v61  ;;  %v4562_v3 = vshll.u32 %v4553_v56, %v4560_v61  ;;  %v4565_v43 = vsub.s32 4294967266, %v4560_v61  ;;  %v3351_v49 = vmul.f32 -0.00019511016, %v10933_v33  ;;  %v14331_v56 = vld [vmem:[#allocation59_spill] sm:$0xff] }
 0x25f   :  { %vm10959_vm13 = vcmp.le.f32.partialorder %v14325_v23, 0.7853982  ;;  %v10971_v48 = vsel %vm2893_vm9, nan, %v10772_v24  ;;  %v10977_v26 = vsel %vm3669_vm3, %v10876_v63, %v10889_v27  ;;  %v10985_v21 = vsel %vm4439_vm7, nan, %v4449_v7 }
 0x260   :  { %v10981_v5 = vsel %vm10959_vm13, 0, %v4576_v53  ;;  %v4563_v12 = vshrl.u32 %v4545_v9, %v4561_v36  ;;  %v4566_v40 = vadd.s32 127, %v4565_v43  ;;  %7850 = vrcp.f32 %v10950_v29 }
 0x261   :  { %v10988_v24 = vadd.f32 0.041655596, %v3344_v16  ;;  %v14330_v58 = vxor.u32 2147483648, %v14329_v11  ;;  %v14332_v63 = vxor.u32 2147483648, %v14331_v56  ;;  %7852 = vrcp.f32 %v10965_v54 }
 0x262   :  { %v4564_v45 = vor.u32 %v4563_v12, %v4562_v3  ;;  %v4567_v62 = vshll.u32 %v4566_v40, 23  ;;  %v4750_v19 = vand.u32 3, %v10839_v22  ;;  %v4904_v20 = vand.u32 3, %v10862_v2 }
 0x263   :  { %v10995_v35 = vsel %vm3824_vm11, %v14331_v56, %v14330_v58  ;;  %v11002_v27 = vsel %vm3827_vm1, %v14332_v63, %v14329_v11  ;;  %v3352_v37 = vadd.f32 0.008332121, %v3351_v49  ;;  %v4595_v47 = vadd.s32 3, %v10981_v5 }
 0x264   :  { %v5058_v42 = vand.u32 3, %v10868_v4  ;;  %7854 = vrcp.f32 %v10985_v21  ;;  %v4568_v39 = vor.u32 4788187, %v4567_v62  ;;  %v4571_v52 = vcvt.s32.f32 %v4564_v45  ;;  %v14350_v45 = vld [vmem:[#allocation18_spill] sm:$0xff] }
 0x265   :  { %vm4751_vm9 = vcmp.lt.s32.totalorder %v4750_v19, 2  ;;  %vm4752_vm3 = vcmp.eq.s32.totalorder %v4750_v19, 0  ;;  %vm4755_vm14 = vcmp.eq.s32.totalorder %v4750_v19, 2  ;;  %vm4905_vm11 = vcmp.lt.s32.totalorder %v4904_v20, 2 }
 0x266   :  { %v4754_v55 = vsel %vm4752_vm3, %v10878_v46, %v4134_v25  ;;  %vm4906_vm2 = vcmp.eq.s32.totalorder %v4904_v20, 0  ;;  %v7851_v22 = vpop.eup %7850  ;;  %v4569_v2 = vand.u32 2147483647, %v4568_v39  ;;  %v4757_v28 = vsel %vm4755_vm14, %v4137_v60, %v10881_v17 }
 0x267   :  { %v4908_v4 = vsel %vm4906_vm2, %v10894_v59, %v4289_v14  ;;  %vm4909_vm8 = vcmp.eq.s32.totalorder %v4904_v20, 2  ;;  %v11019_v32 = vpop.eup %7852  ;;  %v4758_v16 = vsel %vm4751_vm9, %v4754_v55, %v4757_v28  ;;  %vm5060_vm10 = vcmp.eq.s32.totalorder %v5058_v42, 0 }
 0x268   :  { %v4911_v25 = vsel %vm4909_vm8, %v4292_v13, %v10897_v50  ;;  %v5231_v44 = vand.u32 2147483647, %v10950_v29  ;;  %v4572_v9 = vmul.f32 %v4571_v52, %v4569_v2  ;;  %vm5059_vm1 = vcmp.lt.s32.totalorder %v5058_v42, 2 }
 0x269   :  { %v4912_v53 = vsel %vm4905_vm11, %v4908_v4, %v4911_v25  ;;  %v5062_v46 = vsel %vm5060_vm10, %v10903_v31, %v4444_v1  ;;  %v11031_v60 = vmul.f32 %v3352_v37, %v10933_v33  ;;  %v11033_v14 = vand.u32 3, %v4595_v47 }
 0x26a   :  { %v11028_v17 = vpop.eup %7854  ;;  %vm5063_vm6 = vcmp.eq.s32.totalorder %v5058_v42, 2  ;;  %vm5227_vm0 = vweird.f32 %v10950_v29  ;;  %v4573_v59 = vxor.u32 2147483648, %v4572_v9  ;;  %v4759_v50 = vsel %vm4129_vm15, nan, %v4758_v16 }
 0x26b   :  { %v5065_v13 = vsel %vm5063_vm6, %v4447_v57, %v10905_v6  ;;  %v5223_v1 = vmul.f32 %v7851_v22, %v10950_v29  ;;  %v4913_v7 = vsel %vm4284_vm12, nan, %v4912_v53  ;;  %vm5228_vm9 = vweird.f32 %v7851_v22 }
 0x26c   :  { %v5066_v23 = vsel %vm5059_vm1, %v5062_v46, %v5065_v13  ;;  %v5233_v61 = vand.u32 2147483648, %v10950_v29  ;;  %vm3823_vm3 = vcmp.lt.s32.totalorder %v10892_v51, 2  ;;  %v4574_v36 = vsel %vm4453_vm5, %v4573_v59, %v4572_v9  ;;  %vm11067_vm5 = vmor %vm5227_vm0, %vm5228_vm9 }
 0x26d   :  { %v5224_v34 = vsub.f32 1.0, %v5223_v1  ;;  %vm11048_vm15 = vcmp.eq.f32.partialorder %v5231_v44, 8.507059e+37  ;;  %v5238_v31 = vmul.f32 %v11019_v32, %v10965_v54  ;;  %v11057_v8 = vsel %vm10959_vm13, %v14299_v30, %v4574_v36 }
 0x26e   :  { %v5234_v6 = vor.u32 1.1754944e-38, %v5233_v61  ;;  %vm5242_vm12 = vweird.f32 %v10965_v54  ;;  %vm5243_vm14 = vweird.f32 %v11019_v32  ;;  %v4579_v57 = vmul.f32 %v11057_v8, %v11057_v8 }
 0x26f   :  { %v5225_v43 = vmul.f32 %v7851_v22, %v5224_v34  ;;  %v5239_v49 = vsub.f32 1.0, %v5238_v31  ;;  %v5246_v18 = vand.u32 2147483647, %v10965_v54  ;;  %v5248_v15 = vand.u32 2147483648, %v10965_v54  ;;  %vm11079_vm2 = vmor %vm5242_vm12, %vm5243_vm14  ;;  %v14346_v34 = vld [vmem:[#allocation38_spill] sm:$0xff] }
 0x270   :  { %v5253_v40 = vmul.f32 %v11028_v17, %v10985_v21  ;;  %vm5257_vm13 = vweird.f32 %v10985_v21  ;;  %vm5258_vm11 = vweird.f32 %v11028_v17  ;;  %v4580_v11 = vmul.f32 -0.001358992, %v4579_v57 }
 0x271   :  { %v4587_v58 = vmul.f32 -0.00019511016, %v4579_v57  ;;  %v5226_v56 = vadd.f32 %v7851_v22, %v5225_v43  ;;  %v5240_v63 = vmul.f32 %v11019_v32, %v5239_v49  ;;  %vm11083_vm8 = vcmp.eq.f32.partialorder %v5246_v18, 8.507059e+37  ;;  %v14349_v49 = vld [vmem:[#allocation37_spill] sm:$0xff] }
 0x272   :  { %v5249_v62 = vor.u32 1.1754944e-38, %v5248_v15  ;;  %v5254_v19 = vsub.f32 1.0, %v5253_v40  ;;  %v5261_v20 = vand.u32 2147483647, %v10985_v21  ;;  %v4581_v37 = vadd.f32 0.041655596, %v4580_v11 }
 0x273   :  { %v4588_v47 = vadd.f32 0.008332121, %v4587_v58  ;;  %v5230_v42 = vsel %vm11067_vm5, %v7851_v22, %v5226_v56  ;;  %v5241_v39 = vadd.f32 %v11019_v32, %v5240_v63  ;;  %v5067_v54 = vsel %vm4439_vm7, nan, %v5066_v23  ;;  %vm11106_vm7 = vmor %vm5257_vm13, %vm5258_vm11  ;;  %v14345_v23 = vld [vmem:[#allocation52_spill] sm:$0xff] }
 0x274   :  { %v5235_v52 = vsel %vm11048_vm15, %v5234_v6, %v5230_v42  ;;  %v5255_v55 = vmul.f32 %v11028_v17, %v5254_v19  ;;  %v5263_v2 = vand.u32 2147483648, %v10985_v21  ;;  %v4582_v28 = vmul.f32 %v4581_v37, %v4579_v57  ;;  %v14352_v42 = vld [vmem:[#allocation34_spill] sm:$0xff] }
 0x275   :  { %v4589_v4 = vmul.f32 %v4588_v47, %v4579_v57  ;;  %v11097_v16 = vmul.f32 %v5235_v52, %v4759_v50  ;;  %v5245_v22 = vsel %vm11079_vm2, %v11019_v32, %v5241_v39  ;;  %vm5262_vm10 = vcmp.eq.f32.partialorder %v5261_v20, 8.507059e+37  ;;  %v14343_v50 = vld [vmem:[#allocation36_spill] sm:$0xff]  ;;  %v14351_v20 = vld [vmem:[#allocation53_spill] sm:$0xff] }
 0x276   :  { %v5250_v25 = vsel %vm11083_vm8, %v5249_v62, %v5245_v22  ;;  %v5256_v44 = vadd.f32 %v11028_v17, %v5255_v55  ;;  %v5264_v9 = vor.u32 1.1754944e-38, %v5263_v2  ;;  %v4583_v53 = vadd.f32 -0.4999988, %v4582_v28  ;;  %v14353_v28 = vld [vmem:[#allocation49_spill] sm:$0xff] }
 0x277   :  { %v4590_v46 = vadd.f32 -0.16666654, %v4589_v4  ;;  %v11113_v59 = vmul.f32 %v5250_v25, %v4913_v7  ;;  %v5282_v32 = vmul.f32 1.6, %v11097_v16  ;;  %v3346_v21 = vmul.f32 %v10988_v24, %v10933_v33  ;;  %v14355_v22 = vld [vmem:[#allocation45_spill] sm:$0xff]  ;;  %v14357_v25 = vld [vmem:[#allocation54_spill] sm:$0xff] }
 0x278   :  { %vm14344_vm1 = vweird.f32 %v14343_v50  ;;  %v3830_v1 = vsel %vm3823_vm3, %v10995_v35, %v11002_v27  ;;  %v5260_v7 = vsel %vm11106_vm7, %v11028_v17, %v5256_v44  ;;  %vm2528_vm6 = vcmp.eq.s32.totalorder %v14345_v23, 0  ;;  %v14347_v35 = vld [vmem:[#allocation16_spill] sm:$0xff] }
 0x279   :  { %v11121_v13 = vsel %vm14344_vm1, nan, %v10977_v26  ;;  %vm2531_vm0 = vcmp.eq.s32.totalorder %v14345_v23, 2  ;;  %v4584_v61 = vmul.f32 %v4583_v53, %v4579_v57  ;;  %v4591_v24 = vmul.f32 %v4590_v46, %v4579_v57 }
 0x27a   :  { %v5265_v36 = vsel %vm5262_vm10, %v5264_v9, %v5260_v7  ;;  %v5283_v3 = vmul.f32 %v5282_v32, %v14346_v34  ;;  %v3354_v26 = vadd.f32 -0.16666654, %v11031_v60  ;;  %v5284_v6 = vsub.f32 0.0, %v5282_v32  ;;  %v14358_v9 = vld [vmem:[#allocation35_spill] sm:$0xff]  ;;  %v14359_v32 = vld [vmem:[#allocation48_spill] sm:$0xff] }
 0x27b   :  { %v11134_v31 = vmul.f32 %v5265_v36, %v5067_v54  ;;  %v5303_v51 = vmul.f32 1.6, %v11113_v59  ;;  %vm14348_vm9 = vweird.f32 %v14347_v35  ;;  %v11141_v17 = vadd.f32 1.0, %v4584_v61 }
 0x27c   :  { %v11139_v27 = vsel %vm14348_vm9, nan, %v3830_v1  ;;  %v4592_v43 = vadd.f32 1.0, %v4591_v24  ;;  %vm4601_vm3 = vcmp.eq.s32.totalorder %v11033_v14, 2  ;;  %vm2527_vm15 = vcmp.lt.s32.totalorder %v14345_v23, 2  ;;  %v14361_v24 = vld [vmem:[#allocation50_spill] sm:$0xff] }
 0x27d   :  { %v5285_v57 = vmul.f32 %v5284_v6, %v10971_v48  ;;  %v5304_v60 = vmul.f32 %v5303_v51, %v14349_v49  ;;  %v5305_v18 = vsub.f32 0.0, %v5303_v51  ;;  %v5324_v12 = vmul.f32 1.6, %v11134_v31 }
 0x27e   :  { %v3347_v15 = vadd.f32 -0.4999988, %v3346_v21  ;;  %v11149_v40 = vmul.f32 %v4592_v43, %v11057_v8  ;;  %v4602_v11 = vxor.u32 2147483648, %v11141_v17  ;;  %v5286_v58 = vmul.f32 %v5283_v3, %v5283_v3  ;;  %v14360_v21 = vld [vmem:[#allocation55_spill] sm:$0xff] }
 0x27f   :  { %v3355_v56 = vmul.f32 %v3354_v26, %v10933_v33  ;;  %vm4598_vm12 = vcmp.eq.s32.totalorder %v11033_v14, 0  ;;  %v5287_v63 = vmul.f32 %v5285_v57, %v5285_v57  ;;  %v5306_v29 = vmul.f32 %v5305_v18, %v11121_v13  ;;  %v14363_v43 = vld [vmem:[#allocation47_spill] sm:$0xff] }
 0x280   :  { %vm14102_vm14 = vweird.f32 %v14350_v45  ;;  %vm4597_vm5 = vcmp.lt.s32.totalorder %v11033_v14, 2  ;;  %v4599_v62 = vxor.u32 2147483648, %v11149_v40  ;;  %v4603_v8 = vsel %vm4601_vm3, %v4602_v11, %v11149_v40 }
 0x281   :  { %v5326_v19 = vsub.f32 0.0, %v5324_v12  ;;  %v1913_v37 = vxor.u32 2147483648, %v14351_v20  ;;  %vm4594_vm13 = vweird.f32 %v14299_v30  ;;  %v5307_v47 = vmul.f32 %v5304_v60, %v5304_v60  ;;  %v14364_v60 = vld [vmem:[#allocation42_spill] sm:$0xff]  ;;  %v14381_v30 = vld [vmem:[#allocation51_spill] sm:$0xff] }
 0x282   :  { %v5325_v39 = vmul.f32 %v5324_v12, %v14352_v42  ;;  %v4600_v54 = vsel %vm4598_vm12, %v11141_v17, %v4599_v62  ;;  %v11167_v52 = vadd.f32 %v5287_v63, %v5286_v58  ;;  %v5308_v55 = vmul.f32 %v5306_v29, %v5306_v29 }
 0x283   :  { %v5327_v2 = vmul.f32 %v5326_v19, %v11139_v27  ;;  %v14354_v4 = vsub.f32 1.0, %v14353_v28  ;;  %v11175_v44 = vmul.f32 %v14357_v25, %v14356_v38  ;;  %v3359_v53 = vadd.s32 3, %v14358_v9 }
 0x284   :  { %v4604_v46 = vsel %vm4597_vm5, %v4600_v54, %v4603_v8  ;;  %v11180_v50 = vmul.f32 %v14360_v21, %v14359_v32  ;;  %v3348_v1 = vmul.f32 %v3347_v15, %v10933_v33  ;;  %v3356_v7 = vadd.f32 1.0, %v3355_v56 }
 0x285   :  { %v2539_v14 = vmul.f32 %v14355_v22, %v14354_v4  ;;  %v11185_v61 = vsel %vm4594_vm13, nan, %v4604_v46  ;;  %v2530_v36 = vsel %vm2528_vm6, %v14361_v24, %v1913_v37  ;;  %v14362_v3 = vxor.u32 2147483648, %v14361_v24 }
 0x286   :  { %7856 = vrcp.f32 %v11185_v61  ;;  %v5328_v33 = vmul.f32 %v5325_v39, %v5325_v39  ;;  %v5212_v6 = vand.u32 3, %v10981_v5  ;;  %v11200_v51 = vadd.f32 %v5308_v55, %v5307_v47 }
 0x287   :  { %v2533_v26 = vsel %vm2531_vm0, %v14362_v3, %v14351_v20  ;;  %7858 = vrsqrt.f32 %v11167_v52  ;;  %v5329_v35 = vmul.f32 %v5327_v2, %v5327_v2  ;;  %v11203_v57 = vadd.s32 3, %v14363_v43 }
 0x288   :  { %v2545_v18 = vand.u32 2147483647, %v14364_v60  ;;  %v2547_v12 = vand.u32 2147483648, %v14364_v60  ;;  %v3360_v15 = vand.u32 3, %v3359_v53  ;;  %v2534_v58 = vsel %vm2527_vm15, %v2530_v36, %v2533_v26 }
 0x289   :  { %v3349_v56 = vadd.f32 1.0, %v3348_v1  ;;  %v3357_v63 = vmul.f32 %v3356_v7, %v10910_v10  ;;  %7860 = vrsqrt.f32 %v11200_v51  ;;  %v11212_v5 = vadd.f32 %v14355_v22, %v2539_v14 }
 0x28a   :  { %v2560_v29 = vand.u32 2147483647, %v14356_v38  ;;  %v2562_v8 = vand.u32 2147483648, %v14356_v38  ;;  %v11216_v19 = vadd.f32 %v5329_v35, %v5328_v33  ;;  %vm2541_vm11 = vweird.f32 %v14364_v60  ;;  %v14367_v35 = vld [vmem:[#allocation41_spill] sm:$0xff] }
 0x28b   :  { %vm2542_vm2 = vweird.f32 %v14355_v22  ;;  %v2553_v23 = vsub.f32 1.0, %v11175_v44  ;;  %v2568_v47 = vsub.f32 1.0, %v11180_v50  ;;  %vm5214_vm8 = vcmp.eq.s32.totalorder %v5212_v6, 0 }
 0x28c   :  { %vm5217_vm7 = vcmp.eq.s32.totalorder %v5212_v6, 2  ;;  %v7857_v10 = vpop.eup %7856  ;;  %v11224_v39 = vsel %vm14102_vm14, nan, %v2534_v58  ;;  %vm3362_vm10 = vcmp.eq.s32.totalorder %v3360_v15, 0  ;;  %v3976_v54 = vand.u32 3, %v14358_v9 }
 0x28d   :  { %7862 = vrsqrt.f32 %v11216_v19  ;;  %v11228_v55 = vpop.eup %7858  ;;  %v3363_v2 = vxor.u32 2147483648, %v3357_v63  ;;  %vm3365_vm1 = vcmp.eq.s32.totalorder %v3360_v15, 2  ;;  %v3366_v28 = vxor.u32 2147483648, %v3349_v56 }
 0x28e   :  { %v5268_v4 = vmul.f32 %v7857_v10, %v11185_v61  ;;  %vm5213_vm6 = vcmp.lt.s32.totalorder %v5212_v6, 2  ;;  %v5216_v14 = vsel %vm5214_vm8, %v11141_v17, %v4599_v62  ;;  %v5219_v44 = vsel %vm5217_vm7, %v4602_v11, %v11149_v40 }
 0x28f   :  { %v5278_v53 = vand.u32 2147483648, %v11185_v61  ;;  %v11236_v46 = vpop.eup %7860  ;;  %vm2556_vm0 = vweird.f32 %v14356_v38  ;;  %vm5272_vm9 = vweird.f32 %v11185_v61  ;;  %vm5273_vm3 = vweird.f32 %v7857_v10 }
 0x290   :  { %v5269_v9 = vsub.f32 1.0, %v5268_v4  ;;  %v5276_v1 = vand.u32 2147483647, %v11185_v61  ;;  %vm3978_vm15 = vcmp.eq.s32.totalorder %v3976_v54, 0  ;;  %vm3981_vm12 = vcmp.eq.s32.totalorder %v3976_v54, 2  ;;  %vm11253_vm7 = vmor %vm5272_vm9, %vm5273_vm3 }
 0x291   :  { %v5290_v62 = vmul.f32 %v11228_v55, %v11167_v52  ;;  %v5311_v17 = vmul.f32 %v11236_v46, %v11200_v51  ;;  %7864 = vrcp.f32 %v11224_v39  ;;  %vm3361_vm5 = vcmp.lt.s32.totalorder %v3360_v15, 2 }
 0x292   :  { %v5220_v40 = vsel %vm5213_vm6, %v5216_v14, %v5219_v44  ;;  %v5270_v11 = vmul.f32 %v7857_v10, %v5269_v9  ;;  %v3364_v36 = vsel %vm3362_vm10, %v3349_v56, %v3363_v2  ;;  %v3367_v3 = vsel %vm3365_vm1, %v3366_v28, %v3357_v63 }
 0x293   :  { %v11247_v7 = vpop.eup %7862  ;;  %vm3977_vm8 = vcmp.lt.s32.totalorder %v3976_v54, 2  ;;  %v5279_v33 = vor.u32 1.1754944e-38, %v5278_v53  ;;  %vm1756_vm14 = vcmp.lt.s32.totalorder %v14367_v35, 2  ;;  %v3980_v43 = vsel %vm3978_vm15, %v3349_v56, %v3363_v2 }
 0x294   :  { %v3983_v6 = vsel %vm3981_vm12, %v3366_v28, %v3357_v63  ;;  %v5271_v58 = vadd.f32 %v7857_v10, %v5270_v11  ;;  %vm5277_vm6 = vcmp.eq.f32.partialorder %v5276_v1, 8.507059e+37  ;;  %v5221_v4 = vsel %vm4594_vm13, nan, %v5220_v40  ;;  %vm11273_vm13 = vmor %vm2541_vm11, %vm2542_vm2  ;;  %v14385_v11 = vld [vmem:[#allocation29_spill] sm:$0xff] }
 0x295   :  { %v5291_v14 = vmul.f32 %v11228_v55, %v5290_v62  ;;  %v5312_v44 = vmul.f32 %v11236_v46, %v5311_v17  ;;  %v5332_v61 = vmul.f32 %v11247_v7, %v11216_v19  ;;  %v2554_v9 = vmul.f32 %v14357_v25, %v2553_v23 }
 0x296   :  { %vm3358_vm10 = vweird.f32 %v14297_v41  ;;  %v3368_v53 = vsel %vm3361_vm5, %v3364_v36, %v3367_v3  ;;  %v5275_v56 = vsel %vm11253_vm7, %v7857_v10, %v5271_v58  ;;  %vm11279_vm1 = vcmp.eq.f32.partialorder %v2545_v18, 8.507059e+37 }
 0x297   :  { %v2548_v15 = vor.u32 1.1754944e-38, %v2547_v12  ;;  %vm11285_vm9 = vcmp.eq.f32.partialorder %v2560_v29, 8.507059e+37  ;;  %v5280_v10 = vsel %vm5277_vm6, %v5279_v33, %v5275_v56  ;;  %v11289_v2 = vpop.eup %7864  ;;  %vm2557_vm11 = vweird.f32 %v14357_v25  ;;  %v14380_v56 = vld [vmem:[#allocation46_spill] sm:$0xff] }
 0x298   :  { %v2563_v28 = vor.u32 1.1754944e-38, %v2562_v8  ;;  %v3984_v1 = vsel %vm3977_vm8, %v3980_v43, %v3983_v6  ;;  %v11293_v62 = vmul.f32 %v5280_v10, %v5221_v4  ;;  %v11297_v18 = vsel %vm3358_vm10, nan, %v3368_v53  ;;  %vm11311_vm2 = vmor %vm2556_vm0, %vm2557_vm11  ;;  %v14384_v10 = vld [vmem:[#allocation21_spill] sm:$0xff] }
 0x299   :  { %v5292_v60 = vmul.f32 0.5, %v5291_v14  ;;  %v5313_v12 = vmul.f32 0.5, %v5312_v44  ;;  %v5333_v29 = vmul.f32 %v11247_v7, %v5332_v61  ;;  %v2544_v17 = vsel %vm11273_vm13, %v14355_v22, %v11212_v5  ;;  %v14376_v14 = vld [vmem:[#allocation22_spill] sm:$0xff]  ;;  %v14377_v61 = vld [vmem:[#allocation40_spill] sm:$0xff] }
 0x29a   :  { %v2555_v40 = vadd.f32 %v14357_v25, %v2554_v9  ;;  %v2569_v8 = vmul.f32 %v14360_v21, %v2568_v47  ;;  %v5345_v54 = vmul.f32 1.6, %v11293_v62  ;;  %vm2571_vm3 = vweird.f32 %v14359_v32  ;;  %v14378_v9 = vld [vmem:[#allocation14_spill] sm:$0xff] }
 0x29b   :  { %v2575_v36 = vand.u32 2147483647, %v14359_v32  ;;  %v2577_v22 = vand.u32 2147483648, %v14359_v32  ;;  %v11320_v5 = vsel %vm3358_vm10, nan, %v3984_v1  ;;  %vm2572_vm15 = vweird.f32 %v14360_v21 }
 0x29c   :  { %v2582_v50 = vmul.f32 %v11289_v2, %v11224_v39  ;;  %v5346_v38 = vmul.f32 %v5345_v54, %v11297_v18  ;;  %v5347_v47 = vsub.f32 0.0, %v5345_v54  ;;  %v2549_v3 = vsel %vm11279_vm1, %v2548_v15, %v2544_v17  ;;  %vm11348_vm12 = vmor %vm2571_vm3, %vm2572_vm15 }
 0x29d   :  { %v5293_v26 = vsub.f32 1.5, %v5292_v60  ;;  %v5314_v33 = vsub.f32 1.5, %v5313_v12  ;;  %v5334_v43 = vmul.f32 0.5, %v5333_v29  ;;  %v2559_v41 = vsel %vm11311_vm2, %v14357_v25, %v2555_v40 }
 0x29e   :  { %v2570_v6 = vadd.f32 %v14360_v21, %v2569_v8  ;;  %v5348_v58 = vmul.f32 %v5347_v47, %v11320_v5  ;;  %v5349_v4 = vmul.f32 %v5346_v38, %v5346_v38  ;;  %v11334_v44 = vmul.f32 -0.001358992, %v14376_v14 }
 0x29f   :  { %vm14379_vm0 = vweird.f32 %v14378_v9  ;;  %v1763_v63 = vsel %vm1756_vm14, %v14381_v30, %v14380_v56  ;;  %v1910_v15 = vand.u32 3, %v11203_v57  ;;  %v11353_v1 = vmul.f32 %v2549_v3, %v14384_v10 }
 0x2a0   :  { %v1609_v53 = vsel %vm14379_vm0, nan, %v14377_v61  ;;  %v2578_v60 = vor.u32 1.1754944e-38, %v2577_v22  ;;  %v2583_v12 = vsub.f32 1.0, %v2582_v50  ;;  %v5350_v29 = vmul.f32 %v5348_v58, %v5348_v58  ;;  %v14386_v22 = vld [vmem:[#allocation17_spill] sm:$0xff] }
 0x2a1   :  { %v2564_v35 = vsel %vm11285_vm9, %v2563_v28, %v2559_v41  ;;  %v5294_v17 = vmul.f32 %v11228_v55, %v5293_v26  ;;  %v5315_v57 = vmul.f32 %v11236_v46, %v5314_v33  ;;  %v5335_v40 = vsub.f32 1.5, %v5334_v43 }
 0x2a2   :  { %v665_v32 = vmul.f32 -0.00019511016, %v14376_v14  ;;  %v2574_v8 = vsel %vm11348_vm12, %v14360_v21, %v2570_v6  ;;  %vm2576_vm14 = vcmp.eq.f32.partialorder %v2575_v36, 8.507059e+37  ;;  %v11363_v54 = vadd.f32 %v5350_v29, %v5349_v4 }
 0x2a3   :  { %vm524_vm5 = vcmp.eq.s32.totalorder %v14385_v11, 2  ;;  %vm14387_vm8 = vweird.f32 %v14386_v22  ;;  %vm1911_vm7 = vcmp.lt.s32.totalorder %v1910_v15, 2  ;;  %vm1912_vm6 = vcmp.eq.s32.totalorder %v1910_v15, 0 }
 0x2a4   :  { %v1764_v23 = vsel %vm14387_vm8, nan, %v1763_v63  ;;  %7866 = vrcp.f32 %v11353_v1  ;;  %vm1915_vm10 = vcmp.eq.s32.totalorder %v1910_v15, 2  ;;  %v11369_v55 = vmul.f32 %v2564_v35, %v1609_v53  ;;  %v14394_v35 = vld [vmem:[#allocation33_spill] sm:$0xff] }
 0x2a5   :  { %v2584_v46 = vmul.f32 %v11289_v2, %v2583_v12  ;;  %7868 = vrsqrt.f32 %v11363_v54  ;;  %vm521_vm13 = vcmp.eq.s32.totalorder %v14385_v11, 0  ;;  %v2579_v21 = vsel %vm2576_vm14, %v2578_v60, %v2574_v8  ;;  %v14393_v12 = vld [vmem:[#allocation23_spill] sm:$0xff]  ;;  %v14402_v53 = vld [vmem:[#allocation13_spill] sm:$0xff] }
 0x2a6   :  { %v5295_v28 = vmul.f32 %v5294_v17, %v11167_v52  ;;  %v5316_v36 = vmul.f32 %v5315_v57, %v11200_v51  ;;  %v5336_v50 = vmul.f32 %v11247_v7, %v5335_v40  ;;  %vm2586_vm1 = vweird.f32 %v11224_v39  ;;  %v14397_v40 = vld [vmem:[#allocation9_spill] sm:$0xff] }
 0x2a7   :  { %vm2587_vm9 = vweird.f32 %v11289_v2  ;;  %vm5296_vm11 = vcmp.eq.f32.partialorder %v11167_v52, inf  ;;  %vm5317_vm2 = vcmp.eq.f32.partialorder %v11200_v51, inf  ;;  %v1914_v38 = vsel %vm1912_vm6, %v14361_v24, %v1913_v37 }
 0x2a8   :  { %v14388_v47 = vxor.u32 2147483648, %v14361_v24  ;;  %v2590_v26 = vand.u32 2147483647, %v11224_v39  ;;  %v2592_v7 = vand.u32 2147483648, %v11224_v39  ;;  %v2585_v33 = vadd.f32 %v11289_v2, %v2584_v46  ;;  %vm11395_vm15 = vmor %vm2586_vm1, %vm2587_vm9 }
 0x2a9   :  { %vm5298_vm3 = vcmp.eq.f32.partialorder %v11167_v52, 0.0  ;;  %v5299_v43 = vand.u32 2147483648, %v11167_v52  ;;  %v5320_v41 = vand.u32 2147483648, %v11200_v51  ;;  %v5318_v24 = vsel %vm5317_vm2, %v11200_v51, %v5316_v36 }
 0x2aa   :  { %v1917_v3 = vsel %vm1915_vm10, %v14388_v47, %v14351_v20  ;;  %v11393_v6 = vpop.eup %7866  ;;  %v5297_v20 = vsel %vm5296_vm11, %v11167_v52, %v5295_v28  ;;  %vm5319_vm0 = vcmp.eq.f32.partialorder %v11200_v51, 0.0  ;;  %v5337_v39 = vmul.f32 %v5336_v50, %v11216_v19  ;;  %v14401_v47 = vld [vmem:[#allocation27_spill] sm:$0xff] }
 0x2ab   :  { %v7869_v58 = vpop.eup %7868  ;;  %v666_v4 = vadd.f32 0.008332121, %v665_v32  ;;  %v11403_v61 = vmul.f32 %v2579_v21, %v1764_v23  ;;  %7870 = vrcp.f32 %v11369_v55  ;;  %vm5338_vm12 = vcmp.eq.f32.partialorder %v11216_v19, inf }
 0x2ac   :  { %v1918_v9 = vsel %vm1911_vm7, %v1914_v38, %v1917_v3  ;;  %vm11408_vm14 = vcmp.eq.f32.partialorder %v2590_v26, 8.507059e+37  ;;  %v2593_v56 = vor.u32 1.1754944e-38, %v2592_v7  ;;  %v5353_v30 = vmul.f32 %v7869_v58, %v11363_v54  ;;  %v14400_v38 = vld [vmem:[#allocation31_spill] sm:$0xff] }
 0x2ad   :  { %v2589_v51 = vsel %vm11395_vm15, %v11289_v2, %v2585_v33  ;;  %v5300_v63 = vsel %vm5298_vm3, %v5299_v43, %v5297_v20  ;;  %v5321_v25 = vsel %vm5319_vm0, %v5320_v41, %v5318_v24  ;;  %v5341_v10 = vand.u32 2147483648, %v11216_v19 }
 0x2ae   :  { %7872 = vrcp.f32 %v11403_v61  ;;  %v5339_v15 = vsel %vm5338_vm12, %v11216_v19, %v5337_v39  ;;  %vm5340_vm8 = vcmp.eq.f32.partialorder %v11216_v19, 0.0  ;;  %v5354_v60 = vmul.f32 %v7869_v58, %v5353_v30  ;;  %v14404_v30 = vld [vmem:[#allocation19_spill] sm:$0xff] }
 0x2af   :  { %vm520_vm7 = vcmp.lt.s32.totalorder %v14385_v11, 2  ;;  %v522_v29 = vxor.u32 2147483648, %v14393_v12  ;;  %v14395_v2 = vxor.u32 2147483648, %v14394_v35  ;;  %v659_v17 = vadd.f32 0.041655596, %v11334_v44 }
 0x2b0   :  { %vm14396_vm6 = vweird.f32 %v14350_v45  ;;  %vm362_vm10 = vweird.f32 %v14397_v40  ;;  %v2594_v32 = vsel %vm11408_vm14, %v2593_v56, %v2589_v51  ;;  %v5301_v8 = vmul.f32 %v5300_v63, %v11353_v1  ;;  %v14398_v45 = vld [vmem:[#allocation32_spill] sm:$0xff] }
 0x2b1   :  { %v526_v52 = vsel %vm524_vm5, %v14395_v2, %v14393_v12  ;;  %v1919_v57 = vsel %vm14396_vm6, nan, %v1918_v9  ;;  %v5322_v22 = vmul.f32 %v5321_v25, %v11369_v55  ;;  %v5355_v23 = vmul.f32 0.5, %v5354_v60  ;;  %v11437_v46 = vpop.eup %7870  ;;  %v14406_v25 = vld [vmem:[#allocation25_spill] sm:$0xff] }
 0x2b2   :  { %v523_v44 = vsel %vm521_vm13, %v14394_v35, %v522_v29  ;;  %v11447_v28 = vsel %vm9403_vm4, 0, %v14398_v45  ;;  %v667_v36 = vmul.f32 %v666_v4, %v14376_v14  ;;  %v5342_v50 = vsel %vm5340_vm8, %v5341_v10, %v5339_v15 }
 0x2b3   :  { %vm830_vm5 = vcmp.eq.s32.totalorder %v14400_v38, 0  ;;  %vm833_vm1 = vcmp.eq.s32.totalorder %v14400_v38, 2  ;;  %vm984_vm9 = vcmp.eq.s32.totalorder %v14401_v47, 0  ;;  %v5356_v3 = vsub.f32 1.5, %v5355_v23 }
 0x2b4   :  { %v660_v26 = vmul.f32 %v659_v17, %v14376_v14  ;;  %vm987_vm13 = vcmp.eq.s32.totalorder %v14401_v47, 2  ;;  %v11457_v7 = vmul.f32 %v2594_v32, %v1919_v57  ;;  %v2597_v33 = vmul.f32 %v11393_v6, %v11353_v1  ;;  %v11461_v43 = vpop.eup %7872  ;;  %v14407_v32 = vld [vmem:[#allocation30_spill] sm:$0xff] }
 0x2b5   :  { %v2615_v19 = vmul.f32 %v11437_v46, %v11369_v55  ;;  %v5323_v41 = vadd.f32 %v5322_v22, %v5301_v8  ;;  %v5343_v37 = vmul.f32 %v5342_v50, %v11403_v61  ;;  %v5357_v20 = vmul.f32 %v7869_v58, %v5356_v3 }
 0x2b6   :  { %v668_v24 = vadd.f32 -0.16666654, %v667_v36  ;;  %7874 = vrcp.f32 %v11457_v7  ;;  %vm5359_vm4 = vcmp.eq.f32.partialorder %v11363_v54, inf  ;;  %v5362_v39 = vand.u32 2147483648, %v11363_v54 }
 0x2b7   :  { %v673_v4 = vadd.s32 3, %v11447_v28  ;;  %vm829_vm11 = vcmp.lt.s32.totalorder %v14400_v38, 2  ;;  %v5358_v9 = vmul.f32 %v5357_v20, %v11363_v54  ;;  %vm5361_vm2 = vcmp.eq.f32.partialorder %v11363_v54, 0.0 }
 0x2b8   :  { %v14403_v56 = vxor.u32 2147483648, %v14402_v53  ;;  %v14405_v51 = vxor.u32 2147483648, %v14404_v30  ;;  %v11484_v10 = vand.u32 3, %v14406_v25  ;;  %v2633_v15 = vmul.f32 %v11461_v43, %v11403_v61 }
 0x2b9   :  { %v2598_v60 = vsub.f32 1.0, %v2597_v33  ;;  %v2616_v2 = vsub.f32 1.0, %v2615_v19  ;;  %v5344_v17 = vadd.f32 %v5343_v37, %v5323_v41  ;;  %v5360_v57 = vsel %vm5359_vm4, %v11363_v54, %v5358_v9  ;;  %v14408_v33 = vld [vmem:[#allocation24_spill] sm:$0xff] }
 0x2ba   :  { %v832_v58 = vsel %vm830_vm5, %v14404_v30, %v14403_v56  ;;  %v835_v63 = vsel %vm833_vm1, %v14405_v51, %v14402_v53  ;;  %v11492_v8 = vsel %vm362_vm10, nan, %v14407_v32  ;;  %v661_v22 = vadd.f32 -0.4999988, %v660_v26  ;;  %v14410_v26 = vld [vmem:[#allocation15_spill] sm:$0xff] }
 0x2bb   :  { %v669_v23 = vmul.f32 %v668_v24, %v14376_v14  ;;  %v5363_v45 = vsel %vm5361_vm2, %v5362_v39, %v5360_v57  ;;  %v11497_v21 = vsel %vm520_vm7, %v523_v44, %v526_v52  ;;  %v11499_v36 = vand.u32 3, %v673_v4 }
 0x2bc   :  { %v11503_v50 = vsel %vm829_vm11, %v832_v58, %v835_v63  ;;  %v5364_v54 = vmul.f32 %v5363_v45, %v11457_v7  ;;  %v11506_v3 = vpop.eup %7874  ;;  %v14409_v19 = vxor.u32 2147483648, %v14408_v33  ;;  %v14411_v11 = vxor.u32 2147483648, %v14410_v26 }
 0x2bd   :  { %vm1138_vm3 = vcmp.eq.s32.totalorder %v11484_v10, 0  ;;  %v2634_v44 = vsub.f32 1.0, %v2633_v15  ;;  %vm1141_vm15 = vcmp.eq.s32.totalorder %v11484_v10, 2  ;;  %v2599_v38 = vmul.f32 %v11393_v6, %v2598_v60 }
 0x2be   :  { %v11513_v41 = vsel %vm984_vm9, %v14410_v26, %v14409_v19  ;;  %v11520_v52 = vsel %vm987_vm13, %v14411_v11, %v14408_v33  ;;  %v2617_v37 = vmul.f32 %v11437_v46, %v2616_v2  ;;  %v5365_v20 = vadd.f32 %v5364_v54, %v5344_v17  ;;  %v14416_v2 = vld [vmem:[#allocation12_spill] sm:$0xff] }
 0x2bf   :  { %v662_v24 = vmul.f32 %v661_v22, %v14376_v14  ;;  %v670_v39 = vadd.f32 1.0, %v669_v23  ;;  %vm2601_vm0 = vweird.f32 %v11353_v1  ;;  %vm2602_vm12 = vweird.f32 %v11393_v6 }
 0x2c0   :  { %vm2619_vm14 = vweird.f32 %v11369_v55  ;;  %vm2620_vm8 = vweird.f32 %v11437_v46  ;;  %v2651_v4 = vmul.f32 %v11506_v3, %v11457_v7  ;;  %v11533_v9 = vmul.f32 0.25, %v5365_v20  ;;  %vm11540_vm7 = vmor %vm2601_vm0, %vm2602_vm12  ;;  %v14422_v20 = vld [vmem:[#allocation10_spill] sm:$0xff] }
 0x2c1   :  { %v2605_v53 = vand.u32 2147483647, %v11353_v1  ;;  %v2607_v56 = vand.u32 2147483648, %v11353_v1  ;;  %v2625_v14 = vand.u32 2147483648, %v11369_v55  ;;  %v2635_v30 = vmul.f32 %v11461_v43, %v2634_v44  ;;  %vm11555_vm5 = vmor %vm2619_vm14, %vm2620_vm8 }
 0x2c2   :  { %v2600_v58 = vadd.f32 %v11393_v6, %v2599_v38  ;;  %v2618_v63 = vadd.f32 %v11437_v46, %v2617_v37  ;;  %v2623_v25 = vand.u32 2147483647, %v11369_v55  ;;  %7876 = vrcp.f32 %v11533_v9 }
 0x2c3   :  { %v663_v15 = vadd.f32 1.0, %v662_v24  ;;  %vm676_vm6 = vcmp.eq.s32.totalorder %v11499_v36, 0  ;;  %v11549_v1 = vand.u32 3, %v11447_v28  ;;  %vm2637_vm1 = vweird.f32 %v11403_v61 }
 0x2c4   :  { %vm2638_vm9 = vweird.f32 %v11461_v43  ;;  %v671_v17 = vmul.f32 %v670_v39, %v14416_v2  ;;  %v2641_v57 = vand.u32 2147483647, %v11403_v61  ;;  %v2643_v32 = vand.u32 2147483648, %v11403_v61 }
 0x2c5   :  { %v2652_v28 = vsub.f32 1.0, %v2651_v4  ;;  %vm679_vm13 = vcmp.eq.s32.totalorder %v11499_v36, 2  ;;  %vm983_vm4 = vcmp.lt.s32.totalorder %v14401_v47, 2  ;;  %v2608_v55 = vor.u32 1.1754944e-38, %v2607_v56  ;;  %vm11579_vm14 = vmor %vm2637_vm1, %vm2638_vm9 }
 0x2c6   :  { %v2626_v22 = vor.u32 1.1754944e-38, %v2625_v14  ;;  %v2636_v23 = vadd.f32 %v11461_v43, %v2635_v30  ;;  %vm675_vm11 = vcmp.lt.s32.totalorder %v11499_v36, 2  ;;  %vm1137_vm2 = vcmp.lt.s32.totalorder %v11484_v10, 2 }
 0x2c7   :  { %v2604_v45 = vsel %vm11540_vm7, %v11393_v6, %v2600_v58  ;;  %vm2606_vm0 = vcmp.eq.f32.partialorder %v2605_v53, 8.507059e+37  ;;  %v2622_v54 = vsel %vm11555_vm5, %v11437_v46, %v2618_v63  ;;  %vm2624_vm12 = vcmp.eq.f32.partialorder %v2623_v25, 8.507059e+37 }
 0x2c8   :  { %v680_v19 = vxor.u32 2147483648, %v663_v15  ;;  %v1140_v6 = vsel %vm1138_vm3, %v14394_v35, %v522_v29  ;;  %v14419_v26 = vxor.u32 2147483648, %v14394_v35  ;;  %vm1295_vm8 = vcmp.eq.s32.totalorder %v11549_v1, 2  ;;  %v7877_v61 = vpop.eup %7876 }
 0x2c9   :  { %v677_v11 = vxor.u32 2147483648, %v671_v17  ;;  %vm11594_vm7 = vcmp.eq.f32.partialorder %v2641_v57, 8.507059e+37  ;;  %v2644_v38 = vor.u32 1.1754944e-38, %v2643_v32  ;;  %v2653_v37 = vmul.f32 %v11506_v3, %v2652_v28 }
 0x2ca   :  { %v1143_v46 = vsel %vm1141_vm15, %v14419_v26, %v14393_v12  ;;  %vm517_vm5 = vweird.f32 %v14422_v20  ;;  %v2609_v29 = vsel %vm2606_vm0, %v2608_v55, %v2604_v45  ;;  %v2627_v24 = vsel %vm2624_vm12, %v2626_v22, %v2622_v54 }
 0x2cb   :  { %v2640_v35 = vsel %vm11579_vm14, %v11461_v43, %v2636_v23  ;;  %v5368_v12 = vmul.f32 %v7877_v61, %v11533_v9  ;;  %vm2655_vm3 = vweird.f32 %v11457_v7  ;;  %vm2656_vm15 = vweird.f32 %v11506_v3 }
 0x2cc   :  { %v2661_v39 = vand.u32 2147483648, %v11457_v7  ;;  %v5378_v4 = vand.u32 2147483648, %v11533_v9  ;;  %vm5372_vm1 = vweird.f32 %v11533_v9  ;;  %vm5373_vm9 = vweird.f32 %v7877_v61  ;;  %vm11622_vm14 = vmor %vm2655_vm3, %vm2656_vm15 }
 0x2cd   :  { %v5369_v53 = vsub.f32 1.0, %v5368_v12  ;;  %v5376_v56 = vand.u32 2147483647, %v11533_v9  ;;  %vm1291_vm0 = vcmp.lt.s32.totalorder %v11549_v1, 2  ;;  %vm1292_vm12 = vcmp.eq.s32.totalorder %v11549_v1, 0  ;;  %v14427_v9 = vld [vmem:[#allocation11_spill] sm:$0xff] }
 0x2ce   :  { %v2654_v43 = vadd.f32 %v11506_v3, %v2653_v37  ;;  %v2659_v14 = vand.u32 2147483647, %v11457_v7  ;;  %v681_v30 = vsel %vm679_vm13, %v680_v19, %v671_v17  ;;  %v1297_v58 = vsel %vm1295_vm8, %v680_v19, %v671_v17  ;;  %vm11630_vm13 = vmor %vm5372_vm1, %vm5373_vm9 }
 0x2cf   :  { %v2645_v51 = vsel %vm11594_vm7, %v2644_v38, %v2640_v35  ;;  %v5370_v25 = vmul.f32 %v7877_v61, %v5369_v53  ;;  %v678_v60 = vsel %vm676_vm6, %v663_v15, %v677_v11  ;;  %v2610_v2 = vmul.f32 -1.6, %v2609_v29 }
 0x2d0   :  { %v2628_v57 = vmul.f32 -1.6, %v2627_v24  ;;  %v5379_v17 = vor.u32 1.1754944e-38, %v5378_v4  ;;  %v1294_v28 = vsel %vm1292_vm12, %v663_v15, %v677_v11  ;;  %v2662_v55 = vor.u32 1.1754944e-38, %v2661_v39 }
 0x2d1   :  { %v5371_v7 = vadd.f32 %v7877_v61, %v5370_v25  ;;  %vm5377_vm8 = vcmp.eq.f32.partialorder %v5376_v56, 8.507059e+37  ;;  %v990_v22 = vsel %vm983_vm4, %v11513_v41, %v11520_v52  ;;  %v2646_v23 = vmul.f32 -1.6, %v2645_v51 }
 0x2d2   :  { %v2658_v45 = vsel %vm11622_vm14, %v11506_v3, %v2654_v43  ;;  %vm2660_vm6 = vcmp.eq.f32.partialorder %v2659_v14, 8.507059e+37  ;;  %vm672_vm7 = vweird.f32 %v14427_v9  ;;  %v682_v54 = vsel %vm675_vm11, %v678_v60, %v681_v30  ;;  %v14428_v3 = vld [vmem:[#allocation8_spill] sm:$0xff] }
 0x2d3   :  { %v1144_v15 = vsel %vm1137_vm2, %v1140_v6, %v1143_v46  ;;  %v5375_v33 = vsel %vm11630_vm13, %v7877_v61, %v5371_v7  ;;  %v1298_v47 = vsel %vm1291_vm0, %v1294_v28, %v1297_v58  ;;  %v2612_v41 = vsub.f32 0.0, %v2610_v2 }
 0x2d4   :  { %v2630_v52 = vsub.f32 0.0, %v2628_v57  ;;  %v5380_v19 = vsel %vm5377_vm8, %v5379_v17, %v5375_v33  ;;  %vm14429_vm4 = vweird.f32 %v14428_v3  ;;  %v991_v36 = vsel %vm362_vm10, nan, %v990_v22 }
 0x2d5   :  { %v837_v26 = vsel %vm14429_vm4, nan, %v11503_v50  ;;  %v2663_v11 = vsel %vm2660_vm6, %v2662_v55, %v2658_v45  ;;  %v5381_v44 = vmul.f32 -1.6, %v5380_v19  ;;  %v528_v10 = vsel %vm517_vm5, nan, %v11497_v21  ;;  %v14430_v50 = vld [vmem:[#allocation28_spill] sm:$0xff] }
 0x2d6   :  { %v1145_v1 = vsel %vm517_vm5, nan, %v1144_v15  ;;  %v2648_v6 = vsub.f32 0.0, %v2646_v23  ;;  %v683_v46 = vsel %vm672_vm7, nan, %v682_v54  ;;  %v1299_v61 = vsel %vm672_vm7, nan, %v1298_v47 }
 0x2d7   :  { %v11665_v38 = vmul.f32 %v2610_v2, %v14430_v50  ;;  %v11667_v40 = vmul.f32 1.6, %v5381_v44  ;;  %v11669_v37 = vmul.f32 %v2612_v41, %v837_v26  ;;  %v11672_v29 = vmul.f32 %v2628_v57, %v11492_v8 }
 0x2d8   :  { %v11674_v21 = vmul.f32 %v2630_v52, %v991_v36  ;;  %v2664_v20 = vmul.f32 -1.6, %v2663_v11  ;;  %v11684_v4 = vmul.f32 %v2646_v23, %v528_v10  ;;  %v11686_v53 = vmul.f32 %v2648_v6, %v1145_v1 }
 0x2d9   :  { %14431 = vst [vmem:[#allocation39_spill] sm:$0xff] %v11667_v40  ;;  %v5383_v24 = vmul.f32 %v11667_v40, %v11097_v16  ;;  %v5387_v35 = vmul.f32 %v11667_v40, %v11113_v59  ;;  %v5391_v12 = vmul.f32 %v11667_v40, %v11134_v31  ;;  %v5395_v39 = vmul.f32 %v11667_v40, %v11293_v62 }
 0x2da   :  { %v2668_v8 = vsub.f32 %v11665_v38, %v11672_v29  ;;  %v2670_v56 = vsub.f32 %v11669_v37, %v11674_v21  ;;  %v2666_v51 = vsub.f32 0.0, %v2664_v20  ;;  %v2665_v23 = vmul.f32 %v2664_v20, %v683_v46 }
 0x2db   :  { %v5384_v16 = vmul.f32 %v5383_v24, %v14346_v34  ;;  %v5385_v43 = vsub.f32 0.0, %v5383_v24  ;;  %v5388_v59 = vmul.f32 %v5387_v35, %v14349_v49  ;;  %v5389_v14 = vsub.f32 0.0, %v5387_v35 }
 0x2dc   :  { %v5392_v31 = vmul.f32 %v5391_v12, %v14352_v42  ;;  %v5393_v30 = vsub.f32 0.0, %v5391_v12  ;;  %v5396_v62 = vmul.f32 %v5395_v39, %v11297_v18  ;;  %v5397_v58 = vsub.f32 0.0, %v5395_v39 }
 0x2dd   :  { %v5386_v63 = vmul.f32 %v5385_v43, %v10971_v48  ;;  %v5390_v25 = vmul.f32 %v5389_v14, %v11121_v13  ;;  %v5399_v60 = vsub.f32 %v5384_v16, %v5388_v59  ;;  %v5473_v42 = vadd.f32 %v5384_v16, %v11665_v38 }
 0x2de   :  { %v5394_v2 = vmul.f32 %v5393_v30, %v11139_v27  ;;  %v5398_v34 = vmul.f32 %v5397_v58, %v11320_v5  ;;  %v5416_v57 = vsub.f32 %v5392_v31, %v5396_v62  ;;  %v5435_v32 = vsub.f32 %v5388_v59, %v5392_v31 }
 0x2df   :  { %v5400_v49 = vmul.f32 %v5399_v60, %v5399_v60  ;;  %v5401_v17 = vsub.f32 %v5386_v63, %v5390_v25  ;;  %v5452_v28 = vsub.f32 %v5396_v62, %v5384_v16  ;;  %v5475_v13 = vadd.f32 %v5388_v59, %v11672_v29 }
 0x2e0   :  { %v5417_v55 = vmul.f32 %v5416_v57, %v5416_v57  ;;  %v5418_v18 = vsub.f32 %v5394_v2, %v5398_v34  ;;  %v5436_v7 = vmul.f32 %v5435_v32, %v5435_v32  ;;  %v5437_v22 = vsub.f32 %v5390_v25, %v5394_v2 }
 0x2e1   :  { %v5402_v48 = vmul.f32 %v5401_v17, %v5401_v17  ;;  %v5454_v45 = vsub.f32 %v5398_v34, %v5386_v63  ;;  %v2669_v9 = vmul.f32 %v2668_v8, %v2668_v8  ;;  %v2671_v27 = vmul.f32 %v2670_v56, %v2670_v56 }
 0x2e2   :  { %v5419_v54 = vmul.f32 %v5418_v18, %v5418_v18  ;;  %v5438_v5 = vmul.f32 %v5437_v22, %v5437_v22  ;;  %v11702_v15 = vmul.f32 %v2666_v51, %v1299_v61  ;;  %v11706_v47 = vmul.f32 0.5, %v5473_v42 }
 0x2e3   :  { %v11704_v33 = vadd.f32 %v5402_v48, %v5400_v49  ;;  %v5477_v41 = vadd.f32 %v5392_v31, %v11684_v4  ;;  %v5453_v3 = vmul.f32 %v5452_v28, %v5452_v28  ;;  %v5455_v26 = vmul.f32 %v5454_v45, %v5454_v45 }
 0x2e4   :  { %v11709_v52 = vadd.f32 %v5419_v54, %v5417_v55  ;;  %v11711_v19 = vadd.f32 %v5438_v5, %v5436_v7  ;;  %v11714_v36 = vmul.f32 0.5, %v5475_v13  ;;  %v5479_v11 = vadd.f32 %v5396_v62, %v2665_v23 }
 0x2e5   :  { %7878 = vrsqrt.f32 %v11704_v33  ;;  %v5481_v44 = vadd.f32 %v5386_v63, %v11669_v37  ;;  %v11719_v10 = vmul.f32 0.5, %v5477_v41  ;;  %v11721_v1 = vadd.f32 %v2671_v27, %v2669_v9 }
 0x2e6   :  { %7880 = vrsqrt.f32 %v11709_v52  ;;  %v11723_v6 = vadd.f32 %v5455_v26, %v5453_v3  ;;  %v5483_v46 = vadd.f32 %v5390_v25, %v11674_v21  ;;  %v5485_v61 = vadd.f32 %v5394_v2, %v11686_v53 }
 0x2e7   :  { %7882 = vrsqrt.f32 %v11711_v19  ;;  %v11727_v50 = vmul.f32 0.5, %v5479_v11  ;;  %v5482_v20 = vmul.f32 0.5, %v5481_v44  ;;  %v5487_v24 = vadd.f32 %v5398_v34, %v11702_v15 }
 0x2e8   :  { %v5493_v35 = vadd.f32 %v11714_v36, %v11706_v47  ;;  %7884 = vrsqrt.f32 %v11723_v6  ;;  %v5484_v39 = vmul.f32 0.5, %v5483_v46  ;;  %v5486_v8 = vmul.f32 0.5, %v5485_v61 }
 0x2e9   :  { %7886 = vrsqrt.f32 %v11721_v1  ;;  %v11737_v31 = vmul.f32 0.5, %v5487_v24  ;;  %v11742_v58 = vsub.f32 %v11672_v29, %v11684_v4  ;;  %v11746_v51 = vsub.f32 %v11674_v21, %v11686_v53 }
 0x2ea   :  { %v5494_v56 = vadd.f32 %v5493_v35, %v11719_v10  ;;  %v5497_v62 = vadd.f32 %v5484_v39, %v5482_v20  ;;  %v11750_v60 = vsub.f32 %v11684_v4, %v2665_v23  ;;  %v11753_v2 = vsub.f32 %v2665_v23, %v11665_v38 }
 0x2eb   :  { %v7879_v12 = vpop.eup %7878  ;;  %vm5411_vm10 = vcmp.eq.f32.partialorder %v11704_v33, inf  ;;  %vm5413_vm11 = vcmp.eq.f32.partialorder %v11704_v33, 0.0  ;;  %v5414_v21 = vand.u32 2147483648, %v11704_v33  ;;  %vm5428_vm2 = vcmp.eq.f32.partialorder %v11709_v52, inf }
 0x2ec   :  { %v7881_v16 = vpop.eup %7880  ;;  %v5405_v43 = vmul.f32 %v7879_v12, %v11704_v33  ;;  %v5495_v30 = vadd.f32 %v5494_v56, %v11727_v50  ;;  %v5498_v57 = vadd.f32 %v5497_v62, %v5486_v8  ;;  %vm5430_vm5 = vcmp.eq.f32.partialorder %v11709_v52, 0.0 }
 0x2ed   :  { %v7883_v59 = vpop.eup %7882  ;;  %v5422_v14 = vmul.f32 %v7881_v16, %v11709_v52  ;;  %v5431_v45 = vand.u32 2147483648, %v11709_v52  ;;  %vm5447_vm3 = vcmp.eq.f32.partialorder %v11711_v19, inf  ;;  %vm5449_vm15 = vcmp.eq.f32.partialorder %v11711_v19, 0.0 }
 0x2ee   :  { %v5406_v63 = vmul.f32 %v7879_v12, %v5405_v43  ;;  %v5441_v25 = vmul.f32 %v7883_v59, %v11711_v19  ;;  %v7885_v32 = vpop.eup %7884  ;;  %v5499_v4 = vadd.f32 %v5498_v57, %v11737_v31  ;;  %v11764_v22 = vmul.f32 0.25, %v5495_v30 }
 0x2ef   :  { %v5423_v34 = vmul.f32 %v7881_v16, %v5422_v14  ;;  %v5458_v28 = vmul.f32 %v7885_v32, %v11723_v6  ;;  %v11760_v42 = vpop.eup %7886  ;;  %v5450_v27 = vand.u32 2147483648, %v11711_v19  ;;  %vm5464_vm1 = vcmp.eq.f32.partialorder %v11723_v6, inf }
 0x2f0   :  { %v5407_v49 = vmul.f32 0.5, %v5406_v63  ;;  %v5442_v29 = vmul.f32 %v7883_v59, %v5441_v25  ;;  %v11766_v23 = vmul.f32 0.25, %v5499_v4  ;;  %v5467_v44 = vand.u32 2147483648, %v11723_v6 }
 0x2f1   :  { %v5424_v17 = vmul.f32 0.5, %v5423_v34  ;;  %v5459_v7 = vmul.f32 %v7885_v32, %v5458_v28  ;;  %v11781_v46 = vsub.f32 %v11706_v47, %v11764_v22  ;;  %v11789_v35 = vsub.f32 %v11714_v36, %v11764_v22 }
 0x2f2   :  { %v5408_v38 = vsub.f32 1.5, %v5407_v49  ;;  %v5443_v55 = vmul.f32 0.5, %v5442_v29  ;;  %v11775_v3 = vsub.f32 %v5482_v20, %v11766_v23  ;;  %v11792_v20 = vsub.f32 %v5484_v39, %v11766_v23 }
 0x2f3   :  { %v5425_v18 = vsub.f32 1.5, %v5424_v17  ;;  %v5460_v54 = vmul.f32 0.5, %v5459_v7  ;;  %v11809_v39 = vsub.f32 %v11719_v10, %v11764_v22  ;;  %vm5466_vm9 = vcmp.eq.f32.partialorder %v11723_v6, 0.0 }
 0x2f4   :  { %v5409_v48 = vmul.f32 %v7879_v12, %v5408_v38  ;;  %v5444_v13 = vsub.f32 1.5, %v5443_v55  ;;  %v11829_v62 = vadd.f32 1e-12, %v11792_v20  ;;  %v11836_v25 = vsub.f32 %v11737_v31, %v11766_v23 }
 0x2f5   :  { %v5426_v9 = vmul.f32 %v7881_v16, %v5425_v18  ;;  %v5461_v11 = vsub.f32 1.5, %v5460_v54  ;;  %v11800_v16 = vsub.f32 %v5486_v8, %v11766_v23  ;;  %v2687_v8 = vsub.f32 %v11686_v53, %v11702_v15 }
 0x2f6   :  { %v5410_v5 = vmul.f32 %v5409_v48, %v11704_v33  ;;  %v5445_v41 = vmul.f32 %v7883_v59, %v5444_v13  ;;  %v11839_v34 = vand.u32 2147483647, %v11789_v35  ;;  %v11850_v49 = vand.u32 2147483647, %v11809_v39 }
 0x2f7   :  { %v5427_v26 = vmul.f32 %v5426_v9, %v11709_v52  ;;  %v5462_v56 = vmul.f32 %v7885_v32, %v5461_v11  ;;  %v11842_v53 = vadd.f32 1e-12, %v11800_v16  ;;  %v11847_v32 = vand.u32 2147483647, %v11829_v62 }
 0x2f8   :  { %v5412_v61 = vsel %vm5411_vm10, %v11704_v33, %v5410_v5  ;;  %v5446_v24 = vmul.f32 %v5445_v41, %v11711_v19  ;;  %v11812_v33 = vadd.f32 1e-12, %v11775_v3  ;;  %v2707_v31 = vmul.f32 %v11746_v51, %v11746_v51 }
 0x2f9   :  { %v5415_v12 = vsel %vm5413_vm11, %v5414_v21, %v5412_v61  ;;  %v5429_v47 = vsel %vm5428_vm2, %v11709_v52, %v5427_v26  ;;  %v5463_v14 = vmul.f32 %v5462_v56, %v11723_v6  ;;  %v11819_v52 = vand.u32 2147483647, %v11781_v46 }
 0x2fa   :  { %v5432_v43 = vsel %vm5430_vm5, %v5431_v45, %v5429_v47  ;;  %v5448_v36 = vsel %vm5447_vm3, %v11711_v19, %v5446_v24  ;;  %v11826_v10 = vand.u32 2147483647, %v11812_v33  ;;  %v11859_v21 = vand.u32 2147483647, %v11842_v53 }
 0x2fb   :  { %v11814_v59 = vadd.f32 %v5432_v43, %v5415_v12  ;;  %v5451_v30 = vsel %vm5449_vm15, %v5450_v27, %v5448_v36  ;;  %v5465_v63 = vsel %vm5464_vm1, %v11723_v6, %v5463_v14  ;;  %v2705_v6 = vmul.f32 %v11742_v58, %v11742_v58 }
 0x2fc   :  { %v5468_v19 = vsel %vm5466_vm9, %v5467_v44, %v5465_v63  ;;  %v5521_v57 = vmax.f32 %v11826_v10, %v11819_v52  ;;  %v2686_v17 = vmul.f32 %v11750_v60, %v11750_v60  ;;  %v2688_v28 = vmul.f32 %v2687_v8, %v2687_v8 }
 0x2fd   :  { %v11856_v29 = vadd.f32 %v5468_v19, %v5451_v30  ;;  %v2723_v4 = vsub.f32 %v11702_v15, %v11669_v37  ;;  %v5582_v38 = vmax.f32 %v11847_v32, %v11839_v34  ;;  %v11868_v58 = vadd.f32 1e-12, %v11836_v25 }
 0x2fe   :  { %7888 = vrcp.f32 %v5521_v57  ;;  %v11872_v51 = vsub.f32 %v11727_v50, %v11764_v22  ;;  %v5643_v55 = vmax.f32 %v11859_v21, %v11850_v49  ;;  %v11876_v18 = vadd.f32 %v2707_v31, %v2705_v6 }
 0x2ff   :  { %7890 = vrcp.f32 %v5582_v38  ;;  %v11878_v60 = vadd.f32 %v2688_v28, %v2686_v17  ;;  %v2722_v37 = vmul.f32 %v11753_v2, %v11753_v2  ;;  %v2724_v15 = vmul.f32 %v2723_v4, %v2723_v4 }
 0x300   :  { %7892 = vrcp.f32 %v5643_v55  ;;  %v5531_v7 = vand.u32 2147483647, %v5521_v57  ;;  %v11883_v48 = vand.u32 2147483647, %v11868_v58  ;;  %v5533_v50 = vand.u32 2147483648, %v5521_v57 }
 0x301   :  { %v11886_v13 = vand.u32 2147483647, %v11872_v51  ;;  %v2674_v9 = vmul.f32 %v11760_v42, %v11721_v1  ;;  %7894 = vrsqrt.f32 %v11876_v18  ;;  %v11892_v2 = vadd.f32 %v2724_v15, %v2722_v37 }
 0x302   :  { %7896 = vrsqrt.f32 %v11878_v60  ;;  %v5520_v54 = vmin.f32 %v11826_v10, %v11819_v52  ;;  %vm5527_vm0 = vweird.f32 %v5521_v57  ;;  %vm11900_vm14 = vcmp.eq.f32.partialorder %v5531_v7, 8.507059e+37 }
 0x303   :  { %v11898_v5 = vmax.f32 %v11883_v48, %v11886_v13  ;;  %v5534_v61 = vor.u32 1.1754944e-38, %v5533_v50  ;;  %vm5588_vm13 = vweird.f32 %v5582_v38  ;;  %v5592_v47 = vand.u32 2147483647, %v5582_v38 }
 0x304   :  { %v7889_v45 = vpop.eup %7888  ;;  %v5594_v56 = vand.u32 2147483648, %v5582_v38  ;;  %vm5649_vm7 = vweird.f32 %v5643_v55  ;;  %v5655_v8 = vand.u32 2147483648, %v5643_v55  ;;  %v2675_v31 = vmul.f32 %v11760_v42, %v2674_v9 }
 0x305   :  { %v5523_v27 = vmul.f32 %v7889_v45, %v5521_v57  ;;  %v7891_v41 = vpop.eup %7890  ;;  %vm5528_vm12 = vweird.f32 %v7889_v45  ;;  %7898 = vrcp.f32 %v11898_v5  ;;  %v5653_v57 = vand.u32 2147483647, %v5643_v55 }
 0x306   :  { %v7893_v44 = vpop.eup %7892  ;;  %v5584_v24 = vmul.f32 %v7891_v41, %v5582_v38  ;;  %vm11905_vm8 = vmor %vm5527_vm0, %vm5528_vm12  ;;  %vm5589_vm6 = vweird.f32 %v7891_v41  ;;  %7900 = vrsqrt.f32 %v11892_v2  ;;  %v5581_v17 = vmin.f32 %v11847_v32, %v11839_v34 }
 0x307   :  { %v5524_v26 = vsub.f32 1.0, %v5523_v27  ;;  %v5645_v43 = vmul.f32 %v7893_v44, %v5643_v55  ;;  %v11909_v30 = vpop.eup %7894  ;;  %vm5650_vm4 = vweird.f32 %v7893_v44  ;;  %vm11920_vm10 = vmor %vm5588_vm13, %vm5589_vm6  ;;  %v5595_v15 = vor.u32 1.1754944e-38, %v5594_v56 }
 0x308   :  { %v5585_v14 = vsub.f32 1.0, %v5584_v24  ;;  %v11911_v6 = vpop.eup %7896  ;;  %v5642_v7 = vmin.f32 %v11859_v21, %v11850_v49  ;;  %vm5593_vm11 = vcmp.eq.f32.partialorder %v5592_v47, 8.507059e+37  ;;  %vm11932_vm2 = vmor %vm5649_vm7, %vm5650_vm4  ;;  %vm5654_vm5 = vcmp.eq.f32.partialorder %v5653_v57, 8.507059e+37 }
 0x309   :  { %v5525_v12 = vmul.f32 %v7889_v45, %v5524_v26  ;;  %v5646_v19 = vsub.f32 1.0, %v5645_v43  ;;  %v2676_v43 = vmul.f32 0.5, %v2675_v31  ;;  %v2710_v11 = vmul.f32 %v11909_v30, %v11876_v18 }
 0x30a   :  { %v5586_v28 = vmul.f32 %v7891_v41, %v5585_v14  ;;  %vm5710_vm3 = vweird.f32 %v11898_v5  ;;  %vm5571_vm9 = vcmp.eq.s32.totalorder %v11826_v10, inf  ;;  %vm5572_vm0 = vcmp.eq.s32.totalorder %v11819_v52, inf }
 0x30b   :  { %v5526_v63 = vadd.f32 %v7889_v45, %v5525_v12  ;;  %v5647_v50 = vmul.f32 %v7893_v44, %v5646_v19  ;;  %v11926_v9 = vpop.eup %7898  ;;  %vm11989_vm12 = vmand %vm5571_vm9, %vm5572_vm0  ;;  %vm5632_vm13 = vcmp.eq.s32.totalorder %v11847_v32, inf  ;;  %vm2680_vm6 = vcmp.eq.f32.partialorder %v11721_v1, inf }
 0x30c   :  { %v5587_v26 = vadd.f32 %v7891_v41, %v5586_v28  ;;  %v5706_v56 = vmul.f32 %v11926_v9, %v11898_v5  ;;  %v11950_v14 = vpop.eup %7900  ;;  %vm5711_vm15 = vweird.f32 %v11926_v9  ;;  %vm2682_vm7 = vcmp.eq.f32.partialorder %v11721_v1, 0.0 }
 0x30d   :  { %v5530_v4 = vsel %vm11905_vm8, %v7889_v45, %v5526_v63  ;;  %v5656_v45 = vor.u32 1.1754944e-38, %v5655_v8  ;;  %v5648_v12 = vadd.f32 %v7893_v44, %v5647_v50  ;;  %vm11980_vm1 = vmor %vm5710_vm3, %vm5711_vm15  ;;  %vm5633_vm8 = vcmp.eq.s32.totalorder %v11839_v34, inf }
 0x30e   :  { %v5535_v27 = vsel %vm11900_vm14, %v5534_v61, %v5530_v4  ;;  %v5591_v61 = vsel %vm11920_vm10, %v7891_v41, %v5587_v26  ;;  %v5707_v36 = vsub.f32 1.0, %v5706_v56  ;;  %v2691_v41 = vmul.f32 %v11911_v6, %v11878_v60  ;;  %vm12007_vm4 = vmand %vm5632_vm13, %vm5633_vm8 }
 0x30f   :  { %v11936_v24 = vmul.f32 %v5535_v27, %v5520_v54  ;;  %v5596_v47 = vsel %vm5593_vm11, %v5595_v15, %v5591_v61  ;;  %v5652_v54 = vsel %vm11932_vm2, %v7893_v44, %v5648_v12  ;;  %v2677_v44 = vsub.f32 1.5, %v2676_v43 }
 0x310   :  { %v11952_v8 = vmul.f32 %v5596_v47, %v5581_v17  ;;  %v5657_v63 = vsel %vm5654_vm5, %v5656_v45, %v5652_v54  ;;  %v5708_v28 = vmul.f32 %v11926_v9, %v5707_v36  ;;  %v2711_v4 = vmul.f32 %v11909_v30, %v2710_v11 }
 0x311   :  { %v11946_v55 = vmul.f32 %v11936_v24, %v11936_v24  ;;  %v11955_v57 = vmul.f32 %v5657_v63, %v5642_v7  ;;  %v2727_v15 = vmul.f32 %v11950_v14, %v11892_v2  ;;  %v5716_v26 = vand.u32 2147483648, %v11898_v5 }
 0x312   :  { %v11961_v31 = vmul.f32 %v11952_v8, %v11952_v8  ;;  %v2692_v38 = vmul.f32 %v11911_v6, %v2691_v41  ;;  %v5709_v12 = vadd.f32 %v11926_v9, %v5708_v28  ;;  %v5714_v56 = vand.u32 2147483647, %v11898_v5 }
 0x313   :  { %v5538_v19 = vmul.f32 0.002785687, %v11946_v55  ;;  %v11967_v17 = vmul.f32 %v11955_v57, %v11955_v57  ;;  %v2678_v47 = vmul.f32 %v11760_v42, %v2677_v44  ;;  %v2712_v54 = vmul.f32 0.5, %v2711_v4 }
 0x314   :  { %v5599_v7 = vmul.f32 0.002785687, %v11961_v31  ;;  %v2728_v36 = vmul.f32 %v11950_v14, %v2727_v15  ;;  %v2693_v41 = vmul.f32 0.5, %v2692_v38  ;;  %v5713_v42 = vsel %vm11980_vm1, %v11926_v9, %v5709_v12 }
 0x315   :  { %v5539_v37 = vadd.f32 -0.015866, %v5538_v19  ;;  %v5660_v27 = vmul.f32 0.002785687, %v11967_v17  ;;  %v5717_v19 = vor.u32 1.1754944e-38, %v5716_v26  ;;  %vm5715_vm14 = vcmp.eq.f32.partialorder %v5714_v56, 8.507059e+37 }
 0x316   :  { %v5600_v45 = vadd.f32 -0.015866, %v5599_v7  ;;  %v5703_v7 = vmin.f32 %v11883_v48, %v11886_v13  ;;  %vm5693_vm10 = vcmp.eq.s32.totalorder %v11859_v21, inf  ;;  %vm5694_vm11 = vcmp.eq.s32.totalorder %v11850_v49, inf }
 0x317   :  { %v5540_v50 = vmul.f32 %v5539_v37, %v11946_v55  ;;  %v5661_v11 = vadd.f32 -0.015866, %v5660_v27  ;;  %v2679_v37 = vmul.f32 %v2678_v47, %v11721_v1  ;;  %v2729_v27 = vmul.f32 0.5, %v2728_v36  ;;  %vm12022_vm2 = vmand %vm5693_vm10, %vm5694_vm11 }
 0x318   :  { %v5601_v28 = vmul.f32 %v5600_v45, %v11961_v31  ;;  %v5718_v38 = vsel %vm5715_vm14, %v5717_v19, %v5713_v42  ;;  %v2694_v45 = vsub.f32 1.5, %v2693_v41  ;;  %v2683_v47 = vand.u32 2147483648, %v11721_v1 }
 0x319   :  { %v5541_v43 = vadd.f32 0.04247222, %v5540_v50  ;;  %v5662_v4 = vmul.f32 %v5661_v11, %v11967_v17  ;;  %v2713_v50 = vsub.f32 1.5, %v2712_v54  ;;  %v12011_v61 = vmul.f32 %v5718_v38, %v5703_v7 }
 0x31a   :  { %v5602_v15 = vadd.f32 0.04247222, %v5601_v28  ;;  %v2730_v54 = vsub.f32 1.5, %v2729_v27  ;;  %v2681_v19 = vsel %vm2680_vm6, %v11721_v1, %v2679_v37  ;;  %v2695_v41 = vmul.f32 %v11911_v6, %v2694_v45 }
 0x31b   :  { %v5542_v63 = vmul.f32 %v5541_v43, %v11946_v55  ;;  %v5663_v12 = vadd.f32 0.04247222, %v5662_v4  ;;  %v2714_v28 = vmul.f32 %v11909_v30, %v2713_v50  ;;  %v12028_v37 = vmul.f32 %v12011_v61, %v12011_v61 }
 0x31c   :  { %v5603_v43 = vmul.f32 %v5602_v15, %v11961_v31  ;;  %v12032_v30 = vsel %vm2682_vm7, %v2683_v47, %v2681_v19  ;;  %v2731_v6 = vmul.f32 %v11950_v14, %v2730_v54  ;;  %vm2716_vm5 = vcmp.eq.f32.partialorder %v11876_v18, inf }
 0x31d   :  { %v5543_v44 = vadd.f32 -0.074975304, %v5542_v63  ;;  %v5664_v63 = vmul.f32 %v5663_v12, %v11967_v17  ;;  %v5721_v45 = vmul.f32 0.002785687, %v12028_v37  ;;  %vm2718_vm3 = vcmp.eq.f32.partialorder %v11876_v18, 0.0 }
 0x31e   :  { %v5604_v56 = vadd.f32 -0.074975304, %v5603_v43  ;;  %v2696_v43 = vmul.f32 %v2695_v41, %v11878_v60  ;;  %vm2697_vm15 = vcmp.eq.f32.partialorder %v11878_v60, inf  ;;  %v2719_v14 = vand.u32 2147483648, %v11876_v18 }
 0x31f   :  { %v5544_v26 = vmul.f32 %v5543_v44, %v11946_v55  ;;  %v5665_v4 = vadd.f32 -0.074975304, %v5664_v63  ;;  %v2700_v47 = vand.u32 2147483648, %v11878_v60  ;;  %v2732_v54 = vmul.f32 %v2731_v6, %v11892_v2 }
 0x320   :  { %v5605_v42 = vmul.f32 %v5604_v56, %v11961_v31  ;;  %v5722_v56 = vadd.f32 -0.015866, %v5721_v45  ;;  %vm2733_vm1 = vcmp.eq.f32.partialorder %v11892_v2, inf  ;;  %vm2699_vm9 = vcmp.eq.f32.partialorder %v11878_v60, 0.0 }
 0x321   :  { %v5545_v9 = vadd.f32 0.1064488, %v5544_v26  ;;  %v5666_v27 = vmul.f32 %v5665_v4, %v11967_v17  ;;  %v2715_v26 = vmul.f32 %v2714_v28, %v11876_v18  ;;  %vm2735_vm0 = vcmp.eq.f32.partialorder %v11892_v2, 0.0 }
 0x322   :  { %v5606_v15 = vadd.f32 0.1064488, %v5605_v42  ;;  %v5723_v28 = vmul.f32 %v5722_v56, %v12028_v37  ;;  %v2698_v42 = vsel %vm2697_vm15, %v11878_v60, %v2696_v43  ;;  %vm5561_vm14 = vcmp.lt.s32.totalorder %v11812_v33, 0 }
 0x323   :  { %v5546_v36 = vmul.f32 %v5545_v9, %v11946_v55  ;;  %v5667_v9 = vadd.f32 0.1064488, %v5666_v27  ;;  %v2717_v19 = vsel %vm2716_vm5, %v11876_v18, %v2715_v26  ;;  %v2734_v26 = vsel %vm2733_vm1, %v11892_v2, %v2732_v54 }
 0x324   :  { %v5607_v38 = vmul.f32 %v5606_v15, %v11961_v31  ;;  %v2736_v15 = vand.u32 2147483648, %v11892_v2  ;;  %v12059_v27 = vsel %vm2718_vm3, %v2719_v14, %v2717_v19  ;;  %v12064_v43 = vsel %vm2699_vm9, %v2700_v47, %v2698_v42 }
 0x325   :  { %v5547_v44 = vadd.f32 -0.14207031, %v5546_v36  ;;  %v5668_v63 = vmul.f32 %v5667_v9, %v11967_v17  ;;  %vm5754_vm13 = vcmp.eq.s32.totalorder %v11883_v48, inf  ;;  %vm5755_vm8 = vcmp.eq.s32.totalorder %v11886_v13, inf }
 0x326   :  { %v5608_v12 = vadd.f32 -0.14207031, %v5607_v38  ;;  %v12071_v18 = vsel %vm2735_vm0, %v2736_v15, %v2734_v26  ;;  %vm5555_vm6 = vcmp.gt.f32.partialorder %v11819_v52, %v11826_v10  ;;  %vm5558_vm7 = vcmp.lt.f32.partialorder %v11812_v33, 0.0  ;;  %vm12079_vm10 = vmand %vm5754_vm13, %vm5755_vm8 }
 0x327   :  { %v5548_v50 = vmul.f32 %v5547_v44, %v11946_v55  ;;  %v5669_v4 = vadd.f32 -0.14207031, %v5668_v63  ;;  %v14105_v54 = vmov 0.0   ;;  %vm5563_vm11 = vcmp.eq.f32.partialorder %v11781_v46, 0.0 }
 0x328   :  { %v5609_v41 = vmul.f32 %v5608_v12, %v11961_v31  ;;  %vm5565_vm5 = vcmp.ne.f32.partialorder %v11812_v33, %v11812_v33  ;;  %vm5566_vm3 = vcmp.ne.f32.partialorder %v11781_v46, %v11781_v46  ;;  %vm5622_vm15 = vcmp.lt.s32.totalorder %v11829_v62, 0 }
 0x329   :  { %v5549_v1 = vadd.f32 0.19993454, %v5548_v50  ;;  %v5724_v50 = vadd.f32 0.04247222, %v5723_v28  ;;  %v5670_v45 = vmul.f32 %v5669_v4, %v11967_v17  ;;  %vm5616_vm1 = vcmp.gt.f32.partialorder %v11839_v34, %v11847_v32  ;;  %vm12110_vm9 = vmor %vm5565_vm5, %vm5566_vm3 }
 0x32a   :  { %v5610_v6 = vadd.f32 0.19993454, %v5609_v41  ;;  %vm5619_vm0 = vcmp.lt.f32.partialorder %v11829_v62, 0.0  ;;  %v5623_v10 = vsel %vm5622_vm15, 3.1415927, %v14105_v54  ;;  %vm5626_vm13 = vcmp.ne.f32.partialorder %v11829_v62, %v11829_v62 }
 0x32b   :  { %v5550_v36 = vmul.f32 %v5549_v1, %v11946_v55  ;;  %v5725_v1 = vmul.f32 %v5724_v50, %v12028_v37  ;;  %v5671_v12 = vadd.f32 0.19993454, %v5670_v45  ;;  %v5576_v50 = vand.u32 2147483648, %v11781_v46 }
 0x32c   :  { %v5611_v60 = vmul.f32 %v5610_v6, %v11961_v31  ;;  %vm5627_vm8 = vcmp.ne.f32.partialorder %v11789_v35, %v11789_v35  ;;  %vm5680_vm5 = vcmp.lt.f32.partialorder %v11842_v53, 0.0  ;;  %vm5687_vm3 = vcmp.ne.f32.partialorder %v11842_v53, %v11842_v53 }
 0x32d   :  { %v5551_v44 = vadd.f32 -0.33333147, %v5550_v36  ;;  %v5726_v14 = vadd.f32 -0.074975304, %v5725_v1  ;;  %v5672_v56 = vmul.f32 %v5671_v12, %v11967_v17  ;;  %v5562_v36 = vsel %vm5561_vm14, 3.1415927, %v14105_v54 }
 0x32e   :  { %v5612_v2 = vadd.f32 -0.33333147, %v5611_v60  ;;  %vm5624_vm14 = vcmp.eq.f32.partialorder %v11789_v35, 0.0  ;;  %vm5688_vm15 = vcmp.ne.f32.partialorder %v11809_v39, %v11809_v39  ;;  %v5698_v11 = vand.u32 2147483648, %v11809_v39 }
 0x32f   :  { %v5552_v38 = vmul.f32 %v5551_v44, %v11946_v55  ;;  %v5673_v41 = vadd.f32 -0.33333147, %v5672_v56  ;;  %v14103_v44 = vmov 0.7853982   ;;  %v12295_v47 = vadd.f32 %v11800_v16, %v11766_v23 }
 0x330   :  { %v5613_v63 = vmul.f32 %v5612_v2, %v11961_v31  ;;  %v5570_v4 = vsel %vm5558_vm7, 2.3561945, %v14103_v44 }
 0x331   :  { %v5553_v9 = vmul.f32 %v5552_v38, %v11936_v24  ;;  %v5674_v15 = vmul.f32 %v5673_v41, %v11967_v17  ;;  %v2702_v41 = vadd.f32 %v12064_v43, %v12032_v30 }
 0x332   :  { %v5614_v28 = vmul.f32 %v5613_v63, %v11952_v8 }
 0x333   :  { %v5554_v55 = vadd.f32 %v5553_v9, %v11936_v24  ;;  %v5727_v24 = vmul.f32 %v5726_v14, %v12028_v37  ;;  %v5675_v17 = vmul.f32 %v5674_v15, %v11955_v57  ;;  %v5631_v9 = vsel %vm5619_vm0, 2.3561945, %v14103_v44 }
 0x334   :  { %v5615_v26 = vadd.f32 %v5614_v28, %v11952_v8  ;;  %v2738_v28 = vadd.f32 %v12071_v18, %v12059_v27  ;;  %v5692_v27 = vsel %vm5680_vm5, 2.3561945, %v14103_v44  ;;  %v2703_v52 = vmul.f32 0.5, %v2702_v41 }
 0x335   :  { %v5556_v19 = vsub.f32 1.5707964, %v5554_v55  ;;  %v5728_v42 = vadd.f32 0.1064488, %v5727_v24  ;;  %v5676_v12 = vadd.f32 %v5675_v17, %v11955_v57 }
 0x336   :  { %v5617_v45 = vsub.f32 1.5707964, %v5615_v26 }
 0x337   :  { %v5557_v31 = vsel %vm5555_vm6, %v5556_v19, %v5554_v55  ;;  %v5729_v38 = vmul.f32 %v5728_v42, %v12028_v37  ;;  %vm5677_vm6 = vcmp.gt.f32.partialorder %v11850_v49, %v11859_v21  ;;  %v5637_v42 = vand.u32 2147483648, %v11789_v35 }
 0x338   :  { %v5559_v6 = vsub.f32 3.1415927, %v5557_v31  ;;  %v5618_v2 = vsel %vm5616_vm1, %v5617_v45, %v5615_v26  ;;  %vm12167_vm1 = vmor %vm5687_vm3, %vm5688_vm15 }
 0x339   :  { %v5730_v60 = vadd.f32 -0.14207031, %v5729_v38  ;;  %v5620_v56 = vsub.f32 3.1415927, %v5618_v2 }
 0x33a   :  { %v5560_v8 = vsel %vm5558_vm7, %v5559_v6, %v5557_v31  ;;  %vm5683_vm7 = vcmp.lt.s32.totalorder %v11842_v53, 0  ;;  %v5759_v31 = vand.u32 2147483648, %v11872_v51 }
 0x33b   :  { %v5564_v1 = vsel %vm5563_vm11, %v5562_v36, %v5560_v8  ;;  %v5731_v14 = vmul.f32 %v5730_v60, %v12028_v37  ;;  %v5678_v36 = vsub.f32 1.5707964, %v5676_v12  ;;  %vm12141_vm11 = vmor %vm5626_vm13, %vm5627_vm8  ;;  %v5621_v49 = vsel %vm5619_vm0, %v5620_v56, %v5618_v2 }
 0x33c   :  { %v5568_v33 = vsel %vm12110_vm9, nan, %v5564_v1  ;;  %v5625_v5 = vsel %vm5624_vm14, %v5623_v10, %v5621_v49  ;;  %v5684_v24 = vsel %vm5683_vm7, 3.1415927, %v14105_v54  ;;  %v2739_v10 = vmul.f32 0.5, %v2738_v28 }
 0x33d   :  { %v5574_v55 = vsel %vm11989_vm12, %v5570_v4, %v5568_v33  ;;  %v5732_v34 = vadd.f32 0.19993454, %v5731_v14  ;;  %v5679_v21 = vsel %vm5677_vm6, %v5678_v36, %v5676_v12  ;;  %vm5685_vm12 = vcmp.eq.f32.partialorder %v11809_v39, 0.0 }
 0x33e   :  { %v5575_v32 = vand.u32 2147483647, %v5574_v55  ;;  %v5681_v63 = vsub.f32 3.1415927, %v5679_v21  ;;  %v5629_v62 = vsel %vm12141_vm11, nan, %v5625_v5  ;;  %vm5738_vm9 = vcmp.gt.f32.partialorder %v11886_v13, %v11883_v48 }
 0x33f   :  { %v5733_v19 = vmul.f32 %v5732_v34, %v12028_v37  ;;  %v5635_v4 = vsel %vm12007_vm4, %v5631_v9, %v5629_v62  ;;  %vm5744_vm4 = vcmp.lt.s32.totalorder %v11868_v58, 0  ;;  %vm5741_vm0 = vcmp.lt.f32.partialorder %v11868_v58, 0.0 }
 0x340   :  { %v5682_v30 = vsel %vm5680_vm5, %v5681_v63, %v5679_v21  ;;  %v12178_v18 = vor.u32 %v5576_v50, %v5575_v32  ;;  %v5636_v15 = vand.u32 2147483647, %v5635_v4  ;;  %v5745_v45 = vsel %vm5744_vm4, 3.1415927, %v14105_v54 }
 0x341   :  { %v5734_v43 = vadd.f32 -0.33333147, %v5733_v19  ;;  %v5686_v6 = vsel %vm5685_vm12, %v5684_v24, %v5682_v30  ;;  %vm5748_vm6 = vcmp.ne.f32.partialorder %v11868_v58, %v11868_v58  ;;  %vm5749_vm7 = vcmp.ne.f32.partialorder %v11872_v51, %v11872_v51 }
 0x342   :  { %v5690_v26 = vsel %vm12167_vm1, nan, %v5686_v6  ;;  %v12187_v53 = vor.u32 %v5637_v42, %v5636_v15  ;;  %vm12238_vm4 = vmor %vm5748_vm6, %vm5749_vm7  ;;  %v12243_v49 = vmul.f32 0.5, %v2703_v52  ;;  %v5753_v5 = vsel %vm5741_vm0, 2.3561945, %v14103_v44 }
 0x343   :  { %v5735_v38 = vmul.f32 %v5734_v43, %v12028_v37  ;;  %v5696_v50 = vsel %vm12022_vm2, %v5692_v27, %v5690_v26  ;;  %vm5746_vm2 = vcmp.eq.f32.partialorder %v11872_v51, 0.0  ;;  %v12251_v24 = vmul.f32 0.5, %v2739_v10 }
 0x344   :  { %v5697_v17 = vand.u32 2147483647, %v5696_v50  ;;  %vm5761_vm14 = vcmp.lt.f32.partialorder %v12187_v53, %v12178_v18  ;;  %vm5770_vm13 = vcmp.lt.f32.partialorder %v12178_v18, %v12187_v53  ;;  %vm5773_vm8 = vcmp.eq.f32.partialorder %v12178_v18, %v12187_v53 }
 0x345   :  { %v5736_v8 = vmul.f32 %v5735_v38, %v12011_v61  ;;  %v5771_v60 = vsel %vm5770_vm13, 1.0, %v14105_v54  ;;  %v5762_v1 = vsel %vm5761_vm14, 1.0, %v14105_v54  ;;  %v5774_v9 = vsel %vm5773_vm8, 1.0, %v14105_v54 }
 0x346   :  { %v12202_v7 = vor.u32 %v5698_v11, %v5697_v17  ;;  %v5775_v33 = vadd.f32 %v5774_v9, %v5771_v60  ;;  %v12255_v19 = vadd.f32 %v11781_v46, %v11764_v22  ;;  %v12261_v62 = vadd.f32 %v11789_v35, %v11764_v22 }
 0x347   :  { %v5737_v37 = vadd.f32 %v5736_v8, %v12011_v61  ;;  %v12265_v58 = vadd.f32 %v11809_v39, %v11764_v22  ;;  %v12272_v4 = vadd.f32 %v11872_v51, %v11764_v22  ;;  %v12276_v30 = vadd.f32 %v11775_v3, %v11766_v23 }
 0x348   :  { %vm5764_vm11 = vcmp.lt.f32.partialorder %v12202_v7, %v12178_v18  ;;  %vm5776_vm5 = vcmp.lt.f32.partialorder %v12202_v7, %v12187_v53  ;;  %vm5782_vm3 = vcmp.lt.f32.partialorder %v12178_v18, %v12202_v7  ;;  %vm5785_vm15 = vcmp.eq.f32.partialorder %v12178_v18, %v12202_v7 }
 0x349   :  { %v5739_v12 = vsub.f32 1.5707964, %v5737_v37  ;;  %v5765_v61 = vsel %vm5764_vm11, 1.0, %v14105_v54  ;;  %v5777_v2 = vsel %vm5776_vm5, 1.0, %v14105_v54  ;;  %v5783_v36 = vsel %vm5782_vm3, 1.0, %v14105_v54 }
 0x34a   :  { %v5766_v55 = vadd.f32 %v5765_v61, %v5762_v1  ;;  %v5778_v56 = vadd.f32 %v5777_v2, %v5775_v33  ;;  %v5786_v34 = vsel %vm5785_vm15, 1.0, %v14105_v54  ;;  %vm5788_vm12 = vcmp.lt.f32.partialorder %v12187_v53, %v12202_v7 }
 0x34b   :  { %v5740_v14 = vsel %vm5738_vm9, %v5739_v12, %v5737_v37  ;;  %vm5791_vm1 = vcmp.eq.f32.partialorder %v12187_v53, %v12202_v7  ;;  %v5787_v13 = vadd.f32 %v5786_v34, %v5783_v36  ;;  %v5789_v32 = vsel %vm5788_vm12, 1.0, %v14105_v54 }
 0x34c   :  { %v5742_v57 = vsub.f32 3.1415927, %v5740_v14  ;;  %v5792_v63 = vsel %vm5791_vm1, 1.0, %v14105_v54  ;;  %v5956_v6 = vsub.f32 %v11775_v3, %v11800_v16  ;;  %v5959_v26 = vsub.f32 %v11789_v35, %v11809_v39 }
 0x34d   :  { %v5790_v28 = vadd.f32 %v5789_v32, %v5787_v13  ;;  %v5962_v11 = vsub.f32 %v11781_v46, %v11789_v35  ;;  %v12287_v38 = vmul.f32 0.5, %v11814_v59  ;;  %v12291_v52 = vadd.f32 %v11792_v20, %v11766_v23 }
 0x34e   :  { %v5743_v21 = vsel %vm5741_vm0, %v5742_v57, %v5740_v14  ;;  %v12299_v10 = vadd.f32 %v11836_v25, %v11766_v23  ;;  %v12302_v50 = vmul.f32 0.5, %v11856_v29  ;;  %v5955_v59 = vsub.f32 %v11792_v20, %v11800_v16 }
 0x34f   :  { %v5747_v41 = vsel %vm5746_vm2, %v5745_v45, %v5743_v21  ;;  %v5793_v43 = vadd.f32 %v5792_v63, %v5790_v28  ;;  %v12306_v8 = vsub.f32 0.0, %v5956_v6  ;;  %v5958_v45 = vsub.f32 %v11775_v3, %v11792_v20 }
 0x350   :  { %v5751_v42 = vsel %vm12238_vm4, nan, %v5747_v41  ;;  %v12310_v37 = vsub.f32 0.0, %v5959_v26  ;;  %v5961_v60 = vsub.f32 %v11781_v46, %v11809_v39  ;;  %v12314_v1 = vsub.f32 0.0, %v5962_v11 }
 0x351   :  { %v5757_v27 = vsel %vm12079_vm10, %v5753_v5, %v5751_v42 }
 0x352   :  { %v5758_v15 = vand.u32 2147483647, %v5757_v27 }
 0x354   :  { %v5760_v17 = vor.u32 %v5759_v31, %v5758_v15 }
 0x356   :  { %vm5767_vm10 = vcmp.lt.f32.partialorder %v5760_v17, %v12178_v18  ;;  %vm5779_vm9 = vcmp.lt.f32.partialorder %v5760_v17, %v12187_v53  ;;  %vm5794_vm0 = vcmp.lt.f32.partialorder %v5760_v17, %v12202_v7  ;;  %vm5797_vm14 = vcmp.lt.f32.partialorder %v12178_v18, %v5760_v17 }
 0x357   :  { %v5768_v29 = vsel %vm5767_vm10, 1.0, %v14105_v54  ;;  %v5780_v9 = vsel %vm5779_vm9, 1.0, %v14105_v54  ;;  %v5795_v12 = vsel %vm5794_vm0, 1.0, %v14105_v54  ;;  %v5798_v33 = vsel %vm5797_vm14, 1.0, %v14105_v54 }
 0x358   :  { %v12324_v61 = vadd.f32 %v5768_v29, %v5766_v55  ;;  %v12326_v2 = vadd.f32 %v5780_v9, %v5778_v56  ;;  %v12328_v14 = vadd.f32 %v5795_v12, %v5793_v43  ;;  %vm5800_vm13 = vcmp.eq.f32.partialorder %v12178_v18, %v5760_v17 }
 0x359   :  { %v5801_v36 = vsel %vm5800_vm13, 1.0, %v14105_v54  ;;  %vm5803_vm8 = vcmp.lt.f32.partialorder %v12187_v53, %v5760_v17  ;;  %vm5806_vm2 = vcmp.eq.f32.partialorder %v12187_v53, %v5760_v17  ;;  %vm5809_vm6 = vcmp.lt.f32.partialorder %v12202_v7, %v5760_v17 }
 0x35a   :  { %v5802_v57 = vadd.f32 %v5801_v36, %v5798_v33  ;;  %v5804_v34 = vsel %vm5803_vm8, 1.0, %v14105_v54  ;;  %v5807_v55 = vsel %vm5806_vm2, 1.0, %v14105_v54  ;;  %v5810_v56 = vsel %vm5809_vm6, 1.0, %v14105_v54 }
 0x35b   :  { %vm5812_vm7 = vcmp.eq.f32.partialorder %v12202_v7, %v5760_v17  ;;  %vm5815_vm11 = vcmp.eq.f32.partialorder %v12324_v61, 0.0  ;;  %vm5824_vm5 = vcmp.eq.f32.partialorder %v12326_v2, 0.0  ;;  %vm5833_vm3 = vcmp.eq.f32.partialorder %v12328_v14, 0.0 }
 0x35c   :  { %v5805_v18 = vadd.f32 %v5804_v34, %v5802_v57  ;;  %v5813_v53 = vsel %vm5812_vm7, 1.0, %v14105_v54  ;;  %v5816_v48 = vsel %vm5815_vm11, 1.0, %v14105_v54  ;;  %v5825_v13 = vsel %vm5824_vm5, 1.0, %v14105_v54 }
 0x35d   :  { %v5817_v32 = vmul.f32 -1.0, %v5816_v48  ;;  %v5820_v21 = vmul.f32 %v5816_v48, %v12255_v19  ;;  %v5822_v5 = vmul.f32 %v5816_v48, %v12276_v30  ;;  %v5826_v63 = vmul.f32 -1.0, %v5825_v13 }
 0x35e   :  { %v5808_v7 = vadd.f32 %v5807_v55, %v5805_v18  ;;  %v5829_v41 = vmul.f32 %v5825_v13, %v12261_v62  ;;  %v5831_v28 = vmul.f32 %v5825_v13, %v12291_v52  ;;  %v5834_v42 = vsel %vm5833_vm3, 1.0, %v14105_v54 }
 0x35f   :  { %v5827_v31 = vadd.f32 %v5826_v63, %v5817_v32  ;;  %v5828_v27 = vadd.f32 %v5826_v63, %v5816_v48  ;;  %v5836_v43 = vmul.f32 -1.0, %v5834_v42  ;;  %v5838_v15 = vmul.f32 %v5834_v42, %v12265_v58 }
 0x360   :  { %v5811_v6 = vadd.f32 %v5810_v56, %v5808_v7  ;;  %v5830_v26 = vadd.f32 %v5829_v41, %v5820_v21  ;;  %v5832_v11 = vadd.f32 %v5831_v28, %v5822_v5  ;;  %v5840_v17 = vmul.f32 %v5834_v42, %v12295_v47 }
 0x361   :  { %v5835_v29 = vadd.f32 %v5834_v42, %v5827_v31  ;;  %v5837_v9 = vadd.f32 %v5836_v43, %v5828_v27  ;;  %vm5850_vm15 = vcmp.eq.f32.partialorder %v12324_v61, 1.0  ;;  %vm5859_vm12 = vcmp.eq.f32.partialorder %v12326_v2, 1.0 }
 0x362   :  { %v12354_v12 = vadd.f32 %v5813_v53, %v5811_v6  ;;  %v5839_v33 = vadd.f32 %v5838_v15, %v5830_v26  ;;  %v5841_v36 = vadd.f32 %v5840_v17, %v5832_v11  ;;  %v5851_v57 = vsel %vm5850_vm15, 1.0, %v14105_v54 }
 0x363   :  { %v5852_v34 = vmul.f32 -1.0, %v5851_v57  ;;  %v5855_v55 = vmul.f32 %v5851_v57, %v12255_v19  ;;  %v5857_v56 = vmul.f32 %v5851_v57, %v12276_v30  ;;  %v5860_v18 = vsel %vm5859_vm12, 1.0, %v14105_v54 }
 0x364   :  { %vm5842_vm1 = vcmp.eq.f32.partialorder %v12354_v12, 0.0  ;;  %v5861_v48 = vmul.f32 -1.0, %v5860_v18  ;;  %v5864_v13 = vmul.f32 %v5860_v18, %v12261_v62  ;;  %v5866_v32 = vmul.f32 %v5860_v18, %v12291_v52 }
 0x365   :  { %v5843_v53 = vsel %vm5842_vm1, 1.0, %v14105_v54  ;;  %vm5868_vm4 = vcmp.eq.f32.partialorder %v12328_v14, 1.0  ;;  %vm5877_vm10 = vcmp.eq.f32.partialorder %v12354_v12, 1.0  ;;  %vm5885_vm9 = vcmp.eq.f32.partialorder %v12324_v61, 2.0 }
 0x366   :  { %v12367_v21 = vadd.f32 %v5843_v53, %v5835_v29  ;;  %v12369_v5 = vadd.f32 %v5843_v53, %v5837_v9  ;;  %v5846_v63 = vmul.f32 %v5843_v53, %v12272_v4  ;;  %v5848_v7 = vmul.f32 %v5843_v53, %v12299_v10 }
 0x367   :  { %v5862_v41 = vadd.f32 %v5861_v48, %v5852_v34  ;;  %v5863_v28 = vadd.f32 %v5861_v48, %v5851_v57  ;;  %v5865_v42 = vadd.f32 %v5864_v13, %v5855_v55  ;;  %v5867_v31 = vadd.f32 %v5866_v32, %v5857_v56 }
 0x368   :  { %v12373_v27 = vadd.f32 %v5846_v63, %v5839_v33  ;;  %v12375_v43 = vadd.f32 %v5848_v7, %v5841_v36  ;;  %v5869_v15 = vsel %vm5868_vm4, 1.0, %v14105_v54  ;;  %v5878_v6 = vsel %vm5877_vm10, 1.0, %v14105_v54 }
 0x369   :  { %v5870_v26 = vadd.f32 %v5869_v15, %v5862_v41  ;;  %v5871_v11 = vmul.f32 -1.0, %v5869_v15  ;;  %v5873_v17 = vmul.f32 %v5869_v15, %v12265_v58  ;;  %v5875_v29 = vmul.f32 %v5869_v15, %v12295_v47 }
 0x36a   :  { %v5881_v9 = vmul.f32 %v5878_v6, %v12272_v4  ;;  %v5883_v57 = vmul.f32 %v5878_v6, %v12299_v10  ;;  %v5886_v33 = vsel %vm5885_vm9, 1.0, %v14105_v54  ;;  %vm5894_vm0 = vcmp.eq.f32.partialorder %v12326_v2, 2.0 }
 0x36b   :  { %v5872_v36 = vadd.f32 %v5871_v11, %v5863_v28  ;;  %v5874_v34 = vadd.f32 %v5873_v17, %v5865_v42  ;;  %v5876_v55 = vadd.f32 %v5875_v29, %v5867_v31  ;;  %v12387_v56 = vadd.f32 %v5878_v6, %v5870_v26 }
 0x36c   :  { %v5887_v18 = vmul.f32 -1.0, %v5886_v33  ;;  %v5890_v48 = vmul.f32 %v5886_v33, %v12255_v19  ;;  %v5892_v13 = vmul.f32 %v5886_v33, %v12276_v30  ;;  %v5895_v32 = vsel %vm5894_vm0, 1.0, %v14105_v54 }
 0x36d   :  { %v12392_v53 = vadd.f32 %v5878_v6, %v5872_v36  ;;  %v12394_v63 = vadd.f32 %v5881_v9, %v5874_v34  ;;  %v12396_v7 = vadd.f32 %v5883_v57, %v5876_v55  ;;  %v5896_v41 = vmul.f32 -1.0, %v5895_v32 }
 0x36e   :  { %v5899_v28 = vmul.f32 %v5895_v32, %v12261_v62  ;;  %v5901_v42 = vmul.f32 %v5895_v32, %v12291_v52  ;;  %vm5903_vm14 = vcmp.eq.f32.partialorder %v12328_v14, 2.0  ;;  %vm5912_vm13 = vcmp.eq.f32.partialorder %v12354_v12, 2.0 }
 0x36f   :  { %14458 = vst [vmem:[#allocation44_spill] sm:$0xff] %v12396_v7  ;;  %v5897_v31 = vadd.f32 %v5896_v41, %v5887_v18  ;;  %v5898_v15 = vadd.f32 %v5896_v41, %v5886_v33  ;;  %v5904_v26 = vsel %vm5903_vm14, 1.0, %v14105_v54  ;;  %v5913_v6 = vsel %vm5912_vm13, 1.0, %v14105_v54 }
 0x370   :  { %v5900_v11 = vadd.f32 %v5899_v28, %v5890_v48  ;;  %v5902_v17 = vadd.f32 %v5901_v42, %v5892_v13  ;;  %v5906_v29 = vmul.f32 -1.0, %v5904_v26  ;;  %v5908_v9 = vmul.f32 %v5904_v26, %v12265_v58 }
 0x371   :  { %v5905_v57 = vadd.f32 %v5904_v26, %v5897_v31  ;;  %v5910_v36 = vmul.f32 %v5904_v26, %v12295_v47  ;;  %v5916_v34 = vmul.f32 %v5913_v6, %v12272_v4  ;;  %v5918_v55 = vmul.f32 %v5913_v6, %v12299_v10 }
 0x372   :  { %v5907_v32 = vadd.f32 %v5906_v29, %v5898_v15  ;;  %v5909_v44 = vadd.f32 %v5908_v9, %v5900_v11  ;;  %vm5920_vm8 = vcmp.eq.f32.partialorder %v12324_v61, 3.0  ;;  %vm5929_vm2 = vcmp.eq.f32.partialorder %v12326_v2, 3.0 }
 0x373   :  { %v5911_v33 = vadd.f32 %v5910_v36, %v5902_v17  ;;  %v12410_v18 = vadd.f32 %v5913_v6, %v5905_v57  ;;  %v5921_v48 = vsel %vm5920_vm8, 1.0, %v14105_v54  ;;  %v5930_v13 = vsel %vm5929_vm2, 1.0, %v14105_v54 }
 0x374   :  { %v12414_v41 = vadd.f32 %v5913_v6, %v5907_v32  ;;  %v12416_v28 = vadd.f32 %v5916_v34, %v5909_v44  ;;  %v5922_v42 = vmul.f32 -1.0, %v5921_v48  ;;  %v5925_v31 = vmul.f32 %v5921_v48, %v12255_v19 }
 0x375   :  { %v12419_v15 = vadd.f32 %v5918_v55, %v5911_v33  ;;  %v5927_v61 = vmul.f32 %v5921_v48, %v12276_v30  ;;  %v5931_v26 = vmul.f32 -1.0, %v5930_v13  ;;  %v5934_v2 = vmul.f32 %v5930_v13, %v12261_v62 }
 0x376   :  { %14459 = vst [vmem:[#allocation58_spill] sm:$0xff] %v12416_v28  ;;  %v5936_v11 = vmul.f32 %v5930_v13, %v12291_v52  ;;  %vm5938_vm6 = vcmp.eq.f32.partialorder %v12328_v14, 3.0  ;;  %vm5947_vm7 = vcmp.eq.f32.partialorder %v12354_v12, 3.0  ;;  %v5964_v44 = vmul.f32 %v11800_v16, %v11789_v35 }
 0x377   :  { %14460 = vst [vmem:[#allocation57_spill] sm:$0xff] %v12419_v15  ;;  %v5932_v6 = vadd.f32 %v5931_v26, %v5922_v42  ;;  %v5933_v17 = vadd.f32 %v5931_v26, %v5921_v48  ;;  %v5935_v29 = vadd.f32 %v5934_v2, %v5925_v31  ;;  %v5939_v19 = vsel %vm5938_vm6, 1.0, %v14105_v54 }
 0x378   :  { %v5937_v9 = vadd.f32 %v5936_v11, %v5927_v61  ;;  %v5941_v57 = vmul.f32 -1.0, %v5939_v19  ;;  %v5943_v30 = vmul.f32 %v5939_v19, %v12265_v58  ;;  %v5945_v62 = vmul.f32 %v5939_v19, %v12295_v47 }
 0x379   :  { %v5940_v36 = vadd.f32 %v5939_v19, %v5932_v6  ;;  %v5948_v52 = vsel %vm5947_vm7, 1.0, %v14105_v54  ;;  %v5965_v14 = vmul.f32 %v11792_v20, %v11809_v39  ;;  %v5967_v12 = vmul.f32 %v11800_v16, %v11781_v46 }
 0x37a   :  { %v5942_v34 = vadd.f32 %v5941_v57, %v5933_v17  ;;  %v5944_v55 = vadd.f32 %v5943_v30, %v5935_v29  ;;  %v5946_v32 = vadd.f32 %v5945_v62, %v5937_v9  ;;  %v5951_v33 = vmul.f32 %v5948_v52, %v12272_v4 }
 0x37b   :  { %v5949_v48 = vadd.f32 %v5948_v52, %v5940_v36  ;;  %v5953_v13 = vmul.f32 %v5948_v52, %v12299_v10  ;;  %v5966_v58 = vsub.f32 %v5964_v44, %v5965_v14  ;;  %v5968_v47 = vmul.f32 %v11775_v3, %v11809_v39 }
 0x37c   :  { %v5950_v42 = vadd.f32 %v5948_v52, %v5942_v34  ;;  %v12440_v31 = vadd.f32 %v5951_v33, %v5944_v55  ;;  %v5971_v61 = vmul.f32 %v11792_v20, %v11781_v46  ;;  %v5972_v26 = vmul.f32 %v11775_v3, %v11789_v35 }
 0x37d   :  { %v12446_v2 = vadd.f32 %v5953_v13, %v5946_v32  ;;  %v5969_v11 = vsub.f32 %v5967_v12, %v5968_v47  ;;  %v5974_v4 = vmul.f32 %v5955_v59, %v11872_v51  ;;  %v5976_v10 = vmul.f32 %v12310_v37, %v11836_v25 }
 0x37e   :  { %14461 = vst [vmem:[#allocation56_spill] sm:$0xff] %v12440_v31  ;;  %v5973_v44 = vsub.f32 %v5971_v61, %v5972_v26  ;;  %v5979_v6 = vmul.f32 %v12306_v8, %v11872_v51  ;;  %v5981_v17 = vmul.f32 %v5961_v60, %v11836_v25  ;;  %v5984_v29 = vmul.f32 %v5958_v45, %v11872_v51 }
 0x37f   :  { %14462 = vst [vmem:[#allocation26_spill] sm:$0xff] %v12446_v2  ;;  %v5970_v19 = vsub.f32 0.0, %v5969_v11  ;;  %v5977_v9 = vadd.f32 %v5976_v10, %v5974_v4  ;;  %v5986_v59 = vmul.f32 %v12314_v1, %v11836_v25  ;;  %v5995_v37 = vsub.f32 %v12392_v53, %v12414_v41 }
 0x380   :  { %v5982_v57 = vadd.f32 %v5981_v17, %v5979_v6  ;;  %v5996_v8 = vsub.f32 %v12369_v5, %v12414_v41  ;;  %v5998_v60 = vsub.f32 %v12369_v5, %v12392_v53  ;;  %v5999_v30 = vsub.f32 %v12387_v56, %v12410_v18 }
 0x381   :  { %v5978_v62 = vadd.f32 %v5977_v9, %v5966_v58  ;;  %v5987_v45 = vadd.f32 %v5986_v59, %v5984_v29  ;;  %v6001_v36 = vsub.f32 %v12367_v21, %v12410_v18  ;;  %v6002_v1 = vsub.f32 %v12367_v21, %v12387_v56 }
 0x382   :  { %v5983_v52 = vadd.f32 %v5982_v57, %v5970_v19  ;;  %v5997_v14 = vsub.f32 0.0, %v5996_v8  ;;  %v6000_v12 = vsub.f32 0.0, %v5999_v30  ;;  %v6004_v34 = vmul.f32 %v12414_v41, %v12387_v56 }
 0x383   :  { %v5988_v55 = vadd.f32 %v5987_v45, %v5973_v44  ;;  %v5989_v32 = vmul.f32 %v5978_v62, %v11781_v46  ;;  %v5992_v33 = vmul.f32 %v5978_v62, %v11775_v3  ;;  %v6003_v13 = vsub.f32 0.0, %v6002_v1 }
 0x384   :  { %v5990_v58 = vmul.f32 %v5983_v52, %v11789_v35  ;;  %v5993_v47 = vmul.f32 %v5983_v52, %v11792_v20  ;;  %v6005_v61 = vmul.f32 %v12410_v18, %v12392_v53  ;;  %v6007_v26 = vmul.f32 %v12414_v41, %v12367_v21 }
 0x385   :  { %v5991_v11 = vmul.f32 %v5988_v55, %v11809_v39  ;;  %v5994_v4 = vmul.f32 %v5988_v55, %v11800_v16  ;;  %v6008_v10 = vmul.f32 %v12410_v18, %v12369_v5  ;;  %v6011_v44 = vmul.f32 %v12392_v53, %v12367_v21 }
 0x386   :  { %v6006_v6 = vsub.f32 %v6004_v34, %v6005_v61  ;;  %v6012_v17 = vmul.f32 %v12387_v56, %v12369_v5  ;;  %v6014_v29 = vmul.f32 %v5995_v37, %v5949_v48  ;;  %v6016_v19 = vmul.f32 %v6000_v12, %v5950_v42 }
 0x387   :  { %v6009_v9 = vsub.f32 %v6007_v26, %v6008_v10  ;;  %v6019_v59 = vmul.f32 %v5997_v14, %v5949_v48  ;;  %v6021_v57 = vmul.f32 %v6001_v36, %v5950_v42  ;;  %v6024_v8 = vmul.f32 %v5998_v60, %v5949_v48 }
 0x388   :  { %v6013_v30 = vsub.f32 %v6011_v44, %v6012_v17  ;;  %v6017_v45 = vadd.f32 %v6016_v19, %v6014_v29  ;;  %v6026_v1 = vmul.f32 %v6003_v13, %v5950_v42  ;;  %v6035_v54 = vmul.f32 %v5993_v47, %v5988_v55 }
 0x389   :  { %v6010_v40 = vsub.f32 0.0, %v6009_v9  ;;  %v6022_v0 = vadd.f32 %v6021_v57, %v6019_v59  ;;  %v6036_v2 = vmul.f32 %v5994_v4, %v5983_v52  ;;  %v6038_v31 = vmul.f32 %v5992_v33, %v5988_v55 }
 0x38a   :  { %v12496_v15 = vadd.f32 %v6017_v45, %v6006_v6  ;;  %v6027_v34 = vadd.f32 %v6026_v1, %v6024_v8  ;;  %v6039_v61 = vmul.f32 %v5994_v4, %v5978_v62  ;;  %v6042_v28 = vmul.f32 %v5992_v33, %v5983_v52 }
 0x38b   :  { %v12498_v7 = vadd.f32 %v6022_v0, %v6010_v40  ;;  %v6037_v37 = vsub.f32 %v6035_v54, %v6036_v2  ;;  %v6043_v12 = vmul.f32 %v5993_v47, %v5978_v62  ;;  %v6045_v14 = vmul.f32 %v5990_v58, %v5988_v55 }
 0x38c   :  { %v12500_v36 = vadd.f32 %v6027_v34, %v6013_v30  ;;  %v6029_v48 = vmul.f32 %v12496_v15, %v12367_v21  ;;  %v6032_v42 = vmul.f32 %v12496_v15, %v12369_v5  ;;  %v6040_v60 = vsub.f32 %v6038_v31, %v6039_v61 }
 0x38d   :  { %v6030_v13 = vmul.f32 %v12498_v7, %v12387_v56  ;;  %v6033_v26 = vmul.f32 %v12498_v7, %v12392_v53  ;;  %v6044_v0 = vsub.f32 %v6042_v28, %v6043_v12  ;;  %v6046_v40 = vmul.f32 %v5991_v11, %v5983_v52 }
 0x38e   :  { %v6031_v54 = vmul.f32 %v12500_v36, %v12410_v18  ;;  %v6034_v2 = vmul.f32 %v12500_v36, %v12414_v41  ;;  %v6041_v10 = vsub.f32 0.0, %v6040_v60  ;;  %v6049_v21 = vmul.f32 %v5989_v32, %v5988_v55 }
 0x38f   :  { %v6047_v44 = vsub.f32 %v6045_v14, %v6046_v40  ;;  %v6050_v6 = vmul.f32 %v5991_v11, %v5978_v62  ;;  %v6052_v5 = vmul.f32 %v5989_v32, %v5983_v52  ;;  %v6053_v31 = vmul.f32 %v5990_v58, %v5978_v62 }
 0x390   :  { %v6056_v17 = vmul.f32 %v5994_v4, %v5990_v58  ;;  %v6057_v29 = vmul.f32 %v5993_v47, %v5991_v11  ;;  %v6059_v56 = vmul.f32 %v5994_v4, %v5989_v32  ;;  %v6060_v19 = vmul.f32 %v5992_v33, %v5991_v11 }
 0x391   :  { %v6048_v9 = vsub.f32 0.0, %v6047_v44  ;;  %v6051_v53 = vsub.f32 %v6049_v21, %v6050_v6  ;;  %v6054_v28 = vsub.f32 %v6052_v5, %v6053_v31  ;;  %v6063_v59 = vmul.f32 %v5993_v47, %v5989_v32 }
 0x392   :  { %v6058_v57 = vsub.f32 %v6056_v17, %v6057_v29  ;;  %v6061_v8 = vsub.f32 %v6059_v56, %v6060_v19  ;;  %v6064_v18 = vmul.f32 %v5992_v33, %v5990_v58  ;;  %v6066_v30 = vmul.f32 %v6037_v37, %v6029_v48 }
 0x393   :  { %v6055_v45 = vsub.f32 0.0, %v6054_v28  ;;  %v6068_v41 = vmul.f32 %v6041_v10, %v6030_v13  ;;  %v6070_v1 = vmul.f32 %v6044_v0, %v6031_v54  ;;  %v6072_v55 = vmul.f32 %v6048_v9, %v6029_v48 }
 0x394   :  { %v6062_v34 = vsub.f32 0.0, %v6061_v8  ;;  %v6065_v61 = vsub.f32 %v6063_v59, %v6064_v18  ;;  %v6074_v52 = vmul.f32 %v6051_v53, %v6030_v13  ;;  %v6078_v62 = vmul.f32 %v6058_v57, %v6029_v48 }
 0x395   :  { %v6069_v12 = vadd.f32 %v6068_v41, %v6066_v30  ;;  %v6076_v14 = vmul.f32 %v6055_v45, %v6031_v54  ;;  %v6084_v4 = vmul.f32 %v6037_v37, %v6032_v42  ;;  %v6086_v11 = vmul.f32 %v6041_v10, %v6033_v26 }
 0x396   :  { %v6075_v60 = vadd.f32 %v6074_v52, %v6072_v55  ;;  %v6080_v40 = vmul.f32 %v6062_v34, %v6030_v13  ;;  %v6082_v21 = vmul.f32 %v6065_v61, %v6031_v54  ;;  %v6088_v32 = vmul.f32 %v6044_v0, %v6034_v2 }
 0x397   :  { %v12514_v47 = vadd.f32 %v6070_v1, %v6069_v12  ;;  %v6087_v33 = vadd.f32 %v6086_v11, %v6084_v4  ;;  %v6090_v58 = vmul.f32 %v6048_v9, %v6032_v42  ;;  %v6092_v44 = vmul.f32 %v6051_v53, %v6033_v26 }
 0x398   :  { %v12516_v6 = vadd.f32 %v6076_v14, %v6075_v60  ;;  %v6081_v5 = vadd.f32 %v6080_v40, %v6078_v62  ;;  %v6094_v31 = vmul.f32 %v6055_v45, %v6034_v2  ;;  %v6096_v17 = vmul.f32 %v6058_v57, %v6032_v42 }
 0x399   :  { %v12518_v29 = vadd.f32 %v6088_v32, %v6087_v33  ;;  %v6093_v48 = vadd.f32 %v6092_v44, %v6090_v58  ;;  %v6098_v56 = vmul.f32 %v6062_v34, %v6033_v26  ;;  %v6100_v19 = vmul.f32 %v6065_v61, %v6034_v2 }
 0x39a   :  { %v12520_v28 = vadd.f32 %v6082_v21, %v6081_v5  ;;  %v6102_v13 = vmul.f32 %v6037_v37, %v12496_v15  ;;  %v6104_v54 = vmul.f32 %v6041_v10, %v12498_v7  ;;  %v6106_v59 = vmul.f32 %v6044_v0, %v12500_v36 }
 0x39b   :  { %v6095_v8 = vadd.f32 %v6094_v31, %v6093_v48  ;;  %v6099_v18 = vadd.f32 %v6098_v56, %v6096_v17  ;;  %v6108_v30 = vmul.f32 %v6048_v9, %v12496_v15  ;;  %v6110_v41 = vmul.f32 %v6051_v53, %v12498_v7 }
 0x39c   :  { %v6105_v42 = vadd.f32 %v6104_v54, %v6102_v13  ;;  %v6112_v1 = vmul.f32 %v6055_v45, %v12500_v36  ;;  %v6114_v26 = vmul.f32 %v6058_v57, %v12496_v15  ;;  %v6116_v2 = vmul.f32 %v6062_v34, %v12498_v7 }
 0x39d   :  { %v6101_v55 = vadd.f32 %v6100_v19, %v6099_v18  ;;  %v6111_v52 = vadd.f32 %v6110_v41, %v6108_v30  ;;  %v6118_v37 = vmul.f32 %v6065_v61, %v12500_v36  ;;  %v6128_v0 = vmul.f32 %v12514_v47, %v11781_v46 }
 0x39e   :  { %v6107_v10 = vadd.f32 %v6106_v59, %v6105_v42  ;;  %v6117_v62 = vadd.f32 %v6116_v2, %v6114_v26  ;;  %v6129_v9 = vmul.f32 %v12516_v6, %v11775_v3  ;;  %v6132_v53 = vmul.f32 %v12518_v29, %v11781_v46 }
 0x39f   :  { %v6113_v45 = vadd.f32 %v6112_v1, %v6111_v52  ;;  %v6133_v15 = vmul.f32 %v6095_v8, %v11775_v3  ;;  %v6150_v7 = vmul.f32 %v12514_v47, %v11789_v35  ;;  %v6151_v36 = vmul.f32 %v12516_v6, %v11792_v20 }
 0x3a0   :  { %v6119_v57 = vadd.f32 %v6118_v37, %v6117_v62  ;;  %v6120_v34 = vmul.f32 %v6107_v10, %v11781_v46  ;;  %v6130_v61 = vadd.f32 %v6129_v9, %v6128_v0  ;;  %v6142_v12 = vmul.f32 %v6107_v10, %v11789_v35 }
 0x3a1   :  { %v6121_v14 = vmul.f32 %v6113_v45, %v11775_v3  ;;  %v6134_v4 = vadd.f32 %v6133_v15, %v6132_v53  ;;  %v6143_v11 = vmul.f32 %v6113_v45, %v11792_v20  ;;  %v6152_v60 = vadd.f32 %v6151_v36, %v6150_v7 }
 0x3a2   :  { %v6131_v40 = vadd.f32 %v6130_v61, %v12520_v28  ;;  %v6154_v21 = vmul.f32 %v12518_v29, %v11789_v35  ;;  %v6155_v32 = vmul.f32 %v6095_v8, %v11792_v20  ;;  %v6164_v33 = vmul.f32 %v6107_v10, %v11809_v39 }
 0x3a3   :  { %v6122_v58 = vadd.f32 %v6121_v14, %v6120_v34  ;;  %v6135_v46 = vadd.f32 %v6134_v4, %v6101_v55  ;;  %v6144_v44 = vadd.f32 %v6143_v11, %v6142_v12  ;;  %v6153_v5 = vadd.f32 %v6152_v60, %v12520_v28 }
 0x3a4   :  { %v6156_v31 = vadd.f32 %v6155_v32, %v6154_v21  ;;  %v6165_v3 = vmul.f32 %v6113_v45, %v11800_v16  ;;  %v6172_v17 = vmul.f32 %v12514_v47, %v11809_v39  ;;  %v6173_v48 = vmul.f32 %v12516_v6, %v11800_v16 }
 0x3a5   :  { %v6123_v56 = vadd.f32 %v6122_v58, %v6119_v57  ;;  %v6145_v35 = vadd.f32 %v6144_v44, %v6119_v57  ;;  %v6176_v20 = vmul.f32 %v12518_v29, %v11809_v39  ;;  %v6177_v19 = vmul.f32 %v6095_v8, %v11800_v16 }
 0x3a6   :  { %v6157_v13 = vadd.f32 %v6156_v31, %v6101_v55  ;;  %v6166_v54 = vadd.f32 %v6165_v3, %v6164_v33  ;;  %v6174_v59 = vadd.f32 %v6173_v48, %v6172_v17  ;;  %v6186_v18 = vmul.f32 %v6107_v10, %v11872_v51 }
 0x3a7   :  { %7902 = vrcp.f32 %v6123_v56  ;;  %v6178_v30 = vadd.f32 %v6177_v19, %v6176_v20  ;;  %v6187_v41 = vmul.f32 %v6113_v45, %v11836_v25  ;;  %v6194_v42 = vmul.f32 %v12514_v47, %v11872_v51 }
 0x3a8   :  { %7904 = vrcp.f32 %v6145_v35  ;;  %v6167_v1 = vadd.f32 %v6166_v54, %v6119_v57  ;;  %v6175_v26 = vadd.f32 %v6174_v59, %v12520_v28  ;;  %v6195_v39 = vmul.f32 %v12516_v6, %v11836_v25 }
 0x3a9   :  { %v6179_v16 = vadd.f32 %v6178_v30, %v6101_v55  ;;  %v6188_v2 = vadd.f32 %v6187_v41, %v6186_v18  ;;  %v6198_v52 = vmul.f32 %v12518_v29, %v11872_v51  ;;  %v6199_v37 = vmul.f32 %v6095_v8, %v11836_v25 }
 0x3aa   :  { %v5471_v0 = vmul.f32 0.5, %v12302_v50  ;;  %v5472_v10 = vmul.f32 0.5, %v12287_v38  ;;  %7906 = vrcp.f32 %v6167_v1  ;;  %v6196_v47 = vadd.f32 %v6195_v39, %v6194_v42 }
 0x3ab   :  { %v6189_v62 = vadd.f32 %v6188_v2, %v6119_v57  ;;  %v6200_v9 = vadd.f32 %v6199_v37, %v6198_v52 }
 0x3ac   :  { %v6197_v53 = vadd.f32 %v6196_v47, %v12520_v28  ;;  %v5489_v7 = vadd.f32 %v5471_v0, %v12251_v24  ;;  %v5491_v51 = vadd.f32 %v5472_v10, %v12243_v49 }
 0x3ad   :  { %v7903_v45 = vpop.eup %7902  ;;  %7908 = vrcp.f32 %v6189_v62  ;;  %v6201_v6 = vadd.f32 %v6200_v9, %v6101_v55 }
 0x3ae   :  { %v7905_v15 = vpop.eup %7904  ;;  %v6125_v29 = vmul.f32 %v7903_v45, %v6123_v56  ;;  %v5490_v34 = vmul.f32 0.5, %v5489_v7  ;;  %v5492_v61 = vmul.f32 0.5, %v5491_v51 }
 0x3af   :  { %v6147_v25 = vmul.f32 %v7905_v15, %v6145_v35 }
 0x3b0   :  { %v7907_v8 = vpop.eup %7906  ;;  %v6126_v50 = vsub.f32 2.0, %v6125_v29 }
 0x3b1   :  { %v6148_v36 = vsub.f32 2.0, %v6147_v25  ;;  %v6169_v38 = vmul.f32 %v7907_v8, %v6167_v1 }
 0x3b2   :  { %v6127_v57 = vmul.f32 %v7903_v45, %v6126_v50 }
 0x3b3   :  { %v7909_v12 = vpop.eup %7908  ;;  %v6149_v14 = vmul.f32 %v7905_v15, %v6148_v36  ;;  %v6170_v28 = vsub.f32 2.0, %v6169_v38 }
 0x3b4   :  { %v6136_v4 = vmul.f32 %v6131_v40, %v6127_v57  ;;  %v6139_v11 = vmul.f32 %v6135_v46, %v6127_v57  ;;  %v6191_v55 = vmul.f32 %v7909_v12, %v6189_v62  ;;  %v14464_v57 = vld [vmem:[#allocation58_spill] sm:$0xff] }
 0x3b5   :  { %v6158_v60 = vmul.f32 %v6153_v5, %v6149_v14  ;;  %v6161_v21 = vmul.f32 %v6157_v13, %v6149_v14  ;;  %v6171_v24 = vmul.f32 %v7907_v8, %v6170_v28 }
 0x3b6   :  { %v6137_v32 = vmul.f32 %v6136_v4, %v5490_v34  ;;  %v6140_v49 = vmul.f32 %v6139_v11, %v5492_v61  ;;  %v6192_v33 = vsub.f32 2.0, %v6191_v55 }
 0x3b7   :  { %v6159_v58 = vmul.f32 %v6158_v60, %v5490_v34  ;;  %v6162_v44 = vmul.f32 %v6161_v21, %v5492_v61  ;;  %v6180_v31 = vmul.f32 %v6175_v26, %v6171_v24  ;;  %v6183_v3 = vmul.f32 %v6179_v16, %v6171_v24  ;;  %v14465_v60 = vld [vmem:[#allocation57_spill] sm:$0xff] }
 0x3b8   :  { %v12576_v17 = vadd.f32 %v6137_v32, %v11764_v22  ;;  %v12579_v48 = vadd.f32 %v6140_v49, %v11766_v23  ;;  %v6193_v56 = vmul.f32 %v7909_v12, %v6192_v33 }
 0x3b9   :  { %v12582_v40 = vadd.f32 %v6159_v58, %v11764_v22  ;;  %v12585_v46 = vadd.f32 %v6162_v44, %v11766_v23  ;;  %v6181_v5 = vmul.f32 %v6180_v31, %v5490_v34  ;;  %v6184_v35 = vmul.f32 %v6183_v3, %v5492_v61 }
 0x3ba   :  { %v6202_v20 = vmul.f32 %v6197_v53, %v6193_v56  ;;  %v6205_v19 = vmul.f32 %v6201_v6, %v6193_v56  ;;  %v14463_v53 = vld [vmem:[#allocation44_spill] sm:$0xff] }
 0x3bb   :  { %v12588_v13 = vadd.f32 %v6181_v5, %v11764_v22  ;;  %v12591_v54 = vadd.f32 %v6184_v35, %v11766_v23  ;;  %v6208_v59 = vadd.f32 %v12582_v40, %v12576_v17  ;;  %v6212_v18 = vadd.f32 %v12585_v46, %v12579_v48  ;;  %v14466_v5 = vld [vmem:[#allocation56_spill] sm:$0xff] }
 0x3bc   :  { %v6203_v30 = vmul.f32 %v6202_v20, %v5490_v34  ;;  %v6206_v41 = vmul.f32 %v6205_v19, %v5492_v61 }
 0x3bd   :  { %v6209_v42 = vadd.f32 %v6208_v59, %v12588_v13  ;;  %v6213_v1 = vadd.f32 %v6212_v18, %v12591_v54  ;;  %v14467_v18 = vld [vmem:[#allocation26_spill] sm:$0xff] }
 0x3be   :  { %v12600_v26 = vadd.f32 %v6203_v30, %v11764_v22  ;;  %v12603_v39 = vadd.f32 %v6206_v41, %v11766_v23 }
 0x3c0   :  { %v6210_v16 = vadd.f32 %v6209_v42, %v12600_v26  ;;  %v6214_v2 = vadd.f32 %v6213_v1, %v12603_v39 }
 0x3c2   :  { %v12607_v52 = vmul.f32 0.25, %v6210_v16  ;;  %v12609_v37 = vmul.f32 0.25, %v6214_v2 }
 0x3c4   :  { %v6216_v0 = vsub.f32 %v12576_v17, %v12607_v52  ;;  %v6217_v10 = vsub.f32 %v12579_v48, %v12609_v37  ;;  %v6218_v22 = vsub.f32 %v12373_v27, %v12607_v52  ;;  %v6219_v23 = vsub.f32 %v12375_v43, %v12609_v37 }
 0x3c5   :  { %v6232_v47 = vsub.f32 %v12582_v40, %v12607_v52  ;;  %v6233_v62 = vsub.f32 %v12585_v46, %v12609_v37  ;;  %v6234_v9 = vsub.f32 %v12394_v63, %v12607_v52  ;;  %v6235_v45 = vsub.f32 %v14463_v53, %v12609_v37 }
 0x3c6   :  { %v6220_v6 = vmul.f32 %v6216_v0, %v6216_v0  ;;  %v6222_v15 = vmul.f32 %v6217_v10, %v6217_v10  ;;  %v6224_v7 = vmul.f32 %v6218_v22, %v6216_v0  ;;  %v6226_v51 = vmul.f32 %v6219_v23, %v6216_v0 }
 0x3c7   :  { %v6228_v27 = vmul.f32 %v6218_v22, %v6217_v10  ;;  %v6230_v29 = vmul.f32 %v6219_v23, %v6217_v10  ;;  %v6236_v25 = vmul.f32 %v6232_v47, %v6232_v47  ;;  %v6238_v43 = vmul.f32 %v6233_v62, %v6233_v62 }
 0x3c8   :  { %v6223_v8 = vadd.f32 %v6222_v15, %v6220_v6  ;;  %v6240_v50 = vmul.f32 %v6234_v9, %v6232_v47  ;;  %v6242_v36 = vmul.f32 %v6235_v45, %v6232_v47  ;;  %v6244_v38 = vmul.f32 %v6234_v9, %v6233_v62 }
 0x3c9   :  { %v6246_v34 = vmul.f32 %v6235_v45, %v6233_v62  ;;  %v6248_v61 = vsub.f32 %v12588_v13, %v12607_v52  ;;  %v6249_v63 = vsub.f32 %v12591_v54, %v12609_v37  ;;  %v6250_v12 = vsub.f32 %v14464_v57, %v12607_v52 }
 0x3ca   :  { %v6237_v14 = vadd.f32 %v6236_v25, %v6223_v8  ;;  %v6241_v28 = vadd.f32 %v6240_v50, %v6224_v7  ;;  %v6243_v4 = vadd.f32 %v6242_v36, %v6226_v51  ;;  %v6245_v11 = vadd.f32 %v6244_v38, %v6228_v27 }
 0x3cb   :  { %v6247_v55 = vadd.f32 %v6246_v34, %v6230_v29  ;;  %v6251_v21 = vsub.f32 %v14465_v60, %v12609_v37  ;;  %v6252_v24 = vmul.f32 %v6248_v61, %v6248_v61  ;;  %v6254_v32 = vmul.f32 %v6249_v63, %v6249_v63 }
 0x3cc   :  { %v6239_v49 = vadd.f32 %v6238_v43, %v6237_v14  ;;  %v6256_v33 = vmul.f32 %v6250_v12, %v6248_v61  ;;  %v6260_v58 = vmul.f32 %v6250_v12, %v6249_v63  ;;  %v6264_v44 = vsub.f32 %v12600_v26, %v12607_v52 }
 0x3cd   :  { %v6258_v31 = vmul.f32 %v6251_v21, %v6248_v61  ;;  %v6262_v3 = vmul.f32 %v6251_v21, %v6249_v63  ;;  %v6265_v56 = vsub.f32 %v12603_v39, %v12609_v37  ;;  %v6266_v35 = vsub.f32 %v14466_v5, %v12607_v52 }
 0x3ce   :  { %v6253_v20 = vadd.f32 %v6252_v24, %v6239_v49  ;;  %v6257_v19 = vadd.f32 %v6256_v33, %v6241_v28  ;;  %v6261_v59 = vadd.f32 %v6260_v58, %v6245_v11  ;;  %v6267_v30 = vsub.f32 %v14467_v18, %v12609_v37 }
 0x3cf   :  { %v6259_v41 = vadd.f32 %v6258_v31, %v6243_v4  ;;  %v6263_v42 = vadd.f32 %v6262_v3, %v6247_v55  ;;  %v6268_v1 = vmul.f32 %v6264_v44, %v6264_v44  ;;  %v6270_v16 = vmul.f32 %v6265_v56, %v6265_v56 }
 0x3d0   :  { %v6255_v2 = vadd.f32 %v6254_v32, %v6253_v20  ;;  %v6272_v0 = vmul.f32 %v6266_v35, %v6264_v44  ;;  %v6274_v10 = vmul.f32 %v6267_v30, %v6264_v44  ;;  %v6276_v22 = vmul.f32 %v6266_v35, %v6265_v56 }
 0x3d1   :  { %v6278_v23 = vmul.f32 %v6267_v30, %v6265_v56 }
 0x3d2   :  { %v6269_v47 = vadd.f32 %v6268_v1, %v6255_v2  ;;  %v6273_v62 = vadd.f32 %v6272_v0, %v6257_v19  ;;  %v6275_v9 = vadd.f32 %v6274_v10, %v6259_v41  ;;  %v6277_v53 = vadd.f32 %v6276_v22, %v6261_v59 }
 0x3d3   :  { %v6279_v45 = vadd.f32 %v6278_v23, %v6263_v42  ;;  %v14470_v41 = vmov 0.0  }
 0x3d4   :  { %v12643_v6 = vadd.f32 %v6270_v16, %v6269_v47  ;;  %v12645_v15 = vsub.f32 %v6275_v9, %v6277_v53  ;;  %v14471_v16 = vmov 0.7853982  }
 0x3d5   :  { %v12647_v7 = vadd.f32 %v6279_v45, %v6273_v62 }
 0x3d6   :  { %v6283_v51 = vand.u32 2147483647, %v12645_v15  ;;  %vm6330_vm14 = vcmp.ne.f32.partialorder %v12645_v15, %v12645_v15  ;;  %vm6327_vm8 = vcmp.eq.f32.partialorder %v12645_v15, 0.0  ;;  %v6340_v22 = vand.u32 2147483648, %v12645_v15 }
 0x3d7   :  { %v6282_v27 = vand.u32 2147483647, %v12647_v7  ;;  %vm6325_vm9 = vcmp.lt.s32.totalorder %v12647_v7, 0  ;;  %vm6329_vm0 = vcmp.ne.f32.partialorder %v12647_v7, %v12647_v7  ;;  %vm6322_vm13 = vcmp.lt.f32.partialorder %v12647_v7, 0.0 }
 0x3d8   :  { %vm6336_vm1 = vcmp.eq.s32.totalorder %v6283_v51, inf  ;;  %v6326_v42 = vsel %vm6325_vm9, 3.1415927, %v14470_v41  ;;  %vm6331_vm2 = vmor %vm6329_vm0, %vm6330_vm14  ;;  %v6334_v2 = vsel %vm6322_vm13, 2.3561945, %v14471_v16 }
 0x3d9   :  { %v6285_v29 = vmax.f32 %v6282_v27, %v6283_v51  ;;  %v6284_v61 = vmin.f32 %v6282_v27, %v6283_v51  ;;  %vm6335_vm12 = vcmp.eq.s32.totalorder %v6282_v27, inf  ;;  %vm6319_vm10 = vcmp.gt.f32.partialorder %v6283_v51, %v6282_v27 }
 0x3da   :  { %vm12651_vm4 = vmand %vm6335_vm12, %vm6336_vm1 }
 0x3db   :  { %7910 = vrcp.f32 %v6285_v29  ;;  %v6297_v8 = vand.u32 2147483648, %v6285_v29  ;;  %vm6291_vm11 = vweird.f32 %v6285_v29  ;;  %v6295_v36 = vand.u32 2147483647, %v6285_v29 }
 0x3dc   :  { %7912 = vrcp.f32 %v12643_v6 }
 0x3dd   :  { %v6298_v34 = vor.u32 1.1754944e-38, %v6297_v8  ;;  %vm6296_vm15 = vcmp.eq.f32.partialorder %v6295_v36, 8.507059e+37 }
 0x3e1   :  { %v7911_v25 = vpop.eup %7910 }
 0x3e2   :  { %v6287_v43 = vmul.f32 %v7911_v25, %v6285_v29  ;;  %vm6292_vm5 = vweird.f32 %v7911_v25 }
 0x3e3   :  { %vm6293_vm3 = vmor %vm6291_vm11, %vm6292_vm5 }
 0x3e4   :  { %v6288_v50 = vsub.f32 1.0, %v6287_v43 }
 0x3e6   :  { %v6289_v38 = vmul.f32 %v7911_v25, %v6288_v50 }
 0x3e8   :  { %v6290_v63 = vadd.f32 %v7911_v25, %v6289_v38  ;;  %v14472_v38 = vmov 683565275  }
 0x3ea   :  { %v6294_v57 = vsel %vm6293_vm3, %v7911_v25, %v6290_v63 }
 0x3eb   :  { %v6299_v12 = vsel %vm6296_vm15, %v6298_v34, %v6294_v57  ;;  %v14474_v57 = vmov 2131351028  }
 0x3ec   :  { %v6300_v14 = vmul.f32 %v6299_v12, %v6284_v61  ;;  %v14473_v61 = vmov 2475754826  }
 0x3ee   :  { %v6301_v28 = vmul.f32 %v6300_v14, %v6300_v14 }
 0x3f0   :  { %v6302_v4 = vmul.f32 0.002785687, %v6301_v28 }
 0x3f2   :  { %v6303_v11 = vadd.f32 -0.015866, %v6302_v4  ;;  %v14476_v4 = vmov 920167782  }
 0x3f4   :  { %v6304_v55 = vmul.f32 %v6303_v11, %v6301_v28 }
 0x3f6   :  { %v6305_v60 = vadd.f32 0.04247222, %v6304_v55 }
 0x3f8   :  { %v6306_v21 = vmul.f32 %v6305_v60, %v6301_v28 }
 0x3fa   :  { %v6307_v32 = vadd.f32 -0.074975304, %v6306_v21 }
 0x3fc   :  { %v6308_v49 = vmul.f32 %v6307_v32, %v6301_v28  ;;  %v14477_v32 = vmov 1326507024  }
 0x3fe   :  { %v6309_v33 = vadd.f32 0.1064488, %v6308_v49 }
 0x400   :  { %v6310_v58 = vmul.f32 %v6309_v33, %v6301_v28 }
 0x402   :  { %v6311_v44 = vadd.f32 -0.14207031, %v6310_v58 }
 0x404   :  { %v6312_v31 = vmul.f32 %v6311_v44, %v6301_v28 }
 0x406   :  { %v6313_v3 = vadd.f32 0.19993454, %v6312_v31 }
 0x408   :  { %v6314_v56 = vmul.f32 %v6313_v3, %v6301_v28 }
 0x40a   :  { %v6315_v5 = vadd.f32 -0.33333147, %v6314_v56 }
 0x40c   :  { %v6316_v35 = vmul.f32 %v6315_v5, %v6301_v28 }
 0x40e   :  { %v6317_v20 = vmul.f32 %v6316_v35, %v6300_v14 }
 0x410   :  { %v6318_v19 = vadd.f32 %v6317_v20, %v6300_v14  ;;  %v14475_v14 = vmov 2102212464  }
 0x412   :  { %v6320_v59 = vsub.f32 1.5707964, %v6318_v19 }
 0x414   :  { %v6321_v18 = vsel %vm6319_vm10, %v6320_v59, %v6318_v19 }
 0x415   :  { %v6323_v30 = vsub.f32 3.1415927, %v6321_v18 }
 0x417   :  { %v6324_v1 = vsel %vm6322_vm13, %v6323_v30, %v6321_v18 }
 0x418   :  { %v6328_v0 = vsel %vm6327_vm8, %v6326_v42, %v6324_v1 }
 0x419   :  { %v6332_v10 = vsel %vm6331_vm2, nan, %v6328_v0 }
 0x41a   :  { %v6338_v23 = vsel %vm12651_vm4, %v6334_v2, %v6332_v10 }
 0x41b   :  { %v6339_v47 = vand.u32 2147483647, %v6338_v23 }
 0x41d   :  { %v12667_v62 = vor.u32 %v6340_v22, %v6339_v47 }
 0x41f   :  { %v6345_v9 = vand.u32 2139095040, %v12667_v62  ;;  %v6342_v45 = vand.u32 2147483647, %v12667_v62  ;;  %vm6344_vm14 = vcmp.lt.s32.totalorder %v12667_v62, 0 }
 0x421   :  { %v6346_v53 = vshrl.u32 %v6345_v9, 23  ;;  %v6349_v29 = vand.u32 8388607, %v6342_v45  ;;  %vm6343_vm13 = vcmp.le.f32.partialorder %v6342_v45, 0.7853982 }
 0x423   :  { %v7821_v51 = vadd.s32 4294967169, %v6346_v53  ;;  %v6350_v8 = vor.u32 8388608, %v6349_v29 }
 0x425   :  { %v6352_v27 = vadd.s32 1, %v7821_v51  ;;  %v12686_v33 = vshll.u32 %v6350_v8, 8 }
 0x427   :  { %vm6353_vm6 = vcmp.gt.s32.totalorder %v6352_v27, 0  ;;  %v6391_v30 = vand.u32 65535, %v12686_v33  ;;  %v6392_v42 = vshrl.u32 %v12686_v33, 16 }
 0x428   :  { %v6354_v25 = vsel %vm6353_vm6, %v6352_v27, 0 }
 0x429   :  { %v6356_v43 = vand.u32 31, %v6354_v25  ;;  %v12673_v50 = vshrl.u32 %v6354_v25, 5 }
 0x42b   :  { %v6357_v36 = vsub.s32 32, %v6356_v43  ;;  %v6359_v34 = vshll.u32 %v14472_v38, %v6356_v43  ;;  %v6362_v63 = vshll.u32 %v14473_v61, %v6356_v43  ;;  %v6365_v12 = vshll.u32 %v14474_v57, %v6356_v43 }
 0x42c   :  { %v6368_v28 = vshll.u32 %v14475_v14, %v6356_v43  ;;  %v6371_v11 = vshll.u32 %v14476_v4, %v6356_v43  ;;  %vm6374_vm7 = vcmp.lt.s32.totalorder %v12673_v50, 1  ;;  %vm6377_vm11 = vcmp.lt.s32.totalorder %v12673_v50, 4 }
 0x42d   :  { %v6360_v55 = vshrl.u32 %v14473_v61, %v6357_v36  ;;  %v6363_v60 = vshrl.u32 %v14474_v57, %v6357_v36  ;;  %v6366_v21 = vshrl.u32 %v14475_v14, %v6357_v36  ;;  %v6369_v24 = vshrl.u32 %v14476_v4, %v6357_v36 }
 0x42e   :  { %v6372_v49 = vshrl.u32 %v14477_v32, %v6357_v36  ;;  %vm6376_vm5 = vcmp.lt.s32.totalorder %v12673_v50, 3  ;;  %vm6375_vm3 = vcmp.lt.s32.totalorder %v12673_v50, 2  ;;  %v6358_v47 = vshrl.u32 %v14472_v38, %v6357_v36 }
 0x42f   :  { %v6361_v58 = vor.u32 %v6360_v55, %v6359_v34  ;;  %v6364_v44 = vor.u32 %v6363_v60, %v6362_v63  ;;  %v6367_v31 = vor.u32 %v6366_v21, %v6365_v12  ;;  %v6370_v3 = vor.u32 %v6369_v24, %v6368_v28 }
 0x430   :  { %v6373_v56 = vor.u32 %v6372_v49, %v6371_v11  ;;  %v14478_v38 = vmov 0  }
 0x431   :  { %v6382_v5 = vsel %vm6374_vm7, %v6361_v58, %v6364_v44  ;;  %v6386_v35 = vsel %vm6374_vm7, %v6364_v44, %v6367_v31  ;;  %v6383_v20 = vsel %vm6377_vm11, %v6370_v3, 920167782  ;;  %v6378_v12 = vsel %vm6374_vm7, %v6358_v47, %v6361_v58 }
 0x432   :  { %v6387_v19 = vsel %vm6377_vm11, %v6373_v56, 1326507024  ;;  %v6384_v59 = vsel %vm6376_vm5, %v6367_v31, %v6383_v20  ;;  %v6379_v36 = vsel %vm6377_vm11, %v6367_v31, 2102212464 }
 0x433   :  { %v6388_v18 = vsel %vm6376_vm5, %v6370_v3, %v6387_v19  ;;  %v6385_v1 = vsel %vm6375_vm3, %v6382_v5, %v6384_v59  ;;  %v6380_v49 = vsel %vm6376_vm5, %v6364_v44, %v6379_v36 }
 0x434   :  { %v6389_v2 = vsel %vm6375_vm3, %v6386_v35, %v6388_v18  ;;  %v6415_v22 = vand.u32 65535, %v6385_v1  ;;  %v6416_v23 = vshrl.u32 %v6385_v1, 16  ;;  %v6381_v19 = vsel %vm6375_vm3, %v6378_v12, %v6380_v49 }
 0x435   :  { %v6393_v0 = vand.u32 65535, %v6389_v2  ;;  %v6394_v10 = vshrl.u32 %v6389_v2, 16  ;;  %vm6485_vm3 = vweird.f32 %v12667_v62 }
 0x436   :  { %v6417_v27 = vmul.u32 %v6415_v22, %v6391_v30  ;;  %v6418_v29 = vmul.u32 %v6416_v23, %v6391_v30  ;;  %v6419_v25 = vmul.u32 %v6415_v22, %v6392_v42  ;;  %v6420_v61 = vmul.u32 %v6416_v23, %v6392_v42 }
 0x437   :  { %v6395_v9 = vmul.u32 %v6393_v0, %v6391_v30  ;;  %v6396_v53 = vmul.u32 %v6394_v10, %v6391_v30  ;;  %v6397_v51 = vmul.u32 %v6393_v0, %v6392_v42  ;;  %v6398_v43 = vmul.u32 %v6394_v10, %v6392_v42 }
 0x438   :  { %v6421_v63 = vshll.u32 %v6418_v29, 16  ;;  %v6423_v57 = vshll.u32 %v6419_v25, 16  ;;  %v6422_v24 = vshrl.u32 %v6418_v29, 16  ;;  %v6424_v56 = vshrl.u32 %v6419_v25, 16 }
 0x439   :  { %v6399_v8 = vshll.u32 %v6396_v53, 16  ;;  %v6401_v34 = vshll.u32 %v6397_v51, 16  ;;  %v6400_v11 = vshrl.u32 %v6396_v53, 16  ;;  %v6402_v58 = vshrl.u32 %v6397_v51, 16 }
 0x43a   :  { %vm6425_vm12 = vc.u32 %v6417_v27, %v6421_v63  ;;  %v6427_v4 = vadd.s32 %v6421_v63, %v6417_v27  ;;  %v6435_v42 = vmul.u32 %v12686_v33, %v6381_v19 }
 0x43b   :  { %vm6403_vm15 = vc.u32 %v6395_v9, %v6399_v8  ;;  %v6405_v14 = vadd.s32 %v6399_v8, %v6395_v9  ;;  %v6426_v60 = vsel %vm6425_vm12, 1, %v14478_v38 }
 0x43c   :  { %v6404_v28 = vsel %vm6403_vm15, 1, %v14478_v38  ;;  %v6428_v32 = vadd.s32 %v6426_v60, %v6420_v61  ;;  %vm6429_vm4 = vc.u32 %v6427_v4, %v6423_v57  ;;  %v6431_v20 = vadd.s32 %v6427_v4, %v6423_v57 }
 0x43d   :  { %v6406_v55 = vadd.s32 %v6404_v28, %v6398_v43  ;;  %vm6407_vm1 = vc.u32 %v6405_v14, %v6401_v34  ;;  %v6430_v31 = vsel %vm6429_vm4, 1, %v14478_v38 }
 0x43e   :  { %v6408_v21 = vsel %vm6407_vm1, 1, %v14478_v38  ;;  %v6432_v5 = vadd.s32 %v6430_v31, %v6428_v32 }
 0x43f   :  { %v6410_v3 = vadd.s32 %v6408_v21, %v6406_v55 }
 0x440   :  { %v6433_v59 = vadd.s32 %v6432_v5, %v6422_v24 }
 0x441   :  { %v6411_v35 = vadd.s32 %v6410_v3, %v6400_v11 }
 0x442   :  { %v6434_v30 = vadd.s32 %v6433_v59, %v6424_v56 }
 0x443   :  { %v6412_v18 = vadd.s32 %v6411_v35, %v6402_v58  ;;  %v7913_v35 = vpop.eup %7912 }
 0x444   :  { %v6438_v1 = vadd.s32 1, %v6434_v30 }
 0x445   :  { %vm6437_vm10 = vc.u32 %v6412_v18, %v6431_v20  ;;  %v6436_v50 = vadd.s32 %v6431_v20, %v6412_v18 }
 0x446   :  { %v6439_v2 = vsel %vm6437_vm10, %v6438_v1, %v6434_v30 }
 0x447   :  { %v6440_v44 = vadd.s32 %v6439_v2, %v6435_v42  ;;  %v6655_v42 = vmul.f32 %v7913_v35, %v12643_v6 }
 0x449   :  { %v6441_v0 = vadd.s32 536870912, %v6440_v44 }
 0x44b   :  { %v6442_v10 = vshrl.u32 %v6441_v0, 30 }
 0x44d   :  { %v6443_v22 = vshll.u32 %v6442_v10, 30  ;;  %v6466_v36 = vsub.s32 4, %v6442_v10 }
 0x44f   :  { %v6444_v23 = vsub.s32 %v6440_v44, %v6443_v22  ;;  %v6467_v4 = vsel %vm6344_vm14, %v6466_v36, %v6442_v10  ;;  %v6656_v22 = vsub.f32 2.0, %v6655_v42 }
 0x450   :  { %v6469_v60 = vsel %vm6343_vm13, 0, %v6467_v4 }
 0x451   :  { %vm6445_vm9 = vcmp.lt.s32.totalorder %v6444_v23, 0  ;;  %v6446_v47 = vsub.s32 0, %v6444_v23  ;;  %v6640_v58 = vadd.s32 3, %v6469_v60  ;;  %v6486_v45 = vand.u32 3, %v6469_v60 }
 0x453   :  { %v6447_v9 = vsel %vm6445_vm9, %v6446_v47, %v6444_v23  ;;  %v6641_v20 = vand.u32 3, %v6640_v58  ;;  %vm6491_vm8 = vcmp.eq.s32.totalorder %v6486_v45, 2  ;;  %vm6487_vm6 = vcmp.lt.s32.totalorder %v6486_v45, 2 }
 0x454   :  { %v6448_v53 = vclz %v6447_v9  ;;  %vm6488_vm7 = vcmp.eq.s32.totalorder %v6486_v45, 0 }
 0x455   :  { %vm6646_vm2 = vcmp.eq.s32.totalorder %v6641_v20, 2  ;;  %vm6642_vm11 = vcmp.lt.s32.totalorder %v6641_v20, 2  ;;  %vm6643_vm5 = vcmp.eq.s32.totalorder %v6641_v20, 0 }
 0x456   :  { %v7822_v51 = vadd.s32 4294967294, %v6448_v53 }
 0x458   :  { %vm7823_vm0 = vcmp.lt.s32.totalorder %v7822_v51, 0 }
 0x459   :  { %v6451_v27 = vsel %vm7823_vm0, 0, %v7822_v51 }
 0x45a   :  { %v6452_v29 = vsub.s32 32, %v6451_v27  ;;  %v6453_v25 = vshll.u32 %v6444_v23, %v6451_v27  ;;  %v6456_v43 = vsub.s32 4294967266, %v6451_v27 }
 0x45c   :  { %v6454_v33 = vshrl.u32 %v6436_v50, %v6452_v29  ;;  %v6457_v8 = vadd.s32 127, %v6456_v43  ;;  %v6657_v50 = vmul.f32 %v7913_v35, %v6656_v22 }
 0x45e   :  { %v6455_v34 = vor.u32 %v6454_v33, %v6453_v25  ;;  %v6458_v61 = vshll.u32 %v6457_v8, 23 }
 0x460   :  { %v6459_v63 = vor.u32 4788187, %v6458_v61  ;;  %v6462_v57 = vcvt.s32.f32 %v6455_v34 }
 0x462   :  { %v6460_v12 = vand.u32 2147483647, %v6459_v63 }
 0x464   :  { %v6463_v14 = vmul.f32 %v6462_v57, %v6460_v12 }
 0x466   :  { %v6464_v38 = vxor.u32 2147483648, %v6463_v14 }
 0x468   :  { %v6465_v28 = vsel %vm6344_vm14, %v6464_v38, %v6463_v14 }
 0x469   :  { %v6468_v11 = vsel %vm6343_vm13, %v12667_v62, %v6465_v28 }
 0x46a   :  { %v6470_v55 = vmul.f32 %v6468_v11, %v6468_v11 }
 0x46c   :  { %v6471_v21 = vmul.f32 -0.001358992, %v6470_v55  ;;  %v6478_v24 = vmul.f32 -0.00019511016, %v6470_v55 }
 0x46e   :  { %v6472_v32 = vadd.f32 0.041655596, %v6471_v21  ;;  %v6479_v49 = vadd.f32 0.008332121, %v6478_v24 }
 0x470   :  { %v6473_v3 = vmul.f32 %v6472_v32, %v6470_v55  ;;  %v6480_v31 = vmul.f32 %v6479_v49, %v6470_v55 }
 0x472   :  { %v6474_v56 = vadd.f32 -0.4999988, %v6473_v3  ;;  %v6481_v5 = vadd.f32 -0.16666654, %v6480_v31 }
 0x474   :  { %v6475_v19 = vmul.f32 %v6474_v56, %v6470_v55  ;;  %v6482_v59 = vmul.f32 %v6481_v5, %v6470_v55 }
 0x476   :  { %v6476_v18 = vadd.f32 1.0, %v6475_v19  ;;  %v6483_v30 = vadd.f32 1.0, %v6482_v59 }
 0x478   :  { %v6484_v1 = vmul.f32 %v6483_v30, %v6468_v11  ;;  %v6492_v2 = vxor.u32 2147483648, %v6476_v18 }
 0x47a   :  { %v6489_v44 = vxor.u32 2147483648, %v6484_v1  ;;  %v6493_v0 = vsel %vm6491_vm8, %v6492_v2, %v6484_v1  ;;  %v6648_v10 = vsel %vm6646_vm2, %v6492_v2, %v6484_v1 }
 0x47c   :  { %v6490_v23 = vsel %vm6488_vm7, %v6476_v18, %v6489_v44  ;;  %v6645_v47 = vsel %vm6643_vm5, %v6476_v18, %v6489_v44 }
 0x47d   :  { %v6494_v9 = vsel %vm6487_vm6, %v6490_v23, %v6493_v0  ;;  %v6649_v53 = vsel %vm6642_vm11, %v6645_v47, %v6648_v10 }
 0x47e   :  { %v12730_v51 = vsel %vm6485_vm3, nan, %v6494_v9  ;;  %v12732_v6 = vsel %vm6485_vm3, nan, %v6649_v53 }
 0x47f   :  { %v6651_v27 = vmul.f32 %v12730_v51, %v12647_v7  ;;  %v6652_v29 = vmul.f32 %v12732_v6, %v12645_v15  ;;  %v6659_v25 = vmul.f32 %v12730_v51, %v12607_v52  ;;  %v6660_v62 = vmul.f32 %v12732_v6, %v12609_v37 }
 0x480   :  { %v6664_v43 = vmul.f32 %v12732_v6, %v12607_v52  ;;  %v6665_v33 = vmul.f32 %v12730_v51, %v12609_v37  ;;  %v6669_v8 = vmul.f32 %v12730_v51, %v12576_v17  ;;  %v6670_v7 = vmul.f32 %v12732_v6, %v12579_v48 }
 0x481   :  { %v6653_v34 = vadd.f32 %v6652_v29, %v6651_v27  ;;  %v6661_v15 = vsub.f32 %v6659_v25, %v6660_v62  ;;  %v6674_v61 = vmul.f32 %v12730_v51, %v12582_v40  ;;  %v6675_v63 = vmul.f32 %v12732_v6, %v12585_v46 }
 0x482   :  { %v6666_v57 = vadd.f32 %v6665_v33, %v6664_v43  ;;  %v6671_v12 = vsub.f32 %v6669_v8, %v6670_v7  ;;  %v6689_v38 = vmul.f32 %v12732_v6, %v12576_v17  ;;  %v6690_v28 = vmul.f32 %v12730_v51, %v12579_v48 }
 0x483   :  { %v12754_v14 = vmul.f32 %v6657_v50, %v6653_v34  ;;  %v6676_v36 = vsub.f32 %v6674_v61, %v6675_v63  ;;  %v6694_v4 = vmul.f32 %v12732_v6, %v12582_v40  ;;  %v6695_v32 = vmul.f32 %v12730_v51, %v12585_v46 }
 0x484   :  { %v6691_v24 = vadd.f32 %v6690_v28, %v6689_v38  ;;  %v6699_v40 = vmul.f32 %v12732_v6, %v12588_v13  ;;  %v6700_v49 = vmul.f32 %v12730_v51, %v12591_v54  ;;  %v6679_v19 = vmul.f32 %v12730_v51, %v12588_v13 }
 0x485   :  { %v6662_v11 = vmul.f32 %v6661_v15, %v12754_v14  ;;  %v6667_v55 = vmul.f32 %v6666_v57, %v12754_v14  ;;  %v6672_v60 = vmul.f32 %v6671_v12, %v12754_v14  ;;  %v6677_v21 = vmul.f32 %v6676_v36, %v12754_v14 }
 0x486   :  { %v6692_v58 = vmul.f32 %v6691_v24, %v12754_v14  ;;  %v6696_v3 = vadd.f32 %v6695_v32, %v6694_v4  ;;  %v6701_v56 = vadd.f32 %v6700_v49, %v6699_v40  ;;  %v6680_v59 = vmul.f32 %v12732_v6, %v12591_v54 }
 0x487   :  { %v12769_v17 = vsub.f32 %v12607_v52, %v6662_v11  ;;  %v12772_v48 = vsub.f32 %v12609_v37, %v6667_v55 }
 0x488   :  { %v6697_v37 = vmul.f32 %v6696_v3, %v12754_v14  ;;  %v6702_v44 = vmul.f32 %v6701_v56, %v12754_v14  ;;  %v6681_v13 = vsub.f32 %v6679_v19, %v6680_v59 }
 0x489   :  { %14479 = vst [vmem:[#allocation60_spill] sm:$0xff] %v12769_v17  ;;  %v12780_v31 = vadd.f32 %v6672_v60, %v12769_v17  ;;  %v12783_v46 = vadd.f32 %v6677_v21, %v12769_v17  ;;  %v6693_v52 = vadd.f32 %v6692_v58, %v12772_v48 }
 0x48a   :  { %14480 = vst [vmem:[#allocation59_spill] sm:$0xff] %v12772_v48  ;;  %v6698_v35 = vadd.f32 %v6697_v37, %v12772_v48  ;;  %v6703_v9 = vadd.f32 %v6702_v44, %v12772_v48  ;;  %v6682_v50 = vmul.f32 %v6681_v13, %v12754_v14 }
 0x48b   :  { %v6771_v5 = vmul.f32 %v12780_v31, %v12780_v31  ;;  %v6709_v45 = vsub.f32 0.0, %v6693_v52  ;;  %v6772_v20 = vmul.f32 %v6693_v52, %v6693_v52  ;;  %v6967_v18 = vmul.f32 %v12783_v46, %v12783_v46 }
 0x48c   :  { %v12799_v42 = vand.u32 2147483647, %v12780_v31  ;;  %v6905_v2 = vsub.f32 0.0, %v6698_v35  ;;  %v6968_v0 = vmul.f32 %v6698_v35, %v6698_v35  ;;  %v12811_v22 = vand.u32 2147483647, %v12783_v46 }
 0x48d   :  { %v12796_v30 = vadd.f32 1e-12, %v6709_v45  ;;  %v12801_v1 = vadd.f32 %v6772_v20, %v6771_v5  ;;  %v7101_v29 = vsub.f32 0.0, %v6703_v9  ;;  %v12827_v8 = vadd.f32 %v6682_v50, %v12769_v17 }
 0x48e   :  { %v12808_v54 = vadd.f32 1e-12, %v6905_v2  ;;  %v12813_v23 = vadd.f32 %v6968_v0, %v6967_v18  ;;  %v7164_v3 = vmul.f32 %v6703_v9, %v6703_v9  ;;  %vm6759_vm5 = vcmp.ne.f32.partialorder %v12780_v31, %v12780_v31 }
 0x48f   :  { %v12805_v10 = vand.u32 2147483647, %v12796_v30  ;;  %7914 = vrsqrt.f32 %v12801_v1  ;;  %14481 = vst [vmem:[#allocation36_spill] sm:$0xff] %v12827_v8  ;;  %vm6781_vm15 = vcmp.eq.f32.partialorder %v12801_v1, inf  ;;  %v12830_v34 = vadd.f32 1e-12, %v7101_v29 }
 0x490   :  { %v12819_v53 = vand.u32 2147483647, %v12808_v54  ;;  %7916 = vrsqrt.f32 %v12813_v23  ;;  %vm6783_vm12 = vcmp.eq.f32.partialorder %v12801_v1, 0.0  ;;  %v6784_v63 = vand.u32 2147483648, %v12801_v1 }
 0x491   :  { %v6714_v47 = vmax.f32 %v12805_v10, %v12799_v42  ;;  %14482 = vst [vmem:[#allocation52_spill] sm:$0xff] %v12830_v34  ;;  %v6713_v61 = vmin.f32 %v12805_v10, %v12799_v42  ;;  %vm6977_vm4 = vcmp.eq.f32.partialorder %v12813_v23, inf  ;;  %vm6979_vm10 = vcmp.eq.f32.partialorder %v12813_v23, 0.0 }
 0x492   :  { %v6910_v27 = vmax.f32 %v12819_v53, %v12811_v22  ;;  %v6909_v4 = vmin.f32 %v12819_v53, %v12811_v22  ;;  %v12842_v55 = vand.u32 2147483647, %v12827_v8  ;;  %v12845_v32 = vand.u32 2147483647, %v12830_v34 }
 0x493   :  { %7918 = vrcp.f32 %v6714_v47  ;;  %v6726_v43 = vand.u32 2147483648, %v6714_v47  ;;  %vm6720_vm1 = vweird.f32 %v6714_v47  ;;  %v6724_v36 = vand.u32 2147483647, %v6714_v47 }
 0x494   :  { %7920 = vrcp.f32 %v6910_v27  ;;  %v7163_v58 = vmul.f32 %v12827_v8, %v12827_v8  ;;  %v6920_v56 = vand.u32 2147483647, %v6910_v27  ;;  %v6922_v5 = vand.u32 2147483648, %v6910_v27 }
 0x495   :  { %v7915_v25 = vpop.eup %7914  ;;  %v6727_v28 = vor.u32 1.1754944e-38, %v6726_v43  ;;  %vm6916_vm14 = vweird.f32 %v6910_v27  ;;  %vm6725_vm8 = vcmp.eq.f32.partialorder %v6724_v36, 8.507059e+37  ;;  %v12857_v18 = vmax.f32 %v12845_v32, %v12842_v55 }
 0x496   :  { %v6775_v62 = vmul.f32 %v7915_v25, %v12801_v1  ;;  %v7917_v33 = vpop.eup %7916  ;;  %v6980_v0 = vand.u32 2147483648, %v12813_v23  ;;  %v12860_v13 = vadd.f32 %v7164_v3, %v7163_v58  ;;  %vm6921_vm6 = vcmp.eq.f32.partialorder %v6920_v56, 8.507059e+37 }
 0x497   :  { %v6971_v57 = vmul.f32 %v7917_v33, %v12813_v23  ;;  %7922 = vrcp.f32 %v12857_v18  ;;  %v12923_v56 = vmul.f32 %v12730_v51, %v12600_v26  ;;  %vm6758_vm11 = vcmp.ne.f32.partialorder %v12796_v30, %v12796_v30 }
 0x498   :  { %v6776_v7 = vmul.f32 %v7915_v25, %v6775_v62  ;;  %7924 = vrsqrt.f32 %v12860_v13  ;;  %vm12943_vm3 = vmor %vm6758_vm11, %vm6759_vm5  ;;  %vm6748_vm5 = vcmp.gt.f32.partialorder %v12799_v42, %v12805_v10 }
 0x499   :  { %v7919_v15 = vpop.eup %7918  ;;  %v6972_v11 = vmul.f32 %v7917_v33, %v6971_v57 }
 0x49a   :  { %v6716_v12 = vmul.f32 %v7919_v15, %v6714_v47  ;;  %v6777_v38 = vmul.f32 0.5, %v6776_v7  ;;  %v7921_v60 = vpop.eup %7920  ;;  %vm6721_vm9 = vweird.f32 %v7919_v15 }
 0x49b   :  { %v6912_v40 = vmul.f32 %v7921_v60, %v6910_v27  ;;  %v6973_v49 = vmul.f32 0.5, %v6972_v11  ;;  %vm12850_vm0 = vmor %vm6720_vm1, %vm6721_vm9  ;;  %vm6917_vm13 = vweird.f32 %v7921_v60  ;;  %v6923_v27 = vor.u32 1.1754944e-38, %v6922_v5 }
 0x49c   :  { %v6717_v21 = vsub.f32 1.0, %v6716_v12  ;;  %v6778_v24 = vsub.f32 1.5, %v6777_v38  ;;  %vm12867_vm2 = vmor %vm6916_vm14, %vm6917_vm13 }
 0x49d   :  { %v6913_v45 = vsub.f32 1.0, %v6912_v40  ;;  %v6974_v20 = vsub.f32 1.5, %v6973_v49  ;;  %v12909_v49 = vpop.eup %7922 }
 0x49e   :  { %v6718_v52 = vmul.f32 %v7919_v15, %v6717_v21  ;;  %v6779_v37 = vmul.f32 %v7915_v25, %v6778_v24  ;;  %v12915_v3 = vpop.eup %7924 }
 0x49f   :  { %v6914_v2 = vmul.f32 %v7921_v60, %v6913_v45  ;;  %v6975_v44 = vmul.f32 %v7917_v33, %v6974_v20  ;;  %v12930_v20 = vmul.f32 %v12909_v49, %v12857_v18 }
 0x4a0   :  { %v6719_v19 = vadd.f32 %v7919_v15, %v6718_v52  ;;  %v6780_v59 = vmul.f32 %v6779_v37, %v12801_v1 }
 0x4a1   :  { %v6915_v62 = vadd.f32 %v7921_v60, %v6914_v2  ;;  %v6976_v43 = vmul.f32 %v6975_v44, %v12813_v23 }
 0x4a2   :  { %v6723_v47 = vsel %vm12850_vm0, %v7919_v15, %v6719_v19  ;;  %v6782_v9 = vsel %vm6781_vm15, %v12801_v1, %v6780_v59  ;;  %v14487_v15 = vld [vmem:[#allocation39_spill] sm:$0xff]  ;;  %v7167_v19 = vmul.f32 %v12915_v3, %v12860_v13  ;;  %vm6764_vm15 = vcmp.eq.s32.totalorder %v12805_v10, inf }
 0x4a3   :  { %v6728_v29 = vsel %vm6725_vm8, %v6727_v28, %v6723_v47  ;;  %v6785_v25 = vsel %vm6783_vm12, %v6784_v63, %v6782_v9  ;;  %v12879_v57 = vand.u32 2147483647, %v14487_v15  ;;  %v6919_v12 = vsel %vm12867_vm2, %v7921_v60, %v6915_v62 }
 0x4a4   :  { %v12874_v33 = vmul.f32 %v6728_v29, %v6713_v61  ;;  %v12876_v7 = vadd.f32 1e-12, %v6785_v25  ;;  %v6978_v1 = vsel %vm6977_vm4, %v12813_v23, %v6976_v43  ;;  %v6924_v36 = vsel %vm6921_vm6, %v6923_v27, %v6919_v12 }
 0x4a5   :  { %v6981_v38 = vsel %vm6979_vm10, %v6980_v0, %v6978_v1  ;;  %v12897_v28 = vmul.f32 %v6924_v36, %v6909_v4  ;;  %v6704_v23 = vmul.f32 %v12732_v6, %v12600_v26  ;;  %v6705_v4 = vmul.f32 %v12730_v51, %v12603_v39 }
 0x4a6   :  { %v12890_v61 = vmul.f32 %v12874_v33, %v12874_v33  ;;  %v12893_v63 = vand.u32 2147483647, %v12876_v7  ;;  %v12899_v11 = vadd.f32 1e-12, %v6981_v38  ;;  %vm6765_vm12 = vcmp.eq.s32.totalorder %v12799_v42, inf }
 0x4a7   :  { %v12907_v40 = vmul.f32 %v12897_v28, %v12897_v28  ;;  %v12926_v35 = vadd.f32 %v6705_v4, %v6704_v23  ;;  %vm12949_vm4 = vmand %vm6764_vm15, %vm6765_vm12  ;;  %vm6754_vm2 = vcmp.lt.s32.totalorder %v12796_v30, 0  ;;  %vm6751_vm6 = vcmp.lt.f32.partialorder %v12796_v30, 0.0 }
 0x4a8   :  { %14488 = vst [vmem:[#allocation38_spill] sm:$0xff] %v12899_v11  ;;  %v6731_v60 = vmul.f32 0.002785687, %v12890_v61  ;;  %v6791_v21 = vmax.f32 %v12893_v63, %v12879_v57  ;;  %v6852_v24 = vmax.f32 %v12893_v63, 1.6  ;;  %v6790_v23 = vmin.f32 %v12893_v63, %v12879_v57 }
 0x4a9   :  { %v12918_v52 = vand.u32 2147483647, %v12899_v11  ;;  %v6927_v5 = vmul.f32 0.002785687, %v12907_v40  ;;  %vm6954_vm15 = vcmp.ne.f32.partialorder %v12808_v54, %v12808_v54  ;;  %vm6955_vm12 = vcmp.ne.f32.partialorder %v12783_v46, %v12783_v46 }
 0x4aa   :  { %v6732_v58 = vadd.f32 -0.015866, %v6731_v60  ;;  %7926 = vrcp.f32 %v6791_v21  ;;  %vm6797_vm7 = vweird.f32 %v6791_v21  ;;  %v6801_v59 = vand.u32 2147483647, %v6791_v21 }
 0x4ab   :  { %7928 = vrcp.f32 %v6852_v24  ;;  %v6928_v2 = vadd.f32 -0.015866, %v6927_v5  ;;  %v12936_v44 = vmax.f32 %v12918_v52, %v12879_v57  ;;  %v6803_v0 = vand.u32 2147483648, %v6791_v21 }
 0x4ac   :  { %v6733_v37 = vmul.f32 %v6732_v58, %v12890_v61  ;;  %vm6858_vm1 = vweird.f32 %v6852_v24  ;;  %v6862_v62 = vand.u32 2147483647, %v6852_v24  ;;  %v6864_v43 = vand.u32 2147483648, %v6852_v24 }
 0x4ad   :  { %v6929_v1 = vmul.f32 %v6928_v2, %v12907_v40  ;;  %7930 = vrcp.f32 %v12936_v44  ;;  %v12957_v60 = vmax.f32 %v12918_v52, 1.6  ;;  %v6804_v2 = vor.u32 1.1754944e-38, %v6803_v0 }
 0x4ae   :  { %v6734_v45 = vadd.f32 0.04247222, %v6733_v37  ;;  %vm6802_vm14 = vcmp.eq.f32.partialorder %v6801_v59, 8.507059e+37  ;;  %vm6863_vm8 = vcmp.eq.f32.partialorder %v6862_v62, 8.507059e+37  ;;  %v7116_v29 = vand.u32 2147483647, %v12857_v18 }
 0x4af   :  { %v6930_v58 = vadd.f32 0.04247222, %v6929_v1  ;;  %7932 = vrcp.f32 %v12957_v60 }
 0x4b0   :  { %v7927_v26 = vpop.eup %7926  ;;  %v6735_v51 = vmul.f32 %v6734_v45, %v12890_v61 }
 0x4b1   :  { %v7929_v47 = vpop.eup %7928  ;;  %v6793_v50 = vmul.f32 %v7927_v26, %v6791_v21  ;;  %vm6798_vm10 = vweird.f32 %v7927_v26  ;;  %v6931_v1 = vmul.f32 %v6930_v58, %v12907_v40 }
 0x4b2   :  { %v6736_v27 = vadd.f32 -0.074975304, %v6735_v51  ;;  %v6854_v25 = vmul.f32 %v7929_v47, %v6852_v24  ;;  %vm6859_vm9 = vweird.f32 %v7929_v47  ;;  %vm12963_vm0 = vmor %vm6797_vm7, %vm6798_vm10  ;;  %v6851_v51 = vmin.f32 %v12893_v63, 1.6 }
 0x4b3   :  { %v6794_v12 = vsub.f32 1.0, %v6793_v50  ;;  %vm12969_vm13 = vmor %vm6858_vm1, %vm6859_vm9  ;;  %v12976_v0 = vpop.eup %7930  ;;  %v6932_v59 = vadd.f32 -0.074975304, %v6931_v1  ;;  %vm6993_vm7 = vweird.f32 %v12936_v44  ;;  %vm6960_vm10 = vcmp.eq.s32.totalorder %v12819_v53, inf }
 0x4b4   :  { %v6737_v36 = vmul.f32 %v6736_v27, %v12890_v61  ;;  %v6855_v38 = vsub.f32 1.0, %v6854_v25  ;;  %v6989_v62 = vmul.f32 %v12976_v0, %v12936_v44  ;;  %vm13041_vm1 = vmor %vm6954_vm15, %vm6955_vm12  ;;  %vm6961_vm9 = vcmp.eq.s32.totalorder %v12811_v22, inf }
 0x4b5   :  { %v6795_v4 = vmul.f32 %v7927_v26, %v6794_v12  ;;  %v6865_v12 = vor.u32 1.1754944e-38, %v6864_v43  ;;  %v6933_v45 = vmul.f32 %v6932_v59, %v12907_v40  ;;  %v13008_v1 = vpop.eup %7932  ;;  %vm6841_vm12 = vcmp.eq.s32.totalorder %v12893_v63, inf }
 0x4b6   :  { %v6738_v5 = vadd.f32 0.1064488, %v6737_v36  ;;  %v6856_v50 = vmul.f32 %v7929_v47, %v6855_v38  ;;  %v12982_v38 = vmul.f32 %v12915_v3, %v7167_v19 }
 0x4b7   :  { %v6796_v27 = vadd.f32 %v7927_v26, %v6795_v4  ;;  %v6934_v25 = vadd.f32 0.1064488, %v6933_v45 }
 0x4b8   :  { %v6739_v21 = vmul.f32 %v6738_v5, %v12890_v61  ;;  %v6857_v36 = vadd.f32 %v7929_v47, %v6856_v50 }
 0x4b9   :  { %v6800_v24 = vsel %vm12963_vm0, %v7927_v26, %v6796_v27  ;;  %vm6994_vm0 = vweird.f32 %v12976_v0 }
 0x4ba   :  { %v6740_v43 = vadd.f32 -0.14207031, %v6739_v21  ;;  %v6805_v4 = vsel %vm6802_vm14, %v6804_v2, %v6800_v24  ;;  %v6861_v58 = vsel %vm12969_vm13, %v7929_v47, %v6857_v36  ;;  %v6997_v2 = vand.u32 2147483647, %v12936_v44  ;;  %vm13052_vm13 = vmand %vm6960_vm10, %vm6961_vm9 }
 0x4bb   :  { %v12989_v5 = vmul.f32 %v6805_v4, %v6790_v23  ;;  %v6866_v50 = vsel %vm6863_vm8, %v6865_v12, %v6861_v58  ;;  %v13001_v47 = vsel %vm6754_vm2, 3.1415927, %v14470_v41  ;;  %v13013_v21 = vsel %vm6751_vm6, 2.3561945, %v14471_v16  ;;  %vm13062_vm2 = vmor %vm6993_vm7, %vm6994_vm0 }
 0x4bc   :  { %v6741_v26 = vmul.f32 %v6740_v43, %v12890_v61  ;;  %v12993_v27 = vmul.f32 %v6866_v50, %v6851_v51  ;;  %v6990_v24 = vsub.f32 1.0, %v6989_v62  ;;  %v6935_v4 = vmul.f32 %v6934_v25, %v12907_v40 }
 0x4bd   :  { %v13005_v23 = vmul.f32 %v12989_v5, %v12989_v5  ;;  %vm13025_vm11 = vcmp.eq.f32.partialorder %v6997_v2, 8.507059e+37  ;;  %v7050_v25 = vmul.f32 %v13008_v1, %v12957_v60  ;;  %vm6756_vm14 = vcmp.eq.f32.partialorder %v12780_v31, 0.0 }
 0x4be   :  { %v6742_v51 = vadd.f32 0.19993454, %v6741_v26  ;;  %v13017_v36 = vmul.f32 %v12993_v27, %v12993_v27  ;;  %v6999_v26 = vand.u32 2147483648, %v12936_v44  ;;  %v6936_v59 = vadd.f32 -0.14207031, %v6935_v4 }
 0x4bf   :  { %v6808_v43 = vmul.f32 0.002785687, %v13005_v23  ;;  %v6991_v2 = vmul.f32 %v12976_v0, %v6990_v24  ;;  %v7058_v4 = vand.u32 2147483647, %v12957_v60  ;;  %vm7054_vm8 = vweird.f32 %v12957_v60 }
 0x4c0   :  { %v6743_v58 = vmul.f32 %v6742_v51, %v12890_v61  ;;  %v6869_v50 = vmul.f32 0.002785687, %v13017_v36  ;;  %v6937_v37 = vmul.f32 %v6936_v59, %v12907_v40  ;;  %v7000_v8 = vor.u32 1.1754944e-38, %v6999_v26 }
 0x4c1   :  { %v6809_v62 = vadd.f32 -0.015866, %v6808_v43  ;;  %vm13066_vm15 = vcmp.eq.f32.partialorder %v7058_v4, 8.507059e+37  ;;  %v7060_v26 = vand.u32 2147483648, %v12957_v60  ;;  %vm6842_vm10 = vcmp.eq.s32.totalorder %v12879_v57, inf }
 0x4c2   :  { %v6744_v51 = vadd.f32 -0.33333147, %v6743_v58  ;;  %v6870_v12 = vadd.f32 -0.015866, %v6869_v50  ;;  %v6938_v59 = vadd.f32 0.19993454, %v6937_v37  ;;  %vm7055_vm7 = vweird.f32 %v13008_v1  ;;  %vm13079_vm9 = vmand %vm6841_vm12, %vm6842_vm10 }
 0x4c3   :  { %v6810_v19 = vmul.f32 %v6809_v62, %v13005_v23  ;;  %vm6944_vm0 = vcmp.gt.f32.partialorder %v12811_v22, %v12819_v53  ;;  %vm13099_vm12 = vmor %vm7054_vm8, %vm7055_vm7  ;;  %vm6950_vm8 = vcmp.lt.s32.totalorder %v12808_v54, 0  ;;  %vm13190_vm7 = vcmp.eq.f32.partialorder %v7116_v29, 8.507059e+37 }
 0x4c4   :  { %v6745_v58 = vmul.f32 %v6744_v51, %v12890_v61  ;;  %v6871_v50 = vmul.f32 %v6870_v12, %v13017_v36  ;;  %v6992_v12 = vadd.f32 %v12976_v0, %v6991_v2  ;;  %v7051_v51 = vsub.f32 1.0, %v7050_v25 }
 0x4c5   :  { %v6811_v24 = vadd.f32 0.04247222, %v6810_v19 }
 0x4c6   :  { %v6746_v34 = vmul.f32 %v6745_v58, %v12874_v33  ;;  %v6872_v61 = vadd.f32 0.04247222, %v6871_v50  ;;  %v6939_v50 = vmul.f32 %v6938_v59, %v12907_v40  ;;  %v7052_v58 = vmul.f32 %v13008_v1, %v7051_v51 }
 0x4c7   :  { %v6812_v17 = vmul.f32 %v6811_v24, %v13005_v23  ;;  %v14509_v24 = vsub.f32 1.0, %v12930_v20 }
 0x4c8   :  { %v6747_v2 = vadd.f32 %v6746_v34, %v12874_v33  ;;  %v6873_v4 = vmul.f32 %v6872_v61, %v13017_v36  ;;  %v6940_v61 = vadd.f32 -0.33333147, %v6939_v50  ;;  %v7053_v51 = vadd.f32 %v13008_v1, %v7052_v58 }
 0x4c9   :  { %v6813_v44 = vadd.f32 -0.074975304, %v6812_v17  ;;  %v7110_v34 = vmul.f32 %v12909_v49, %v14509_v24  ;;  %v6996_v17 = vsel %vm13062_vm2, %v12976_v0, %v6992_v12  ;;  %v14512_v0 = vmin.f32 %v12918_v52, %v12879_v57 }
 0x4ca   :  { %v6749_v33 = vsub.f32 1.5707964, %v6747_v2  ;;  %v6874_v48 = vadd.f32 -0.074975304, %v6873_v4  ;;  %v7001_v59 = vsel %vm13025_vm11, %v7000_v8, %v6996_v17  ;;  %v6941_v4 = vmul.f32 %v6940_v61, %v12907_v40 }
 0x4cb   :  { %v6814_v11 = vmul.f32 %v6813_v44, %v13005_v23  ;;  %v13109_v12 = vmul.f32 %v7001_v59, %v14512_v0  ;;  %v7061_v44 = vor.u32 1.1754944e-38, %v7060_v26  ;;  %vm6947_vm11 = vcmp.lt.f32.partialorder %v12808_v54, 0.0 }
 0x4cc   :  { %v6750_v19 = vsel %vm6748_vm5, %v6749_v33, %v6747_v2  ;;  %v6875_v60 = vmul.f32 %v6874_v48, %v13017_v36  ;;  %v7057_v10 = vsel %vm13099_vm12, %v13008_v1, %v7053_v51  ;;  %v6942_v40 = vmul.f32 %v6941_v4, %v12897_v28 }
 0x4cd   :  { %v6752_v45 = vsub.f32 3.1415927, %v6750_v19  ;;  %v6815_v8 = vadd.f32 0.1064488, %v6814_v11  ;;  %v13118_v42 = vmul.f32 %v13109_v12, %v13109_v12  ;;  %v7062_v50 = vsel %vm13066_vm15, %v7061_v44, %v7057_v10 }
 0x4ce   :  { %v6876_v48 = vadd.f32 0.1064488, %v6875_v60  ;;  %vm7112_vm5 = vweird.f32 %v12857_v18  ;;  %v6943_v33 = vadd.f32 %v6942_v40, %v12897_v28  ;;  %v14513_v61 = vmin.f32 %v12918_v52, 1.6 }
 0x4cf   :  { %v6753_v26 = vsel %vm6751_vm6, %v6752_v45, %v6750_v19  ;;  %v6816_v11 = vmul.f32 %v6815_v8, %v13005_v23  ;;  %v7004_v2 = vmul.f32 0.002785687, %v13118_v42  ;;  %vm7113_vm6 = vweird.f32 %v12909_v49 }
 0x4d0   :  { %v6757_v58 = vsel %vm6756_vm14, %v13001_v47, %v6753_v26  ;;  %v6877_v24 = vmul.f32 %v6876_v48, %v13017_v36  ;;  %v13143_v59 = vmul.f32 %v7062_v50, %v14513_v61  ;;  %v6945_v19 = vsub.f32 1.5707964, %v6943_v33 }
 0x4d1   :  { %v6761_v30 = vsel %vm12943_vm3, nan, %v6757_v58  ;;  %v6817_v1 = vadd.f32 -0.14207031, %v6816_v11  ;;  %v7005_v47 = vadd.f32 -0.015866, %v7004_v2  ;;  %vm6952_vm3 = vcmp.eq.f32.partialorder %v12783_v46, 0.0 }
 0x4d2   :  { %v6767_v17 = vsel %vm12949_vm4, %v13013_v21, %v6761_v30  ;;  %v6878_v20 = vadd.f32 -0.14207031, %v6877_v24  ;;  %v7111_v0 = vadd.f32 %v12909_v49, %v7110_v34  ;;  %v14514_v21 = vand.u32 2147483648, %v12780_v31  ;;  %vm13161_vm4 = vmor %vm7112_vm5, %vm7113_vm6 }
 0x4d3   :  { %v6768_v37 = vand.u32 2147483647, %v6767_v17  ;;  %v6818_v9 = vmul.f32 %v6817_v1, %v13005_v23  ;;  %v7006_v28 = vmul.f32 %v7005_v47, %v13118_v42  ;;  %v6946_v8 = vsel %vm6944_vm0, %v6945_v19, %v6943_v33 }
 0x4d4   :  { %v6879_v45 = vmul.f32 %v6878_v20, %v13017_v36  ;;  %v6948_v34 = vsub.f32 3.1415927, %v6946_v8  ;;  %v6951_v31 = vsel %vm6950_vm8, 3.1415927, %v14470_v41  ;;  %v13170_v10 = vmul.f32 %v13143_v59, %v13143_v59 }
 0x4d5   :  { %v13153_v51 = vor.u32 %v14514_v21, %v6768_v37  ;;  %v6819_v44 = vadd.f32 0.19993454, %v6818_v9  ;;  %v7007_v4 = vadd.f32 0.04247222, %v7006_v28  ;;  %v6959_v53 = vsel %vm6947_vm11, 2.3561945, %v14471_v16 }
 0x4d6   :  { %v6880_v22 = vadd.f32 0.19993454, %v6879_v45  ;;  %v6965_v11 = vand.u32 2147483648, %v12783_v46  ;;  %vm6825_vm14 = vcmp.gt.f32.partialorder %v12879_v57, %v12893_v63  ;;  %v6949_v48 = vsel %vm6947_vm11, %v6948_v34, %v6946_v8 }
 0x4d7   :  { %v6820_v26 = vmul.f32 %v6819_v44, %v13005_v23  ;;  %v7008_v40 = vmul.f32 %v7007_v4, %v13118_v42  ;;  %vm7037_vm2 = vcmp.eq.s32.totalorder %v12918_v52, inf  ;;  %v7115_v58 = vsel %vm13161_vm4, %v12909_v49, %v7111_v0 }
 0x4d8   :  { %vm6831_vm15 = vcmp.lt.s32.totalorder %v12876_v7, 0  ;;  %v6881_v50 = vmul.f32 %v6880_v22, %v13017_v36  ;;  %v6953_v30 = vsel %vm6952_vm3, %v6951_v31, %v6949_v48  ;;  %vm6835_vm0 = vcmp.ne.f32.partialorder %v12876_v7, %v12876_v7  ;;  %vm13200_vm12 = vmand %vm7037_vm2, %vm6842_vm10 }
 0x4d9   :  { %v6821_v2 = vadd.f32 -0.33333147, %v6820_v26  ;;  %v6957_v54 = vsel %vm13041_vm1, nan, %v6953_v30  ;;  %v7009_v24 = vadd.f32 -0.074975304, %v7008_v40  ;;  %v7118_v33 = vand.u32 2147483648, %v12857_v18 }
 0x4da   :  { %v7065_v46 = vmul.f32 0.002785687, %v13170_v10  ;;  %vm6828_vm11 = vcmp.lt.f32.partialorder %v12876_v7, 0.0  ;;  %v6882_v47 = vadd.f32 -0.33333147, %v6881_v50  ;;  %v6963_v43 = vsel %vm13052_vm13, %v6959_v53, %v6957_v54 }
 0x4db   :  { %v6822_v17 = vmul.f32 %v6821_v2, %v13005_v23  ;;  %v7169_v61 = vmul.f32 0.5, %v12982_v38  ;;  %vm6833_vm1 = vcmp.eq.f32.partialorder %v14487_v15, 0.0  ;;  %v6964_v37 = vand.u32 2147483647, %v6963_v43 }
 0x4dc   :  { %v7010_v9 = vmul.f32 %v7009_v24, %v13118_v42  ;;  %v7066_v20 = vadd.f32 -0.015866, %v7065_v46  ;;  %v7119_v19 = vor.u32 1.1754944e-38, %v7118_v33  ;;  %vm6836_vm8 = vcmp.ne.f32.partialorder %v14487_v15, %v14487_v15 }
 0x4dd   :  { %v6823_v28 = vmul.f32 %v6822_v17, %v12989_v5  ;;  %v6883_v18 = vmul.f32 %v6882_v47, %v13017_v36  ;;  %v7170_v23 = vsub.f32 1.5, %v7169_v61  ;;  %v13217_v0 = vor.u32 %v6965_v11, %v6964_v37  ;;  %vm13257_vm3 = vmor %vm6835_vm0, %vm6836_vm8 }
 0x4de   :  { %v7011_v62 = vadd.f32 0.1064488, %v7010_v9  ;;  %v7067_v38 = vmul.f32 %v7066_v20, %v13170_v10  ;;  %v7120_v29 = vsel %vm13190_vm7, %v7119_v19, %v7115_v58  ;;  %v14521_v45 = vmin.f32 %v12845_v32, %v12842_v55 }
 0x4df   :  { %v6824_v21 = vadd.f32 %v6823_v28, %v12989_v5  ;;  %v6884_v44 = vmul.f32 %v6883_v18, %v12993_v27  ;;  %v7171_v36 = vmul.f32 %v12915_v3, %v7170_v23  ;;  %vm7827_vm13 = vcmp.lt.f32.partialorder %v12893_v63, 1.6 }
 0x4e0   :  { %v13227_v8 = vmul.f32 %v7120_v29, %v14521_v45  ;;  %v7012_v60 = vmul.f32 %v7011_v62, %v13118_v42  ;;  %v7068_v34 = vadd.f32 0.04247222, %v7067_v38  ;;  %vm7173_vm5 = vcmp.eq.f32.partialorder %v12860_v13, inf  ;;  %v14524_v45 = vld [vmem:[#allocation59_spill] sm:$0xff] }
 0x4e1   :  { %v6826_v31 = vsub.f32 1.5707964, %v6824_v21  ;;  %v6885_v4 = vadd.f32 %v6884_v44, %v12993_v27  ;;  %v7172_v26 = vmul.f32 %v7171_v36, %v12860_v13  ;;  %vm7175_vm6 = vcmp.eq.f32.partialorder %v12860_v13, 0.0 }
 0x4e2   :  { %v13236_v5 = vmul.f32 %v13227_v8, %v13227_v8  ;;  %v7013_v22 = vadd.f32 -0.14207031, %v7012_v60  ;;  %v7069_v53 = vmul.f32 %v7068_v34, %v13170_v10  ;;  %v7176_v3 = vand.u32 2147483648, %v12860_v13 }
 0x4e3   :  { %v6827_v11 = vsel %vm6825_vm14, %v6826_v31, %v6824_v21  ;;  %v6887_v48 = vsub.f32 1.5707964, %v6885_v4  ;;  %v7174_v40 = vsel %vm7173_vm5, %v12860_v13, %v7172_v26  ;;  %v6832_v2 = vsel %vm6831_vm15, 3.1415927, %v14470_v41 }
 0x4e4   :  { %v7123_v27 = vmul.f32 0.002785687, %v13236_v5  ;;  %v6829_v58 = vsub.f32 3.1415927, %v6827_v11  ;;  %v7014_v50 = vmul.f32 %v7013_v22, %v13118_v42  ;;  %v7070_v30 = vadd.f32 -0.074975304, %v7069_v53 }
 0x4e5   :  { %v6840_v13 = vsel %vm6828_vm11, 2.3561945, %v14471_v16  ;;  %v6888_v54 = vsel %vm7827_vm13, %v6887_v48, %v6885_v4  ;;  %v7177_v46 = vsel %vm7175_vm6, %v7176_v3, %v7174_v40  ;;  %v6685_v61 = vmul.f32 %v12732_v6, %v12603_v39 }
 0x4e6   :  { %v7124_v24 = vadd.f32 -0.015866, %v7123_v27  ;;  %v6830_v33 = vsel %vm6828_vm11, %v6829_v58, %v6827_v11  ;;  %v6890_v17 = vsub.f32 3.1415927, %v6888_v54  ;;  %v7015_v47 = vadd.f32 0.19993454, %v7014_v50 }
 0x4e7   :  { %v7071_v43 = vmul.f32 %v7070_v30, %v13170_v10  ;;  %v6707_v37 = vmul.f32 %v12926_v35, %v12754_v14  ;;  %v6834_v9 = vsel %vm6833_vm1, %v6832_v2, %v6830_v33  ;;  %v13290_v23 = vadd.f32 1e-12, %v7177_v46  ;;  %v14527_v27 = vld [vmem:[#allocation38_spill] sm:$0xff]  ;;  %v14528_v30 = vld [vmem:[#allocation60_spill] sm:$0xff] }
 0x4e8   :  { %v7125_v63 = vmul.f32 %v7124_v24, %v13236_v5  ;;  %v6838_v20 = vsel %vm13257_vm3, nan, %v6834_v9  ;;  %v6891_v19 = vsel %vm6828_vm11, %v6890_v17, %v6888_v54  ;;  %v7016_v28 = vmul.f32 %v7015_v47, %v13118_v42 }
 0x4e9   :  { %v7072_v18 = vadd.f32 0.1064488, %v7071_v43  ;;  %v13283_v39 = vsel %vm13079_vm9, %v6840_v13, %v6838_v20  ;;  %v13288_v6 = vsel %vm6835_vm0, nan, %v6891_v19  ;;  %v6686_v25 = vsub.f32 %v12923_v56, %v6685_v61 }
 0x4ea   :  { %v7126_v35 = vadd.f32 0.04247222, %v7125_v63  ;;  %v7017_v62 = vadd.f32 -0.33333147, %v7016_v28  ;;  %v13297_v36 = vadd.f32 %v6707_v37, %v14524_v45  ;;  %v13300_v7 = vand.u32 2147483647, %v13290_v23 }
 0x4eb   :  { %v7073_v38 = vmul.f32 %v7072_v18, %v13170_v10  ;;  %vm7156_vm9 = vcmp.eq.s32.totalorder %v12845_v32, inf  ;;  %vm7157_vm4 = vcmp.eq.s32.totalorder %v12842_v55, inf  ;;  %v6687_v53 = vmul.f32 %v6686_v25, %v12754_v14 }
 0x4ec   :  { %v7127_v29 = vmul.f32 %v7126_v35, %v13236_v5  ;;  %v7018_v21 = vmul.f32 %v7017_v62, %v13118_v42  ;;  %v7297_v42 = vsub.f32 0.0, %v13297_v36  ;;  %vm13309_vm14 = vmand %vm7156_vm9, %vm7157_vm4  ;;  %vm7021_vm2 = vcmp.gt.f32.partialorder %v12879_v57, %v12918_v52 }
 0x4ed   :  { %v7074_v44 = vadd.f32 -0.14207031, %v7073_v38  ;;  %v13318_v11 = vmax.f32 %v13300_v7, %v12879_v57  ;;  %vm7027_vm15 = vcmp.lt.s32.totalorder %v14527_v27, 0  ;;  %v13323_v40 = vmax.f32 %v13300_v7, 1.6 }
 0x4ee   :  { %v7128_v60 = vadd.f32 -0.074975304, %v7127_v29  ;;  %v7019_v34 = vmul.f32 %v7018_v21, %v13109_v12  ;;  %vm7031_vm7 = vcmp.ne.f32.partialorder %v14527_v27, %v14527_v27  ;;  %v13329_v58 = vadd.f32 1e-12, %v7297_v42 }
 0x4ef   :  { %v7075_v31 = vmul.f32 %v7074_v44, %v13170_v10  ;;  %7934 = vrcp.f32 %v13318_v11  ;;  %vm7024_vm0 = vcmp.lt.f32.partialorder %v14527_v27, 0.0  ;;  %v13334_v1 = vadd.f32 %v6687_v53, %v14528_v30  ;;  %vm13343_vm11 = vmor %vm7031_vm7, %vm6836_vm8 }
 0x4f0   :  { %v7129_v4 = vmul.f32 %v7128_v60, %v13236_v5  ;;  %v7020_v56 = vadd.f32 %v7019_v34, %v13109_v12  ;;  %7936 = vrcp.f32 %v13323_v40  ;;  %v7028_v54 = vsel %vm7027_vm15, 3.1415927, %v14470_v41 }
 0x4f1   :  { %v7076_v26 = vadd.f32 0.19993454, %v7075_v31  ;;  %v7036_v33 = vsel %vm7024_vm0, 2.3561945, %v14471_v16  ;;  %vm7828_vm13 = vcmp.lt.f32.partialorder %v12918_v52, 1.6  ;;  %vm7189_vm5 = vweird.f32 %v13318_v11 }
 0x4f2   :  { %v7130_v3 = vadd.f32 0.1064488, %v7129_v4  ;;  %v7022_v48 = vsub.f32 1.5707964, %v7020_v56  ;;  %v13356_v61 = vand.u32 2147483647, %v13329_v58  ;;  %vm7250_vm6 = vweird.f32 %v13323_v40 }
 0x4f3   :  { %v7077_v12 = vmul.f32 %v7076_v26, %v13170_v10  ;;  %v13359_v37 = vand.u32 2147483647, %v13334_v1  ;;  %v7193_v18 = vand.u32 2147483647, %v13318_v11  ;;  %v7195_v44 = vand.u32 2147483648, %v13318_v11  ;;  %v14531_v31 = vld [vmem:[#allocation52_spill] sm:$0xff] }
 0x4f4   :  { %v7131_v14 = vmul.f32 %v7130_v3, %v13236_v5  ;;  %v7023_v2 = vsel %vm7021_vm2, %v7022_v48, %v7020_v56  ;;  %v7256_v60 = vand.u32 2147483648, %v13323_v40  ;;  %vm7140_vm3 = vcmp.gt.f32.partialorder %v12842_v55, %v12845_v32 }
 0x4f5   :  { %v7078_v50 = vadd.f32 -0.33333147, %v7077_v12  ;;  %v7025_v13 = vsub.f32 3.1415927, %v7023_v2  ;;  %v7935_v20 = vpop.eup %7934  ;;  %v13372_v35 = vmax.f32 %v13356_v61, %v13359_v37  ;;  %vm7146_vm9 = vcmp.lt.s32.totalorder %v14531_v31, 0 }
 0x4f6   :  { %v7132_v24 = vadd.f32 -0.14207031, %v7131_v14  ;;  %v7937_v62 = vpop.eup %7936  ;;  %v7185_v21 = vmul.f32 %v7935_v20, %v13318_v11  ;;  %v7254_v42 = vand.u32 2147483647, %v13323_v40  ;;  %v7243_v53 = vmin.f32 %v13300_v7, 1.6 }
 0x4f7   :  { %v7079_v17 = vmul.f32 %v7078_v50, %v13170_v10  ;;  %v7026_v47 = vsel %vm7024_vm0, %v7025_v13, %v7023_v2  ;;  %v7182_v10 = vmin.f32 %v13300_v7, %v12879_v57  ;;  %v7246_v45 = vmul.f32 %v7937_v62, %v13323_v40 }
 0x4f8   :  { %v7133_v43 = vmul.f32 %v7132_v24, %v13236_v5  ;;  %v7030_v9 = vsel %vm6833_vm1, %v7028_v54, %v7026_v47  ;;  %v7186_v49 = vsub.f32 1.0, %v7185_v21  ;;  %7938 = vrcp.f32 %v13372_v35  ;;  %v14536_v47 = vld [vmem:[#allocation36_spill] sm:$0xff] }
 0x4f9   :  { %v7080_v63 = vmul.f32 %v7079_v17, %v13143_v59  ;;  %v7034_v19 = vsel %vm13343_vm11, nan, %v7030_v9  ;;  %v7247_v4 = vsub.f32 1.0, %v7246_v45  ;;  %vm7251_vm4 = vweird.f32 %v7937_v62 }
 0x4fa   :  { %v7134_v28 = vadd.f32 0.19993454, %v7133_v43  ;;  %v13376_v38 = vsel %vm13200_vm12, %v7036_v33, %v7034_v19  ;;  %vm7190_vm12 = vweird.f32 %v7935_v20  ;;  %v7187_v26 = vmul.f32 %v7935_v20, %v7186_v49  ;;  %vm13404_vm11 = vmor %vm7250_vm6, %vm7251_vm4 }
 0x4fb   :  { %v7081_v29 = vadd.f32 %v7080_v63, %v13143_v59  ;;  %v7359_v3 = vmul.f32 %v13334_v1, %v13334_v1  ;;  %vm13398_vm2 = vmor %vm7189_vm5, %vm7190_vm12  ;;  %v7196_v2 = vor.u32 1.1754944e-38, %v7195_v44  ;;  %v7248_v50 = vmul.f32 %v7937_v62, %v7247_v4 }
 0x4fc   :  { %v7135_v25 = vmul.f32 %v7134_v28, %v13236_v5  ;;  %v7188_v30 = vadd.f32 %v7935_v20, %v7187_v26  ;;  %vm7194_vm15 = vcmp.eq.f32.partialorder %v7193_v18, 8.507059e+37  ;;  %v7257_v13 = vor.u32 1.1754944e-38, %v7256_v60 }
 0x4fd   :  { %v7083_v34 = vsub.f32 1.5707964, %v7081_v29  ;;  %v7249_v24 = vadd.f32 %v7937_v62, %v7248_v50  ;;  %vm7150_vm5 = vcmp.ne.f32.partialorder %v14531_v31, %v14531_v31  ;;  %v7312_v18 = vand.u32 2147483647, %v13372_v35 }
 0x4fe   :  { %v7136_v59 = vadd.f32 -0.33333147, %v7135_v25  ;;  %v7939_v46 = vpop.eup %7938  ;;  %v7192_v33 = vsel %vm13398_vm2, %v7935_v20, %v7188_v30  ;;  %vm7143_vm12 = vcmp.lt.f32.partialorder %v14531_v31, 0.0  ;;  %vm7148_vm4 = vcmp.eq.f32.partialorder %v14536_v47, 0.0 }
 0x4ff   :  { %v7084_v56 = vsel %vm7828_vm13, %v7083_v34, %v7081_v29  ;;  %vm7255_vm13 = vcmp.eq.f32.partialorder %v7254_v42, 8.507059e+37  ;;  %v7197_v43 = vsel %vm7194_vm15, %v7196_v2, %v7192_v33  ;;  %v7253_v9 = vsel %vm13404_vm11, %v7937_v62, %v7249_v24 }
 0x500   :  { %v7086_v48 = vsub.f32 3.1415927, %v7084_v56  ;;  %v7137_v12 = vmul.f32 %v7136_v59, %v13236_v5  ;;  %v7360_v5 = vmul.f32 %v13297_v36, %v13297_v36  ;;  %v13429_v27 = vmul.f32 %v7197_v43, %v7182_v10 }
 0x501   :  { %v7258_v63 = vsel %vm7255_vm13, %v7257_v13, %v7253_v9  ;;  %v7304_v19 = vmul.f32 %v7939_v46, %v13372_v35  ;;  %vm7309_vm6 = vweird.f32 %v7939_v46  ;;  %v7147_v25 = vsel %vm7146_vm9, 3.1415927, %v14470_v41 }
 0x502   :  { %v7087_v11 = vsel %vm7024_vm0, %v7086_v48, %v7084_v56  ;;  %v7138_v54 = vmul.f32 %v7137_v12, %v13227_v8  ;;  %v13422_v36 = vadd.f32 %v7360_v5, %v7359_v3  ;;  %vm7151_vm0 = vcmp.ne.f32.partialorder %v14536_v47, %v14536_v47 }
 0x503   :  { %v13416_v40 = vsel %vm7031_vm7, nan, %v7087_v11  ;;  %vm7308_vm7 = vweird.f32 %v13372_v35  ;;  %v13433_v20 = vmul.f32 %v7258_v63, %v7243_v53  ;;  %v13439_v29 = vmul.f32 %v13429_v27, %v13429_v27 }
 0x504   :  { %v7139_v17 = vadd.f32 %v7138_v54, %v13227_v8  ;;  %v7314_v8 = vand.u32 2147483648, %v13372_v35  ;;  %v7305_v21 = vsub.f32 1.0, %v7304_v19  ;;  %7940 = vrsqrt.f32 %v13422_v36  ;;  %vm7310_vm9 = vmor %vm7308_vm7, %vm7309_vm6 }
 0x505   :  { %v13449_v62 = vmul.f32 %v13433_v20, %v13433_v20  ;;  %v7200_v32 = vmul.f32 0.002785687, %v13439_v29  ;;  %v7155_v60 = vsel %vm7143_vm12, 2.3561945, %v14471_v16  ;;  %v7301_v49 = vmin.f32 %v13356_v61, %v13359_v37 }
 0x506   :  { %v7141_v28 = vsub.f32 1.5707964, %v7139_v17  ;;  %v7306_v45 = vmul.f32 %v7939_v46, %v7305_v21  ;;  %v7315_v59 = vor.u32 1.1754944e-38, %v7314_v8  ;;  %vm7313_vm2 = vcmp.eq.f32.partialorder %v7312_v18, 8.507059e+37 }
 0x507   :  { %v7261_v34 = vmul.f32 0.002785687, %v13449_v62  ;;  %v7201_v31 = vadd.f32 -0.015866, %v7200_v32  ;;  %vm7233_vm15 = vcmp.eq.s32.totalorder %v13300_v7, inf  ;;  %vm7346_vm11 = vcmp.ne.f32.partialorder %v13329_v58, %v13329_v58 }
 0x508   :  { %v7142_v10 = vsel %vm7140_vm3, %v7141_v28, %v7139_v17  ;;  %vm13460_vm3 = vmor %vm7150_vm5, %vm7151_vm0  ;;  %v7307_v42 = vadd.f32 %v7939_v46, %v7306_v45  ;;  %vm7369_vm13 = vcmp.eq.f32.partialorder %v13422_v36, inf  ;;  %v7372_v32 = vand.u32 2147483648, %v13422_v36 }
 0x509   :  { %v7144_v44 = vsub.f32 3.1415927, %v7142_v10  ;;  %v7262_v26 = vadd.f32 -0.015866, %v7261_v34  ;;  %v7202_v48 = vmul.f32 %v7201_v31, %v13439_v29  ;;  %vm7347_vm5 = vcmp.ne.f32.partialorder %v13334_v1, %v13334_v1 }
 0x50a   :  { %v7941_v53 = vpop.eup %7940  ;;  %v7311_v12 = vsel %vm7310_vm9, %v7939_v46, %v7307_v42  ;;  %vm7352_vm0 = vcmp.eq.s32.totalorder %v13356_v61, inf  ;;  %vm13511_vm7 = vmor %vm7346_vm11, %vm7347_vm5  ;;  %vm7353_vm6 = vcmp.eq.s32.totalorder %v13359_v37, inf  ;;  %v13520_v31 = vand.u32 2147483648, %v14487_v15 }
 0x50b   :  { %v7145_v4 = vsel %vm7143_vm12, %v7144_v44, %v7142_v10  ;;  %v7263_v14 = vmul.f32 %v7262_v26, %v13449_v62  ;;  %v7316_v2 = vsel %vm7313_vm2, %v7315_v59, %v7311_v12  ;;  %v7203_v50 = vadd.f32 0.04247222, %v7202_v48 }
 0x50c   :  { %v7149_v56 = vsel %vm7148_vm4, %v7147_v25, %v7145_v4  ;;  %v13481_v30 = vmul.f32 %v7316_v2, %v7301_v49  ;;  %v7363_v13 = vmul.f32 %v7941_v53, %v13422_v36  ;;  %vm7371_vm12 = vcmp.eq.f32.partialorder %v13422_v36, 0.0  ;;  %vm13523_vm4 = vmand %vm7352_vm0, %vm7353_vm6 }
 0x50d   :  { %v7153_v3 = vsel %vm13460_vm3, nan, %v7149_v56  ;;  %v7264_v52 = vadd.f32 0.04247222, %v7263_v14  ;;  %v7204_v5 = vmul.f32 %v7203_v50, %v13439_v29  ;;  %v6845_v4 = vand.u32 2147483647, %v13283_v39 }
 0x50e   :  { %v13478_v35 = vsel %vm13309_vm14, %v7155_v60, %v7153_v3  ;;  %v13488_v11 = vmul.f32 %v13481_v30, %v13481_v30  ;;  %vm13492_vm14 = vmand %vm7233_vm15, %vm6842_vm10  ;;  %v7364_v24 = vmul.f32 %v7941_v53, %v7363_v13  ;;  %v6901_v14 = vand.u32 2147483647, %v13288_v6 }
 0x50f   :  { %v7265_v54 = vmul.f32 %v7264_v52, %v13449_v62  ;;  %v7205_v46 = vadd.f32 -0.074975304, %v7204_v5  ;;  %v13536_v52 = vor.u32 %v13520_v31, %v6845_v4  ;;  %v13548_v6 = vmul.f32 0.31830987, %v13217_v0 }
 0x510   :  { %v7319_v33 = vmul.f32 0.002785687, %v13488_v11  ;;  %v7365_v43 = vmul.f32 0.5, %v7364_v24  ;;  %vm7223_vm3 = vcmp.lt.s32.totalorder %v13290_v23, 0  ;;  %vm7217_vm9 = vcmp.gt.f32.partialorder %v12879_v57, %v13300_v7 }
 0x511   :  { %v7266_v17 = vadd.f32 -0.074975304, %v7265_v54  ;;  %v7206_v9 = vmul.f32 %v7205_v46, %v13439_v29  ;;  %v7041_v54 = vand.u32 2147483647, %v13376_v38  ;;  %v13545_v46 = vmul.f32 0.31830987, %v13153_v51 }
 0x512   :  { %v7320_v63 = vadd.f32 -0.015866, %v7319_v33  ;;  %v7366_v28 = vsub.f32 1.5, %v7365_v43  ;;  %v13551_v43 = vor.u32 -0.0, %v6901_v14  ;;  %vm7220_vm2 = vcmp.lt.f32.partialorder %v13290_v23, 0.0 }
 0x513   :  { %v7267_v19 = vmul.f32 %v7266_v17, %v13449_v62  ;;  %v7207_v18 = vadd.f32 0.1064488, %v7206_v9  ;;  %v7097_v9 = vand.u32 2147483647, %v13416_v40  ;;  %v13562_v0 = vor.u32 %v7041_v54, %v13520_v31 }
 0x514   :  { %v7321_v8 = vmul.f32 %v7320_v63, %v13488_v11  ;;  %v7367_v10 = vmul.f32 %v7941_v53, %v7366_v28  ;;  %vm7829_vm15 = vcmp.lt.f32.partialorder %v13300_v7, 1.6  ;;  %vm7227_vm11 = vcmp.ne.f32.partialorder %v13290_v23, %v13290_v23 }
 0x515   :  { %v7268_v21 = vadd.f32 0.1064488, %v7267_v19  ;;  %v7208_v44 = vmul.f32 %v7207_v18, %v13439_v29  ;;  %v6848_v19 = vsub.f32 0.0, %v13536_v52  ;;  %vm7336_vm5 = vcmp.gt.f32.partialorder %v13359_v37, %v13356_v61 }
 0x516   :  { %v7322_v25 = vadd.f32 0.04247222, %v7321_v8  ;;  %v7368_v59 = vmul.f32 %v7367_v10, %v13422_v36  ;;  %v7161_v8 = vand.u32 2147483648, %v14536_v47 }
 0x517   :  { %v7269_v55 = vmul.f32 %v7268_v21, %v13449_v62  ;;  %v7209_v45 = vadd.f32 -0.14207031, %v7208_v44  ;;  %v13681_v47 = vmul.f32 0.63661975, %v6848_v19 }
 0x518   :  { %v7323_v60 = vmul.f32 %v7322_v25, %v13488_v11  ;;  %v7370_v3 = vsel %vm7369_vm13, %v13422_v36, %v7368_v59 }
 0x519   :  { %v7270_v34 = vadd.f32 -0.14207031, %v7269_v55  ;;  %v7210_v42 = vmul.f32 %v7209_v45, %v13439_v29  ;;  %v7373_v39 = vsel %vm7371_vm12, %v7372_v32, %v7370_v3  ;;  %v7224_v32 = vsel %vm7223_vm3, 3.1415927, %v14470_v41  ;;  %vm13609_vm12 = vmor %vm7227_vm11, %vm6836_vm8 }
 0x51a   :  { %v7324_v56 = vadd.f32 -0.074975304, %v7323_v60  ;;  %v13533_v50 = vadd.f32 1e-12, %v7373_v39  ;;  %v7232_v45 = vsel %vm7220_vm2, 2.3561945, %v14471_v16 }
 0x51b   :  { %v7271_v53 = vmul.f32 %v7270_v34, %v13449_v62  ;;  %v7211_v48 = vadd.f32 0.19993454, %v7210_v42 }
 0x51c   :  { %v7325_v12 = vmul.f32 %v7324_v56, %v13488_v11  ;;  %v13542_v36 = vand.u32 2147483647, %v13533_v50  ;;  %v6903_v56 = vsub.f32 0.0, %v13551_v43 }
 0x51d   :  { %v7272_v2 = vadd.f32 0.19993454, %v7271_v53  ;;  %v7212_v13 = vmul.f32 %v7211_v48, %v13439_v29 }
 0x51e   :  { %v7326_v5 = vadd.f32 0.1064488, %v7325_v12  ;;  %v7379_v38 = vmax.f32 %v13542_v36, %v12879_v57  ;;  %v13559_v18 = vmax.f32 %v13542_v36, 1.6 }
 0x51f   :  { %v7273_v24 = vmul.f32 %v7272_v2, %v13449_v62  ;;  %v7213_v33 = vadd.f32 -0.33333147, %v7212_v13 }
 0x520   :  { %v7327_v17 = vmul.f32 %v7326_v5, %v13488_v11  ;;  %7942 = vrcp.f32 %v7379_v38  ;;  %v7389_v25 = vand.u32 2147483647, %v7379_v38  ;;  %vm7385_vm13 = vweird.f32 %v7379_v38 }
 0x521   :  { %v7274_v63 = vadd.f32 -0.33333147, %v7273_v24  ;;  %v7214_v28 = vmul.f32 %v7213_v33, %v13439_v29  ;;  %7944 = vrcp.f32 %v13559_v18  ;;  %v13570_v29 = vor.u32 -0.0, %v7097_v9 }
 0x522   :  { %v7328_v51 = vadd.f32 -0.14207031, %v7327_v17  ;;  %vm13590_vm0 = vcmp.eq.f32.partialorder %v7389_v25, 8.507059e+37  ;;  %v7391_v53 = vand.u32 2147483648, %v7379_v38  ;;  %vm7446_vm6 = vweird.f32 %v13559_v18 }
 0x523   :  { %v7275_v21 = vmul.f32 %v7274_v63, %v13449_v62  ;;  %v7215_v40 = vmul.f32 %v7214_v28, %v13429_v27  ;;  %v7450_v39 = vand.u32 2147483647, %v13559_v18  ;;  %v7452_v5 = vand.u32 2147483648, %v13559_v18 }
 0x524   :  { %v7329_v10 = vmul.f32 %v7328_v51, %v13488_v11  ;;  %v7392_v9 = vor.u32 1.1754944e-38, %v7391_v53  ;;  %v7160_v53 = vand.u32 2147483647, %v13478_v35 }
 0x525   :  { %v7276_v44 = vmul.f32 %v7275_v21, %v13433_v20  ;;  %v7216_v55 = vadd.f32 %v7215_v40, %v13429_v27  ;;  %v7378_v27 = vmin.f32 %v13542_v36, %v12879_v57 }
 0x526   :  { %v7330_v62 = vadd.f32 0.19993454, %v7329_v10  ;;  %v7943_v4 = vpop.eup %7942  ;;  %v7162_v37 = vor.u32 %v7161_v8, %v7160_v53 }
 0x527   :  { %v7277_v60 = vadd.f32 %v7276_v44, %v13433_v20  ;;  %v7218_v34 = vsub.f32 1.5707964, %v7216_v55  ;;  %v7945_v20 = vpop.eup %7944  ;;  %v7381_v12 = vmul.f32 %v7943_v4, %v7379_v38  ;;  %vm7386_vm3 = vweird.f32 %v7943_v4 }
 0x528   :  { %v7331_v59 = vmul.f32 %v7330_v62, %v13488_v11  ;;  %v7442_v13 = vmul.f32 %v7945_v20, %v13559_v18  ;;  %v7439_v38 = vmin.f32 %v13542_v36, 1.6 }
 0x529   :  { %v7279_v42 = vsub.f32 1.5707964, %v7277_v60  ;;  %v7219_v3 = vsel %vm7217_vm9, %v7218_v34, %v7216_v55  ;;  %v7382_v17 = vsub.f32 1.0, %v7381_v12  ;;  %vm7447_vm9 = vweird.f32 %v7945_v20 }
 0x52a   :  { %v7332_v48 = vadd.f32 -0.33333147, %v7331_v59  ;;  %v7221_v14 = vsub.f32 3.1415927, %v7219_v3  ;;  %v7443_v63 = vsub.f32 1.0, %v7442_v13  ;;  %v7453_v55 = vor.u32 1.1754944e-38, %v7452_v5 }
 0x52b   :  { %v7280_v2 = vsel %vm7829_vm15, %v7279_v42, %v7277_v60  ;;  %v7383_v40 = vmul.f32 %v7943_v4, %v7382_v17  ;;  %vm13627_vm15 = vmor %vm7385_vm13, %vm7386_vm3  ;;  %vm7339_vm13 = vcmp.lt.f32.partialorder %v13329_v58, 0.0  ;;  %v7099_v13 = vsub.f32 0.0, %v13570_v29 }
 0x52c   :  { %v7282_v24 = vsub.f32 3.1415927, %v7280_v2  ;;  %v7333_v33 = vmul.f32 %v7332_v48, %v13488_v11  ;;  %v7222_v7 = vsel %vm7220_vm2, %v7221_v14, %v7219_v3  ;;  %v7444_v25 = vmul.f32 %v7945_v20, %v7443_v63 }
 0x52d   :  { %v7226_v28 = vsel %vm6833_vm1, %v7224_v32, %v7222_v7  ;;  %v7384_v34 = vadd.f32 %v7943_v4, %v7383_v40  ;;  %v7351_v5 = vsel %vm7339_vm13, 2.3561945, %v14471_v16  ;;  %v13687_v17 = vmul.f32 0.63661975, %v6903_v56 }
 0x52e   :  { %v7283_v51 = vsel %vm7220_vm2, %v7282_v24, %v7280_v2  ;;  %v7334_v21 = vmul.f32 %v7333_v33, %v13481_v30  ;;  %v7230_v11 = vsel %vm13609_vm12, nan, %v7226_v28  ;;  %vm13636_vm2 = vmor %vm7446_vm6, %vm7447_vm9  ;;  %v7445_v42 = vadd.f32 %v7945_v20, %v7444_v25 }
 0x52f   :  { %v7289_v10 = vsel %vm7227_vm11, nan, %v7283_v51  ;;  %v7236_v62 = vsel %vm13492_vm14, %v7232_v45, %v7230_v11  ;;  %vm7451_vm11 = vcmp.eq.f32.partialorder %v7450_v39, 8.507059e+37  ;;  %vm7342_vm14 = vcmp.lt.s32.totalorder %v13329_v58, 0 }
 0x530   :  { %v7293_v32 = vand.u32 2147483647, %v7289_v10  ;;  %v7335_v60 = vadd.f32 %v7334_v21, %v13481_v30  ;;  %v7237_v23 = vand.u32 2147483647, %v7236_v62  ;;  %v7388_v30 = vsel %vm13627_vm15, %v7943_v4, %v7384_v34 }
 0x531   :  { %v7393_v18 = vsel %vm13590_vm0, %v7392_v9, %v7388_v30  ;;  %v7449_v45 = vsel %vm13636_vm2, %v7945_v20, %v7445_v42  ;;  %v7343_v4 = vsel %vm7342_vm14, 3.1415927, %v14470_v41  ;;  %vm7344_vm6 = vcmp.eq.f32.partialorder %v13334_v1, 0.0 }
 0x532   :  { %v7337_v3 = vsub.f32 1.5707964, %v7335_v60  ;;  %v7294_v22 = vor.u32 -0.0, %v7293_v32  ;;  %v7239_v48 = vor.u32 %v7237_v23, %v13520_v31  ;;  %v13654_v12 = vmul.f32 %v7393_v18, %v7378_v27 }
 0x533   :  { %v7454_v39 = vsel %vm7451_vm11, %v7453_v55, %v7449_v45  ;;  %v7044_v20 = vsub.f32 0.0, %v13562_v0  ;;  %v7357_v33 = vand.u32 2147483648, %v13334_v1  ;;  %v13693_v28 = vmul.f32 0.63661975, %v7099_v13 }
 0x534   :  { %v7338_v35 = vsel %vm7336_vm5, %v7337_v3, %v7335_v60  ;;  %v13658_v2 = vmul.f32 %v7454_v39, %v7439_v38  ;;  %v13665_v61 = vmul.f32 %v13654_v12, %v13654_v12  ;;  %v7240_v0 = vsub.f32 0.0, %v7239_v48 }
 0x535   :  { %v7340_v14 = vsub.f32 3.1415927, %v7338_v35  ;;  %v7295_v29 = vsub.f32 0.0, %v7294_v22  ;;  %v13689_v7 = vmul.f32 0.63661975, %v7044_v20  ;;  %vm7419_vm5 = vcmp.lt.s32.totalorder %v13533_v50, 0 }
 0x536   :  { %v13676_v43 = vmul.f32 %v13658_v2, %v13658_v2  ;;  %v7396_v24 = vmul.f32 0.002785687, %v13665_v61  ;;  %v13695_v51 = vmul.f32 0.31830987, %v7162_v37  ;;  %v13697_v49 = vmul.f32 0.63661975, %v7240_v0 }
 0x537   :  { %v7341_v27 = vsel %vm7339_vm13, %v7340_v14, %v7338_v35  ;;  %v13699_v21 = vmul.f32 0.63661975, %v7295_v29  ;;  %vm7505_vm0 = vcmp.eq.f32.partialorder %v13545_v46, %v13548_v6  ;;  %v13713_v25 = vsel %vm7419_vm5, 3.1415927, %v14470_v41 }
 0x538   :  { %v7345_v54 = vsel %vm7344_vm6, %v7343_v4, %v7341_v27  ;;  %v7457_v58 = vmul.f32 0.002785687, %v13676_v43  ;;  %v7397_v63 = vadd.f32 -0.015866, %v7396_v24  ;;  %vm7429_vm12 = vcmp.eq.s32.totalorder %v13542_v36, inf }
 0x539   :  { %v7349_v8 = vsel %vm13511_vm7, nan, %v7345_v54  ;;  %vm7416_vm7 = vcmp.lt.f32.partialorder %v13533_v50, 0.0  ;;  %vm7493_vm3 = vcmp.lt.f32.partialorder %v13548_v6, %v13545_v46  ;;  %vm7496_vm9 = vcmp.lt.f32.partialorder %v13695_v51, %v13545_v46  ;;  %vm13728_vm15 = vmand %vm7429_vm12, %vm6842_vm10 }
 0x53a   :  { %v7355_v9 = vsel %vm13523_vm4, %v7351_v5, %v7349_v8  ;;  %v7458_v19 = vadd.f32 -0.015866, %v7457_v58  ;;  %v7398_v1 = vmul.f32 %v7397_v63, %v13665_v61  ;;  %vm7502_vm4 = vcmp.lt.f32.partialorder %v13545_v46, %v13548_v6 }
 0x53b   :  { %v7356_v52 = vand.u32 2147483647, %v7355_v9  ;;  %v7503_v10 = vsel %vm7502_vm4, 1.0, %v14470_v41  ;;  %v13724_v32 = vsel %vm7416_vm7, 2.3561945, %v14471_v16  ;;  %v7494_v59 = vsel %vm7493_vm3, 1.0, %v14470_v41 }
 0x53c   :  { %v7459_v11 = vmul.f32 %v7458_v19, %v13676_v43  ;;  %v7399_v26 = vadd.f32 0.04247222, %v7398_v1  ;;  %v7497_v23 = vsel %vm7496_vm9, 1.0, %v14470_v41  ;;  %v7506_v16 = vsel %vm7505_vm0, 1.0, %v14470_v41 }
 0x53d   :  { %v7358_v40 = vor.u32 %v7357_v33, %v7356_v52  ;;  %v7498_v42 = vadd.f32 %v7497_v23, %v7494_v59  ;;  %v7507_v30 = vadd.f32 %v7506_v16, %v7503_v10  ;;  %vm7508_vm10 = vcmp.lt.f32.partialorder %v13695_v51, %v13548_v6 }
 0x53e   :  { %v7460_v55 = vadd.f32 0.04247222, %v7459_v11  ;;  %v7400_v62 = vmul.f32 %v7399_v26, %v13665_v61  ;;  %v7509_v45 = vsel %vm7508_vm10, 1.0, %v14470_v41  ;;  %vm7514_vm14 = vcmp.lt.f32.partialorder %v13545_v46, %v13695_v51 }
 0x53f   :  { %v13710_v44 = vmul.f32 0.31830987, %v7358_v40  ;;  %v7510_v35 = vadd.f32 %v7509_v45, %v7507_v30  ;;  %v7515_v4 = vsel %vm7514_vm14, 1.0, %v14470_v41  ;;  %vm7517_vm13 = vcmp.eq.f32.partialorder %v13545_v46, %v13695_v51 }
 0x540   :  { %v7461_v34 = vmul.f32 %v7460_v55, %v13676_v43  ;;  %v7401_v38 = vadd.f32 -0.074975304, %v7400_v62  ;;  %vm7520_vm6 = vcmp.lt.f32.partialorder %v13548_v6, %v13695_v51  ;;  %v7518_v13 = vsel %vm7517_vm13, 1.0, %v14470_v41 }
 0x541   :  { %vm7499_vm2 = vcmp.lt.f32.partialorder %v13710_v44, %v13545_v46  ;;  %vm7511_vm11 = vcmp.lt.f32.partialorder %v13710_v44, %v13548_v6  ;;  %v7521_v37 = vsel %vm7520_vm6, 1.0, %v14470_v41  ;;  %v7519_v5 = vadd.f32 %v7518_v13, %v7515_v4 }
 0x542   :  { %v7462_v53 = vadd.f32 -0.074975304, %v7461_v34  ;;  %v7500_v3 = vsel %vm7499_vm2, 1.0, %v14470_v41  ;;  %v7402_v22 = vmul.f32 %v7401_v38, %v13665_v61  ;;  %v7512_v39 = vsel %vm7511_vm11, 1.0, %v14470_v41 }
 0x543   :  { %v13745_v18 = vadd.f32 %v7500_v3, %v7498_v42  ;;  %v13759_v20 = vadd.f32 %v7512_v39, %v7510_v35  ;;  %vm7523_vm4 = vcmp.eq.f32.partialorder %v13548_v6, %v13695_v51  ;;  %vm7526_vm5 = vcmp.lt.f32.partialorder %v13710_v44, %v13695_v51 }
 0x544   :  { %v7463_v48 = vmul.f32 %v7462_v53, %v13676_v43  ;;  %v7403_v14 = vadd.f32 0.1064488, %v7402_v22  ;;  %v7524_v29 = vsel %vm7523_vm4, 1.0, %v14470_v41  ;;  %v7527_v54 = vsel %vm7526_vm5, 1.0, %v14470_v41 }
 0x545   :  { %vm7529_vm0 = vcmp.lt.f32.partialorder %v13545_v46, %v13710_v44  ;;  %v7522_v8 = vadd.f32 %v7521_v37, %v7519_v5  ;;  %vm7532_vm12 = vcmp.eq.f32.partialorder %v13545_v46, %v13710_v44  ;;  %vm7535_vm3 = vcmp.lt.f32.partialorder %v13548_v6, %v13710_v44 }
 0x546   :  { %v7464_v56 = vadd.f32 0.1064488, %v7463_v48  ;;  %v7404_v27 = vmul.f32 %v7403_v14, %v13665_v61  ;;  %v7530_v33 = vsel %vm7529_vm0, 1.0, %v14470_v41  ;;  %v7533_v9 = vsel %vm7532_vm12, 1.0, %v14470_v41 }
 0x547   :  { %vm7538_vm9 = vcmp.eq.f32.partialorder %v13548_v6, %v13710_v44  ;;  %v7525_v52 = vadd.f32 %v7524_v29, %v7522_v8  ;;  %v7534_v19 = vadd.f32 %v7533_v9, %v7530_v33  ;;  %v7536_v1 = vsel %vm7535_vm3, 1.0, %v14470_v41 }
 0x548   :  { %v7465_v0 = vmul.f32 %v7464_v56, %v13676_v43  ;;  %v7405_v24 = vadd.f32 -0.14207031, %v7404_v27  ;;  %v7539_v11 = vsel %vm7538_vm9, 1.0, %v14470_v41  ;;  %vm7541_vm2 = vcmp.lt.f32.partialorder %v13695_v51, %v13710_v44 }
 0x549   :  { %vm7544_vm10 = vcmp.eq.f32.partialorder %v13695_v51, %v13710_v44  ;;  %v13789_v10 = vadd.f32 %v7527_v54, %v7525_v52  ;;  %v7537_v55 = vadd.f32 %v7536_v1, %v7534_v19  ;;  %v7542_v62 = vsel %vm7541_vm2, 1.0, %v14470_v41 }
 0x54a   :  { %v7466_v58 = vadd.f32 -0.14207031, %v7465_v0  ;;  %v7406_v63 = vmul.f32 %v7405_v24, %v13665_v61  ;;  %v7545_v59 = vsel %vm7544_vm10, 1.0, %v14470_v41  ;;  %vm7547_vm11 = vcmp.eq.f32.partialorder %v13745_v18, 0.0 }
 0x54b   :  { %vm7555_vm14 = vcmp.eq.f32.partialorder %v13759_v20, 0.0  ;;  %v7540_v38 = vadd.f32 %v7539_v11, %v7537_v55  ;;  %v7548_v42 = vsel %vm7547_vm11, 1.0, %v14470_v41  ;;  %vm7413_vm13 = vcmp.gt.f32.partialorder %v12879_v57, %v13542_v36 }
 0x54c   :  { %v7467_v40 = vmul.f32 %v7466_v58, %v13676_v43  ;;  %v7407_v26 = vadd.f32 0.19993454, %v7406_v63  ;;  %v7556_v16 = vsel %vm7555_vm14, 1.0, %v14470_v41  ;;  %v7549_v3 = vmul.f32 %v7548_v42, %v13545_v46 }
 0x54d   :  { %v7551_v30 = vmul.f32 %v7548_v42, %v13681_v47  ;;  %v7553_v22 = vmul.f32 %v7548_v42, %v13687_v17  ;;  %vm7830_vm6 = vcmp.lt.f32.partialorder %v13542_v36, 1.6  ;;  %v7543_v48 = vadd.f32 %v7542_v62, %v7540_v38 }
 0x54e   :  { %v7468_v34 = vadd.f32 0.19993454, %v7467_v40  ;;  %v7408_v23 = vmul.f32 %v7407_v26, %v13665_v61  ;;  %v7557_v35 = vmul.f32 %v7556_v16, %v13548_v6  ;;  %v7559_v39 = vmul.f32 %v7556_v16, %v13689_v7 }
 0x54f   :  { %vm7423_vm4 = vcmp.ne.f32.partialorder %v13533_v50, %v13533_v50  ;;  %v7561_v4 = vmul.f32 %v7556_v16, %v13693_v28  ;;  %vm7563_vm5 = vcmp.eq.f32.partialorder %v13789_v10, 0.0  ;;  %vm7586_vm0 = vcmp.eq.f32.partialorder %v13745_v18, 1.0 }
 0x550   :  { %v7469_v53 = vmul.f32 %v7468_v34, %v13676_v43  ;;  %v7409_v45 = vadd.f32 -0.33333147, %v7408_v23  ;;  %v13813_v13 = vadd.f32 %v7545_v59, %v7543_v48  ;;  %v7558_v37 = vadd.f32 %v7557_v35, %v7549_v3  ;;  %vm13857_vm10 = vmor %vm7423_vm4, %vm6836_vm8 }
 0x551   :  { %v7560_v27 = vadd.f32 %v7559_v39, %v7551_v30  ;;  %v7562_v0 = vadd.f32 %v7561_v4, %v7553_v22  ;;  %v7564_v29 = vsel %vm7563_vm5, 1.0, %v14470_v41  ;;  %v7587_v54 = vsel %vm7586_vm0, 1.0, %v14470_v41 }
 0x552   :  { %v7470_v14 = vadd.f32 -0.33333147, %v7469_v53  ;;  %v7410_v56 = vmul.f32 %v7409_v45, %v13665_v61  ;;  %v7565_v8 = vmul.f32 %v7564_v29, %v13695_v51  ;;  %v7567_v33 = vmul.f32 %v7564_v29, %v13697_v49 }
 0x553   :  { %v7569_v58 = vmul.f32 %v7564_v29, %v13699_v21  ;;  %vm7571_vm12 = vcmp.eq.f32.partialorder %v13813_v13, 0.0  ;;  %v7588_v9 = vmul.f32 %v7587_v54, %v13545_v46  ;;  %v7592_v26 = vmul.f32 %v7587_v54, %v13687_v17 }
 0x554   :  { %v7471_v5 = vmul.f32 %v7470_v14, %v13676_v43  ;;  %v7411_v24 = vmul.f32 %v7410_v56, %v13654_v12  ;;  %v7590_v43 = vmul.f32 %v7587_v54, %v13681_v47  ;;  %v7566_v52 = vadd.f32 %v7565_v8, %v7558_v37 }
 0x555   :  { %v13827_v19 = vadd.f32 %v7567_v33, %v7560_v27  ;;  %v13829_v1 = vadd.f32 %v7569_v58, %v7562_v0  ;;  %v13833_v11 = vsel %vm7571_vm12, 1.0, %v14470_v41  ;;  %vm7594_vm3 = vcmp.eq.f32.partialorder %v13759_v20, 1.0 }
 0x556   :  { %v7472_v61 = vmul.f32 %v7471_v5, %v13658_v2  ;;  %v7412_v63 = vadd.f32 %v7411_v24, %v13654_v12  ;;  %v7573_v62 = vmul.f32 %v13833_v11, %v13710_v44  ;;  %v7595_v12 = vsel %vm7594_vm3, 1.0, %v14470_v41 }
 0x557   :  { %vm7602_vm9 = vcmp.eq.f32.partialorder %v13789_v10, 1.0  ;;  %v7596_v59 = vmul.f32 %v7595_v12, %v13548_v6  ;;  %v7600_v23 = vmul.f32 %v7595_v12, %v13693_v28  ;;  %vm7610_vm2 = vcmp.eq.f32.partialorder %v13813_v13, 1.0 }
 0x558   :  { %v7473_v40 = vadd.f32 %v7472_v61, %v13658_v2  ;;  %v7414_v55 = vsub.f32 1.5707964, %v7412_v63  ;;  %v7598_v2 = vmul.f32 %v7595_v12, %v13689_v7  ;;  %v7574_v42 = vadd.f32 %v7573_v62, %v7566_v52 }
 0x559   :  { %v7603_v16 = vsel %vm7602_vm9, 1.0, %v14470_v41  ;;  %v7597_v30 = vadd.f32 %v7596_v59, %v7588_v9  ;;  %v7601_v48 = vadd.f32 %v7600_v23, %v7592_v26  ;;  %v7611_v4 = vsel %vm7610_vm2, 1.0, %v14470_v41 }
 0x55a   :  { %v7475_v34 = vsub.f32 1.5707964, %v7473_v40  ;;  %v7415_v38 = vsel %vm7413_vm13, %v7414_v55, %v7412_v63  ;;  %v7599_v22 = vadd.f32 %v7598_v2, %v7590_v43  ;;  %7579 = vst [vmem:[#allocation5] sm:$0xff] %v7574_v42  ;;  %v7604_v35 = vmul.f32 %v7603_v16, %v13695_v51 }
 0x55b   :  { %v7417_v53 = vsub.f32 3.1415927, %v7415_v38  ;;  %v7606_v36 = vmul.f32 %v7603_v16, %v13697_v49  ;;  %7583 = vst [vmem:[#allocation5 + $0x40] sm:$0xff] %v7574_v42  ;;  %v7608_v14 = vmul.f32 %v7603_v16, %v13699_v21  ;;  %vm7626_vm8 = vcmp.eq.f32.partialorder %v13745_v18, 2.0 }
 0x55c   :  { %v7476_v3 = vsel %vm7830_vm6, %v7475_v34, %v7473_v40  ;;  %v7605_v27 = vadd.f32 %v7604_v35, %v7597_v30  ;;  %v7612_v24 = vmul.f32 %v7611_v4, %v13710_v44  ;;  %v7627_v8 = vsel %vm7626_vm8, 1.0, %v14470_v41 }
 0x55d   :  { %v7478_v45 = vsub.f32 3.1415927, %v7476_v3  ;;  %v7418_v39 = vsel %vm7416_vm7, %v7417_v53, %v7415_v38  ;;  %v7607_v5 = vadd.f32 %v7606_v36, %v7599_v22  ;;  %v7609_v54 = vadd.f32 %v7608_v14, %v7601_v48 }
 0x55e   :  { %v7422_v56 = vsel %vm6833_vm1, %v13713_v25, %v7418_v39  ;;  %vm7634_vm1 = vcmp.eq.f32.partialorder %v13759_v20, 2.0  ;;  %v7613_v58 = vadd.f32 %v7612_v24, %v7605_v27  ;;  %v7628_v61 = vmul.f32 %v7627_v8, %v13545_v46 }
 0x55f   :  { %v7479_v37 = vsel %vm7416_vm7, %v7478_v45, %v7476_v3  ;;  %v7426_v0 = vsel %vm13857_vm10, nan, %v7422_v56  ;;  %v7630_v9 = vmul.f32 %v7627_v8, %v13681_v47  ;;  %v7632_v43 = vmul.f32 %v7627_v8, %v13687_v17 }
 0x560   :  { %v7485_v29 = vsel %vm7423_vm4, nan, %v7479_v37  ;;  %v7432_v15 = vsel %vm13728_vm15, %v13724_v32, %v7426_v0  ;;  %v7635_v63 = vsel %vm7634_vm1, 1.0, %v14470_v41  ;;  %vm7642_vm7 = vcmp.eq.f32.partialorder %v13789_v10, 2.0  ;;  %7619 = vst [vmem:[#allocation5 + $0x10] sm:$0xff] %v7613_v58 }
 0x561   :  { %v7489_v25 = vand.u32 2147483647, %v7485_v29  ;;  %v7433_v33 = vand.u32 2147483647, %v7432_v15  ;;  %v7636_v60 = vmul.f32 %v7635_v63, %v13548_v6  ;;  %v7638_v52 = vmul.f32 %v7635_v63, %v13689_v7  ;;  %7623 = vst [vmem:[#allocation5 + $0x50] sm:$0xff] %v7613_v58 }
 0x562   :  { %v7640_v40 = vmul.f32 %v7635_v63, %v13693_v28  ;;  %v7643_v55 = vsel %vm7642_vm7, 1.0, %v14470_v41  ;;  %vm7650_vm15 = vcmp.eq.f32.partialorder %v13813_v13, 2.0  ;;  %vm7666_vm11 = vcmp.eq.f32.partialorder %v13745_v18, 3.0 }
 0x563   :  { %v7490_v50 = vor.u32 -0.0, %v7489_v25  ;;  %v7435_v32 = vor.u32 %v7433_v33, %v13520_v31  ;;  %v7637_v12 = vadd.f32 %v7636_v60, %v7628_v61  ;;  %v7639_v34 = vadd.f32 %v7638_v52, %v7630_v9 }
 0x564   :  { %v7641_v59 = vadd.f32 %v7640_v40, %v7632_v43  ;;  %v7644_v2 = vmul.f32 %v7643_v55, %v13695_v51  ;;  %v7646_v23 = vmul.f32 %v7643_v55, %v13697_v49  ;;  %v7648_v38 = vmul.f32 %v7643_v55, %v13699_v21 }
 0x565   :  { %v7491_v26 = vsub.f32 0.0, %v7490_v50  ;;  %v7436_v62 = vsub.f32 0.0, %v7435_v32  ;;  %v7651_v16 = vsel %vm7650_vm15, 1.0, %v14470_v41  ;;  %v7667_v53 = vsel %vm7666_vm11, 1.0, %v14470_v41 }
 0x566   :  { %vm7674_vm14 = vcmp.eq.f32.partialorder %v13759_v20, 3.0  ;;  %v7645_v30 = vadd.f32 %v7644_v2, %v7637_v12  ;;  %v7647_v22 = vadd.f32 %v7646_v23, %v7639_v34  ;;  %v7649_v48 = vadd.f32 %v7648_v38, %v7641_v59 }
 0x567   :  { %v7492_v31 = vmul.f32 0.63661975, %v7491_v26  ;;  %v7437_v42 = vmul.f32 0.63661975, %v7436_v62  ;;  %v7652_v35 = vmul.f32 %v7651_v16, %v13710_v44  ;;  %v7668_v29 = vmul.f32 %v7667_v53, %v13545_v46 }
 0x568   :  { %vm7682_vm13 = vcmp.eq.f32.partialorder %v13789_v10, 3.0  ;;  %vm7690_vm6 = vcmp.eq.f32.partialorder %v13813_v13, 3.0 }
 0x569   :  { %v7577_v18 = vmul.f32 %v13833_v11, %v7492_v31  ;;  %v7616_v3 = vmul.f32 %v7611_v4, %v7492_v31  ;;  %v7575_v57 = vmul.f32 %v13833_v11, %v7437_v42  ;;  %v7614_v45 = vmul.f32 %v7611_v4, %v7437_v42 }
 0x56a   :  { %v7654_v14 = vmul.f32 %v7651_v16, %v7437_v42  ;;  %v7656_v56 = vmul.f32 %v7651_v16, %v7492_v31  ;;  %v7653_v0 = vadd.f32 %v7652_v35, %v7645_v30  ;;  %v7670_v11 = vmul.f32 %v7667_v53, %v13681_v47 }
 0x56b   :  { %v7578_v36 = vadd.f32 %v7577_v18, %v13829_v1  ;;  %v7617_v39 = vadd.f32 %v7616_v3, %v7609_v54  ;;  %v7576_v37 = vadd.f32 %v7575_v57, %v13827_v19  ;;  %v7615_v27 = vadd.f32 %v7614_v45, %v7607_v5 }
 0x56c   :  { %v7655_v24 = vadd.f32 %v7654_v14, %v7647_v22  ;;  %v7657_v15 = vadd.f32 %v7656_v56, %v7649_v48  ;;  %v7672_v4 = vmul.f32 %v7667_v53, %v13687_v17  ;;  %v7675_v1 = vsel %vm7674_vm14, 1.0, %v14470_v41  ;;  %7659 = vst [vmem:[#allocation5 + $0x20] sm:$0xff] %v7653_v0 }
 0x56d   :  { %7585 = vst [vmem:[#allocation5 + $0x48] sm:$0xff] %v7578_v36  ;;  %v7676_v19 = vmul.f32 %v7675_v1, %v13548_v6  ;;  %v7678_v46 = vmul.f32 %v7675_v1, %v13689_v7  ;;  %v7680_v5 = vmul.f32 %v7675_v1, %v13693_v28  ;;  %v7683_v47 = vsel %vm7682_vm13, 1.0, %v14470_v41 }
 0x56e   :  { %7581 = vst [vmem:[#allocation5 + $0x8] sm:$0xff] %v7576_v37  ;;  %v7684_v17 = vmul.f32 %v7683_v47, %v13695_v51  ;;  %v7686_v54 = vmul.f32 %v7683_v47, %v13697_v49  ;;  %v7688_v20 = vmul.f32 %v7683_v47, %v13699_v21  ;;  %v7691_v10 = vsel %vm7690_vm6, 1.0, %v14470_v41 }
 0x56f   :  { %7621 = vst [vmem:[#allocation5 + $0x18] sm:$0xff] %v7615_v27  ;;  %v7677_v13 = vadd.f32 %v7676_v19, %v7668_v29  ;;  %v7679_v25 = vadd.f32 %v7678_v46, %v7670_v11  ;;  %v7681_v8 = vadd.f32 %v7680_v5, %v7672_v4  ;;  %v7692_v6 = vmul.f32 %v7691_v10, %v13710_v44 }
 0x570   :  { %7625 = vst [vmem:[#allocation5 + $0x58] sm:$0xff] %v7617_v39  ;;  %v7694_v7 = vmul.f32 %v7691_v10, %v7437_v42  ;;  %v7696_v28 = vmul.f32 %v7691_v10, %v7492_v31 }
 0x571   :  { %7661 = vst [vmem:[#allocation5 + $0x28] sm:$0xff] %v7655_v24  ;;  %v7685_v33 = vadd.f32 %v7684_v17, %v7677_v13  ;;  %v7687_v58 = vadd.f32 %v7686_v54, %v7679_v25  ;;  %v7689_v61 = vadd.f32 %v7688_v20, %v7681_v8 }
 0x572   :  { %7663 = vst [vmem:[#allocation5 + $0x60] sm:$0xff] %v7653_v0 }
 0x573   :  { %7665 = vst [vmem:[#allocation5 + $0x68] sm:$0xff] %v7657_v15  ;;  %v7693_v51 = vadd.f32 %v7692_v6, %v7685_v33  ;;  %v7695_v49 = vadd.f32 %v7694_v7, %v7687_v58  ;;  %v7697_v9 = vadd.f32 %v7696_v28, %v7689_v61 }
 0x575   :  { %7699 = vst [vmem:[#allocation5 + $0x30] sm:$0xff] %v7693_v51 }
 0x576   :  { %7701 = vst [vmem:[#allocation5 + $0x38] sm:$0xff] %v7695_v49 }
 0x577   :  { %7703 = vst [vmem:[#allocation5 + $0x70] sm:$0xff] %v7693_v51 }
 0x578   :  { %7705 = vst [vmem:[#allocation5 + $0x78] sm:$0xff] %v7697_v9 }
 0x579   :  { %7718 = dma.vmem_to_hbm [thread:$0]  %s7711_s13, 2048, %s7713_s16, [#allocation4], %s7999_s11, %s7999_s11, %s8000_s12  }
 0x57a   :  { %7996 = dma.done.wait [#allocation4], 2048  }
 0x57b   :  { %7997 = vsyncadd [#allocation4], 4294965248 }
 0x57c   :  { %7723 = vsyncpa [#allocation3], 1 }
 0x57d   :  { %7724 = vsyncpa [#allocation4], 1 }

</bundles_post_ra>
